<compile_context>
chip_gen: v7x
topology: tpu7x:2x2x1
jax: 0.10.0
libtpu: 0.0.40
codegen_flags: <defaults>
</compile_context>

<pallas_src>
import math
from functools import partial

import jax
import jax.numpy as jnp
import numpy as np
from jax.experimental import pallas as pl
from jax.experimental.pallas import tpu as pltpu

NUM_HEADS = 4
LANES = 128            # channel dim padded to one full vreg lane width inside the kernel

# Row layout of the packed (VEC_ROWS, LANES) vector slab.
ROW_LN1_W, ROW_LN1_B = 0, 1
ROW_LN2_W, ROW_LN2_B = 2, 3
ROW_B2 = 4
ROW_HMASK = 8                      # rows 8 .. 8+NUM_HEADS-1  (8-aligned)
VEC_ROWS = 16


def _layernorm_lanepadded(x, w, b, c_real, eps=1e-5):
    # x, w have zeros in the padded lanes, so full-lane-width reductions equal
    # reductions over the real channels (one-pass variance).  b may carry a 1.0
    # in the "ones lane" (bias folding); that lane does not enter the stats.
    inv_c = np.float32(1.0 / c_real)
    mu = jnp.sum(x, axis=-1, keepdims=True) * inv_c
    var = jnp.sum(x * x, axis=-1, keepdims=True) * inv_c - mu * mu
    return (x - mu) * jax.lax.rsqrt(var + eps) * w + b


def _gelu_exact(x):
    # PyTorch nn.GELU() default (exact erf form).
    return 0.5 * x * (1.0 + jax.lax.erf(x * np.float32(1.0 / math.sqrt(2.0))))


def self_attention_kernel(x_ref, w_ref, vec_ref, o_ref, *, num_heads):
    _, C, N = x_ref.shape                     # (1, C, N) block, one batch element
    Cp = w_ref.shape[0]

    # --- hoist LN weights / b2 / head mask once (no repeated ref reads) ---
    ln1_w = vec_ref[ROW_LN1_W:ROW_LN1_W + 1, :]
    ln1_b = vec_ref[ROW_LN1_B:ROW_LN1_B + 1, :]   # carries 1.0 in the ones lane
    ln2_w = vec_ref[ROW_LN2_W:ROW_LN2_W + 1, :]
    ln2_b = vec_ref[ROW_LN2_B:ROW_LN2_B + 1, :]   # carries 1.0 in the ones lane
    b2 = vec_ref[ROW_B2:ROW_B2 + 1, :]
    hmask = vec_ref[ROW_HMASK:ROW_HMASK + num_heads, :]   # (nh, Cp) 0/1 per-head mask
    hmask3 = hmask[:, None, :]                             # (nh, 1, Cp)

    # --- (C, N) -> (N, Cp) transpose + zero-pad in ONE tiny MXU matmul ---
    # E[c, l] = 1 iff c == l  (C x Cp one-hot);  x[n, l] = x_cn[l, n] for l < C else 0.
    eye_cp = (jax.lax.broadcasted_iota(jnp.int32, (C, Cp), 0) ==
              jax.lax.broadcasted_iota(jnp.int32, (C, Cp), 1)).astype(jnp.float32)
    x = jax.lax.dot_general(x_ref[0], eye_cp, (((0,), (0,)), ((), ())),
                            preferred_element_type=jnp.float32)          # (N, Cp)

    # --- pre-LayerNorm (ones lane of x_ln == 1 via ln1_b -> QKV biases ride the MXU) ---
    x_ln = _layernorm_lanepadded(x, ln1_w, ln1_b, C)

    # --- fused QKV projection (one MXU matmul; scale & biases folded into the slab) ---
    wqkv = w_ref[:, 0:3 * Cp]                              # [Wq*s | Wk | Wv], pre-transposed
    qkv = jnp.dot(x_ln, wqkv, preferred_element_type=jnp.float32)
    q = qkv[:, 0:Cp]                                       # 1/sqrt(head_dim) & bq folded
    k = qkv[:, Cp:2 * Cp]
    v = qkv[:, 2 * Cp:3 * Cp]                              # v[:, ones_lane] == 1.0

    # --- all-head attention without per-head lane slicing (bf16 MXU, f32 accumulate) ---
    q_stacked = (q[None, :, :] * hmask3).reshape(num_heads * N, Cp)      # (nh*N, Cp)
    s = jax.lax.dot_general(q_stacked.astype(jnp.bfloat16), k.astype(jnp.bfloat16),
                            (((1,), (1,)), ((), ())),
                            preferred_element_type=jnp.float32)          # (nh*N, N)

    s = s - jnp.max(s, axis=-1, keepdims=True)
    p = jnp.exp(s)
    denom = jnp.sum(p, axis=-1, keepdims=True)
    r = pl.reciprocal(denom, approx=True)                  # EUP slot
    r = r * (2.0 - denom * r)                              # one Newton step -> ~f32 accuracy
    p = p * r

    # Contexts over the full padded width (bf16 MXU), masked merge back to (N, Cp).
    ctx = jnp.dot(p.astype(jnp.bfloat16), v.astype(jnp.bfloat16),
                  preferred_element_type=jnp.float32)                    # (nh*N, Cp)
    ctx_m = jnp.sum(ctx.reshape(num_heads, N, Cp) * hmask3, axis=0)      # (N, Cp)
    # head-0 mask carries the ones lane: ctx_m[:, ones_lane] == softmax row-sum == 1
    # so the output-projection bias bo rides the next matmul for free.

    # --- output projection (bo folded) + residual ---
    wo = w_ref[:, 3 * Cp:4 * Cp]
    attn_out = jnp.dot(ctx_m, wo, preferred_element_type=jnp.float32) + x

    # --- feed-forward block (LN -> Linear -> GELU -> Linear) + residual ---
    w1 = w_ref[:, 4 * Cp:5 * Cp]
    w2 = w_ref[:, 5 * Cp:6 * Cp]
    ff = _layernorm_lanepadded(attn_out, ln2_w, ln2_b, C)  # ones lane == 1 -> b1 folded
    ff = jnp.dot(ff, w1, preferred_element_type=jnp.float32)
    ff = _gelu_exact(ff)
    ff = jnp.dot(ff, w2, preferred_element_type=jnp.float32) + b2
    out = ff + attn_out                                                   # (N, Cp)

    # --- (N, Cp) -> (C, N) slice + transpose in ONE tiny MXU matmul; lane-dense store ---
    o_ref[0] = jax.lax.dot_general(eye_cp, out, (((1,), (1,)), ((), ())),
                                   preferred_element_type=jnp.float32).astype(o_ref.dtype)


def pack_params(params, C, num_heads, Cp=LANES):
    """Pack once at init: zero-pad to 128 lanes, fold scale + biases via a 'ones lane'."""
    assert C % num_heads == 0 and C + 1 <= Cp
    hd = C // num_heads
    q_scale = np.float32(1.0 / math.sqrt(hd))
    ones = C   # free padded lane that carries a constant 1.0

    def block(w_t, bias, scale=np.float32(1.0), v_ones=False):
        blk = np.zeros((Cp, Cp), np.float32)
        blk[:C, :C] = np.asarray(w_t, np.float32) * scale
        blk[ones, :C] = np.asarray(bias, np.float32).reshape(-1) * scale
        if v_ones:
            blk[ones, ones] = 1.0     # propagate the ones lane into V -> through softmax
        return blk

    w_slab = np.concatenate([
        block(params["wq_t"], params["bq"], scale=q_scale),
        block(params["wk_t"], params["bk"]),
        block(params["wv_t"], params["bv"], v_ones=True),
        block(params["wo_t"], params["bo"]),
        block(params["w1_t"], params["b1"]),
        block(params["w2_t"], np.zeros((C,), np.float32)),   # b2 stays an explicit add
    ], axis=1)                                               # (Cp, 6*Cp)

    def vec(v):
        row = np.zeros((Cp,), np.float32)
        row[:C] = np.asarray(v, np.float32).reshape(-1)
        return row

    rows = np.zeros((VEC_ROWS, Cp), np.float32)
    rows[ROW_LN1_W] = vec(params["ln1_w"])
    rows[ROW_LN1_B] = vec(params["ln1_b"]); rows[ROW_LN1_B, ones] = 1.0
    rows[ROW_LN2_W] = vec(params["ln2_w"])
    rows[ROW_LN2_B] = vec(params["ln2_b"]); rows[ROW_LN2_B, ones] = 1.0
    rows[ROW_B2] = vec(params["b2"])
    for h in range(num_heads):
        rows[ROW_HMASK + h, h * hd:(h + 1) * hd] = 1.0
    rows[ROW_HMASK, ones] = 1.0      # head 0 also merges the ones lane (-> bo folding)
    return jnp.asarray(w_slab), jnp.asarray(rows)


def self_attention_forward(x_nchw, w_slab, vec_slab, num_heads=NUM_HEADS):
    B, C, H, W = x_nchw.shape
    N = H * W
    Cp = LANES
    assert C % num_heads == 0 and C + 1 <= Cp

    # NCHW -> (B, C, N) is a contiguous (free) reshape; all relayout is in-kernel.
    x_bcn = x_nchw.reshape(B, C, N)

    out = pl.pallas_call(
        partial(self_attention_kernel, num_heads=num_heads),
        out_shape=jax.ShapeDtypeStruct((B, C, N), x_nchw.dtype),
        grid_spec=pltpu.PrefetchScalarGridSpec(
            num_scalar_prefetch=0,
            grid=(B,),
            in_specs=[
                pl.BlockSpec((1, C, N), lambda b: (b, 0, 0)),
                pl.BlockSpec((Cp, 6 * Cp), lambda b: (0, 0)),
                pl.BlockSpec((VEC_ROWS, Cp), lambda b: (0, 0)),
            ],
            out_specs=pl.BlockSpec((1, C, N), lambda b: (b, 0, 0)),
        ),
        compiler_params=pltpu.CompilerParams(
            dimension_semantics=("parallel",)),
    )(x_bcn, w_slab, vec_slab)

    return out.reshape(B, C, H, W)


def init_params(key, C):
    ks = jax.random.split(key, 12)
    f32 = jnp.float32
    s = 0.2
    ln1_w = 1.0 + 0.1 * jax.random.normal(ks[0], (1, C), f32)
    ln1_b = 0.1 * jax.random.normal(ks[1], (1, C), f32)
    in_proj_w = s * jax.random.normal(ks[2], (3 * C, C), f32)
    in_proj_b = 0.05 * jax.random.normal(ks[3], (3 * C,), f32)
    wq, wk, wv = in_proj_w[:C], in_proj_w[C:2 * C], in_proj_w[2 * C:]
    bq, bk, bv = in_proj_b[:C], in_proj_b[C:2 * C], in_proj_b[2 * C:]
    wo = s * jax.random.normal(ks[4], (C, C), f32)
    bo = 0.05 * jax.random.normal(ks[5], (C,), f32)
    ln2_w = 1.0 + 0.1 * jax.random.normal(ks[6], (1, C), f32)
    ln2_b = 0.1 * jax.random.normal(ks[7], (1, C), f32)
    w1 = s * jax.random.normal(ks[8], (C, C), f32)
    b1 = 0.05 * jax.random.normal(ks[9], (C,), f32)
    w2 = s * jax.random.normal(ks[10], (C, C), f32)
    b2 = 0.05 * jax.random.normal(ks[11], (C,), f32)
    # PyTorch Linear is y = x @ W.T + b -> pre-transpose weights.
    return {
        "ln1_w": ln1_w, "ln1_b": ln1_b,
        "wq_t": wq.T, "wk_t": wk.T, "wv_t": wv.T,
        "bq": bq.reshape(1, C), "bk": bk.reshape(1, C), "bv": bv.reshape(1, C),
        "wo_t": wo.T, "bo": bo.reshape(1, C),
        "ln2_w": ln2_w, "ln2_b": ln2_b,
        "w1_t": w1.T, "b1": b1.reshape(1, C),
        "w2_t": w2.T, "b2": b2.reshape(1, C),
    }


def _layernorm_ref(x, w, b, eps=1e-5):
    mu = jnp.mean(x, axis=-1, keepdims=True)
    var = jnp.mean((x - mu) ** 2, axis=-1, keepdims=True)
    return (x - mu) * jax.lax.rsqrt(var + eps) * w + b


def reference_forward(x_nchw, params, num_heads=NUM_HEADS):
    # Pure-JAX reference of the same forward pass (correctness check).
    B, C, H, W = x_nchw.shape
    N = H * W
    hd = C // num_heads
    x = jnp.transpose(x_nchw.reshape(B, C, N), (0, 2, 1))          # (B, N, C)
    x_ln = _layernorm_ref(x, params["ln1_w"], params["ln1_b"])
    q = x_ln @ params["wq_t"] + params["bq"]
    k = x_ln @ params["wk_t"] + params["bk"]
    v = x_ln @ params["wv_t"] + params["bv"]
    q = q.reshape(B, N, num_heads, hd).transpose(0, 2, 1, 3)
    k = k.reshape(B, N, num_heads, hd).transpose(0, 2, 1, 3)
    v = v.reshape(B, N, num_heads, hd).transpose(0, 2, 1, 3)
    s = jnp.einsum("bhqd,bhkd->bhqk", q, k) / math.sqrt(hd)
    p = jax.nn.softmax(s, axis=-1)
    a = jnp.einsum("bhqk,bhkd->bhqd", p, v).transpose(0, 2, 1, 3).reshape(B, N, C)
    a = a @ params["wo_t"] + params["bo"]
    a = a + x
    ff = _layernorm_ref(a, params["ln2_w"], params["ln2_b"])
    ff = ff @ params["w1_t"] + params["b1"]
    ff = _gelu_exact(ff)
    ff = ff @ params["w2_t"] + params["b2"]
    out = ff + a
    return jnp.transpose(out, (0, 2, 1)).reshape(B, C, H, W)


if __name__ == "__main__":
    B, C, H, W = 2, 8, 16, 16          # channels=8 -> head_dim=2 with 4 heads, N=256 tokens
    key = jax.random.PRNGKey(0)
    k_x, k_p = jax.random.split(key)
    x = jax.random.normal(k_x, (B, C, H, W), jnp.float32)
    params = init_params(k_p, C)

    # Pack the parameter slabs ONCE (hoisted out of the per-call path).
    w_slab, vec_slab = pack_params(params, C, NUM_HEADS)

    fwd = jax.jit(self_attention_forward)
    out = jax.block_until_ready(fwd(x, w_slab, vec_slab))
    ref = jax.block_until_ready(reference_forward(x, params))
    # Tolerance loosened (was 2e-4) because the two big attention matmuls now use
    # bf16 MXU inputs with f32 accumulation, per the performance review.
    np.testing.assert_allclose(np.asarray(out), np.asarray(ref),
                               rtol=1e-2, atol=2e-2)
    print("KERNEL_OK")
</pallas_src>

<mosaic_0001>
module attributes {stable_mosaic.version = 11 : i64} {
  func.func @self_attention_kernel(%arg0: i32, %arg1: memref<1x8x256xf32, #tpu.memory_space<vmem>>, %arg2: memref<128x768xf32, #tpu.memory_space<vmem>>, %arg3: memref<16x128xf32, #tpu.memory_space<vmem>>, %arg4: memref<1x8x256xf32, #tpu.memory_space<vmem>>) attributes {dimension_semantics = [#tpu.dimension_semantics<parallel>], iteration_bounds = array<i64: 2>, scalar_prefetch = 0 : i64, scratch_operands = 0 : i64, tpu.core_type = #tpu.core_type<tc>, window_params = [{transform_indices = @transform_0, window_bounds = array<i64: 1, 8, 256>}, {pipeline_mode = #tpu.pipeline_mode<synchronous>, transform_indices = @transform_1, window_bounds = array<i64: 128, 768>}, {pipeline_mode = #tpu.pipeline_mode<synchronous>, transform_indices = @transform_2, window_bounds = array<i64: 16, 128>}, {transform_indices = @transform_3, window_bounds = array<i64: 1, 8, 256>}]} {
    %c0 = arith.constant 0 : index
    %c0_0 = arith.constant 0 : index
    %0 = vector.load %arg3[%c0, %c0_0] : memref<16x128xf32, #tpu.memory_space<vmem>>, vector<1x128xf32>
    %c1 = arith.constant 1 : index
    %c0_1 = arith.constant 0 : index
    %1 = vector.load %arg3[%c1, %c0_1] : memref<16x128xf32, #tpu.memory_space<vmem>>, vector<1x128xf32>
    %c2 = arith.constant 2 : index
    %c0_2 = arith.constant 0 : index
    %2 = vector.load %arg3[%c2, %c0_2] : memref<16x128xf32, #tpu.memory_space<vmem>>, vector<1x128xf32>
    %c3 = arith.constant 3 : index
    %c0_3 = arith.constant 0 : index
    %3 = vector.load %arg3[%c3, %c0_3] : memref<16x128xf32, #tpu.memory_space<vmem>>, vector<1x128xf32>
    %c4 = arith.constant 4 : index
    %c0_4 = arith.constant 0 : index
    %4 = vector.load %arg3[%c4, %c0_4] : memref<16x128xf32, #tpu.memory_space<vmem>>, vector<1x128xf32>
    %c8 = arith.constant 8 : index
    %c0_5 = arith.constant 0 : index
    %5 = vector.load %arg3[%c8, %c0_5] : memref<16x128xf32, #tpu.memory_space<vmem>>, vector<4x128xf32>
    %6 = vector.shape_cast %5 : vector<4x128xf32> to vector<4x1x128xf32>
    %7 = tpu.iota {dimensions = array<i32: 0>} : vector<8x128xi32>
    %8 = tpu.iota {dimensions = array<i32: 1>} : vector<8x128xi32>
    %9 = arith.cmpi eq, %7, %8 : vector<8x128xi32>
    %10 = arith.extui %9 : vector<8x128xi1> to vector<8x128xi32>
    %11 = arith.sitofp %10 : vector<8x128xi32> to vector<8x128xf32>
    %c0_6 = arith.constant 0 : index
    %c0_7 = arith.constant 0 : index
    %c0_8 = arith.constant 0 : index
    %12 = vector.load %arg1[%c0_6, %c0_7, %c0_8] : memref<1x8x256xf32, #tpu.memory_space<vmem>>, vector<1x8x256xf32>
    %13 = vector.shape_cast %12 : vector<1x8x256xf32> to vector<8x256xf32>
    %cst = arith.constant dense<0.000000e+00> : vector<256x128xf32>
    %14 = tpu.matmul %13, %11, %cst {dimension_numbers = #tpu.dot_dimension_numbers<[0], [0], [1], [1], [0, 1, 1, 1], [], []>} : vector<8x256xf32>, vector<8x128xf32>, vector<256x128xf32> -> vector<256x128xf32>
    %cst_9 = arith.constant dense<0.000000e+00> : vector<256xf32>
    %15 = vector.multi_reduction <add>, %14, %cst_9 [1] : vector<256x128xf32> to vector<256xf32>
    %16 = vector.shape_cast %15 : vector<256xf32> to vector<256x1xf32>
    %cst_10 = arith.constant 1.250000e-01 : f32
    %17 = vector.broadcast %cst_10 : f32 to vector<256x1xf32>
    %18 = arith.mulf %16, %17 : vector<256x1xf32>
    %19 = arith.mulf %14, %14 : vector<256x128xf32>
    %cst_11 = arith.constant dense<0.000000e+00> : vector<256xf32>
    %20 = vector.multi_reduction <add>, %19, %cst_11 [1] : vector<256x128xf32> to vector<256xf32>
    %21 = vector.shape_cast %20 : vector<256xf32> to vector<256x1xf32>
    %cst_12 = arith.constant 1.250000e-01 : f32
    %22 = vector.broadcast %cst_12 : f32 to vector<256x1xf32>
    %23 = arith.mulf %21, %22 : vector<256x1xf32>
    %24 = arith.mulf %18, %18 : vector<256x1xf32>
    %25 = arith.subf %23, %24 : vector<256x1xf32>
    %26 = vector.broadcast %18 : vector<256x1xf32> to vector<256x128xf32>
    %27 = arith.subf %14, %26 : vector<256x128xf32>
    %cst_13 = arith.constant 9.99999974E-6 : f32
    %28 = vector.broadcast %cst_13 : f32 to vector<256x1xf32>
    %29 = arith.addf %25, %28 : vector<256x1xf32>
    %30 = math.rsqrt %29 : vector<256x1xf32>
    %31 = vector.broadcast %30 : vector<256x1xf32> to vector<256x128xf32>
    %32 = arith.mulf %27, %31 : vector<256x128xf32>
    %33 = vector.broadcast %0 : vector<1x128xf32> to vector<256x128xf32>
    %34 = arith.mulf %32, %33 : vector<256x128xf32>
    %35 = vector.broadcast %1 : vector<1x128xf32> to vector<256x128xf32>
    %36 = arith.addf %34, %35 : vector<256x128xf32>
    %c0_14 = arith.constant 0 : index
    %c0_15 = arith.constant 0 : index
    %37 = vector.load %arg2[%c0_14, %c0_15] : memref<128x768xf32, #tpu.memory_space<vmem>>, vector<128x384xf32>
    %cst_16 = arith.constant dense<0.000000e+00> : vector<256x384xf32>
    %38 = tpu.matmul %36, %37, %cst_16 {dimension_numbers = #tpu.dot_dimension_numbers<[1], [0], [0], [1], [0, 0, 1, 1], [], []>} : vector<256x128xf32>, vector<128x384xf32>, vector<256x384xf32> -> vector<256x384xf32>
    %39 = vector.extract_strided_slice %38 {offsets = [0, 0], sizes = [256, 128], strides = [1, 1]} : vector<256x384xf32> to vector<256x128xf32>
    %40 = vector.extract_strided_slice %38 {offsets = [0, 128], sizes = [256, 128], strides = [1, 1]} : vector<256x384xf32> to vector<256x128xf32>
    %41 = vector.extract_strided_slice %38 {offsets = [0, 256], sizes = [256, 128], strides = [1, 1]} : vector<256x384xf32> to vector<256x128xf32>
    %42 = vector.shape_cast %39 : vector<256x128xf32> to vector<1x256x128xf32>
    %43 = vector.broadcast %42 : vector<1x256x128xf32> to vector<4x256x128xf32>
    %44 = vector.broadcast %6 : vector<4x1x128xf32> to vector<4x256x128xf32>
    %45 = arith.mulf %43, %44 : vector<4x256x128xf32>
    %46 = vector.shape_cast %45 : vector<4x256x128xf32> to vector<1024x128xf32>
    %47 = arith.truncf %46 : vector<1024x128xf32> to vector<1024x128xbf16>
    %48 = arith.truncf %40 : vector<256x128xf32> to vector<256x128xbf16>
    %cst_17 = arith.constant dense<0.000000e+00> : vector<1024x256xf32>
    %49 = tpu.matmul %47, %48, %cst_17 {dimension_numbers = #tpu.dot_dimension_numbers<[1], [1], [0], [0], [0, 0, 1, 0], [], []>} : vector<1024x128xbf16>, vector<256x128xbf16>, vector<1024x256xf32> -> vector<1024x256xf32>
    %cst_18 = arith.constant dense<0xFF800000> : vector<1024xf32>
    %50 = vector.multi_reduction <maximumf>, %49, %cst_18 [1] : vector<1024x256xf32> to vector<1024xf32>
    %51 = vector.shape_cast %50 : vector<1024xf32> to vector<1024x1xf32>
    %52 = vector.broadcast %51 : vector<1024x1xf32> to vector<1024x256xf32>
    %53 = arith.subf %49, %52 : vector<1024x256xf32>
    %54 = math.exp %53 : vector<1024x256xf32>
    %cst_19 = arith.constant dense<0.000000e+00> : vector<1024xf32>
    %55 = vector.multi_reduction <add>, %54, %cst_19 [1] : vector<1024x256xf32> to vector<1024xf32>
    %56 = vector.shape_cast %55 : vector<1024xf32> to vector<1024x1xf32>
    %57 = tpu.reciprocal %56 {approx = true} : vector<1024x1xf32> -> vector<1024x1xf32>
    %58 = arith.mulf %56, %57 : vector<1024x1xf32>
    %cst_20 = arith.constant 2.000000e+00 : f32
    %59 = vector.broadcast %cst_20 : f32 to vector<1024x1xf32>
    %60 = arith.subf %59, %58 : vector<1024x1xf32>
    %61 = arith.mulf %57, %60 : vector<1024x1xf32>
    %62 = vector.broadcast %61 : vector<1024x1xf32> to vector<1024x256xf32>
    %63 = arith.mulf %54, %62 : vector<1024x256xf32>
    %64 = arith.truncf %63 : vector<1024x256xf32> to vector<1024x256xbf16>
    %65 = arith.truncf %41 : vector<256x128xf32> to vector<256x128xbf16>
    %cst_21 = arith.constant dense<0.000000e+00> : vector<1024x128xf32>
    %66 = tpu.matmul %64, %65, %cst_21 {dimension_numbers = #tpu.dot_dimension_numbers<[1], [0], [0], [1], [0, 0, 1, 1], [], []>} : vector<1024x256xbf16>, vector<256x128xbf16>, vector<1024x128xf32> -> vector<1024x128xf32>
    %67 = vector.shape_cast %66 : vector<1024x128xf32> to vector<4x256x128xf32>
    %68 = vector.broadcast %6 : vector<4x1x128xf32> to vector<4x256x128xf32>
    %69 = arith.mulf %67, %68 : vector<4x256x128xf32>
    %cst_22 = arith.constant dense<0.000000e+00> : vector<256x128xf32>
    %70 = vector.multi_reduction <add>, %69, %cst_22 [0] : vector<4x256x128xf32> to vector<256x128xf32>
    %c0_23 = arith.constant 0 : index
    %c384 = arith.constant 384 : index
    %71 = vector.load %arg2[%c0_23, %c384] : memref<128x768xf32, #tpu.memory_space<vmem>>, vector<128x128xf32>
    %cst_24 = arith.constant dense<0.000000e+00> : vector<256x128xf32>
    %72 = tpu.matmul %70, %71, %cst_24 {dimension_numbers = #tpu.dot_dimension_numbers<[1], [0], [0], [1], [0, 0, 1, 1], [], []>} : vector<256x128xf32>, vector<128x128xf32>, vector<256x128xf32> -> vector<256x128xf32>
    %73 = arith.addf %72, %14 : vector<256x128xf32>
    %c0_25 = arith.constant 0 : index
    %c512 = arith.constant 512 : index
    %74 = vector.load %arg2[%c0_25, %c512] : memref<128x768xf32, #tpu.memory_space<vmem>>, vector<128x128xf32>
    %c0_26 = arith.constant 0 : index
    %c640 = arith.constant 640 : index
    %75 = vector.load %arg2[%c0_26, %c640] : memref<128x768xf32, #tpu.memory_space<vmem>>, vector<128x128xf32>
    %cst_27 = arith.constant dense<0.000000e+00> : vector<256xf32>
    %76 = vector.multi_reduction <add>, %73, %cst_27 [1] : vector<256x128xf32> to vector<256xf32>
    %77 = vector.shape_cast %76 : vector<256xf32> to vector<256x1xf32>
    %cst_28 = arith.constant 1.250000e-01 : f32
    %78 = vector.broadcast %cst_28 : f32 to vector<256x1xf32>
    %79 = arith.mulf %77, %78 : vector<256x1xf32>
    %80 = arith.mulf %73, %73 : vector<256x128xf32>
    %cst_29 = arith.constant dense<0.000000e+00> : vector<256xf32>
    %81 = vector.multi_reduction <add>, %80, %cst_29 [1] : vector<256x128xf32> to vector<256xf32>
    %82 = vector.shape_cast %81 : vector<256xf32> to vector<256x1xf32>
    %cst_30 = arith.constant 1.250000e-01 : f32
    %83 = vector.broadcast %cst_30 : f32 to vector<256x1xf32>
    %84 = arith.mulf %82, %83 : vector<256x1xf32>
    %85 = arith.mulf %79, %79 : vector<256x1xf32>
    %86 = arith.subf %84, %85 : vector<256x1xf32>
    %87 = vector.broadcast %79 : vector<256x1xf32> to vector<256x128xf32>
    %88 = arith.subf %73, %87 : vector<256x128xf32>
    %cst_31 = arith.constant 9.99999974E-6 : f32
    %89 = vector.broadcast %cst_31 : f32 to vector<256x1xf32>
    %90 = arith.addf %86, %89 : vector<256x1xf32>
    %91 = math.rsqrt %90 : vector<256x1xf32>
    %92 = vector.broadcast %91 : vector<256x1xf32> to vector<256x128xf32>
    %93 = arith.mulf %88, %92 : vector<256x128xf32>
    %94 = vector.broadcast %2 : vector<1x128xf32> to vector<256x128xf32>
    %95 = arith.mulf %93, %94 : vector<256x128xf32>
    %96 = vector.broadcast %3 : vector<1x128xf32> to vector<256x128xf32>
    %97 = arith.addf %95, %96 : vector<256x128xf32>
    %cst_32 = arith.constant dense<0.000000e+00> : vector<256x128xf32>
    %98 = tpu.matmul %97, %74, %cst_32 {dimension_numbers = #tpu.dot_dimension_numbers<[1], [0], [0], [1], [0, 0, 1, 1], [], []>} : vector<256x128xf32>, vector<128x128xf32>, vector<256x128xf32> -> vector<256x128xf32>
    %cst_33 = arith.constant 5.000000e-01 : f32
    %99 = vector.broadcast %cst_33 : f32 to vector<256x128xf32>
    %100 = arith.mulf %99, %98 : vector<256x128xf32>
    %cst_34 = arith.constant 0.707106769 : f32
    %101 = vector.broadcast %cst_34 : f32 to vector<256x128xf32>
    %102 = arith.mulf %98, %101 : vector<256x128xf32>
    %103 = math.erf %102 : vector<256x128xf32>
    %cst_35 = arith.constant 1.000000e+00 : f32
    %104 = vector.broadcast %cst_35 : f32 to vector<256x128xf32>
    %105 = arith.addf %104, %103 : vector<256x128xf32>
    %106 = arith.mulf %100, %105 : vector<256x128xf32>
    %cst_36 = arith.constant dense<0.000000e+00> : vector<256x128xf32>
    %107 = tpu.matmul %106, %75, %cst_36 {dimension_numbers = #tpu.dot_dimension_numbers<[1], [0], [0], [1], [0, 0, 1, 1], [], []>} : vector<256x128xf32>, vector<128x128xf32>, vector<256x128xf32> -> vector<256x128xf32>
    %108 = vector.broadcast %4 : vector<1x128xf32> to vector<256x128xf32>
    %109 = arith.addf %107, %108 : vector<256x128xf32>
    %110 = arith.addf %109, %73 : vector<256x128xf32>
    %cst_37 = arith.constant dense<0.000000e+00> : vector<8x256xf32>
    %111 = tpu.matmul %11, %110, %cst_37 {dimension_numbers = #tpu.dot_dimension_numbers<[1], [1], [0], [0], [0, 0, 1, 0], [], []>} : vector<8x128xf32>, vector<256x128xf32>, vector<8x256xf32> -> vector<8x256xf32>
    %c0_38 = arith.constant 0 : index
    %c0_39 = arith.constant 0 : index
    %c0_40 = arith.constant 0 : index
    %112 = vector.load %arg4[%c0_38, %c0_39, %c0_40] : memref<1x8x256xf32, #tpu.memory_space<vmem>>, vector<1x8x256xf32>
    %113 = vector.shape_cast %112 : vector<1x8x256xf32> to vector<8x256xf32>
    %114 = vector.shape_cast %111 : vector<8x256xf32> to vector<1x8x256xf32>
    tpu.vector_store %arg4[%c0_38, %c0_39, %c0_40], %114 {strides = array<i32>} : memref<1x8x256xf32, #tpu.memory_space<vmem>>, vector<1x8x256xf32>,
    return
  }
  func.func @transform_0(%arg0: i32) -> (i32, i32, i32) {
    %c0_i32 = arith.constant 0 : i32
    %c0_i32_0 = arith.constant 0 : i32
    %c0_i32_1 = arith.constant 0 : i32
    return %arg0, %c0_i32, %c0_i32_0 : i32, i32, i32
  }
  func.func @transform_1(%arg0: i32) -> (i32, i32) {
    %c0_i32 = arith.constant 0 : i32
    %c0_i32_0 = arith.constant 0 : i32
    %c0_i32_1 = arith.constant 0 : i32
    return %c0_i32, %c0_i32_0 : i32, i32
  }
  func.func @transform_2(%arg0: i32) -> (i32, i32) {
    %c0_i32 = arith.constant 0 : i32
    %c0_i32_0 = arith.constant 0 : i32
    %c0_i32_1 = arith.constant 0 : i32
    return %c0_i32, %c0_i32_0 : i32, i32
  }
  func.func @transform_3(%arg0: i32) -> (i32, i32, i32) {
    %c0_i32 = arith.constant 0 : i32
    %c0_i32_0 = arith.constant 0 : i32
    %c0_i32_1 = arith.constant 0 : i32
    return %arg0, %c0_i32, %c0_i32_0 : i32, i32, i32
  }
}

</mosaic_0001>

<bundles_post_ra>
// kernel: self_attention_forward.1
= control target key start
LH: loop header
LB: loop body
LE: loop exit
PB: predicated region body
PF: predicated region fallthrough
CT: control target
= control target key end

     0   :  { %8 = vsyncpa [#allocation3], 0  ;;  %s9371_s12 = smov 0   ;;  %s14022_s0 = inlined_call_operand.vmem [shape: f32[2,8,256], index: 0, kind: input, shape index: {}]   ;;  %s14023_s1 = inlined_call_operand.hbm [shape: f32[128,768], index: 1, kind: input, shape index: {}]   ;;  %s14024_s2 = inlined_call_operand.vmem [shape: f32[16,128], index: 2, kind: input, shape index: {}]   ;;  %s14025_s3 = inlined_call_operand.vmem [shape: f32[2,8,256], index: 3, kind: output, shape index: {}]  }
   0x1 LB: > { %s9377_s13 = sadd.s32 4294967295, %s9342_s12   ;;  %p7298_p0 = scmp.ge.s32.totalorder %s9342_s12, 1  ;;  %s9342_s12 = sphi %s9371_s12, %s14_s12  }
   0x2   : > { %p113_p1 = scmp.lt.s32.totalorder %s9342_s12, 3  ;;  %s9344_s14 = smov [#allocation2]  }
   0x3   : > { %s125_s15 = sshll.u32 %s9344_s14, 4  ;;  %p14026_p3 = scmp.eq.s32.totalorder %s9377_s13, 0  ;;  %s126_s15 = int_to_ptr.vmem [resolvable:$true] %s125_s15 }
   0x4   : > { %p9381_p2 = pnand %p7298_p0, %p113_p1  ;;  %s9304_s20 = scalar_lea.hbm %s14023_s1, 12288 }
   0x5   : > { %p9305_p6 = scmp.ne.s32.totalorder %s14023_s1, %s9304_s20  ;;  %p9311_p10 = scmp.lt.u32.totalorder %s9304_s20, %s14023_s1 }
   0x6   : > { %s14645_s16 = scalar_select %p9381_p2, 1, 0 }
   0x7   : > { %p8323_p4 = pneg %p9381_p2 }
   0x9   : > { %p9390_p5 = pnand %p14026_p3, %p8323_p4 }
   0xb   : > { %p9306_p7 = pneg %p9390_p5 }
   0xd   : > { %p9307_p8 = pnand %p9306_p7, %p9305_p6 }
   0xf   : > { %p9308_p9 = pneg %p9307_p8 }
  0x11   : > { %p9313_p11 = pnand %p9311_p10, %p9308_p9 }
  0x13   : > { %9316 = shalt.err (!%p9313_p11)
}
  0x14   : > { %s9317_s25 = scalar_lea.vmem %s126_s15, 12288  ;;  %p9325_p1 = scmp.lt.s32.totalorder %s126_s15, %s126_s15 }
  0x15   : > { %p9318_p12 = scmp.ne.s32.totalorder %s126_s15, %s9317_s25  ;;  %p9326_p4 = scmp.lt.s32.totalorder %s9317_s25, %s9317_s25 }
  0x17   : > { %p9320_p13 = pnand %p9318_p12, %p9306_p7  ;;  %p9327_p3 = por %p9326_p4, %p9325_p1 }
  0x19   : > { %p9321_p0 = pneg %p9320_p13 }
  0x1b   : > { %p9328_p2 = pnand %p9327_p3, %p9321_p0 }
  0x1d   : > { %9331 = shalt.err (!%p9328_p2)
}
  0x1e   : > { %s9345_s26 = smov 768   ;;  %s9346_s27 = smov 48  }
  0x1f   : > { %8326 = dma.hbm_to_vmem [thread:$0]  (!%p9390_p5), %s14023_s1, 12288, %s126_s15, [#allocation3], %s9345_s26, %s9345_s26, %s9346_s27  }
  0x20   : > { %p14647_p6 = scmp.ne.s32.totalorder %s14645_s16, 0 }
  0x22   : > { %152 = sbr.rel (%p14647_p6) target bundleno = 3667 (0xe53), region = 32 }
  0x29   : > { %p14648_p8 = scmp.eq.s32.totalorder %s9377_s13, 0 }
  0x2b   : > { %9337 = dma.done.wait (%p14648_p8), [#allocation3], 12288   ;;  %p14649_p7 = pmov %p14648_p8 }
  0x2c   : > { %p176_p2 = scmp.lt.s32.totalorder %s9377_s13, 1  ;;  %v205_v0 = vlaneseq  ;;  %v7307_v4 = vld.sshfl [vmem:[%s14024_s2 + $0x8] sm:$0x33 pattern:$0x75316420]  ;;  %v14650_v7 = vmov 0 }
  0x2d   : > { %9339 = vsyncadd (%p14649_p7), [#allocation3], 4294955008  ;;  %v9347_v5 = vmov 1966171168   ;;  %v14028_v8 = vmov 1.0   ;;  %v201_v9 = vcombine.high %v7307_v4, %v7307_v4  ;;  %vm291_vm1 = vcmask 64512  }
  0x2e   : > { %s15851_s13 = smov (!%p176_p2, %s9377_s13), 1  ;;  %v206_v2 = vshrl.u32 %v205_v0, 7  ;;  %v221_v3 = vand.u32 127, %v205_v0  ;;  %v203_v6 = vunpack.c.l.s4 %v9347_v5  ;;  %v1102_v59 = vld [vmem:[#allocation2 + $0x8] sm:$0xff]  ;;  %v1105_v60 = vld [vmem:[#allocation2 + $0x38] sm:$0xff]  ;;  %v1101_v63 = vld [vmem:[#allocation2] sm:$0xff] }
  0x2f   : > { %s7350_s30 = sshll.u32 %s15851_s13, 4  ;;  %v8125_v62 = vpack.c.bf16 %v1105_v60, %v1102_v59  ;;  %v1104_v0 = vld [vmem:[#allocation2 + $0x30] sm:$0xff]  ;;  %v1132_v60 = vld [vmem:[#allocation2 + $0x1e8] sm:$0xff] }
  0x30   : > { %s180_s6 = scalar_lea.vmem %s14022_s0, %s7350_s30  ;;  %vm9429_vm0 = vcmp.eq.s32.totalorder %v206_v2, %v221_v3  ;;  %v204_v10 = vunpack.c.0.s8 %v203_v6  ;;  %v9445_v12 = vsub.s32 0, %v206_v2  ;;  %v8127_v3 = vpack.c.bf16 %v1104_v0, %v1101_v63  ;;  %v1108_v6 = vld [vmem:[#allocation2 + $0x68] sm:$0xff]  ;;  %v1131_v0 = vld [vmem:[#allocation2 + $0x1e0] sm:$0xff]  ;;  %s185_s23 = scalar_lea.vmem %s14025_s3, %s7350_s30 }
  0x31   : > { %v225_v1 = vld [vmem:[%s180_s6] sm:$0xff]  ;;  %v14651_v7 = vsel %vm9429_vm0, 4294967295, %v14650_v7  ;;  %7755 = vmatprep.subr.msk.mxu0 %vm9429_vm0, %v14028_v8  ;;  %8317 = vmatprep.subr.msk.mxu1 %vm9429_vm0, %v14028_v8  ;;  %v226_v20 = vld [vmem:[%s180_s6 + $0x8] sm:$0xff] }
  0x32   : > { %227 = vxpose.xlu0.b32.start.end [1/1] (short) %v225_v1, 128  ;;  %14652 = vst [vmem:[#allocation5_spill] sm:$0xff] %v14651_v7  ;;  %7756 = vmatpush3.msk.msra.mxu0 %vm9429_vm0, %v14028_v8  ;;  %v207_v11 = vsub.s32 %v204_v10, %v206_v2  ;;  %v1103_v1 = vld [vmem:[#allocation2 + $0x10] sm:$0xff] }
  0x33   : > { %8318 = vmatpush3.msk.msra.mxu1 %vm9429_vm0, %v14028_v8 }
  0x34   : > { %v9447_v13 = vrot.slane %v7307_v4, %v207_v11  ;;  %v215_v14 = vrot.slane %v201_v9, %v207_v11  ;;  %v1106_v4 = vld [vmem:[#allocation2 + $0x40] sm:$0xff]  ;;  %8126 = vmatprep.subr.bf16.mxu1 %v8125_v62  ;;  %v1111_v9 = vld [vmem:[#allocation2 + $0x98] sm:$0xff] }
  0x35   : > { %v8157_v5 = vpack.c.bf16 %v1106_v4, %v1103_v1  ;;  %v8129_v10 = vpack.c.bf16 %v1111_v9, %v1108_v6  ;;  %v1107_v11 = vld [vmem:[#allocation2 + $0x60] sm:$0xff]  ;;  %v1135_v62 = vld [vmem:[#allocation2 + $0x218] sm:$0xff]  ;;  %v1134_v1 = vld [vmem:[#allocation2 + $0x210] sm:$0xff] }
  0x36   : > { %v216_v15 = vcombine.high %v9447_v13, %v9447_v13  ;;  %v217_v16 = vcombine.high %v215_v14, %v215_v14  ;;  %v9452_v17 = vrot.slane %v215_v14, %v9445_v12  ;;  %v1110_v14 = vld [vmem:[#allocation2 + $0x90] sm:$0xff]  ;;  %v8145_v63 = vpack.c.bf16 %v1135_v62, %v1132_v60 }
  0x37   : > { %8158 = vmatprep.subr.bf16.mxu0 %v8157_v5  ;;  %v8147_v4 = vpack.c.bf16 %v1134_v1, %v1131_v0 }
  0x38   : > { %14653 = vst [vmem:[#allocation6_spill] sm:$0xff] %v9452_v17  ;;  %v9455_v18 = vrot.slane %v216_v15, %v9445_v12  ;;  %v9458_v19 = vrot.slane %v217_v16, %v9445_v12  ;;  %v1109_v15 = vld [vmem:[#allocation2 + $0x70] sm:$0xff]  ;;  %v8131_v16 = vpack.c.bf16 %v1110_v14, %v1107_v11  ;;  %v1141_v11 = vld [vmem:[#allocation2 + $0x278] sm:$0xff] }
  0x3a   : > { %14654 = vst [vmem:[#allocation7_spill] sm:$0xff] %v9455_v18  ;;  %14655 = vst [vmem:[#allocation8_spill] sm:$0xff] %v9458_v19 }
  0x6f   : > { %259 = vxpose.xlu0.b32.start.end [1/1] (short) %v226_v20, 128  ;;  %v1112_v20 = vld [vmem:[#allocation2 + $0xa0] sm:$0xff] }
  0xb2   : > { %v243_v21 = vpop.trf.xlu0 }
  0xb3   : > { %7757 = vmatprep.mubr.msk.f32.mxu0 %vm291_vm1, %v243_v21  ;;  %v8161_v21 = vpack.c.bf16 %v1112_v20, %v1109_v15  ;;  %v1140_v20 = vld [vmem:[#allocation2 + $0x270] sm:$0xff] }
  0xb6   : > { %v244_v22 = vpop.trf.xlu0 }
  0xb7   : > { %7758 = vmatmul.mubr.msk.f32.vlgmr.msra.gmra.mrb[0].mxu0 %vm291_vm1, %v244_v22 }
  0xb8   : > { %8160 = vmatpush3.bf16.msra.mxu0 %v8157_v5  ;;  %v1136_v5 = vld [vmem:[#allocation2 + $0x220] sm:$0xff] }
  0xb9   : > { %8162 = vmatprep.subr.bf16.mxu0 %v8161_v21 }
  0xba   : > { %v245_v23 = vpop.trf.xlu0 }
  0xbb   : > { %7760 = vmatprep.mubr.msk.f32.mxu0 %vm291_vm1, %v245_v23  ;;  %v1114_v23 = vld [vmem:[#allocation2 + $0xc8] sm:$0xff] }
  0xbc   : > { %8164 = vmatpush3.bf16.msra.mxu0 %v8161_v21  ;;  %v1139_v21 = vld [vmem:[#allocation2 + $0x250] sm:$0xff] }
  0xbe   : > { %v246_v24 = vpop.trf.xlu0 }
  0xbf   : > { %7761 = vmatmul.mubr.msk.f32.gmra.mrb[2].mxu0 %vm291_vm1, %v246_v24  ;;  %v1117_v24 = vld [vmem:[#allocation2 + $0xf8] sm:$0xff] }
  0xc2   : > { %v247_v25 = vpop.trf.xlu0 }
  0xc3   : > { %7763 = vmatprep.mubr.msk.f32.mxu0 %vm291_vm1, %v247_v25 }
  0xc6   : > { %v248_v26 = vpop.trf.xlu0 }
  0xc7   : > { %7764 = vmatmul.mubr.msk.f32.gmra.mrb[4].mxu0 %vm291_vm1, %v248_v26  ;;  %v8133_v26 = vpack.c.bf16 %v1117_v24, %v1114_v23  ;;  %v1142_v24 = vld [vmem:[#allocation2 + $0x280] sm:$0xff] }
  0xca   : > { %v249_v27 = vpop.trf.xlu0 }
  0xcb   : > { %7766 = vmatprep.mubr.msk.f32.mxu0 %vm291_vm1, %v249_v27  ;;  %v1113_v27 = vld [vmem:[#allocation2 + $0xc0] sm:$0xff] }
  0xce   : > { %v250_v28 = vpop.trf.xlu0 }
  0xcf   : > { %7767 = vmatmul.mubr.msk.f32.gmra.mrb[6].mxu0 %vm291_vm1, %v250_v28  ;;  %v1116_v28 = vld [vmem:[#allocation2 + $0xf0] sm:$0xff] }
  0xd2   : > { %v251_v29 = vpop.trf.xlu0 }
  0xd3   : > { %7769 = vmatprep.mubr.msk.f32.mxu0 %vm291_vm1, %v251_v29  ;;  %v1115_v29 = vld [vmem:[#allocation2 + $0xd0] sm:$0xff] }
  0xd6   : > { %v252_v30 = vpop.trf.xlu0 }
  0xd7   : > { %7770 = vmatmul.mubr.msk.f32.gmra.mrb[8].mxu0 %vm291_vm1, %v252_v30 }
  0xda   : > { %v253_v31 = vpop.trf.xlu0 }
  0xdb   : > { %7772 = vmatprep.mubr.msk.f32.mxu0 %vm291_vm1, %v253_v31  ;;  %v8135_v31 = vpack.c.bf16 %v1116_v28, %v1113_v27  ;;  %v1144_v28 = vld [vmem:[#allocation2 + $0x2a8] sm:$0xff] }
  0xde   : > { %v254_v32 = vpop.trf.xlu0 }
  0xdf   : > { %7773 = vmatmul.mubr.msk.f32.gmra.mrb[10].mxu0 %vm291_vm1, %v254_v32  ;;  %v1118_v32 = vld [vmem:[#allocation2 + $0x100] sm:$0xff] }
  0xe2   : > { %v255_v33 = vpop.trf.xlu0 }
  0xe3   : > { %7775 = vmatprep.mubr.msk.f32.mxu0 %vm291_vm1, %v255_v33  ;;  %v8165_v33 = vpack.c.bf16 %v1118_v32, %v1115_v29  ;;  %v1147_v29 = vld [vmem:[#allocation2 + $0x2d8] sm:$0xff]  ;;  %v1143_v32 = vld [vmem:[#allocation2 + $0x2a0] sm:$0xff] }
  0xe5   : > { %8166 = vmatprep.subr.bf16.mxu0 %v8165_v33 }
  0xe6   : > { %v256_v34 = vpop.trf.xlu0  ;;  %8168 = vmatpush3.bf16.msra.mxu0 %v8165_v33  ;;  %v1146_v33 = vld [vmem:[#allocation2 + $0x2d0] sm:$0xff] }
  0xe7   : > { %7776 = vmatmul.mubr.msk.f32.gmra.mrb[12].mxu0 %vm291_vm1, %v256_v34 }
  0xea   : > { %v257_v35 = vpop.trf.xlu0 }
  0xeb   : > { %7778 = vmatprep.mubr.msk.f32.mxu0 %vm291_vm1, %v257_v35  ;;  %v1120_v35 = vld [vmem:[#allocation2 + $0x128] sm:$0xff] }
  0xee   : > { %v258_v36 = vpop.trf.xlu0 }
  0xef   : > { %7779 = vmatmul.mubr.msk.f32.gmra.mrb[14].mxu0 %vm291_vm1, %v258_v36  ;;  %v1123_v36 = vld [vmem:[#allocation2 + $0x158] sm:$0xff] }
  0xf2   : > { %v275_v37 = vpop.trf.xlu0 }
  0xf3   : > { %7781 = vmatprep.mubr.msk.f32.mxu1 %vm291_vm1, %v275_v37  ;;  %v8137_v37 = vpack.c.bf16 %v1123_v36, %v1120_v35  ;;  %v8155_v35 = vpack.c.bf16 %v1146_v33, %v1143_v32  ;;  %v1148_v36 = vld [vmem:[#allocation2 + $0x2e0] sm:$0xff] }
  0xf6   : > { %v276_v38 = vpop.trf.xlu0 }
  0xf7   : > { %7782 = vmatmul.mubr.msk.f32.vlgmr.msra.gmra.mrb[0].mxu1 %vm291_vm1, %v276_v38  ;;  %v1119_v38 = vld [vmem:[#allocation2 + $0x120] sm:$0xff] }
  0xf8   : > { %8128 = vmatpush1.bf16.msra.mxu1 %v8127_v3  ;;  %v1133_v3 = vld [vmem:[#allocation2 + $0x1f0] sm:$0xff] }
  0xf9   : > { %8130 = vmatprep.subr.bf16.mxu1 %v8129_v10  ;;  %v8177_v6 = vpack.c.bf16 %v1136_v5, %v1133_v3  ;;  %v1138_v10 = vld [vmem:[#allocation2 + $0x248] sm:$0xff] }
  0xfa   : > { %v277_v39 = vpop.trf.xlu0  ;;  %v8149_v15 = vpack.c.bf16 %v1141_v11, %v1138_v10 }
  0xfb   : > { %7784 = vmatprep.mubr.msk.f32.mxu1 %vm291_vm1, %v277_v39  ;;  %v1122_v39 = vld [vmem:[#allocation2 + $0x150] sm:$0xff] }
  0xfc   : > { %8132 = vmatpush1.bf16.msra.mxu1 %v8131_v16  ;;  %v1137_v16 = vld [vmem:[#allocation2 + $0x240] sm:$0xff] }
  0xfd   : > { %8134 = vmatprep.subr.bf16.mxu1 %v8133_v26  ;;  %v8151_v23 = vpack.c.bf16 %v1140_v20, %v1137_v16  ;;  %v8181_v26 = vpack.c.bf16 %v1142_v24, %v1139_v21 }
  0xfe   : > { %v278_v40 = vpop.trf.xlu0 }
  0xff   : > { %7785 = vmatmul.mubr.msk.f32.gmra.mrb[2].mxu1 %vm291_vm1, %v278_v40  ;;  %v1121_v40 = vld [vmem:[#allocation2 + $0x130] sm:$0xff] }
 0x100   : > { %8136 = vmatpush1.bf16.msra.mxu1 %v8135_v31  ;;  %v8153_v31 = vpack.c.bf16 %v1147_v29, %v1144_v28 }
 0x101   : > { %8138 = vmatprep.subr.bf16.mxu1 %v8137_v37 }
 0x102   : > { %v279_v41 = vpop.trf.xlu0 }
 0x103   : > { %7787 = vmatprep.mubr.msk.f32.mxu1 %vm291_vm1, %v279_v41  ;;  %v8139_v41 = vpack.c.bf16 %v1122_v39, %v1119_v38 }
 0x105   : > { %8140 = vmatpush1.bf16.msra.mxu1 %v8139_v41 }
 0x106   : > { %v280_v42 = vpop.trf.xlu0 }
 0x107   : > { %7788 = vmatmul.mubr.msk.f32.gmra.mrb[4].mxu1 %vm291_vm1, %v280_v42  ;;  %v1124_v42 = vld [vmem:[#allocation2 + $0x160] sm:$0xff] }
 0x10a   : > { %v281_v43 = vpop.trf.xlu0 }
 0x10b   : > { %7790 = vmatprep.mubr.msk.f32.mxu1 %vm291_vm1, %v281_v43  ;;  %v8169_v43 = vpack.c.bf16 %v1124_v42, %v1121_v40  ;;  %v14030_v40 = vmov 0.0  }
 0x10d   : > { %8170 = vmatprep.subr.bf16.mxu0 %v8169_v43 }
 0x10e   : > { %v282_v44 = vpop.trf.xlu0  ;;  %8172 = vmatpush3.bf16.msra.mxu0 %v8169_v43 }
 0x10f   : > { %7791 = vmatmul.mubr.msk.f32.gmra.mrb[6].mxu1 %vm291_vm1, %v282_v44  ;;  %v1126_v44 = vld [vmem:[#allocation2 + $0x188] sm:$0xff] }
 0x112   : > { %v283_v45 = vpop.trf.xlu0 }
 0x113   : > { %7793 = vmatprep.mubr.msk.f32.mxu1 %vm291_vm1, %v283_v45  ;;  %v1129_v45 = vld [vmem:[#allocation2 + $0x1b8] sm:$0xff] }
 0x116   : > { %v284_v46 = vpop.trf.xlu0 }
 0x117   : > { %7794 = vmatmul.mubr.msk.f32.gmra.mrb[8].mxu1 %vm291_vm1, %v284_v46 }
 0x11a   : > { %v285_v47 = vpop.trf.xlu0 }
 0x11b   : > { %7796 = vmatprep.mubr.msk.f32.mxu1 %vm291_vm1, %v285_v47  ;;  %v8141_v47 = vpack.c.bf16 %v1129_v45, %v1126_v44 }
 0x11d   : > { %8142 = vmatprep.subr.bf16.mxu1 %v8141_v47 }
 0x11e   : > { %v286_v48 = vpop.trf.xlu0 }
 0x11f   : > { %7797 = vmatmul.mubr.msk.f32.gmra.mrb[10].mxu1 %vm291_vm1, %v286_v48  ;;  %v1125_v48 = vld [vmem:[#allocation2 + $0x180] sm:$0xff] }
 0x122   : > { %v287_v49 = vpop.trf.xlu0 }
 0x123   : > { %7799 = vmatprep.mubr.msk.f32.mxu1 %vm291_vm1, %v287_v49  ;;  %v1128_v49 = vld [vmem:[#allocation2 + $0x1b0] sm:$0xff] }
 0x126   : > { %v288_v50 = vpop.trf.xlu0 }
 0x127   : > { %7800 = vmatmul.mubr.msk.f32.gmra.mrb[12].mxu1 %vm291_vm1, %v288_v50  ;;  %v1127_v50 = vld [vmem:[#allocation2 + $0x190] sm:$0xff] }
 0x12a   : > { %v289_v51 = vpop.trf.xlu0 }
 0x12b   : > { %7802 = vmatprep.mubr.msk.f32.mxu1 %vm291_vm1, %v289_v51 }
 0x12e   : > { %v290_v52 = vpop.trf.xlu0 }
 0x12f   : > { %7803 = vmatmul.mubr.msk.f32.gmra.mrb[14].mxu1 %vm291_vm1, %v290_v52  ;;  %v8143_v52 = vpack.c.bf16 %v1128_v49, %v1125_v48 }
 0x130   : > { %1213 = vmatprep.mubr.f32.mxu1 %v14030_v40 }
 0x131   : > { %8144 = vmatpush1.bf16.msra.mxu1 %v8143_v52 }
 0x132   : > { %8146 = vmatprep.subr.bf16.mxu1 %v8145_v63 }
 0x135   : > { %8148 = vmatpush1.bf16.msra.mxu1 %v8147_v4 }
 0x136   : > { %8150 = vmatprep.subr.bf16.mxu1 %v8149_v15 }
 0x139   : > { %8152 = vmatpush1.bf16.msra.mxu1 %v8151_v23 }
 0x13a   : > { %8154 = vmatprep.subr.bf16.mxu1 %v8153_v31 }
 0x13d   : > { %8156 = vmatpush1.bf16.msra.mxu1 %v8155_v35 }
 0x18a   : > { %v9492_v53 = vpop.f32.mrb[0].mxu0 }
 0x18b   : > { %14656 = vst [vmem:[#allocation9_spill] sm:$0xff] %v9492_v53  ;;  %615 = vadd.xlane.f32.xlu1 %v9492_v53  ;;  %v9495_v54 = vpop.f32.mrb[1].mxu0  ;;  %v710_v55 = vmul.f32 %v9492_v53, %v9492_v53 }
 0x18c   : > { %14657 = vst [vmem:[#allocation10_spill] sm:$0xff] %v9495_v54  ;;  %v709_v58 = vmul.f32 %v9495_v54, %v9495_v54 }
 0x18f   : > { %613 = vadd.xlane.f32.xlu1 %v9495_v54 }
 0x192   : > { %v9500_v56 = vpop.f32.mrb[2].mxu0 }
 0x193   : > { %14658 = vst [vmem:[#allocation11_spill] sm:$0xff] %v9500_v56  ;;  %743 = vadd.xlane.f32.xlu1 %v710_v55  ;;  %v9502_v57 = vpop.f32.mrb[3].mxu0  ;;  %v712_v22 = vmul.f32 %v9500_v56, %v9500_v56  ;;  %v1130_v55 = vld [vmem:[#allocation2 + $0x1c0] sm:$0xff] }
 0x194   : > { %14659 = vst [vmem:[#allocation12_spill] sm:$0xff] %v9502_v57  ;;  %v711_v34 = vmul.f32 %v9502_v57, %v9502_v57  ;;  %v8173_v59 = vpack.c.bf16 %v1130_v55, %v1127_v50 }
 0x196   : > { %8174 = vmatprep.subr.bf16.mxu0 %v8173_v59 }
 0x197   : > { %741 = vadd.xlane.f32.xlu1 %v709_v58  ;;  %8176 = vmatpush3.bf16.msra.mxu0 %v8173_v59 }
 0x198   : > { %8178 = vmatprep.subr.bf16.mxu0 %v8177_v6 }
 0x19a   : > { %v9506_v61 = vpop.f32.mrb[4].mxu0 }
 0x19b   : > { %14660 = vst [vmem:[#allocation13_spill] sm:$0xff] %v9506_v61  ;;  %619 = vadd.xlane.f32.xlu1 %v9500_v56  ;;  %v9509_v2 = vpop.f32.mrb[5].mxu0  ;;  %v714_v9 = vmul.f32 %v9506_v61, %v9506_v61  ;;  %8180 = vmatpush3.bf16.msra.mxu0 %v8177_v6 }
 0x19c   : > { %14661 = vst [vmem:[#allocation14_spill] sm:$0xff] %v9509_v2  ;;  %v713_v27 = vmul.f32 %v9509_v2, %v9509_v2  ;;  %8182 = vmatprep.subr.bf16.mxu0 %v8181_v26 }
 0x19f   : > { %617 = vadd.xlane.f32.xlu1 %v9502_v57  ;;  %8184 = vmatpush3.bf16.msra.mxu0 %v8181_v26 }
 0x1a2   : > { %v9514_v25 = vpop.f32.mrb[6].mxu0 }
 0x1a3   : > { %14662 = vst [vmem:[#allocation15_spill] sm:$0xff] %v9514_v25  ;;  %747 = vadd.xlane.f32.xlu1 %v712_v22  ;;  %v9516_v30 = vpop.f32.mrb[7].mxu0  ;;  %v716_v41 = vmul.f32 %v9514_v25, %v9514_v25 }
 0x1a4   : > { %14663 = vst [vmem:[#allocation16_spill] sm:$0xff] %v9516_v30  ;;  %v715_v44 = vmul.f32 %v9516_v30, %v9516_v30 }
 0x1a7   : > { %745 = vadd.xlane.f32.xlu1 %v711_v34  ;;  %v1145_v34 = vld [vmem:[#allocation2 + $0x2b0] sm:$0xff] }
 0x1a8   : > { %v8185_v37 = vpack.c.bf16 %v1148_v36, %v1145_v34 }
 0x1aa   : > { %v9520_v46 = vpop.f32.mrb[8].mxu0  ;;  %8186 = vmatprep.subr.bf16.mxu0 %v8185_v37 }
 0x1ab   : > { %14664 = vst [vmem:[#allocation17_spill] sm:$0xff] %v9520_v46  ;;  %623 = vadd.xlane.f32.xlu1 %v9506_v61  ;;  %v9523_v51 = vpop.f32.mrb[9].mxu0  ;;  %8188 = vmatpush3.bf16.msra.mxu0 %v8185_v37  ;;  %v718_v48 = vmul.f32 %v9520_v46, %v9520_v46 }
 0x1ac   : > { %14665 = vst [vmem:[#allocation18_spill] sm:$0xff] %v9523_v51  ;;  %v717_v58 = vmul.f32 %v9523_v51, %v9523_v51 }
 0x1ae   : > { %757 = vadd.xlane.f32.xlu0 %v717_v58 }
 0x1af   : > { %621 = vadd.xlane.f32.xlu1 %v9509_v2 }
 0x1b2   : > { %v9530_v14 = vpop.f32.mrb[10].mxu0 }
 0x1b3   : > { %14666 = vst [vmem:[#allocation19_spill] sm:$0xff] %v9530_v14  ;;  %751 = vadd.xlane.f32.xlu1 %v714_v9  ;;  %v9532_v22 = vpop.f32.mrb[11].mxu0  ;;  %v720_v1 = vmul.f32 %v9530_v14, %v9530_v14 }
 0x1b4   : > { %14667 = vst [vmem:[#allocation20_spill] sm:$0xff] %v9532_v22  ;;  %v719_v5 = vmul.f32 %v9532_v22, %v9532_v22 }
 0x1b7   : > { %749 = vadd.xlane.f32.xlu1 %v713_v27 }
 0x1ba   : > { %v9536_v38 = vpop.f32.mrb[12].mxu0 }
 0x1bb   : > { %14668 = vst [vmem:[#allocation21_spill] sm:$0xff] %v9536_v38  ;;  %627 = vadd.xlane.f32.xlu1 %v9514_v25  ;;  %v9539_v39 = vpop.f32.mrb[13].mxu0  ;;  %v722_v10 = vmul.f32 %v9536_v38, %v9536_v38 }
 0x1bc   : > { %14669 = vst [vmem:[#allocation22_spill] sm:$0xff] %v9539_v39  ;;  %v721_v16 = vmul.f32 %v9539_v39, %v9539_v39 }
 0x1bf   : > { %625 = vadd.xlane.f32.xlu1 %v9516_v30 }
 0x1c2   : > { %v9545_v42 = vpop.f32.mrb[14].mxu0 }
 0x1c3   : > { %14670 = vst [vmem:[#allocation23_spill] sm:$0xff] %v9545_v42  ;;  %755 = vadd.xlane.f32.xlu1 %v716_v41  ;;  %v9547_v43 = vpop.f32.mrb[15].mxu0  ;;  %v724_v20 = vmul.f32 %v9545_v42, %v9545_v42 }
 0x1c4   : > { %14671 = vst [vmem:[#allocation24_spill] sm:$0xff] %v9547_v43  ;;  %v723_v21 = vmul.f32 %v9547_v43, %v9547_v43 }
 0x1c7   : > { %753 = vadd.xlane.f32.xlu1 %v715_v44 }
 0x1ca   : > { %v9551_v45 = vpop.f32.mrb[0].mxu1 }
 0x1cb   : > { %14672 = vst [vmem:[#allocation25_spill] sm:$0xff] %v9551_v45  ;;  %629 = vadd.xlane.f32.xlu1 %v9523_v51  ;;  %v9554_v47 = vpop.f32.mrb[1].mxu1  ;;  %v726_v59 = vmul.f32 %v9551_v45, %v9551_v45 }
 0x1cc   : > { %14673 = vst [vmem:[#allocation26_spill] sm:$0xff] %v9554_v47  ;;  %v725_v52 = vmul.f32 %v9554_v47, %v9554_v47 }
 0x1cf   : > { %631 = vadd.xlane.f32.xlu1 %v9520_v46 }
 0x1d2   : > { %v9559_v49 = vpop.f32.mrb[2].mxu1 }
 0x1d3   : > { %14674 = vst [vmem:[#allocation27_spill] sm:$0xff] %v9559_v49  ;;  %759 = vadd.xlane.f32.xlu1 %v718_v48  ;;  %v9561_v50 = vpop.f32.mrb[3].mxu1  ;;  %v728_v33 = vmul.f32 %v9559_v49, %v9559_v49 }
 0x1d4   : > { %14675 = vst [vmem:[#allocation28_spill] sm:$0xff] %v9561_v50  ;;  %v727_v24 = vmul.f32 %v9561_v50, %v9561_v50 }
 0x1d7   : > { %645 = vadd.xlane.f32.xlu1 %v9554_v47 }
 0x1da   : > { %v9566_v55 = vpop.f32.mrb[4].mxu1 }
 0x1db   : > { %14676 = vst [vmem:[#allocation29_spill] sm:$0xff] %v9566_v55  ;;  %773 = vadd.xlane.f32.xlu1 %v725_v52  ;;  %v9568_v58 = vpop.f32.mrb[5].mxu1 }
 0x1dc   : > { %14677 = vst [vmem:[#allocation30_spill] sm:$0xff] %v9568_v58 }
 0x1df   : > { %647 = vadd.xlane.f32.xlu1 %v9551_v45 }
 0x1e2   : > { %v9573_v60 = vpop.f32.mrb[6].mxu1 }
 0x1e3   : > { %14678 = vst [vmem:[#allocation31_spill] sm:$0xff] %v9573_v60  ;;  %775 = vadd.xlane.f32.xlu1 %v726_v59  ;;  %v9575_v62 = vpop.f32.mrb[7].mxu1  ;;  %v729_v59 = vmul.f32 %v9568_v58, %v9568_v58 }
 0x1e4   : > { %14679 = vst [vmem:[#allocation32_spill] sm:$0xff] %v9575_v62  ;;  %657 = vadd.xlane.f32.xlu0 %v9575_v62 }
 0x1e7   : > { %649 = vadd.xlane.f32.xlu1 %v9561_v50 }
 0x1e8   : > { %659 = vadd.xlane.f32.xlu0 %v9573_v60 }
 0x1ea   : > { %v9580_v63 = vpop.f32.mrb[8].mxu1 }
 0x1eb   : > { %14680 = vst [vmem:[#allocation33_spill] sm:$0xff] %v9580_v63  ;;  %635 = vadd.xlane.f32.xlu1 %v9530_v14  ;;  %v9583_v0 = vpop.f32.mrb[9].mxu1 }
 0x1ec   : > { %14681 = vst [vmem:[#allocation34_spill] sm:$0xff] %v9583_v0  ;;  %661 = vadd.xlane.f32.xlu0 %v9583_v0 }
 0x1ef   : > { %633 = vadd.xlane.f32.xlu1 %v9532_v22 }
 0x1f0   : > { %663 = vadd.xlane.f32.xlu0 %v9580_v63 }
 0x1f2   : > { %v9590_v3 = vpop.f32.mrb[10].mxu1 }
 0x1f3   : > { %14682 = vst [vmem:[#allocation35_spill] sm:$0xff] %v9590_v3  ;;  %763 = vadd.xlane.f32.xlu1 %v720_v1  ;;  %v9592_v4 = vpop.f32.mrb[11].mxu1 }
 0x1f4   : > { %14683 = vst [vmem:[#allocation36_spill] sm:$0xff] %v9592_v4  ;;  %665 = vadd.xlane.f32.xlu0 %v9592_v4 }
 0x1f7   : > { %761 = vadd.xlane.f32.xlu1 %v719_v5 }
 0x1f8   : > { %667 = vadd.xlane.f32.xlu0 %v9590_v3 }
 0x1fa   : > { %v9598_v6 = vpop.f32.mrb[12].mxu1 }
 0x1fb   : > { %14684 = vst [vmem:[#allocation37_spill] sm:$0xff] %v9598_v6  ;;  %639 = vadd.xlane.f32.xlu1 %v9536_v38  ;;  %v9601_v9 = vpop.f32.mrb[13].mxu1 }
 0x1fc   : > { %14685 = vst [vmem:[#allocation38_spill] sm:$0xff] %v9601_v9  ;;  %669 = vadd.xlane.f32.xlu0 %v9601_v9 }
 0x1ff   : > { %637 = vadd.xlane.f32.xlu1 %v9539_v39 }
 0x200   : > { %671 = vadd.xlane.f32.xlu0 %v9598_v6 }
 0x202   : > { %v9608_v11 = vpop.f32.mrb[14].mxu1 }
 0x203   : > { %14686 = vst [vmem:[#allocation39_spill] sm:$0xff] %v9608_v11  ;;  %767 = vadd.xlane.f32.xlu1 %v722_v10  ;;  %v9610_v15 = vpop.f32.mrb[15].mxu1 }
 0x204   : > { %14687 = vst [vmem:[#allocation40_spill] sm:$0xff] %v9610_v15  ;;  %673 = vadd.xlane.f32.xlu0 %v9610_v15 }
 0x207   : > { %765 = vadd.xlane.f32.xlu1 %v721_v16  ;;  %v730_v16 = vmul.f32 %v9566_v55, %v9566_v55 }
 0x208   : > { %675 = vadd.xlane.f32.xlu0 %v9608_v11 }
 0x20b   : > { %643 = vadd.xlane.f32.xlu1 %v9545_v42 }
 0x20f   : > { %641 = vadd.xlane.f32.xlu1 %v9547_v43 }
 0x213   : > { %771 = vadd.xlane.f32.xlu1 %v724_v20 }
 0x217   : > { %769 = vadd.xlane.f32.xlu1 %v723_v21 }
 0x218   : > { %v616_v23 = vpop.xlane.xlu1 %615 }
 0x219   : > { %v678_v27 = vmul.f32 0.125, %v616_v23 }
 0x21b   : > { %777 = vadd.xlane.f32.xlu1 %v727_v24  ;;  %v838_v29 = vmul.f32 %v678_v27, %v678_v27  ;;  %v902_v21 = vsub.f32 %v9492_v53, %v678_v27 }
 0x21c   : > { %v614_v26 = vpop.xlane.xlu1 %613 }
 0x21d   : > { %v677_v31 = vmul.f32 0.125, %v614_v26 }
 0x21f   : > { %651 = vadd.xlane.f32.xlu1 %v9559_v49  ;;  %v837_v36 = vmul.f32 %v677_v31, %v677_v31 }
 0x220   : > { %v744_v28 = vpop.xlane.xlu1 %743 }
 0x221   : > { %v806_v32 = vmul.f32 0.125, %v744_v28 }
 0x223   : > { %v870_v34 = vsub.f32 %v806_v32, %v838_v29  ;;  %779 = vadd.xlane.f32.xlu1 %v728_v33  ;;  %v731_v32 = vmul.f32 %v9575_v62, %v9575_v62  ;;  %v901_v33 = vsub.f32 %v9495_v54, %v677_v31  ;;  %v9646_v31 = vld [vmem:[%s14024_s2 + $0x1] ss:$0 sm:$0xff] }
 0x224   : > { %v742_v35 = vpop.xlane.xlu1 %741 }
 0x225   : > { %v934_v37 = vadd.f32 1e-05, %v870_v34  ;;  %v805_v41 = vmul.f32 0.125, %v742_v35  ;;  %v9640_v35 = vld [vmem:[%s14024_s2] ss:$0 sm:$0xff] }
 0x227   : > { %8344 = vrsqrt.f32 %v934_v37  ;;  %v869_v44 = vsub.f32 %v805_v41, %v837_v36  ;;  %653 = vadd.xlane.f32.xlu1 %v9568_v58 }
 0x228   : > { %v620_v48 = vpop.xlane.xlu1 %619 }
 0x229   : > { %v933_v52 = vadd.f32 1e-05, %v869_v44  ;;  %v680_v5 = vmul.f32 0.125, %v620_v48 }
 0x22b   : > { %8346 = vrsqrt.f32 %v933_v52  ;;  %781 = vadd.xlane.f32.xlu1 %v729_v59  ;;  %v840_v23 = vmul.f32 %v680_v5, %v680_v5 }
 0x22c   : > { %v618_v1 = vpop.xlane.xlu1 %617 }
 0x22d   : > { %v679_v24 = vmul.f32 0.125, %v618_v1 }
 0x22f   : > { %655 = vadd.xlane.f32.xlu1 %v9566_v55  ;;  %v839_v37 = vmul.f32 %v679_v24, %v679_v24 }
 0x230   : > { %v748_v10 = vpop.xlane.xlu1 %747 }
 0x231   : > { %v8345_v20 = vpop.eup %8344  ;;  %v808_v26 = vmul.f32 0.125, %v748_v10 }
 0x232   : > { %v998_v28 = vmul.f32 %v8345_v20, %v902_v21 }
 0x233   : > { %v872_v29 = vsub.f32 %v808_v26, %v840_v23  ;;  %783 = vadd.xlane.f32.xlu1 %v730_v16  ;;  %v732_v16 = vmul.f32 %v9573_v60, %v9573_v60  ;;  %v733_v23 = vmul.f32 %v9583_v0, %v9583_v0 }
 0x234   : > { %v746_v34 = vpop.xlane.xlu1 %745  ;;  %v1034_v52 = vmul.f32 %v9640_v35, %v998_v28 }
 0x235   : > { %v8347_v36 = vpop.eup %8346  ;;  %v936_v27 = vadd.f32 1e-05, %v872_v29  ;;  %v807_v41 = vmul.f32 0.125, %v746_v34  ;;  %v904_v34 = vsub.f32 %v9500_v56, %v680_v5 }
 0x236   : > { %v997_v44 = vmul.f32 %v8347_v36, %v901_v33  ;;  %v1070_v21 = vadd.f32 %v9646_v31, %v1034_v52  ;;  %v903_v52 = vsub.f32 %v9502_v57, %v679_v24 }
 0x237   : > { %8348 = vrsqrt.f32 %v936_v27  ;;  %v871_v48 = vsub.f32 %v807_v41, %v839_v37  ;;  %785 = vadd.xlane.f32.xlu1 %v731_v32  ;;  %v734_v32 = vmul.f32 %v9580_v63, %v9580_v63 }
 0x238   : > { %v624_v59 = vpop.xlane.xlu1 %623  ;;  %v1033_v1 = vmul.f32 %v9640_v35, %v997_v44  ;;  %v735_v44 = vmul.f32 %v9592_v4, %v9592_v4 }
 0x239   : > { %v935_v10 = vadd.f32 1e-05, %v871_v48  ;;  %v682_v28 = vmul.f32 0.125, %v624_v59 }
 0x23a   : > { %v1069_v20 = vadd.f32 %v9646_v31, %v1033_v1 }
 0x23b   : > { %8350 = vrsqrt.f32 %v935_v10  ;;  %787 = vadd.xlane.f32.xlu1 %v732_v16  ;;  %v842_v36 = vmul.f32 %v682_v28, %v682_v28 }
 0x23c   : > { %v622_v26 = vpop.xlane.xlu1 %621  ;;  %1214 = vmatmul.mubr.f32.vlgmr.msra.gmra.mrb[16].mxu1 %v1069_v20  ;;  %7837 = vmatprep.mubr.f32.mxu0 %v1069_v20 }
 0x23d   : > { %7838 = vmatmul.mubr.f32.vlgmr.msra.gmra.mrb[16].mxu0 %v1070_v21  ;;  %1219 = vmatprep.mubr.f32.mxu1 %v14030_v40  ;;  %v681_v37 = vmul.f32 0.125, %v622_v26 }
 0x23f   : > { %789 = vadd.xlane.f32.xlu1 %v733_v23  ;;  %v841_v10 = vmul.f32 %v681_v37, %v681_v37 }
 0x240   : > { %v752_v29 = vpop.xlane.xlu1 %751  ;;  %1220 = vmatmul.mubr.f32.gmra.mrb[18].mxu1 %v1070_v21 }
 0x241   : > { %v8349_v33 = vpop.eup %8348  ;;  %v810_v27 = vmul.f32 0.125, %v752_v29  ;;  %1225 = vmatprep.mubr.f32.mxu1 %v14030_v40 }
 0x242   : > { %v1000_v48 = vmul.f32 %v8349_v33, %v904_v34  ;;  %v736_v33 = vmul.f32 %v9590_v3, %v9590_v3 }
 0x243   : > { %v874_v41 = vsub.f32 %v810_v27, %v842_v36  ;;  %791 = vadd.xlane.f32.xlu1 %v734_v32  ;;  %v737_v36 = vmul.f32 %v9601_v9, %v9601_v9 }
 0x244   : > { %v750_v59 = vpop.xlane.xlu1 %749  ;;  %v1036_v23 = vmul.f32 %v9640_v35, %v1000_v48  ;;  %v738_v48 = vmul.f32 %v9598_v6, %v9598_v6 }
 0x245   : > { %v8351_v1 = vpop.eup %8350  ;;  %v938_v16 = vadd.f32 1e-05, %v874_v41  ;;  %v809_v20 = vmul.f32 0.125, %v750_v59  ;;  %v906_v59 = vsub.f32 %v9506_v61, %v682_v28 }
 0x246   : > { %v999_v21 = vmul.f32 %v8351_v1, %v903_v52  ;;  %v1072_v34 = vadd.f32 %v9646_v31, %v1036_v23  ;;  %v905_v23 = vsub.f32 %v9509_v2, %v681_v37  ;;  %v740_v37 = vmul.f32 %v9608_v11, %v9608_v11 }
 0x247   : > { %8352 = vrsqrt.f32 %v938_v16  ;;  %v873_v5 = vsub.f32 %v809_v20, %v841_v10  ;;  %793 = vadd.xlane.f32.xlu1 %v735_v44 }
 0x248   : > { %v628_v26 = vpop.xlane.xlu1 %627  ;;  %v1035_v29 = vmul.f32 %v9640_v35, %v999_v21  ;;  %v739_v21 = vmul.f32 %v9610_v15, %v9610_v15 }
 0x249   : > { %v937_v32 = vadd.f32 1e-05, %v873_v5  ;;  %v684_v41 = vmul.f32 0.125, %v628_v26 }
 0x24a   : > { %v1071_v24 = vadd.f32 %v9646_v31, %v1035_v29 }
 0x24b   : > { %8354 = vrsqrt.f32 %v937_v32  ;;  %795 = vadd.xlane.f32.xlu1 %v736_v33  ;;  %v844_v1 = vmul.f32 %v684_v41, %v684_v41 }
 0x24c   : > { %v626_v27 = vpop.xlane.xlu1 %625  ;;  %1226 = vmatmul.mubr.f32.gmra.mrb[20].mxu1 %v1071_v24  ;;  %7840 = vmatprep.mubr.f32.mxu0 %v1071_v24 }
 0x24d   : > { %7841 = vmatmul.mubr.f32.gmra.mrb[18].mxu0 %v1072_v34  ;;  %1231 = vmatprep.mubr.f32.mxu1 %v14030_v40  ;;  %v683_v10 = vmul.f32 0.125, %v626_v27  ;;  %v758_v27 = vpop.xlane.xlu0 %757 }
 0x24f   : > { %797 = vadd.xlane.f32.xlu1 %v737_v36  ;;  %v843_v32 = vmul.f32 %v683_v10, %v683_v10 }
 0x250   : > { %v756_v44 = vpop.xlane.xlu1 %755  ;;  %1232 = vmatmul.mubr.f32.gmra.mrb[22].mxu1 %v1072_v34 }
 0x251   : > { %v8353_v52 = vpop.eup %8352  ;;  %v812_v16 = vmul.f32 0.125, %v756_v44  ;;  %1237 = vmatprep.mubr.f32.mxu1 %v14030_v40 }
 0x252   : > { %v1002_v5 = vmul.f32 %v8353_v52, %v906_v59  ;;  %v813_v59 = vmul.f32 0.125, %v758_v27 }
 0x253   : > { %v876_v20 = vsub.f32 %v812_v16, %v844_v1  ;;  %799 = vadd.xlane.f32.xlu1 %v738_v48 }
 0x254   : > { %v754_v26 = vpop.xlane.xlu1 %753  ;;  %v1038_v36 = vmul.f32 %v9640_v35, %v1002_v5 }
 0x255   : > { %v8355_v29 = vpop.eup %8354  ;;  %v940_v33 = vadd.f32 1e-05, %v876_v20  ;;  %v811_v24 = vmul.f32 0.125, %v754_v26 }
 0x256   : > { %v1001_v34 = vmul.f32 %v8355_v29, %v905_v23  ;;  %v1074_v23 = vadd.f32 %v9646_v31, %v1038_v36 }
 0x257   : > { %8356 = vrsqrt.f32 %v940_v33  ;;  %v875_v28 = vsub.f32 %v811_v24, %v843_v32  ;;  %801 = vadd.xlane.f32.xlu1 %v739_v21  ;;  %v908_v24 = vsub.f32 %v9514_v25, %v684_v41 }
 0x258   : > { %v630_v44 = vpop.xlane.xlu1 %629  ;;  %v1037_v48 = vmul.f32 %v9640_v35, %v1001_v34 }
 0x259   : > { %v939_v1 = vadd.f32 1e-05, %v875_v28  ;;  %v685_v16 = vmul.f32 0.125, %v630_v44  ;;  %v907_v44 = vsub.f32 %v9516_v30, %v683_v10 }
 0x25a   : > { %v1073_v52 = vadd.f32 %v9646_v31, %v1037_v48 }
 0x25b   : > { %8358 = vrsqrt.f32 %v939_v1  ;;  %v845_v20 = vmul.f32 %v685_v16, %v685_v16  ;;  %803 = vadd.xlane.f32.xlu1 %v740_v37 }
 0x25c   : > { %v632_v21 = vpop.xlane.xlu1 %631  ;;  %1238 = vmatmul.mubr.f32.gmra.mrb[24].mxu1 %v1073_v52  ;;  %7843 = vmatprep.mubr.f32.mxu0 %v1073_v52 }
 0x25d   : > { %v877_v5 = vsub.f32 %v813_v59, %v845_v20  ;;  %v686_v26 = vmul.f32 0.125, %v632_v21  ;;  %7844 = vmatmul.mubr.f32.gmra.mrb[20].mxu0 %v1074_v23  ;;  %1243 = vmatprep.mubr.f32.mxu1 %v14030_v40 }
 0x25f   : > { %v941_v29 = vadd.f32 1e-05, %v877_v5  ;;  %v846_v34 = vmul.f32 %v686_v26, %v686_v26 }
 0x260   : > { %v760_v32 = vpop.xlane.xlu1 %759  ;;  %1244 = vmatmul.mubr.f32.gmra.mrb[26].mxu1 %v1074_v23  ;;  %v909_v23 = vsub.f32 %v9523_v51, %v685_v16 }
 0x261   : > { %v8357_v33 = vpop.eup %8356  ;;  %8360 = vrsqrt.f32 %v941_v29  ;;  %v814_v28 = vmul.f32 0.125, %v760_v32  ;;  %1249 = vmatprep.mubr.f32.mxu1 %v14030_v40 }
 0x262   : > { %v1004_v27 = vmul.f32 %v8357_v33, %v908_v24  ;;  %v910_v24 = vsub.f32 %v9520_v46, %v686_v26 }
 0x263   : > { %v878_v36 = vsub.f32 %v814_v28, %v846_v34 }
 0x264   : > { %v9689_v48 = vpop.xlane.xlu1 %645  ;;  %v1040_v59 = vmul.f32 %v9640_v35, %v1004_v27 }
 0x265   : > { %v8359_v1 = vpop.eup %8358  ;;  %v942_v37 = vadd.f32 1e-05, %v878_v36 }
 0x266   : > { %v1003_v52 = vmul.f32 %v8359_v1, %v907_v44  ;;  %v1076_v29 = vadd.f32 %v9646_v31, %v1040_v59 }
 0x267   : > { %8362 = vrsqrt.f32 %v942_v37 }
 0x268   : > { %v9692_v20 = vpop.xlane.xlu1 %773  ;;  %v1039_v41 = vmul.f32 %v9640_v35, %v1003_v52 }
 0x26a   : > { %v1075_v21 = vadd.f32 %v9646_v31, %v1039_v41 }
 0x26b   : > { %v8361_v5 = vpop.eup %8360 }
 0x26c   : > { %v1005_v10 = vmul.f32 %v8361_v5, %v909_v23  ;;  %v9698_v32 = vpop.xlane.xlu1 %647  ;;  %1250 = vmatmul.mubr.f32.gmra.mrb[28].mxu1 %v1075_v21  ;;  %7846 = vmatprep.mubr.f32.mxu0 %v1075_v21 }
 0x26d   : > { %7847 = vmatmul.mubr.f32.gmra.mrb[22].mxu0 %v1076_v29  ;;  %1255 = vmatprep.mubr.f32.mxu1 %v14030_v40 }
 0x26e   : > { %v1041_v33 = vmul.f32 %v9640_v35, %v1005_v10 }
 0x270   : > { %v9703_v34 = vpop.xlane.xlu1 %775  ;;  %1256 = vmatmul.mubr.f32.gmra.mrb[30].mxu1 %v1076_v29  ;;  %v1077_v16 = vadd.f32 %v9646_v31, %v1041_v33 }
 0x271   : > { %v8363_v28 = vpop.eup %8362  ;;  %1261 = vmatprep.mubr.f32.mxu1 %v14030_v40 }
 0x272   : > { %7849 = vmatprep.mubr.f32.mxu0 %v1077_v16  ;;  %v1006_v36 = vmul.f32 %v8363_v28, %v910_v24 }
 0x274   : > { %v9707_v27 = vpop.xlane.xlu1 %649  ;;  %1262 = vmatmul.mubr.f32.gmra.mrb[32].mxu1 %v1077_v16  ;;  %v1042_v44 = vmul.f32 %v9640_v35, %v1006_v36 }
 0x275   : > { %1267 = vmatprep.mubr.f32.mxu1 %v14030_v40 }
 0x276   : > { %v1078_v1 = vadd.f32 %v9646_v31, %v1042_v44 }
 0x278   : > { %v636_v26 = vpop.xlane.xlu1 %635  ;;  %1268 = vmatmul.mubr.f32.gmra.mrb[34].mxu1 %v1078_v1  ;;  %7850 = vmatmul.mubr.f32.gmra.mrb[24].mxu0 %v1078_v1 }
 0x279   : > { %1273 = vmatprep.mubr.f32.mxu1 %v14030_v40  ;;  %v688_v52 = vmul.f32 0.125, %v636_v26 }
 0x27b   : > { %v848_v41 = vmul.f32 %v688_v52, %v688_v52  ;;  %v912_v26 = vsub.f32 %v9530_v14, %v688_v52 }
 0x27c   : > { %v634_v37 = vpop.xlane.xlu1 %633 }
 0x27d   : > { %v687_v23 = vmul.f32 0.125, %v634_v37 }
 0x27f   : > { %v847_v10 = vmul.f32 %v687_v23, %v687_v23 }
 0x280   : > { %v764_v59 = vpop.xlane.xlu1 %763 }
 0x281   : > { %v816_v21 = vmul.f32 0.125, %v764_v59 }
 0x283   : > { %v880_v5 = vsub.f32 %v816_v21, %v848_v41  ;;  %v14035_v21 = vmov 0  }
 0x284   : > { %v762_v29 = vpop.xlane.xlu1 %761  ;;  %4980 = vmatprep.subr.bf16.mxu1 %v14035_v21  ;;  %v9737_v21 = vmul.f32 0.125, %v9707_v27 }
 0x285   : > { %v944_v33 = vadd.f32 1e-05, %v880_v5  ;;  %v815_v24 = vmul.f32 0.125, %v762_v29  ;;  %v911_v5 = vsub.f32 %v9532_v22, %v687_v23 }
 0x287   : > { %8364 = vrsqrt.f32 %v944_v33  ;;  %v879_v16 = vsub.f32 %v815_v24, %v847_v10 }
 0x288   : > { %v640_v28 = vpop.xlane.xlu1 %639 }
 0x289   : > { %v943_v36 = vadd.f32 1e-05, %v879_v16  ;;  %v690_v1 = vmul.f32 0.125, %v640_v28 }
 0x28b   : > { %8366 = vrsqrt.f32 %v943_v36  ;;  %v850_v7 = vmul.f32 %v690_v1, %v690_v1 }
 0x28c   : > { %v638_v44 = vpop.xlane.xlu1 %637 }
 0x28d   : > { %v689_v51 = vmul.f32 0.125, %v638_v44  ;;  %v9718_v44 = vmul.f32 0.125, %v9689_v48 }
 0x28f   : > { %v849_v33 = vmul.f32 %v689_v51, %v689_v51 }
 0x290   : > { %v768_v8 = vpop.xlane.xlu1 %767 }
 0x291   : > { %v8365_v40 = vpop.eup %8364  ;;  %v818_v37 = vmul.f32 0.125, %v768_v8 }
 0x292   : > { %v1008_v41 = vmul.f32 %v8365_v40, %v912_v26  ;;  %v821_v26 = vmul.f32 0.125, %v9692_v20  ;;  %v822_v20 = vmul.f32 0.125, %v9703_v34 }
 0x293   : > { %v882_v59 = vsub.f32 %v818_v37, %v850_v7 }
 0x294   : > { %v766_v29 = vpop.xlane.xlu1 %765  ;;  %v1044_v52 = vmul.f32 %v9640_v35, %v1008_v41 }
 0x295   : > { %v8367_v10 = vpop.eup %8366  ;;  %v946_v24 = vadd.f32 1e-05, %v882_v59  ;;  %v817_v16 = vmul.f32 0.125, %v766_v29  ;;  %v853_v59 = vmul.f32 %v9718_v44, %v9718_v44  ;;  %v14688_v29 = vmov 0.0  }
 0x296   : > { %v1007_v28 = vmul.f32 %v8367_v10, %v911_v5  ;;  %v1080_v37 = vadd.f32 %v9646_v31, %v1044_v52  ;;  %v9727_v5 = vmul.f32 0.125, %v9698_v32 }
 0x297   : > { %8368 = vrsqrt.f32 %v946_v24  ;;  %v881_v36 = vsub.f32 %v817_v16, %v849_v33  ;;  %v885_v10 = vsub.f32 %v821_v26, %v853_v59  ;;  %v913_v26 = vsub.f32 %v9539_v39, %v689_v51 }
 0x298   : > { %v644_v7 = vpop.xlane.xlu1 %643  ;;  %v1043_v8 = vmul.f32 %v9640_v35, %v1007_v28  ;;  %v854_v33 = vmul.f32 %v9727_v5, %v9727_v5  ;;  %v914_v28 = vsub.f32 %v9536_v38, %v690_v1  ;;  %v855_v51 = vmul.f32 %v9737_v21, %v9737_v21 }
 0x299   : > { %v945_v40 = vadd.f32 1e-05, %v881_v36  ;;  %v692_v48 = vmul.f32 0.125, %v644_v7  ;;  %v949_v7 = vadd.f32 1e-05, %v885_v10 }
 0x29a   : > { %v1079_v23 = vadd.f32 %v9646_v31, %v1043_v8  ;;  %v886_v8 = vsub.f32 %v822_v20, %v854_v33 }
 0x29b   : > { %8370 = vrsqrt.f32 %v945_v40  ;;  %v852_v32 = vmul.f32 %v692_v48, %v692_v48 }
 0x29c   : > { %v642_v41 = vpop.xlane.xlu1 %641  ;;  %1274 = vmatmul.mubr.f32.gmra.mrb[36].mxu1 %v1079_v23  ;;  %7852 = vmatprep.mubr.f32.mxu0 %v1079_v23  ;;  %8372 = vrsqrt.f32 %v949_v7  ;;  %v950_v1 = vadd.f32 1e-05, %v886_v8  ;;  %v658_v8 = vpop.xlane.xlu0 %657 }
 0x29d   : > { %7853 = vmatmul.mubr.f32.gmra.mrb[26].mxu0 %v1080_v37  ;;  %1279 = vmatprep.mubr.f32.mxu1 %v14688_v29  ;;  %v691_v36 = vmul.f32 0.125, %v642_v41 }
 0x2a0   : > { %v772_v24 = vpop.xlane.xlu1 %771  ;;  %1280 = vmatmul.mubr.f32.gmra.mrb[38].mxu1 %v1080_v37  ;;  %v851_v37 = vmul.f32 %v691_v36, %v691_v36 }
 0x2a1   : > { %v8369_v16 = vpop.eup %8368  ;;  %v820_v52 = vmul.f32 0.125, %v772_v24  ;;  %1285 = vmatprep.mubr.f32.mxu1 %v14688_v29 }
 0x2a2   : > { %v1010_v23 = vmul.f32 %v8369_v16, %v914_v28 }
 0x2a3   : > { %v884_v40 = vsub.f32 %v820_v52, %v852_v32 }
 0x2a4   : > { %v770_v34 = vpop.xlane.xlu1 %769  ;;  %v1046_v10 = vmul.f32 %v9640_v35, %v1010_v23 }
 0x2a5   : > { %v8371_v59 = vpop.eup %8370  ;;  %v948_v22 = vadd.f32 1e-05, %v884_v40  ;;  %v819_v14 = vmul.f32 0.125, %v770_v34  ;;  %v916_v34 = vsub.f32 %v9545_v42, %v692_v48  ;;  %v918_v48 = vsub.f32 %v9551_v45, %v9727_v5 }
 0x2a6   : > { %v1009_v41 = vmul.f32 %v8371_v59, %v913_v26  ;;  %v1082_v52 = vadd.f32 %v9646_v31, %v1046_v10  ;;  %v8373_v40 = vpop.eup %8372 }
 0x2a7   : > { %8374 = vrsqrt.f32 %v948_v22  ;;  %v883_v24 = vsub.f32 %v819_v14, %v851_v37 }
 0x2a8   : > { %v778_v20 = vpop.xlane.xlu1 %777  ;;  %v1045_v33 = vmul.f32 %v9640_v35, %v1009_v41  ;;  %8376 = vrsqrt.f32 %v950_v1  ;;  %v917_v1 = vsub.f32 %v9554_v47, %v9718_v44 }
 0x2a9   : > { %v947_v16 = vadd.f32 1e-05, %v883_v24  ;;  %v823_v28 = vmul.f32 0.125, %v778_v20  ;;  %v660_v20 = vpop.xlane.xlu0 %659 }
 0x2aa   : > { %v1081_v27 = vadd.f32 %v9646_v31, %v1045_v33  ;;  %v915_v33 = vsub.f32 %v9547_v43, %v691_v36 }
 0x2ab   : > { %8378 = vrsqrt.f32 %v947_v16  ;;  %v887_v32 = vsub.f32 %v823_v28, %v855_v51  ;;  %v1013_v16 = vmul.f32 %v8373_v40, %v917_v1 }
 0x2ac   : > { %v652_v7 = vpop.xlane.xlu1 %651  ;;  %1286 = vmatmul.mubr.f32.gmra.mrb[40].mxu1 %v1081_v27  ;;  %7855 = vmatprep.mubr.f32.mxu0 %v1081_v27 }
 0x2ad   : > { %v951_v14 = vadd.f32 1e-05, %v887_v32  ;;  %v9745_v22 = vmul.f32 0.125, %v652_v7  ;;  %7856 = vmatmul.mubr.f32.gmra.mrb[28].mxu0 %v1082_v52  ;;  %1291 = vmatprep.mubr.f32.mxu1 %v14688_v29  ;;  %v1049_v40 = vmul.f32 %v9640_v35, %v1013_v16 }
 0x2af   : > { %8380 = vrsqrt.f32 %v951_v14  ;;  %v856_v59 = vmul.f32 %v9745_v22, %v9745_v22  ;;  %v919_v14 = vsub.f32 %v9561_v50, %v9737_v21 }
 0x2b0   : > { %v780_v23 = vpop.xlane.xlu1 %779  ;;  %1292 = vmatmul.mubr.f32.gmra.mrb[42].mxu1 %v1082_v52 }
 0x2b1   : > { %v8375_v26 = vpop.eup %8374  ;;  %v824_v37 = vmul.f32 0.125, %v780_v23  ;;  %1297 = vmatprep.mubr.f32.mxu1 %v14688_v29 }
 0x2b2   : > { %v1012_v24 = vmul.f32 %v8375_v26, %v916_v34  ;;  %v8377_v10 = vpop.eup %8376 }
 0x2b3   : > { %v888_v41 = vsub.f32 %v824_v37, %v856_v59  ;;  %v1014_v44 = vmul.f32 %v8377_v10, %v918_v48  ;;  %v662_v59 = vpop.xlane.xlu0 %661 }
 0x2b4   : > { %v654_v51 = vpop.xlane.xlu1 %653  ;;  %v1048_v7 = vmul.f32 %v9640_v35, %v1012_v24 }
 0x2b5   : > { %v8379_v28 = vpop.eup %8378  ;;  %v952_v27 = vadd.f32 1e-05, %v888_v41  ;;  %v9757_v32 = vmul.f32 0.125, %v654_v51  ;;  %v1050_v10 = vmul.f32 %v9640_v35, %v1014_v44 }
 0x2b6   : > { %v1011_v52 = vmul.f32 %v8379_v28, %v915_v33  ;;  %v1084_v24 = vadd.f32 %v9646_v31, %v1048_v7  ;;  %v1085_v33 = vadd.f32 %v9646_v31, %v1049_v40 }
 0x2b7   : > { %8382 = vrsqrt.f32 %v952_v27  ;;  %v857_v5 = vmul.f32 %v9757_v32, %v9757_v32  ;;  %v1086_v48 = vadd.f32 %v9646_v31, %v1050_v10  ;;  %v664_v27 = vpop.xlane.xlu0 %663  ;;  %v9788_v10 = vmul.f32 0.125, %v660_v20 }
 0x2b8   : > { %v782_v23 = vpop.xlane.xlu1 %781  ;;  %v1047_v36 = vmul.f32 %v9640_v35, %v1011_v52  ;;  %v920_v52 = vsub.f32 %v9559_v49, %v9745_v22 }
 0x2b9   : > { %v8381_v26 = vpop.eup %8380  ;;  %v825_v34 = vmul.f32 0.125, %v782_v23  ;;  %v9778_v23 = vmul.f32 0.125, %v658_v8 }
 0x2ba   : > { %v1083_v37 = vadd.f32 %v9646_v31, %v1047_v36  ;;  %v1015_v1 = vmul.f32 %v8381_v26, %v919_v14 }
 0x2bb   : > { %v889_v41 = vsub.f32 %v825_v34, %v857_v5  ;;  %v859_v5 = vmul.f32 %v9778_v23, %v9778_v23 }
 0x2bc   : > { %v656_v21 = vpop.xlane.xlu1 %655  ;;  %1298 = vmatmul.mubr.f32.gmra.mrb[44].mxu1 %v1083_v37  ;;  %7858 = vmatprep.mubr.f32.mxu0 %v1083_v37  ;;  %v1051_v51 = vmul.f32 %v9640_v35, %v1015_v1 }
 0x2bd   : > { %v953_v16 = vadd.f32 1e-05, %v889_v41  ;;  %v9771_v28 = vmul.f32 0.125, %v656_v21  ;;  %7859 = vmatmul.mubr.f32.gmra.mrb[30].mxu0 %v1084_v24  ;;  %1303 = vmatprep.mubr.f32.mxu1 %v14688_v29  ;;  %v666_v41 = vpop.xlane.xlu0 %665 }
 0x2be   : > { %7861 = vmatprep.mubr.f32.mxu0 %v1085_v33  ;;  %v1087_v44 = vadd.f32 %v9646_v31, %v1051_v51  ;;  %v921_v51 = vsub.f32 %v9568_v58, %v9757_v32 }
 0x2bf   : > { %8384 = vrsqrt.f32 %v953_v16  ;;  %v858_v36 = vmul.f32 %v9771_v28, %v9771_v28 }
 0x2c0   : > { %v784_v7 = vpop.xlane.xlu1 %783  ;;  %1304 = vmatmul.mubr.f32.gmra.mrb[46].mxu1 %v1084_v24 }
 0x2c1   : > { %v8383_v14 = vpop.eup %8382  ;;  %v826_v40 = vmul.f32 0.125, %v784_v7  ;;  %7862 = vmatmul.mubr.f32.gmra.mrb[32].mxu0 %v1086_v48  ;;  %1309 = vmatprep.mubr.f32.mxu1 %v14688_v29  ;;  %v9794_v7 = vmul.f32 0.125, %v662_v59  ;;  %v668_v32 = vpop.xlane.xlu0 %667 }
 0x2c2   : > { %7864 = vmatprep.mubr.f32.mxu0 %v1087_v44  ;;  %v1016_v26 = vmul.f32 %v8383_v14, %v920_v52  ;;  %v860_v52 = vmul.f32 %v9788_v10, %v9788_v10 }
 0x2c3   : > { %v890_v22 = vsub.f32 %v826_v40, %v858_v36  ;;  %v861_v40 = vmul.f32 %v9794_v7, %v9794_v7 }
 0x2c4   : > { %v786_v34 = vpop.xlane.xlu1 %785  ;;  %1310 = vmatmul.mubr.f32.gmra.mrb[48].mxu1 %v1085_v33  ;;  %v1052_v37 = vmul.f32 %v9640_v35, %v1016_v26 }
 0x2c5   : > { %v954_v1 = vadd.f32 1e-05, %v890_v22  ;;  %v827_v8 = vmul.f32 0.125, %v786_v34  ;;  %1315 = vmatprep.mubr.f32.mxu1 %v14688_v29 }
 0x2c6   : > { %v1088_v24 = vadd.f32 %v9646_v31, %v1052_v37  ;;  %v9802_v37 = vmul.f32 0.125, %v664_v27  ;;  %v670_v27 = vpop.xlane.xlu0 %669 }
 0x2c7   : > { %8386 = vrsqrt.f32 %v954_v1  ;;  %v891_v21 = vsub.f32 %v827_v8, %v859_v5  ;;  %v922_v8 = vsub.f32 %v9566_v55, %v9771_v28 }
 0x2c8   : > { %v788_v16 = vpop.xlane.xlu1 %787  ;;  %1316 = vmatmul.mubr.f32.gmra.mrb[50].mxu1 %v1086_v48  ;;  %7865 = vmatmul.mubr.f32.gmra.mrb[34].mxu0 %v1088_v24 }
 0x2c9   : > { %v8385_v33 = vpop.eup %8384  ;;  %v955_v14 = vadd.f32 1e-05, %v891_v21  ;;  %v828_v36 = vmul.f32 0.125, %v788_v16  ;;  %1321 = vmatprep.mubr.f32.mxu1 %v14688_v29  ;;  %v9808_v16 = vmul.f32 0.125, %v666_v41 }
 0x2ca   : > { %v1017_v20 = vmul.f32 %v8385_v33, %v921_v51 }
 0x2cb   : > { %8388 = vrsqrt.f32 %v955_v14  ;;  %v892_v26 = vsub.f32 %v828_v36, %v860_v52  ;;  %v863_v36 = vmul.f32 %v9808_v16, %v9808_v16 }
 0x2cc   : > { %v790_v5 = vpop.xlane.xlu1 %789  ;;  %1322 = vmatmul.mubr.f32.gmra.mrb[52].mxu1 %v1087_v44  ;;  %v1053_v48 = vmul.f32 %v9640_v35, %v1017_v20  ;;  %v862_v44 = vmul.f32 %v9802_v37, %v9802_v37 }
 0x2cd   : > { %v956_v22 = vadd.f32 1e-05, %v892_v26  ;;  %v829_v34 = vmul.f32 0.125, %v790_v5  ;;  %1327 = vmatprep.mubr.f32.mxu1 %v14688_v29 }
 0x2ce   : > { %v1089_v59 = vadd.f32 %v9646_v31, %v1053_v48 }
 0x2cf   : > { %8390 = vrsqrt.f32 %v956_v22  ;;  %v893_v1 = vsub.f32 %v829_v34, %v861_v40  ;;  %v9818_v34 = vmul.f32 0.125, %v668_v32 }
 0x2d0   : > { %v792_v21 = vpop.xlane.xlu1 %791  ;;  %1328 = vmatmul.mubr.f32.gmra.mrb[54].mxu1 %v1088_v24  ;;  %7867 = vmatprep.mubr.f32.mxu0 %v1089_v59  ;;  %v923_v24 = vsub.f32 %v9575_v62, %v9778_v23  ;;  %v672_v23 = vpop.xlane.xlu0 %671 }
 0x2d1   : > { %v8387_v51 = vpop.eup %8386  ;;  %v957_v33 = vadd.f32 1e-05, %v893_v1  ;;  %v830_v52 = vmul.f32 0.125, %v792_v21  ;;  %1333 = vmatprep.mubr.f32.mxu1 %v14688_v29 }
 0x2d2   : > { %v1018_v14 = vmul.f32 %v8387_v51, %v922_v8  ;;  %v924_v8 = vsub.f32 %v9573_v60, %v9788_v10 }
 0x2d3   : > { %8392 = vrsqrt.f32 %v957_v33  ;;  %v894_v28 = vsub.f32 %v830_v52, %v862_v44  ;;  %v864_v44 = vmul.f32 %v9818_v34, %v9818_v34  ;;  %v9825_v33 = vmul.f32 0.125, %v670_v27 }
 0x2d4   : > { %v794_v20 = vpop.xlane.xlu1 %793  ;;  %1334 = vmatmul.mubr.f32.gmra.mrb[56].mxu1 %v1089_v59  ;;  %v1054_v40 = vmul.f32 %v9640_v35, %v1018_v14 }
 0x2d5   : > { %v8389_v41 = vpop.eup %8388  ;;  %v958_v26 = vadd.f32 1e-05, %v894_v28  ;;  %v831_v5 = vmul.f32 0.125, %v794_v20  ;;  %1339 = vmatprep.mubr.f32.mxu1 %v14688_v29  ;;  %v865_v10 = vmul.f32 %v9825_v33, %v9825_v33 }
 0x2d6   : > { %v1090_v48 = vadd.f32 %v9646_v31, %v1054_v40  ;;  %v1019_v22 = vmul.f32 %v8389_v41, %v923_v24  ;;  %v925_v24 = vsub.f32 %v9583_v0, %v9794_v7  ;;  %v926_v7 = vsub.f32 %v9580_v63, %v9802_v37 }
 0x2d7   : > { %8394 = vrsqrt.f32 %v958_v26  ;;  %v895_v1 = vsub.f32 %v831_v5, %v863_v36  ;;  %v674_v5 = vpop.xlane.xlu0 %673 }
 0x2d8   : > { %v796_v21 = vpop.xlane.xlu1 %795  ;;  %1340 = vmatmul.mubr.f32.gmra.mrb[58].mxu1 %v1090_v48  ;;  %7868 = vmatmul.mubr.f32.gmra.mrb[36].mxu0 %v1090_v48  ;;  %v1055_v59 = vmul.f32 %v9640_v35, %v1019_v22 }
 0x2d9   : > { %v8391_v51 = vpop.eup %8390  ;;  %v959_v52 = vadd.f32 1e-05, %v895_v1  ;;  %v832_v32 = vmul.f32 0.125, %v796_v21  ;;  %1345 = vmatprep.mubr.f32.mxu1 %v14688_v29  ;;  %v9836_v1 = vmul.f32 0.125, %v672_v23 }
 0x2da   : > { %v1091_v14 = vadd.f32 %v9646_v31, %v1055_v59  ;;  %v1020_v36 = vmul.f32 %v8391_v51, %v924_v8 }
 0x2db   : > { %8396 = vrsqrt.f32 %v959_v52  ;;  %v896_v28 = vsub.f32 %v832_v32, %v864_v44  ;;  %v866_v44 = vmul.f32 %v9836_v1, %v9836_v1  ;;  %v9843_v52 = vmul.f32 0.125, %v674_v5 }
 0x2dc   : > { %v798_v20 = vpop.xlane.xlu1 %797  ;;  %1346 = vmatmul.mubr.f32.gmra.mrb[60].mxu1 %v1091_v14  ;;  %7870 = vmatprep.mubr.f32.mxu0 %v1091_v14  ;;  %v1056_v27 = vmul.f32 %v9640_v35, %v1020_v36 }
 0x2dd   : > { %v8393_v40 = vpop.eup %8392  ;;  %v960_v41 = vadd.f32 1e-05, %v896_v28  ;;  %v833_v26 = vmul.f32 0.125, %v798_v20  ;;  %1351 = vmatprep.mubr.f32.mxu1 %v14688_v29  ;;  %v867_v37 = vmul.f32 %v9843_v52, %v9843_v52  ;;  %v927_v28 = vsub.f32 %v9592_v4, %v9808_v16 }
 0x2de   : > { %v1092_v48 = vadd.f32 %v9646_v31, %v1056_v27  ;;  %v1021_v22 = vmul.f32 %v8393_v40, %v925_v24  ;;  %v676_v24 = vpop.xlane.xlu0 %675  ;;  %v928_v16 = vsub.f32 %v9590_v3, %v9818_v34 }
 0x2df   : > { %8398 = vrsqrt.f32 %v960_v41  ;;  %v897_v8 = vsub.f32 %v833_v26, %v865_v10 }
 0x2e0   : > { %v800_v21 = vpop.xlane.xlu1 %799  ;;  %1352 = vmatmul.mubr.f32.gmra.mrb[62].mxu1 %v1092_v48  ;;  %7871 = vmatmul.mubr.f32.gmra.mrb[38].mxu0 %v1092_v48  ;;  %v1057_v59 = vmul.f32 %v9640_v35, %v1021_v22  ;;  %v708_v22 = vmul.f32 0.125, %v676_v24 }
 0x2e1   : > { %v8395_v51 = vpop.eup %8394  ;;  %v961_v32 = vadd.f32 1e-05, %v897_v8  ;;  %v834_v14 = vmul.f32 0.125, %v800_v21  ;;  %1357 = vmatprep.mubr.f32.mxu1 %v14688_v29 }
 0x2e2   : > { %v1093_v23 = vadd.f32 %v9646_v31, %v1057_v59  ;;  %v1022_v36 = vmul.f32 %v8395_v51, %v926_v7  ;;  %v868_v51 = vmul.f32 %v708_v22, %v708_v22 }
 0x2e3   : > { %8400 = vrsqrt.f32 %v961_v32  ;;  %v898_v10 = vsub.f32 %v834_v14, %v866_v44 }
 0x2e4   : > { %v802_v20 = vpop.xlane.xlu1 %801  ;;  %1358 = vmatmul.mubr.f32.gmra.mrb[64].mxu1 %v1093_v23  ;;  %7873 = vmatprep.mubr.f32.mxu0 %v1093_v23  ;;  %v1058_v27 = vmul.f32 %v9640_v35, %v1022_v36 }
 0x2e5   : > { %v8397_v40 = vpop.eup %8396  ;;  %v962_v41 = vadd.f32 1e-05, %v898_v10  ;;  %v835_v26 = vmul.f32 0.125, %v802_v20  ;;  %1363 = vmatprep.mubr.f32.mxu1 %v14688_v29 }
 0x2e6   : > { %v1094_v5 = vadd.f32 %v9646_v31, %v1058_v27  ;;  %v1023_v48 = vmul.f32 %v8397_v40, %v927_v28  ;;  %v930_v27 = vsub.f32 %v9598_v6, %v9836_v1 }
 0x2e7   : > { %8402 = vrsqrt.f32 %v962_v41  ;;  %v899_v8 = vsub.f32 %v835_v26, %v867_v37  ;;  %v929_v37 = vsub.f32 %v9601_v9, %v9825_v33 }
 0x2e8   : > { %v804_v7 = vpop.xlane.xlu1 %803  ;;  %1364 = vmatmul.mubr.f32.gmra.mrb[66].mxu1 %v1094_v5  ;;  %7874 = vmatmul.mubr.f32.gmra.mrb[40].mxu0 %v1094_v5  ;;  %v1059_v21 = vmul.f32 %v9640_v35, %v1023_v48  ;;  %v931_v5 = vsub.f32 %v9610_v15, %v9843_v52 }
 0x2e9   : > { %v8399_v59 = vpop.eup %8398  ;;  %v963_v44 = vadd.f32 1e-05, %v899_v8  ;;  %v836_v32 = vmul.f32 0.125, %v804_v7  ;;  %1369 = vmatprep.mubr.f32.mxu1 %v14688_v29  ;;  %v932_v7 = vsub.f32 %v9608_v11, %v708_v22  ;;  %v9883_v22 = vrot.slane %v9447_v13, %v9445_v12 }
 0x2ea   : > { %v1095_v14 = vadd.f32 %v9646_v31, %v1059_v21  ;;  %v1024_v23 = vmul.f32 %v8399_v59, %v928_v16 }
 0x2eb   : > { %8404 = vrsqrt.f32 %v963_v44  ;;  %v900_v36 = vsub.f32 %v836_v32, %v868_v51  ;;  %14689 = vst [vmem:[#allocation41_spill] sm:$0xff] %v9883_v22 }
 0x2ec   : > { %1370 = vmatmul.mubr.f32.gmra.mrb[68].mxu1 %v1095_v14  ;;  %7876 = vmatprep.mubr.f32.mxu0 %v1095_v14  ;;  %v1060_v34 = vmul.f32 %v9640_v35, %v1024_v23 }
 0x2ed   : > { %v8401_v10 = vpop.eup %8400  ;;  %v964_v28 = vadd.f32 1e-05, %v900_v36  ;;  %1375 = vmatprep.mubr.f32.mxu1 %v14688_v29 }
 0x2ee   : > { %v1096_v24 = vadd.f32 %v9646_v31, %v1060_v34  ;;  %v1025_v20 = vmul.f32 %v8401_v10, %v929_v37 }
 0x2ef   : > { %8406 = vrsqrt.f32 %v964_v28 }
 0x2f0   : > { %1376 = vmatmul.mubr.f32.gmra.mrb[70].mxu1 %v1096_v24  ;;  %7877 = vmatmul.mubr.f32.gmra.mrb[42].mxu0 %v1096_v24  ;;  %v1061_v40 = vmul.f32 %v9640_v35, %v1025_v20 }
 0x2f1   : > { %v8403_v33 = vpop.eup %8402  ;;  %1381 = vmatprep.mubr.f32.mxu1 %v14688_v29 }
 0x2f2   : > { %v1097_v41 = vadd.f32 %v9646_v31, %v1061_v40  ;;  %v1026_v26 = vmul.f32 %v8403_v33, %v930_v27  ;;  %v14690_v33 = vmov 0  }
 0x2f4   : > { %1382 = vmatmul.mubr.f32.gmra.mrb[72].mxu1 %v1097_v41  ;;  %7879 = vmatprep.mubr.f32.mxu0 %v1097_v41  ;;  %v1062_v48 = vmul.f32 %v9640_v35, %v1026_v26 }
 0x2f5   : > { %v8405_v8 = vpop.eup %8404  ;;  %1387 = vmatprep.mubr.f32.mxu1 %v14688_v29 }
 0x2f6   : > { %v1098_v1 = vadd.f32 %v9646_v31, %v1062_v48  ;;  %v1027_v16 = vmul.f32 %v8405_v8, %v931_v5 }
 0x2f8   : > { %1388 = vmatmul.mubr.f32.gmra.mrb[74].mxu1 %v1098_v1  ;;  %7880 = vmatmul.mubr.f32.gmra.mrb[44].mxu0 %v1098_v1  ;;  %v1063_v21 = vmul.f32 %v9640_v35, %v1027_v16 }
 0x2f9   : > { %v8407_v59 = vpop.eup %8406  ;;  %1393 = vmatprep.mubr.f32.mxu1 %v14688_v29 }
 0x2fa   : > { %v1099_v52 = vadd.f32 %v9646_v31, %v1063_v21  ;;  %v1028_v51 = vmul.f32 %v8407_v59, %v932_v7 }
 0x2fc   : > { %1394 = vmatmul.mubr.f32.gmra.mrb[76].mxu1 %v1099_v52  ;;  %7882 = vmatprep.mubr.f32.mxu0 %v1099_v52  ;;  %v1064_v44 = vmul.f32 %v9640_v35, %v1028_v51 }
 0x2fd   : > { %1399 = vmatprep.mubr.f32.mxu1 %v14688_v29 }
 0x2fe   : > { %v1100_v32 = vadd.f32 %v9646_v31, %v1064_v44 }
 0x300   : > { %1400 = vmatmul.mubr.f32.gmra.mrb[78].mxu1 %v1100_v32  ;;  %7883 = vmatmul.mubr.f32.gmra.mrb[46].mxu0 %v1100_v32 }
 0x30f   : > { %v1215_v14 = vpop.f32.mrb[16].mxu1 }
 0x310   : > { %v9885_v23 = vpop.f32.mrb[17].mxu1  ;;  %v7839_v36 = vpop.f32.mrb[16].mxu0  ;;  %v1651_v28 = vmul.f32 %v9883_v22, %v1215_v14  ;;  %v1683_v35 = vmul.f32 %v9452_v17, %v1215_v14  ;;  %v1715_v29 = vmul.f32 %v9455_v18, %v1215_v14  ;;  %v1747_v31 = vmul.f32 %v9458_v19, %v1215_v14 }
 0x311   : > { %v1472_v37 = vpop.f32.mrb[17].mxu0 }
 0x312   : > { %v4964_v34 = vpack.c.bf16 %v7839_v36, %v1472_v37 }
 0x313   : > { %v1221_v10 = vpop.f32.mrb[18].mxu1 }
 0x314   : > { %v9891_v24 = vpop.f32.mrb[19].mxu1  ;;  %4981 = vmatpush1.bf16.msra.mxu1 %v4964_v34  ;;  %v1652_v12 = vmul.f32 %v9883_v22, %v1221_v10  ;;  %v1684_v13 = vmul.f32 %v9452_v17, %v1221_v10  ;;  %v1716_v20 = vmul.f32 %v9455_v18, %v1221_v10  ;;  %v1748_v27 = vmul.f32 %v9458_v19, %v1221_v10 }
 0x315   : > { %4982 = vmatprep.subr.bf16.mxu1 %v14690_v33 }
 0x316   : > { %v9900_v41 = vpack.c.bf16 %v1652_v12, %v1651_v28  ;;  %v9902_v26 = vpack.c.bf16 %v1684_v13, %v1683_v35  ;;  %v9904_v5 = vpack.c.bf16 %v1716_v20, %v1715_v29  ;;  %v9906_v48 = vpack.c.bf16 %v1748_v27, %v1747_v31 }
 0x318   : > { %14691 = vst [vmem:[#allocation42_spill] sm:$0xff] %v9906_v48  ;;  %7449 = vmatprep.mubr.bf16.mxu0 %v9900_v41 }
 0x31f   : > { %v1227_v8 = vpop.f32.mrb[20].mxu1 }
 0x320   : > { %v9909_v1 = vpop.f32.mrb[21].mxu1  ;;  %v7842_v16 = vpop.f32.mrb[18].mxu0  ;;  %v1653_v52 = vmul.f32 %v9883_v22, %v1227_v8  ;;  %v1685_v51 = vmul.f32 %v9452_v17, %v1227_v8  ;;  %v1717_v44 = vmul.f32 %v9455_v18, %v1227_v8  ;;  %v1749_v32 = vmul.f32 %v9458_v19, %v1227_v8 }
 0x321   : > { %v1482_v7 = vpop.f32.mrb[19].mxu0 }
 0x322   : > { %v4965_v21 = vpack.c.bf16 %v7842_v16, %v1482_v7 }
 0x323   : > { %v1233_v59 = vpop.f32.mrb[22].mxu1 }
 0x324   : > { %v9915_v14 = vpop.f32.mrb[23].mxu1  ;;  %4983 = vmatpush1.bf16.msra.mxu1 %v4965_v21  ;;  %v1654_v36 = vmul.f32 %v9883_v22, %v1233_v59  ;;  %v1686_v37 = vmul.f32 %v9452_v17, %v1233_v59  ;;  %v1718_v34 = vmul.f32 %v9455_v18, %v1233_v59  ;;  %v1750_v10 = vmul.f32 %v9458_v19, %v1233_v59 }
 0x325   : > { %4984 = vmatprep.subr.bf16.mxu1 %v14690_v33 }
 0x326   : > { %v9924_v35 = vpack.c.bf16 %v1654_v36, %v1653_v52  ;;  %v9926_v29 = vpack.c.bf16 %v1686_v37, %v1685_v51  ;;  %v9928_v31 = vpack.c.bf16 %v1718_v34, %v1717_v44  ;;  %v9930_v12 = vpack.c.bf16 %v1750_v10, %v1749_v32 }
 0x328   : > { %14692 = vst [vmem:[#allocation43_spill] sm:$0xff] %v9930_v12 }
 0x32f   : > { %v1239_v13 = vpop.f32.mrb[24].mxu1 }
 0x330   : > { %v9932_v20 = vpop.f32.mrb[25].mxu1  ;;  %v7845_v27 = vpop.f32.mrb[20].mxu0  ;;  %v1655_v21 = vmul.f32 %v9883_v22, %v1239_v13  ;;  %v1687_v59 = vmul.f32 %v9452_v17, %v1239_v13  ;;  %v1719_v52 = vmul.f32 %v9455_v18, %v1239_v13  ;;  %v1751_v51 = vmul.f32 %v9458_v19, %v1239_v13 }
 0x331   : > { %v1492_v8 = vpop.f32.mrb[21].mxu0 }
 0x332   : > { %v4966_v16 = vpack.c.bf16 %v7845_v27, %v1492_v8 }
 0x333   : > { %v1245_v7 = vpop.f32.mrb[26].mxu1 }
 0x334   : > { %v9938_v36 = vpop.f32.mrb[27].mxu1  ;;  %4985 = vmatpush1.bf16.msra.mxu1 %v4966_v16  ;;  %v1656_v44 = vmul.f32 %v9883_v22, %v1245_v7  ;;  %v1688_v32 = vmul.f32 %v9452_v17, %v1245_v7  ;;  %v1720_v37 = vmul.f32 %v9455_v18, %v1245_v7  ;;  %v1752_v34 = vmul.f32 %v9458_v19, %v1245_v7 }
 0x335   : > { %4986 = vmatprep.subr.bf16.mxu1 %v14690_v33 }
 0x336   : > { %v9947_v27 = vpack.c.bf16 %v1656_v44, %v1655_v21  ;;  %v9949_v8 = vpack.c.bf16 %v1688_v32, %v1687_v59  ;;  %v9951_v13 = vpack.c.bf16 %v1720_v37, %v1719_v52  ;;  %v9953_v16 = vpack.c.bf16 %v1752_v34, %v1751_v51 }
 0x338   : > { %14693 = vst [vmem:[#allocation44_spill] sm:$0xff] %v9953_v16 }
 0x33f   : > { %v1251_v28 = vpop.f32.mrb[28].mxu1 }
 0x340   : > { %v9955_v40 = vpop.f32.mrb[29].mxu1  ;;  %v7848_v15 = vpop.f32.mrb[22].mxu0  ;;  %v1657_v6 = vmul.f32 %v9883_v22, %v1251_v28  ;;  %v1689_v10 = vmul.f32 %v9452_v17, %v1251_v28  ;;  %v1721_v21 = vmul.f32 %v9455_v18, %v1251_v28  ;;  %v1753_v59 = vmul.f32 %v9458_v19, %v1251_v28 }
 0x341   : > { %v1502_v11 = vpop.f32.mrb[23].mxu0 }
 0x342   : > { %v4967_v9 = vpack.c.bf16 %v7848_v15, %v1502_v11 }
 0x343   : > { %v1257_v7 = vpop.f32.mrb[30].mxu1 }
 0x344   : > { %v9961_v44 = vpop.f32.mrb[31].mxu1  ;;  %4987 = vmatpush1.bf16.msra.mxu1 %v4967_v9  ;;  %v1658_v52 = vmul.f32 %v9883_v22, %v1257_v7  ;;  %v1690_v51 = vmul.f32 %v9452_v17, %v1257_v7  ;;  %v1722_v32 = vmul.f32 %v9455_v18, %v1257_v7  ;;  %v1754_v11 = vmul.f32 %v9458_v19, %v1257_v7 }
 0x345   : > { %4988 = vmatprep.subr.bf16.mxu1 %v14690_v33 }
 0x346   : > { %v9970_v37 = vpack.c.bf16 %v1658_v52, %v1657_v6  ;;  %v9972_v34 = vpack.c.bf16 %v1690_v51, %v1689_v10  ;;  %v9974_v28 = vpack.c.bf16 %v1722_v32, %v1721_v21  ;;  %v9976_v9 = vpack.c.bf16 %v1754_v11, %v1753_v59 }
 0x347   : > { %v1263_v4 = vpop.f32.mrb[32].mxu1 }
 0x348   : > { %14694 = vst [vmem:[#allocation45_spill] sm:$0xff] %v9976_v9  ;;  %v9978_v3 = vpop.f32.mrb[33].mxu1  ;;  %v1659_v7 = vmul.f32 %v9883_v22, %v1263_v4  ;;  %v1691_v62 = vmul.f32 %v9452_v17, %v1263_v4  ;;  %v1723_v15 = vmul.f32 %v9455_v18, %v1263_v4  ;;  %v1755_v6 = vmul.f32 %v9458_v19, %v1263_v4 }
 0x34b   : > { %v1269_v0 = vpop.f32.mrb[34].mxu1  ;;  %v7851_v63 = vpop.f32.mrb[24].mxu0 }
 0x34c   : > { %v9984_v52 = vpop.f32.mrb[35].mxu1  ;;  %v1512_v10 = vpop.f32.mrb[25].mxu0  ;;  %v1660_v21 = vmul.f32 %v9883_v22, %v1269_v0  ;;  %v1692_v59 = vmul.f32 %v9452_v17, %v1269_v0  ;;  %v1724_v51 = vmul.f32 %v9455_v18, %v1269_v0  ;;  %v1756_v32 = vmul.f32 %v9458_v19, %v1269_v0 }
 0x34d   : > { %v4968_v60 = vpack.c.bf16 %v7851_v63, %v1512_v10 }
 0x34e   : > { %v9992_v58 = vpack.c.bf16 %v1660_v21, %v1659_v7  ;;  %v9994_v55 = vpack.c.bf16 %v1692_v59, %v1691_v62  ;;  %v9996_v4 = vpack.c.bf16 %v1724_v51, %v1723_v15  ;;  %v9998_v50 = vpack.c.bf16 %v1756_v32, %v1755_v6 }
 0x34f   : > { %4989 = vmatpush1.bf16.msra.mxu1 %v4968_v60 }
 0x350   : > { %14695 = vst [vmem:[#allocation46_spill] sm:$0xff] %v9998_v50  ;;  %4990 = vmatprep.subr.bf16.mxu1 %v14690_v33 }
 0x36f   : > { %v1275_v49 = vpop.f32.mrb[36].mxu1 }
 0x370   : > { %v10001_v47 = vpop.f32.mrb[37].mxu1  ;;  %v7854_v45 = vpop.f32.mrb[26].mxu0  ;;  %v1661_v63 = vmul.f32 %v9883_v22, %v1275_v49  ;;  %v1693_v7 = vmul.f32 %v9452_v17, %v1275_v49  ;;  %v1725_v62 = vmul.f32 %v9455_v18, %v1275_v49  ;;  %v1757_v15 = vmul.f32 %v9458_v19, %v1275_v49 }
 0x371   : > { %v1522_v0 = vpop.f32.mrb[27].mxu0 }
 0x372   : > { %v4969_v43 = vpack.c.bf16 %v7854_v45, %v1522_v0 }
 0x373   : > { %v1281_v42 = vpop.f32.mrb[38].mxu1 }
 0x374   : > { %v10007_v6 = vpop.f32.mrb[39].mxu1  ;;  %4991 = vmatpush1.bf16.msra.mxu1 %v4969_v43  ;;  %v1662_v60 = vmul.f32 %v9883_v22, %v1281_v42  ;;  %v1694_v10 = vmul.f32 %v9452_v17, %v1281_v42  ;;  %v1726_v21 = vmul.f32 %v9455_v18, %v1281_v42  ;;  %v1758_v45 = vmul.f32 %v9458_v19, %v1281_v42 }
 0x375   : > { %4992 = vmatprep.subr.bf16.mxu1 %v14690_v33 }
 0x376   : > { %v10016_v51 = vpack.c.bf16 %v1662_v60, %v1661_v63  ;;  %v10018_v32 = vpack.c.bf16 %v1694_v10, %v1693_v7  ;;  %v10020_v49 = vpack.c.bf16 %v1726_v21, %v1725_v62  ;;  %v10022_v43 = vpack.c.bf16 %v1758_v45, %v1757_v15 }
 0x378   : > { %14696 = vst [vmem:[#allocation47_spill] sm:$0xff] %v10020_v49  ;;  %14697 = vst [vmem:[#allocation48_spill] sm:$0xff] %v10022_v43  ;;  %v14704_v49 = vpack.c.bf16 %v9891_v24, %v9885_v23 }
 0x37f   : > { %v1287_v0 = vpop.f32.mrb[40].mxu1 }
 0x380   : > { %v10024_v11 = vpop.f32.mrb[41].mxu1  ;;  %v7857_v39 = vpop.f32.mrb[28].mxu0  ;;  %v1663_v30 = vmul.f32 %v9883_v22, %v1287_v0  ;;  %v1695_v59 = vmul.f32 %v9452_v17, %v1287_v0  ;;  %v1727_v63 = vmul.f32 %v9455_v18, %v1287_v0  ;;  %v1759_v7 = vmul.f32 %v9458_v19, %v1287_v0 }
 0x381   : > { %v1532_v38 = vpop.f32.mrb[29].mxu0 }
 0x382   : > { %v4970_v46 = vpack.c.bf16 %v7857_v39, %v1532_v38 }
 0x383   : > { %v1293_v42 = vpop.f32.mrb[42].mxu1 }
 0x384   : > { %v10030_v60 = vpop.f32.mrb[43].mxu1  ;;  %4993 = vmatpush1.bf16.msra.mxu1 %v4970_v46  ;;  %v1664_v62 = vmul.f32 %v9883_v22, %v1293_v42  ;;  %v1696_v15 = vmul.f32 %v9452_v17, %v1293_v42  ;;  %v1728_v10 = vmul.f32 %v9455_v18, %v1293_v42  ;;  %v1760_v38 = vmul.f32 %v9458_v19, %v1293_v42 }
 0x385   : > { %4994 = vmatprep.subr.bf16.mxu1 %v14690_v33 }
 0x386   : > { %v10039_v21 = vpack.c.bf16 %v1664_v62, %v1663_v30  ;;  %v10041_v45 = vpack.c.bf16 %v1696_v15, %v1695_v59  ;;  %v10043_v0 = vpack.c.bf16 %v1728_v10, %v1727_v63  ;;  %v10045_v46 = vpack.c.bf16 %v1760_v38, %v1759_v7 }
 0x388   : > { %14698 = vst [vmem:[#allocation49_spill] sm:$0xff] %v10043_v0  ;;  %14699 = vst [vmem:[#allocation50_spill] sm:$0xff] %v10045_v46 }
 0x38f   : > { %v1299_v25 = vpop.f32.mrb[44].mxu1 }
 0x390   : > { %v10047_v2 = vpop.f32.mrb[45].mxu1  ;;  %v7860_v61 = vpop.f32.mrb[30].mxu0  ;;  %v1665_v54 = vmul.f32 %v9883_v22, %v1299_v25  ;;  %v1697_v39 = vmul.f32 %v9452_v17, %v1299_v25  ;;  %v1729_v30 = vmul.f32 %v9455_v18, %v1299_v25  ;;  %v1761_v38 = vmul.f32 %v9458_v19, %v1299_v25 }
 0x391   : > { %v1542_v57 = vpop.f32.mrb[31].mxu0 }
 0x392   : > { %v4971_v56 = vpack.c.bf16 %v7860_v61, %v1542_v57 }
 0x393   : > { %v1305_v42 = vpop.f32.mrb[46].mxu1 }
 0x394   : > { %v10052_v62 = vpop.f32.mrb[47].mxu1  ;;  %v7863_v59 = vpop.f32.mrb[32].mxu0  ;;  %4995 = vmatpush1.bf16.msra.mxu1 %v4971_v56  ;;  %v1666_v63 = vmul.f32 %v9883_v22, %v1305_v42  ;;  %v1698_v7 = vmul.f32 %v9452_v17, %v1305_v42  ;;  %v1730_v15 = vmul.f32 %v9455_v18, %v1305_v42  ;;  %v1762_v10 = vmul.f32 %v9458_v19, %v1305_v42 }
 0x395   : > { %v1552_v61 = vpop.f32.mrb[33].mxu0  ;;  %4996 = vmatprep.subr.bf16.mxu1 %v14690_v33 }
 0x396   : > { %v4972_v53 = vpack.c.bf16 %v7863_v59, %v1552_v61  ;;  %v10062_v46 = vpack.c.bf16 %v1666_v63, %v1665_v54  ;;  %v10064_v56 = vpack.c.bf16 %v1698_v7, %v1697_v39  ;;  %v10066_v43 = vpack.c.bf16 %v1730_v15, %v1729_v30 }
 0x397   : > { %v1311_v50 = vpop.f32.mrb[48].mxu1  ;;  %v10068_v9 = vpack.c.bf16 %v1762_v10, %v1761_v38 }
 0x398   : > { %14700 = vst [vmem:[#allocation51_spill] sm:$0xff] %v10066_v43  ;;  %v1313_v16 = vpop.f32.mrb[49].mxu1  ;;  %4997 = vmatpush1.bf16.msra.mxu1 %v4972_v53  ;;  %v1667_v12 = vmul.f32 %v9883_v22, %v1311_v50  ;;  %v1699_v25 = vmul.f32 %v9452_v17, %v1311_v50  ;;  %v1731_v54 = vmul.f32 %v9455_v18, %v1311_v50 }
 0x399   : > { %14701 = vst [vmem:[#allocation52_spill] sm:$0xff] %v10068_v9  ;;  %4998 = vmatprep.subr.bf16.mxu1 %v14690_v33  ;;  %v1763_v39 = vmul.f32 %v9458_v19, %v1311_v50 }
 0x39b   : > { %v1317_v42 = vpop.f32.mrb[50].mxu1  ;;  %v7866_v57 = vpop.f32.mrb[34].mxu0 }
 0x39c   : > { %v1319_v59 = vpop.f32.mrb[51].mxu1  ;;  %v1562_v30 = vpop.f32.mrb[35].mxu0  ;;  %v1668_v63 = vmul.f32 %v9883_v22, %v1317_v42  ;;  %v1700_v7 = vmul.f32 %v9452_v17, %v1317_v42  ;;  %v1732_v53 = vmul.f32 %v9455_v18, %v1317_v42  ;;  %v1764_v15 = vmul.f32 %v9458_v19, %v1317_v42 }
 0x39d   : > { %v1851_v10 = vpack.c.bf16 %v1319_v59, %v1313_v16  ;;  %v4973_v61 = vpack.c.bf16 %v7866_v57, %v1562_v30 }
 0x39e   : > { %v10079_v38 = vpack.c.bf16 %v1668_v63, %v1667_v12  ;;  %v10081_v9 = vpack.c.bf16 %v1700_v7, %v1699_v25  ;;  %v10083_v48 = vpack.c.bf16 %v1732_v53, %v1731_v54  ;;  %v10085_v43 = vpack.c.bf16 %v1764_v15, %v1763_v39 }
 0x39f   : > { %v1323_v50 = vpop.f32.mrb[52].mxu1  ;;  %7433 = vmatprep.subr.bf16.mxu0 %v1851_v10  ;;  %4999 = vmatpush1.bf16.msra.mxu1 %v4973_v61  ;;  %v14707_v61 = vpack.c.bf16 %v9915_v14, %v9909_v1 }
 0x3a0   : > { %14702 = vst [vmem:[#allocation53_spill] sm:$0xff] %v10083_v48  ;;  %14703 = vst [vmem:[#allocation54_spill] sm:$0xff] %v10085_v43  ;;  %v1325_v0 = vpop.f32.mrb[53].mxu1  ;;  %7434 = vmatpush3.bf16.xpose.msra.mxu0 %v14704_v49  ;;  %5000 = vmatprep.subr.bf16.mxu1 %v14690_v33  ;;  %v1669_v12 = vmul.f32 %v9883_v22, %v1323_v50  ;;  %v1701_v57 = vmul.f32 %v9452_v17, %v1323_v50 }
 0x3a1   : > { %v1733_v42 = vmul.f32 %v9455_v18, %v1323_v50  ;;  %v1765_v25 = vmul.f32 %v9458_v19, %v1323_v50  ;;  %v14710_v48 = vpack.c.bf16 %v9938_v36, %v9932_v20 }
 0x3a3   : > { %v1329_v16 = vpop.f32.mrb[54].mxu1 }
 0x3a4   : > { %v1331_v54 = vpop.f32.mrb[55].mxu1  ;;  %v1670_v39 = vmul.f32 %v9883_v22, %v1329_v16  ;;  %v1702_v59 = vmul.f32 %v9452_v17, %v1329_v16  ;;  %v1734_v30 = vmul.f32 %v9455_v18, %v1329_v16  ;;  %v1766_v23 = vmul.f32 %v9458_v19, %v1329_v16 }
 0x3a5   : > { %v1852_v24 = vpack.c.bf16 %v1331_v54, %v1325_v0 }
 0x3a6   : > { %v10099_v49 = vpack.c.bf16 %v1670_v39, %v1669_v12  ;;  %v10101_v63 = vpack.c.bf16 %v1702_v59, %v1701_v57  ;;  %v10103_v7 = vpack.c.bf16 %v1734_v30, %v1733_v42  ;;  %v10105_v53 = vpack.c.bf16 %v1766_v23, %v1765_v25 }
 0x3a7   : > { %v1335_v15 = vpop.f32.mrb[56].mxu1  ;;  %7435 = vmatprep.subr.bf16.mxu0 %v1852_v24 }
 0x3a8   : > { %14705 = vst [vmem:[#allocation55_spill] sm:$0xff] %v10103_v7  ;;  %14706 = vst [vmem:[#allocation56_spill] sm:$0xff] %v10105_v53  ;;  %v1337_v10 = vpop.f32.mrb[57].mxu1  ;;  %7436 = vmatpush3.bf16.xpose.msra.mxu0 %v14707_v61  ;;  %v1671_v16 = vmul.f32 %v9883_v22, %v1335_v15  ;;  %v1703_v0 = vmul.f32 %v9452_v17, %v1335_v15  ;;  %v1735_v12 = vmul.f32 %v9455_v18, %v1335_v15 }
 0x3a9   : > { %v1767_v57 = vmul.f32 %v9458_v19, %v1335_v15 }
 0x3ab   : > { %v1341_v50 = vpop.f32.mrb[58].mxu1  ;;  %v7869_v43 = vpop.f32.mrb[36].mxu0 }
 0x3ac   : > { %v1343_v42 = vpop.f32.mrb[59].mxu1  ;;  %v1572_v25 = vpop.f32.mrb[37].mxu0  ;;  %v1672_v54 = vmul.f32 %v9883_v22, %v1341_v50  ;;  %v1704_v39 = vmul.f32 %v9452_v17, %v1341_v50  ;;  %v1736_v59 = vmul.f32 %v9455_v18, %v1341_v50  ;;  %v1768_v1 = vmul.f32 %v9458_v19, %v1341_v50 }
 0x3ad   : > { %v1853_v14 = vpack.c.bf16 %v1343_v42, %v1337_v10  ;;  %v4974_v30 = vpack.c.bf16 %v7869_v43, %v1572_v25 }
 0x3ae   : > { %v10118_v23 = vpack.c.bf16 %v1672_v54, %v1671_v16  ;;  %v10120_v24 = vpack.c.bf16 %v1704_v39, %v1703_v0  ;;  %v10122_v61 = vpack.c.bf16 %v1736_v59, %v1735_v12  ;;  %v10124_v53 = vpack.c.bf16 %v1768_v1, %v1767_v57 }
 0x3af   : > { %v1347_v15 = vpop.f32.mrb[60].mxu1  ;;  %7437 = vmatprep.subr.bf16.mxu0 %v1853_v14  ;;  %5001 = vmatpush1.bf16.msra.mxu1 %v4974_v30 }
 0x3b0   : > { %14708 = vst [vmem:[#allocation57_spill] sm:$0xff] %v10122_v61  ;;  %14709 = vst [vmem:[#allocation58_spill] sm:$0xff] %v10124_v53  ;;  %v1349_v7 = vpop.f32.mrb[61].mxu1  ;;  %7438 = vmatpush3.bf16.xpose.msra.mxu0 %v14710_v48  ;;  %5002 = vmatprep.subr.bf16.mxu1 %v14690_v33  ;;  %v1673_v50 = vmul.f32 %v9883_v22, %v1347_v15  ;;  %v1705_v16 = vmul.f32 %v9452_v17, %v1347_v15 }
 0x3b1   : > { %v1737_v0 = vmul.f32 %v9455_v18, %v1347_v15  ;;  %v1769_v12 = vmul.f32 %v9458_v19, %v1347_v15  ;;  %v14713_v61 = vpack.c.bf16 %v9961_v44, %v9955_v40 }
 0x3b3   : > { %v1353_v10 = vpop.f32.mrb[62].mxu1  ;;  %v7872_v43 = vpop.f32.mrb[38].mxu0 }
 0x3b4   : > { %v1355_v57 = vpop.f32.mrb[63].mxu1  ;;  %v1582_v42 = vpop.f32.mrb[39].mxu0  ;;  %v1674_v25 = vmul.f32 %v9883_v22, %v1353_v10  ;;  %v1706_v54 = vmul.f32 %v9452_v17, %v1353_v10  ;;  %v1738_v48 = vmul.f32 %v9455_v18, %v1353_v10  ;;  %v1770_v20 = vmul.f32 %v9458_v19, %v1353_v10 }
 0x3b5   : > { %v1854_v36 = vpack.c.bf16 %v1355_v57, %v1349_v7  ;;  %v4975_v39 = vpack.c.bf16 %v7872_v43, %v1582_v42 }
 0x3b6   : > { %v10138_v59 = vpack.c.bf16 %v1674_v25, %v1673_v50  ;;  %v10140_v1 = vpack.c.bf16 %v1706_v54, %v1705_v16  ;;  %v10142_v14 = vpack.c.bf16 %v1738_v48, %v1737_v0  ;;  %v10144_v30 = vpack.c.bf16 %v1770_v20, %v1769_v12 }
 0x3b7   : > { %v1359_v15 = vpop.f32.mrb[64].mxu1  ;;  %7439 = vmatprep.subr.bf16.mxu0 %v1854_v36  ;;  %5003 = vmatpush1.bf16.msra.mxu1 %v4975_v39 }
 0x3b8   : > { %14711 = vst [vmem:[#allocation59_spill] sm:$0xff] %v10142_v14  ;;  %14712 = vst [vmem:[#allocation60_spill] sm:$0xff] %v10144_v30  ;;  %v1361_v53 = vpop.f32.mrb[65].mxu1  ;;  %7440 = vmatpush3.bf16.xpose.msra.mxu0 %v14713_v61  ;;  %5004 = vmatprep.subr.bf16.mxu1 %v14690_v33  ;;  %v1675_v43 = vmul.f32 %v9883_v22, %v1359_v15  ;;  %v1707_v50 = vmul.f32 %v9452_v17, %v1359_v15 }
 0x3b9   : > { %v1739_v16 = vmul.f32 %v9455_v18, %v1359_v15  ;;  %v1771_v0 = vmul.f32 %v9458_v19, %v1359_v15  ;;  %v14716_v14 = vpack.c.bf16 %v9984_v52, %v9978_v3 }
 0x3bb   : > { %v1365_v7 = vpop.f32.mrb[66].mxu1  ;;  %v7875_v10 = vpop.f32.mrb[40].mxu0 }
 0x3bc   : > { %v1367_v12 = vpop.f32.mrb[67].mxu1  ;;  %v1592_v57 = vpop.f32.mrb[41].mxu0  ;;  %v1676_v42 = vmul.f32 %v9883_v22, %v1365_v7  ;;  %v1708_v25 = vmul.f32 %v9452_v17, %v1365_v7  ;;  %v1740_v40 = vmul.f32 %v9455_v18, %v1365_v7  ;;  %v1772_v44 = vmul.f32 %v9458_v19, %v1365_v7 }
 0x3bd   : > { %v1855_v61 = vpack.c.bf16 %v1367_v12, %v1361_v53  ;;  %v4976_v54 = vpack.c.bf16 %v7875_v10, %v1592_v57 }
 0x3be   : > { %v10158_v48 = vpack.c.bf16 %v1676_v42, %v1675_v43  ;;  %v10160_v20 = vpack.c.bf16 %v1708_v25, %v1707_v50  ;;  %v10162_v36 = vpack.c.bf16 %v1740_v40, %v1739_v16  ;;  %v10164_v39 = vpack.c.bf16 %v1772_v44, %v1771_v0 }
 0x3bf   : > { %v1371_v15 = vpop.f32.mrb[68].mxu1  ;;  %7441 = vmatprep.subr.bf16.mxu0 %v1855_v61  ;;  %5005 = vmatpush1.bf16.msra.mxu1 %v4976_v54 }
 0x3c0   : > { %14714 = vst [vmem:[#allocation61_spill] sm:$0xff] %v10162_v36  ;;  %14715 = vst [vmem:[#allocation62_spill] sm:$0xff] %v10164_v39  ;;  %v1373_v30 = vpop.f32.mrb[69].mxu1  ;;  %7442 = vmatpush3.bf16.xpose.msra.mxu0 %v14716_v14  ;;  %5006 = vmatprep.subr.bf16.mxu1 %v14690_v33  ;;  %v1677_v10 = vmul.f32 %v9883_v22, %v1371_v15  ;;  %v1709_v43 = vmul.f32 %v9452_v17, %v1371_v15 }
 0x3c1   : > { %v1741_v50 = vmul.f32 %v9455_v18, %v1371_v15  ;;  %v1773_v16 = vmul.f32 %v9458_v19, %v1371_v15  ;;  %v14719_v36 = vpack.c.bf16 %v10007_v6, %v10001_v47 }
 0x3c3   : > { %v1377_v53 = vpop.f32.mrb[70].mxu1  ;;  %v7878_v7 = vpop.f32.mrb[42].mxu0 }
 0x3c4   : > { %v1379_v0 = vpop.f32.mrb[71].mxu1  ;;  %v1602_v12 = vpop.f32.mrb[43].mxu0  ;;  %v1678_v57 = vmul.f32 %v9883_v22, %v1377_v53  ;;  %v1710_v42 = vmul.f32 %v9452_v17, %v1377_v53  ;;  %v1742_v3 = vmul.f32 %v9455_v18, %v1377_v53  ;;  %v1774_v52 = vmul.f32 %v9458_v19, %v1377_v53 }
 0x3c5   : > { %v1856_v14 = vpack.c.bf16 %v1379_v0, %v1373_v30  ;;  %v4977_v25 = vpack.c.bf16 %v7878_v7, %v1602_v12 }
 0x3c6   : > { %v10178_v40 = vpack.c.bf16 %v1678_v57, %v1677_v10  ;;  %v10180_v44 = vpack.c.bf16 %v1710_v42, %v1709_v43  ;;  %v10182_v61 = vpack.c.bf16 %v1742_v3, %v1741_v50  ;;  %v10184_v54 = vpack.c.bf16 %v1774_v52, %v1773_v16 }
 0x3c7   : > { %v1383_v15 = vpop.f32.mrb[72].mxu1  ;;  %7443 = vmatprep.subr.bf16.mxu0 %v1856_v14  ;;  %5007 = vmatpush1.bf16.msra.mxu1 %v4977_v25 }
 0x3c8   : > { %14717 = vst [vmem:[#allocation63_spill] sm:$0xff] %v10182_v61  ;;  %14718 = vst [vmem:[#allocation64_spill] sm:$0xff] %v10184_v54  ;;  %v1385_v39 = vpop.f32.mrb[73].mxu1  ;;  %7444 = vmatpush3.bf16.xpose.msra.mxu0 %v14719_v36  ;;  %5008 = vmatprep.subr.bf16.mxu1 %v14690_v33  ;;  %v1679_v7 = vmul.f32 %v9883_v22, %v1383_v15  ;;  %v1711_v10 = vmul.f32 %v9452_v17, %v1383_v15 }
 0x3c9   : > { %v1743_v43 = vmul.f32 %v9455_v18, %v1383_v15  ;;  %v1775_v50 = vmul.f32 %v9458_v19, %v1383_v15  ;;  %v14721_v61 = vpack.c.bf16 %v10030_v60, %v10024_v11 }
 0x3cb   : > { %v1389_v30 = vpop.f32.mrb[74].mxu1  ;;  %v7881_v53 = vpop.f32.mrb[44].mxu0 }
 0x3cc   : > { %v1391_v16 = vpop.f32.mrb[75].mxu1  ;;  %v1612_v0 = vpop.f32.mrb[45].mxu0  ;;  %v1680_v12 = vmul.f32 %v9883_v22, %v1389_v30  ;;  %v1712_v57 = vmul.f32 %v9452_v17, %v1389_v30  ;;  %v1744_v47 = vmul.f32 %v9455_v18, %v1389_v30  ;;  %v1776_v6 = vmul.f32 %v9458_v19, %v1389_v30 }
 0x3cd   : > { %v1857_v36 = vpack.c.bf16 %v1391_v16, %v1385_v39  ;;  %v4978_v42 = vpack.c.bf16 %v7881_v53, %v1612_v0 }
 0x3ce   : > { %v1793_v3 = vpack.c.bf16 %v1680_v12, %v1679_v7  ;;  %v10198_v52 = vpack.c.bf16 %v1712_v57, %v1711_v10  ;;  %v10200_v14 = vpack.c.bf16 %v1744_v47, %v1743_v43  ;;  %v10202_v25 = vpack.c.bf16 %v1776_v6, %v1775_v50 }
 0x3cf   : > { %v1395_v15 = vpop.f32.mrb[76].mxu1  ;;  %7445 = vmatprep.subr.bf16.mxu0 %v1857_v36  ;;  %5009 = vmatpush1.bf16.msra.mxu1 %v4978_v42  ;;  %v14723_v42 = vpack.c.bf16 %v10052_v62, %v10047_v2 }
 0x3d0   : > { %14720 = vst [vmem:[#allocation65_spill] sm:$0xff] %v10202_v25  ;;  %v1397_v54 = vpop.f32.mrb[77].mxu1  ;;  %7446 = vmatpush3.bf16.xpose.msra.mxu0 %v14721_v61  ;;  %5010 = vmatprep.subr.bf16.mxu1 %v14690_v33  ;;  %v1681_v53 = vmul.f32 %v9883_v22, %v1395_v15  ;;  %v1713_v7 = vmul.f32 %v9452_v17, %v1395_v15 }
 0x3d1   : > { %v1745_v10 = vmul.f32 %v9455_v18, %v1395_v15  ;;  %v1777_v43 = vmul.f32 %v9458_v19, %v1395_v15 }
 0x3d3   : > { %v1401_v30 = vpop.f32.mrb[78].mxu1  ;;  %v7884_v39 = vpop.f32.mrb[46].mxu0 }
 0x3d4   : > { %v1403_v50 = vpop.f32.mrb[79].mxu1  ;;  %v1622_v16 = vpop.f32.mrb[47].mxu0  ;;  %v1682_v0 = vmul.f32 %v9883_v22, %v1401_v30  ;;  %v1714_v12 = vmul.f32 %v9452_v17, %v1401_v30  ;;  %v1746_v11 = vmul.f32 %v9455_v18, %v1401_v30  ;;  %v1778_v33 = vmul.f32 %v9458_v19, %v1401_v30  ;;  %v14750_v22 = vld [vmem:[#allocation59_spill] sm:$0xff] }
 0x3d5   : > { %v1858_v60 = vpack.c.bf16 %v1403_v50, %v1397_v54  ;;  %v4979_v61 = vpack.c.bf16 %v7884_v39, %v1622_v16 }
 0x3d6   : > { %v1794_v57 = vpack.c.bf16 %v1682_v0, %v1681_v53  ;;  %v10216_v47 = vpack.c.bf16 %v1714_v12, %v1713_v7  ;;  %v10218_v6 = vpack.c.bf16 %v1746_v11, %v1745_v10  ;;  %v10220_v36 = vpack.c.bf16 %v1778_v33, %v1777_v43 }
 0x3d7   : > { %7447 = vmatprep.subr.bf16.mxu0 %v1858_v60  ;;  %5011 = vmatpush1.bf16.msra.mxu1 %v4979_v61 }
 0x3d8   : > { %14722 = vst [vmem:[#allocation66_spill] sm:$0xff] %v10220_v36  ;;  %7448 = vmatpush3.bf16.xpose.msra.mxu0 %v14723_v42 }
 0x3df   : > { %7450 = vmatmul.mubr.bf16.vlgmr.msra.gmra.mrb[48].mxu0 %v9900_v41 }
 0x3e0   : > { %7451 = vmatprep.mubr.bf16.mxu0 %v9924_v35 }
 0x3e7   : > { %7452 = vmatmul.mubr.bf16.gmra.mrb[52].mxu0 %v9924_v35 }
 0x3e8   : > { %7453 = vmatprep.mubr.bf16.mxu0 %v9947_v27 }
 0x3ef   : > { %7454 = vmatmul.mubr.bf16.gmra.mrb[56].mxu0 %v9947_v27 }
 0x3f0   : > { %7455 = vmatprep.mubr.bf16.mxu0 %v9970_v37 }
 0x3f7   : > { %7456 = vmatmul.mubr.bf16.gmra.mrb[60].mxu0 %v9970_v37 }
 0x3f8   : > { %7457 = vmatprep.mubr.bf16.mxu0 %v9992_v58 }
 0x3ff   : > { %7458 = vmatmul.mubr.bf16.gmra.mrb[64].mxu0 %v9992_v58 }
 0x400   : > { %7459 = vmatprep.mubr.bf16.mxu0 %v10016_v51 }
 0x407   : > { %7460 = vmatmul.mubr.bf16.gmra.mrb[68].mxu0 %v10016_v51 }
 0x408   : > { %7461 = vmatprep.mubr.bf16.mxu0 %v10039_v21 }
 0x40f   : > { %7462 = vmatmul.mubr.bf16.gmra.mrb[72].mxu0 %v10039_v21 }
 0x410   : > { %7463 = vmatprep.mubr.bf16.mxu0 %v10062_v46 }
 0x417   : > { %7464 = vmatmul.mubr.bf16.gmra.mrb[76].mxu0 %v10062_v46 }
 0x418   : > { %7465 = vmatprep.mubr.bf16.mxu0 %v10079_v38 }
 0x41f   : > { %7466 = vmatmul.mubr.bf16.gmra.mrb[80].mxu0 %v10079_v38 }
 0x420   : > { %7467 = vmatprep.mubr.bf16.mxu0 %v10099_v49 }
 0x427   : > { %7468 = vmatmul.mubr.bf16.gmra.mrb[84].mxu0 %v10099_v49 }
 0x428   : > { %7469 = vmatprep.mubr.bf16.mxu0 %v10118_v23 }
 0x42f   : > { %7470 = vmatmul.mubr.bf16.gmra.mrb[88].mxu0 %v10118_v23 }
 0x430   : > { %7471 = vmatprep.mubr.bf16.mxu0 %v10138_v59 }
 0x437   : > { %7472 = vmatmul.mubr.bf16.gmra.mrb[92].mxu0 %v10138_v59 }
 0x438   : > { %7473 = vmatprep.mubr.bf16.mxu0 %v10158_v48 }
 0x43f   : > { %7474 = vmatmul.mubr.bf16.gmra.mrb[96].mxu0 %v10158_v48 }
 0x440   : > { %7475 = vmatprep.mubr.bf16.mxu0 %v10178_v40 }
 0x447   : > { %7476 = vmatmul.mubr.bf16.gmra.mrb[100].mxu0 %v10178_v40 }
 0x448   : > { %7477 = vmatprep.mubr.bf16.mxu0 %v1793_v3 }
 0x44f   : > { %7478 = vmatmul.mubr.bf16.gmra.mrb[104].mxu0 %v1793_v3 }
 0x450   : > { %7479 = vmatprep.mubr.bf16.mxu0 %v1794_v57 }
 0x457   : > { %7480 = vmatmul.mubr.bf16.gmra.mrb[108].mxu0 %v1794_v57 }
 0x458   : > { %7481 = vmatprep.mubr.bf16.mxu0 %v9902_v26 }
 0x45f   : > { %7482 = vmatmul.mubr.bf16.gmra.mrb[112].mxu0 %v9902_v26 }
 0x460   : > { %7483 = vmatprep.mubr.bf16.mxu0 %v9926_v29 }
 0x467   : > { %7484 = vmatmul.mubr.bf16.gmra.mrb[116].mxu0 %v9926_v29 }
 0x468   : > { %7485 = vmatprep.mubr.bf16.mxu0 %v9949_v8 }
 0x46f   : > { %7486 = vmatmul.mubr.bf16.gmra.mrb[120].mxu0 %v9949_v8 }
 0x470   : > { %7487 = vmatprep.mubr.bf16.mxu0 %v9972_v34 }
 0x477   : > { %7488 = vmatmul.mubr.bf16.gmra.mrb[124].mxu0 %v9972_v34 }
 0x478   : > { %7489 = vmatprep.mubr.bf16.mxu0 %v9994_v55 }
 0x47f   : > { %7490 = vmatmul.mubr.bf16.gmra.mrb[128].mxu0 %v9994_v55 }
 0x480   : > { %7491 = vmatprep.mubr.bf16.mxu0 %v10018_v32 }
 0x487   : > { %7492 = vmatmul.mubr.bf16.gmra.mrb[132].mxu0 %v10018_v32 }
 0x488   : > { %7493 = vmatprep.mubr.bf16.mxu0 %v10041_v45 }
 0x48f   : > { %7494 = vmatmul.mubr.bf16.gmra.mrb[136].mxu0 %v10041_v45 }
 0x490   : > { %7495 = vmatprep.mubr.bf16.mxu0 %v10064_v56 }
 0x497   : > { %7496 = vmatmul.mubr.bf16.gmra.mrb[140].mxu0 %v10064_v56 }
 0x498   : > { %7497 = vmatprep.mubr.bf16.mxu0 %v10081_v9 }
 0x49f   : > { %7498 = vmatmul.mubr.bf16.gmra.mrb[144].mxu0 %v10081_v9 }
 0x4a0   : > { %7499 = vmatprep.mubr.bf16.mxu0 %v10101_v63 }
 0x4a7   : > { %7500 = vmatmul.mubr.bf16.gmra.mrb[148].mxu0 %v10101_v63 }
 0x4a8   : > { %7501 = vmatprep.mubr.bf16.mxu0 %v10120_v24 }
 0x4af   : > { %7502 = vmatmul.mubr.bf16.gmra.mrb[152].mxu0 %v10120_v24 }
 0x4b0   : > { %7503 = vmatprep.mubr.bf16.mxu0 %v10140_v1 }
 0x4b2   : > { %v10275_v2 = vpop.f32.mrb[48].mxu0 }
 0x4b3   : > { %v10277_v55 = vpop.f32.mrb[49].mxu0 }
 0x4b4   : > { %v10279_v58 = vpop.f32.mrb[50].mxu0  ;;  %v2532_v41 = vmax.f32 %v10275_v2, %v10277_v55 }
 0x4b5   : > { %v10283_v26 = vpop.f32.mrb[51].mxu0 }
 0x4b6   : > { %2533 = vmax.xlane.f32.xlu0 %v2532_v41  ;;  %v2535_v35 = vmax.f32 %v10279_v58, %v10283_v26 }
 0x4b7   : > { %7504 = vmatmul.mubr.bf16.gmra.mrb[156].mxu0 %v10140_v1 }
 0x4b8   : > { %7505 = vmatprep.mubr.bf16.mxu0 %v10160_v20  ;;  %2536 = vmax.xlane.f32.xlu1 %v2535_v35 }
 0x4ba   : > { %v10289_v29 = vpop.f32.mrb[52].mxu0 }
 0x4bb   : > { %v10291_v27 = vpop.f32.mrb[53].mxu0 }
 0x4bc   : > { %v10293_v8 = vpop.f32.mrb[54].mxu0  ;;  %v2538_v37 = vmax.f32 %v10289_v29, %v10291_v27 }
 0x4bd   : > { %v10297_v34 = vpop.f32.mrb[55].mxu0 }
 0x4be   : > { %2539 = vmax.xlane.f32.xlu0 %v2538_v37  ;;  %v2541_v9 = vmax.f32 %v10293_v8, %v10297_v34 }
 0x4bf   : > { %7506 = vmatmul.mubr.bf16.gmra.mrb[160].mxu0 %v10160_v20 }
 0x4c0   : > { %7507 = vmatprep.mubr.bf16.mxu0 %v10180_v44  ;;  %2542 = vmax.xlane.f32.xlu1 %v2541_v9 }
 0x4c2   : > { %v10303_v51 = vpop.f32.mrb[56].mxu0 }
 0x4c3   : > { %v10305_v32 = vpop.f32.mrb[57].mxu0 }
 0x4c4   : > { %v10307_v21 = vpop.f32.mrb[58].mxu0  ;;  %v2544_v45 = vmax.f32 %v10303_v51, %v10305_v32 }
 0x4c5   : > { %v10311_v46 = vpop.f32.mrb[59].mxu0 }
 0x4c6   : > { %2545 = vmax.xlane.f32.xlu0 %v2544_v45  ;;  %v2547_v62 = vmax.f32 %v10307_v21, %v10311_v46 }
 0x4c7   : > { %7508 = vmatmul.mubr.bf16.gmra.mrb[164].mxu0 %v10180_v44 }
 0x4c8   : > { %7509 = vmatprep.mubr.bf16.mxu0 %v10198_v52  ;;  %2548 = vmax.xlane.f32.xlu1 %v2547_v62 }
 0x4ca   : > { %v10317_v56 = vpop.f32.mrb[60].mxu0 }
 0x4cb   : > { %v10319_v38 = vpop.f32.mrb[61].mxu0 }
 0x4cc   : > { %v10321_v49 = vpop.f32.mrb[62].mxu0  ;;  %v2550_v63 = vmax.f32 %v10317_v56, %v10319_v38 }
 0x4cd   : > { %v10325_v23 = vpop.f32.mrb[63].mxu0 }
 0x4ce   : > { %2551 = vmax.xlane.f32.xlu0 %v2550_v63  ;;  %v2553_v24 = vmax.f32 %v10321_v49, %v10325_v23 }
 0x4cf   : > { %7510 = vmatmul.mubr.bf16.gmra.mrb[168].mxu0 %v10198_v52 }
 0x4d0   : > { %7511 = vmatprep.mubr.bf16.mxu0 %v10216_v47  ;;  %2554 = vmax.xlane.f32.xlu1 %v2553_v24 }
 0x4d2   : > { %v10331_v59 = vpop.f32.mrb[64].mxu0 }
 0x4d3   : > { %v10333_v1 = vpop.f32.mrb[65].mxu0 }
 0x4d4   : > { %v10335_v48 = vpop.f32.mrb[66].mxu0  ;;  %v2556_v20 = vmax.f32 %v10331_v59, %v10333_v1 }
 0x4d5   : > { %v10339_v40 = vpop.f32.mrb[67].mxu0 }
 0x4d6   : > { %2557 = vmax.xlane.f32.xlu0 %v2556_v20  ;;  %v2559_v44 = vmax.f32 %v10335_v48, %v10339_v40 }
 0x4d7   : > { %7512 = vmatmul.mubr.bf16.gmra.mrb[172].mxu0 %v10216_v47 }
 0x4d8   : > { %7513 = vmatprep.mubr.bf16.mxu0 %v9904_v5  ;;  %2560 = vmax.xlane.f32.xlu1 %v2559_v44 }
 0x4da   : > { %v10345_v54 = vpop.f32.mrb[68].mxu0 }
 0x4db   : > { %v10347_v3 = vpop.f32.mrb[69].mxu0 }
 0x4dc   : > { %v10349_v52 = vpop.f32.mrb[70].mxu0  ;;  %v2562_v15 = vmax.f32 %v10345_v54, %v10347_v3 }
 0x4dd   : > { %v10353_v30 = vpop.f32.mrb[71].mxu0 }
 0x4de   : > { %2563 = vmax.xlane.f32.xlu0 %v2562_v15  ;;  %v2565_v39 = vmax.f32 %v10349_v52, %v10353_v30 }
 0x4df   : > { %7514 = vmatmul.mubr.bf16.gmra.mrb[176].mxu0 %v9904_v5 }
 0x4e0   : > { %7515 = vmatprep.mubr.bf16.mxu0 %v9928_v31  ;;  %2566 = vmax.xlane.f32.xlu1 %v2565_v39 }
 0x4e2   : > { %v10359_v53 = vpop.f32.mrb[72].mxu0 }
 0x4e3   : > { %v10361_v7 = vpop.f32.mrb[73].mxu0 }
 0x4e4   : > { %v10363_v10 = vpop.f32.mrb[74].mxu0  ;;  %v2568_v43 = vmax.f32 %v10359_v53, %v10361_v7 }
 0x4e5   : > { %v10367_v50 = vpop.f32.mrb[75].mxu0 }
 0x4e6   : > { %2569 = vmax.xlane.f32.xlu0 %v2568_v43  ;;  %v2571_v16 = vmax.f32 %v10363_v10, %v10367_v50 }
 0x4e7   : > { %7516 = vmatmul.mubr.bf16.gmra.mrb[180].mxu0 %v9928_v31 }
 0x4e8   : > { %7517 = vmatprep.mubr.bf16.mxu0 %v9951_v13  ;;  %2572 = vmax.xlane.f32.xlu1 %v2571_v16 }
 0x4ea   : > { %v10373_v5 = vpop.f32.mrb[76].mxu0 }
 0x4eb   : > { %v10375_v0 = vpop.f32.mrb[77].mxu0 }
 0x4ec   : > { %14724 = vst [vmem:[#allocation67_spill] sm:$0xff] %v10375_v0  ;;  %v10377_v12 = vpop.f32.mrb[78].mxu0  ;;  %v2574_v11 = vmax.f32 %v10373_v5, %v10375_v0 }
 0x4ed   : > { %14725 = vst [vmem:[#allocation68_spill] sm:$0xff] %v10377_v12  ;;  %v10381_v33 = vpop.f32.mrb[79].mxu0 }
 0x4ee   : > { %14726 = vst [vmem:[#allocation69_spill] sm:$0xff] %v10381_v33  ;;  %2575 = vmax.xlane.f32.xlu0 %v2574_v11  ;;  %v2577_v60 = vmax.f32 %v10377_v12, %v10381_v33 }
 0x4ef   : > { %7518 = vmatmul.mubr.bf16.gmra.mrb[184].mxu0 %v9951_v13 }
 0x4f0   : > { %7519 = vmatprep.mubr.bf16.mxu0 %v9974_v28  ;;  %2578 = vmax.xlane.f32.xlu1 %v2577_v60 }
 0x4f2   : > { %v10387_v31 = vpop.f32.mrb[80].mxu0 }
 0x4f3   : > { %14727 = vst [vmem:[#allocation70_spill] sm:$0xff] %v10387_v31  ;;  %v10389_v61 = vpop.f32.mrb[81].mxu0 }
 0x4f4   : > { %14728 = vst [vmem:[#allocation71_spill] sm:$0xff] %v10389_v61  ;;  %v10391_v57 = vpop.f32.mrb[82].mxu0  ;;  %v2580_v47 = vmax.f32 %v10387_v31, %v10389_v61 }
 0x4f5   : > { %14729 = vst [vmem:[#allocation72_spill] sm:$0xff] %v10391_v57  ;;  %v10395_v42 = vpop.f32.mrb[83].mxu0 }
 0x4f6   : > { %14730 = vst [vmem:[#allocation73_spill] sm:$0xff] %v10395_v42  ;;  %2581 = vmax.xlane.f32.xlu0 %v2580_v47  ;;  %v2583_v41 = vmax.f32 %v10391_v57, %v10395_v42 }
 0x4f7   : > { %7520 = vmatmul.mubr.bf16.gmra.mrb[188].mxu0 %v9974_v28  ;;  %v14735_v28 = vld [vmem:[#allocation47_spill] sm:$0xff] }
 0x4f8   : > { %7521 = vmatprep.mubr.bf16.mxu0 %v9996_v4  ;;  %2584 = vmax.xlane.f32.xlu1 %v2583_v41 }
 0x4fa   : > { %v10401_v13 = vpop.f32.mrb[84].mxu0 }
 0x4fb   : > { %14731 = vst [vmem:[#allocation74_spill] sm:$0xff] %v10401_v13  ;;  %v10403_v35 = vpop.f32.mrb[85].mxu0 }
 0x4fc   : > { %14732 = vst [vmem:[#allocation75_spill] sm:$0xff] %v10403_v35  ;;  %v10405_v37 = vpop.f32.mrb[86].mxu0  ;;  %v2586_v9 = vmax.f32 %v10401_v13, %v10403_v35 }
 0x4fd   : > { %14733 = vst [vmem:[#allocation76_spill] sm:$0xff] %v10405_v37  ;;  %v10409_v45 = vpop.f32.mrb[87].mxu0 }
 0x4fe   : > { %14734 = vst [vmem:[#allocation77_spill] sm:$0xff] %v10409_v45  ;;  %2587 = vmax.xlane.f32.xlu0 %v2586_v9  ;;  %v2589_v62 = vmax.f32 %v10405_v37, %v10409_v45  ;;  %v14745_v9 = vld [vmem:[#allocation51_spill] sm:$0xff] }
 0x4ff   : > { %7522 = vmatmul.mubr.bf16.gmra.mrb[192].mxu0 %v9996_v4  ;;  %v14740_v4 = vld [vmem:[#allocation49_spill] sm:$0xff] }
 0x500   : > { %7523 = vmatprep.mubr.bf16.mxu0 %v14735_v28  ;;  %2590 = vmax.xlane.f32.xlu1 %v2589_v62 }
 0x502   : > { %v10415_v63 = vpop.f32.mrb[88].mxu0 }
 0x503   : > { %14736 = vst [vmem:[#allocation47_spill] sm:$0xff] %v10415_v63  ;;  %v10417_v24 = vpop.f32.mrb[89].mxu0 }
 0x504   : > { %14737 = vst [vmem:[#allocation78_spill] sm:$0xff] %v10417_v24  ;;  %v10419_v20 = vpop.f32.mrb[90].mxu0  ;;  %v2592_v44 = vmax.f32 %v10415_v63, %v10417_v24 }
 0x505   : > { %14738 = vst [vmem:[#allocation79_spill] sm:$0xff] %v10419_v20  ;;  %v10423_v15 = vpop.f32.mrb[91].mxu0 }
 0x506   : > { %14739 = vst [vmem:[#allocation80_spill] sm:$0xff] %v10423_v15  ;;  %2593 = vmax.xlane.f32.xlu0 %v2592_v44  ;;  %v2595_v39 = vmax.f32 %v10419_v20, %v10423_v15  ;;  %v14760_v20 = vld [vmem:[#allocation63_spill] sm:$0xff] }
 0x507   : > { %7524 = vmatmul.mubr.bf16.gmra.mrb[196].mxu0 %v14735_v28 }
 0x508   : > { %7525 = vmatprep.mubr.bf16.mxu0 %v14740_v4  ;;  %2596 = vmax.xlane.f32.xlu1 %v2595_v39  ;;  %v14748_v39 = vld [vmem:[#allocation57_spill] sm:$0xff] }
 0x50a   : > { %v10429_v43 = vpop.f32.mrb[92].mxu0 }
 0x50b   : > { %14741 = vst [vmem:[#allocation49_spill] sm:$0xff] %v10429_v43  ;;  %v10431_v16 = vpop.f32.mrb[93].mxu0 }
 0x50c   : > { %14742 = vst [vmem:[#allocation81_spill] sm:$0xff] %v10431_v16  ;;  %v10433_v11 = vpop.f32.mrb[94].mxu0  ;;  %v2598_v60 = vmax.f32 %v10429_v43, %v10431_v16 }
 0x50d   : > { %14743 = vst [vmem:[#allocation82_spill] sm:$0xff] %v10433_v11  ;;  %v10437_v47 = vpop.f32.mrb[95].mxu0 }
 0x50e   : > { %14744 = vst [vmem:[#allocation83_spill] sm:$0xff] %v10437_v47  ;;  %2599 = vmax.xlane.f32.xlu0 %v2598_v60  ;;  %v2601_v41 = vmax.f32 %v10433_v11, %v10437_v47  ;;  %v14747_v60 = vld [vmem:[#allocation55_spill] sm:$0xff]  ;;  %v14755_v11 = vld [vmem:[#allocation61_spill] sm:$0xff] }
 0x50f   : > { %7526 = vmatmul.mubr.bf16.gmra.mrb[200].mxu0 %v14740_v4  ;;  %v14746_v4 = vld [vmem:[#allocation53_spill] sm:$0xff] }
 0x510   : > { %7527 = vmatprep.mubr.bf16.mxu0 %v14745_v9  ;;  %2602 = vmax.xlane.f32.xlu1 %v2601_v41 }
 0x512   : > { %v10443_v62 = vpop.f32.mrb[96].mxu0 }
 0x513   : > { %v10445_v28 = vpop.f32.mrb[97].mxu0 }
 0x514   : > { %v10447_v44 = vpop.f32.mrb[98].mxu0 }
 0x515   : > { %v10451_v19 = vpop.f32.mrb[99].mxu0 }
 0x517   : > { %7528 = vmatmul.mubr.bf16.gmra.mrb[204].mxu0 %v14745_v9 }
 0x518   : > { %7529 = vmatprep.mubr.bf16.mxu0 %v14746_v4 }
 0x51a   : > { %v10457_v18 = vpop.f32.mrb[100].mxu0 }
 0x51b   : > { %v10459_v41 = vpop.f32.mrb[101].mxu0 }
 0x51c   : > { %v10461_v17 = vpop.f32.mrb[102].mxu0 }
 0x51d   : > { %v10465_v36 = vpop.f32.mrb[103].mxu0 }
 0x51f   : > { %7530 = vmatmul.mubr.bf16.gmra.mrb[208].mxu0 %v14746_v4 }
 0x520   : > { %7531 = vmatprep.mubr.bf16.mxu0 %v14747_v60 }
 0x522   : > { %v10471_v9 = vpop.f32.mrb[104].mxu0 }
 0x523   : > { %v10473_v25 = vpop.f32.mrb[105].mxu0 }
 0x524   : > { %v10475_v47 = vpop.f32.mrb[106].mxu0 }
 0x525   : > { %v10479_v16 = vpop.f32.mrb[107].mxu0 }
 0x527   : > { %7532 = vmatmul.mubr.bf16.gmra.mrb[212].mxu0 %v14747_v60 }
 0x528   : > { %7533 = vmatprep.mubr.bf16.mxu0 %v14748_v39 }
 0x52a   : > { %v10485_v4 = vpop.f32.mrb[108].mxu0 }
 0x52b   : > { %v10487_v43 = vpop.f32.mrb[109].mxu0 }
 0x52c   : > { %v10489_v15 = vpop.f32.mrb[110].mxu0 }
 0x52d   : > { %v10493_v24 = vpop.f32.mrb[111].mxu0 }
 0x52e   : > { %14749 = vst [vmem:[#allocation51_spill] sm:$0xff] %v10493_v24 }
 0x52f   : > { %7534 = vmatmul.mubr.bf16.gmra.mrb[216].mxu0 %v14748_v39 }
 0x530   : > { %7535 = vmatprep.mubr.bf16.mxu0 %v14750_v22 }
 0x532   : > { %v10499_v60 = vpop.f32.mrb[112].mxu0 }
 0x533   : > { %14751 = vst [vmem:[#allocation53_spill] sm:$0xff] %v10499_v60  ;;  %v10501_v63 = vpop.f32.mrb[113].mxu0 }
 0x534   : > { %14752 = vst [vmem:[#allocation55_spill] sm:$0xff] %v10501_v63  ;;  %v10505_v37 = vpop.f32.mrb[114].mxu0 }
 0x535   : > { %14753 = vst [vmem:[#allocation57_spill] sm:$0xff] %v10505_v37  ;;  %v10507_v35 = vpop.f32.mrb[115].mxu0 }
 0x536   : > { %14754 = vst [vmem:[#allocation59_spill] sm:$0xff] %v10507_v35 }
 0x537   : > { %7536 = vmatmul.mubr.bf16.gmra.mrb[220].mxu0 %v14750_v22 }
 0x538   : > { %7537 = vmatprep.mubr.bf16.mxu0 %v14755_v11 }
 0x53a   : > { %v10513_v39 = vpop.f32.mrb[116].mxu0 }
 0x53b   : > { %14756 = vst [vmem:[#allocation61_spill] sm:$0xff] %v10513_v39  ;;  %v10515_v13 = vpop.f32.mrb[117].mxu0 }
 0x53c   : > { %14757 = vst [vmem:[#allocation84_spill] sm:$0xff] %v10515_v13  ;;  %v10519_v57 = vpop.f32.mrb[118].mxu0 }
 0x53d   : > { %14758 = vst [vmem:[#allocation85_spill] sm:$0xff] %v10519_v57  ;;  %v10521_v45 = vpop.f32.mrb[119].mxu0 }
 0x53e   : > { %14759 = vst [vmem:[#allocation86_spill] sm:$0xff] %v10521_v45 }
 0x53f   : > { %7538 = vmatmul.mubr.bf16.gmra.mrb[224].mxu0 %v14755_v11 }
 0x540   : > { %7539 = vmatprep.mubr.bf16.mxu0 %v14760_v20 }
 0x542   : > { %v10527_v22 = vpop.f32.mrb[120].mxu0 }
 0x543   : > { %14761 = vst [vmem:[#allocation63_spill] sm:$0xff] %v10527_v22  ;;  %v2534_v31 = vpop.xlane.xlu0 %2533  ;;  %v10529_v33 = vpop.f32.mrb[121].mxu0 }
 0x544   : > { %14762 = vst [vmem:[#allocation87_spill] sm:$0xff] %v10529_v33  ;;  %v2916_v12 = vsub.f32 %v10275_v2, %v2534_v31  ;;  %v2917_v42 = vsub.f32 %v10277_v55, %v2534_v31  ;;  %v10535_v39 = vpop.f32.mrb[122].mxu0 }
 0x545   : > { %14763 = vst [vmem:[#allocation88_spill] sm:$0xff] %v10535_v39  ;;  %v2537_v35 = vpop.xlane.xlu1 %2536  ;;  %v10537_v61 = vpop.f32.mrb[123].mxu0 }
 0x546   : > { %14764 = vst [vmem:[#allocation89_spill] sm:$0xff] %v10537_v61  ;;  %v3172_v11 = vmul.f32 1.442695, %v2916_v12  ;;  %v3174_v45 = vmul.f32 1.442695, %v2917_v42  ;;  %v2918_v57 = vsub.f32 %v10279_v58, %v2537_v35  ;;  %v2919_v37 = vsub.f32 %v10283_v26, %v2537_v35 }
 0x547   : > { %7540 = vmatmul.mubr.bf16.gmra.mrb[228].mxu0 %v14760_v20 }
 0x548   : > { %8408 = vpow2.f32 %v3172_v11  ;;  %v3176_v2 = vmul.f32 1.442695, %v2918_v57  ;;  %v3178_v55 = vmul.f32 1.442695, %v2919_v37  ;;  %7541 = vmatprep.mubr.bf16.mxu0 %v10200_v14 }
 0x549   : > { %8410 = vpow2.f32 %v3174_v45 }
 0x54a   : > { %8412 = vpow2.f32 %v3176_v2  ;;  %v10545_v31 = vpop.f32.mrb[124].mxu0 }
 0x54b   : > { %14765 = vst [vmem:[#allocation90_spill] sm:$0xff] %v10545_v31  ;;  %8414 = vpow2.f32 %v3178_v55  ;;  %v2540_v12 = vpop.xlane.xlu0 %2539  ;;  %v10547_v42 = vpop.f32.mrb[125].mxu0 }
 0x54c   : > { %14766 = vst [vmem:[#allocation91_spill] sm:$0xff] %v10547_v42  ;;  %v2920_v58 = vsub.f32 %v10289_v29, %v2540_v12  ;;  %v2921_v26 = vsub.f32 %v10291_v27, %v2540_v12  ;;  %v10553_v20 = vpop.f32.mrb[126].mxu0 }
 0x54d   : > { %v2543_v57 = vpop.xlane.xlu1 %2542  ;;  %v10555_v37 = vpop.f32.mrb[127].mxu0 }
 0x54e   : > { %14767 = vst [vmem:[#allocation92_spill] sm:$0xff] %v10555_v37  ;;  %v3180_v45 = vmul.f32 1.442695, %v2920_v58  ;;  %v3182_v11 = vmul.f32 1.442695, %v2921_v26  ;;  %v2922_v2 = vsub.f32 %v10293_v8, %v2543_v57  ;;  %v2923_v55 = vsub.f32 %v10297_v34, %v2543_v57 }
 0x54f   : > { %7542 = vmatmul.mubr.bf16.gmra.mrb[232].mxu0 %v10200_v14 }
 0x550   : > { %8416 = vpow2.f32 %v3180_v45  ;;  %v3184_v29 = vmul.f32 1.442695, %v2922_v2  ;;  %v3186_v27 = vmul.f32 1.442695, %v2923_v55  ;;  %7543 = vmatprep.mubr.bf16.mxu0 %v10218_v6 }
 0x551   : > { %8418 = vpow2.f32 %v3182_v11 }
 0x552   : > { %v10563_v12 = vpop.eup %8408  ;;  %8420 = vpow2.f32 %v3184_v29  ;;  %v10565_v58 = vpop.f32.mrb[128].mxu0 }
 0x553   : > { %14768 = vst [vmem:[#allocation93_spill] sm:$0xff] %v10563_v12  ;;  %14769 = vst [vmem:[#allocation94_spill] sm:$0xff] %v10565_v58  ;;  %v10567_v26 = vpop.eup %8410  ;;  %8422 = vpow2.f32 %v3186_v27  ;;  %v2546_v8 = vpop.xlane.xlu0 %2545 }
 0x554   : > { %14770 = vst [vmem:[#allocation95_spill] sm:$0xff] %v10567_v26  ;;  %v10569_v34 = vpop.f32.mrb[129].mxu0  ;;  %v10571_v57 = vpop.eup %8412  ;;  %v2924_v14 = vsub.f32 %v10303_v51, %v2546_v8  ;;  %v2925_v45 = vsub.f32 %v10305_v32, %v2546_v8  ;;  %v3684_v55 = vadd.f32 %v10567_v26, %v10563_v12  ;;  %v14775_v12 = vld [vmem:[#allocation42_spill] sm:$0xff] }
 0x555   : > { %14771 = vst [vmem:[#allocation96_spill] sm:$0xff] %v10569_v34  ;;  %14772 = vst [vmem:[#allocation97_spill] sm:$0xff] %v10571_v57  ;;  %v10577_v2 = vpop.f32.mrb[130].mxu0  ;;  %v10581_v29 = vpop.eup %8414 }
 0x556   : > { %14773 = vst [vmem:[#allocation98_spill] sm:$0xff] %v10581_v29  ;;  %v2549_v27 = vpop.xlane.xlu1 %2548  ;;  %v10583_v0 = vpop.f32.mrb[131].mxu0  ;;  %v3188_v35 = vmul.f32 1.442695, %v2924_v14  ;;  %v3190_v13 = vmul.f32 1.442695, %v2925_v45  ;;  %3685 = vadd.xlane.f32.xlu0 %v3684_v55  ;;  %v3687_v8 = vadd.f32 %v10581_v29, %v10571_v57 }
 0x557   : > { %14774 = vst [vmem:[#allocation99_spill] sm:$0xff] %v10583_v0  ;;  %v2926_v37 = vsub.f32 %v10307_v21, %v2549_v27  ;;  %v2927_v51 = vsub.f32 %v10311_v46, %v2549_v27  ;;  %7544 = vmatmul.mubr.bf16.gmra.mrb[236].mxu0 %v10218_v6  ;;  %v14777_v21 = vmax.f32 %v10443_v62, %v10445_v28  ;;  %v14782_v57 = vld [vmem:[#allocation43_spill] sm:$0xff] }
 0x558   : > { %8424 = vpow2.f32 %v3188_v35  ;;  %7545 = vmatprep.mubr.bf16.mxu0 %v14775_v12  ;;  %3688 = vadd.xlane.f32.xlu1 %v3687_v8 }
 0x559   : > { %v3192_v11 = vmul.f32 1.442695, %v2926_v37  ;;  %v3194_v26 = vmul.f32 1.442695, %v2927_v51  ;;  %8426 = vpow2.f32 %v3190_v13 }
 0x55a   : > { %v10593_v14 = vpop.eup %8416  ;;  %2605 = vmax.xlane.f32.xlu0 %v14777_v21  ;;  %v10598_v46 = vpop.f32.mrb[132].mxu0 }
 0x55b   : > { %14776 = vst [vmem:[#allocation42_spill] sm:$0xff] %v10593_v14  ;;  %8428 = vpow2.f32 %v3192_v11  ;;  %v10600_v6 = vpop.eup %8418  ;;  %v2552_v45 = vpop.xlane.xlu0 %2551 }
 0x55c   : > { %14778 = vst [vmem:[#allocation100_spill] sm:$0xff] %v10600_v6  ;;  %8430 = vpow2.f32 %v3194_v26  ;;  %v10602_v35 = vpop.f32.mrb[133].mxu0  ;;  %v10604_v37 = vpop.eup %8420  ;;  %v2928_v13 = vsub.f32 %v10317_v56, %v2552_v45  ;;  %v2929_v55 = vsub.f32 %v10319_v38, %v2552_v45  ;;  %v3690_v51 = vadd.f32 %v10600_v6, %v10593_v14 }
 0x55d   : > { %14779 = vst [vmem:[#allocation101_spill] sm:$0xff] %v10604_v37  ;;  %v10610_v27 = vpop.f32.mrb[134].mxu0  ;;  %v10614_v8 = vpop.eup %8422  ;;  %v14781_v26 = vmax.f32 %v10447_v44, %v10451_v19 }
 0x55e   : > { %14780 = vst [vmem:[#allocation102_spill] sm:$0xff] %v10614_v8  ;;  %v2555_v21 = vpop.xlane.xlu1 %2554  ;;  %v10619_v32 = vpop.f32.mrb[135].mxu0  ;;  %v3196_v56 = vmul.f32 1.442695, %v2928_v13  ;;  %v3198_v29 = vmul.f32 1.442695, %v2929_v55  ;;  %3691 = vadd.xlane.f32.xlu0 %v3690_v51  ;;  %v3693_v14 = vadd.f32 %v10614_v8, %v10604_v37 }
 0x55f   : > { %2608 = vmax.xlane.f32.xlu1 %v14781_v26  ;;  %v2930_v38 = vsub.f32 %v10321_v49, %v2555_v21  ;;  %v2931_v45 = vsub.f32 %v10325_v23, %v2555_v21  ;;  %7546 = vmatmul.mubr.bf16.gmra.mrb[240].mxu0 %v14775_v12  ;;  %v14784_v49 = vmax.f32 %v10457_v18, %v10459_v41  ;;  %v14792_v8 = vld [vmem:[#allocation44_spill] sm:$0xff] }
 0x560   : > { %8432 = vpow2.f32 %v3196_v56  ;;  %7547 = vmatprep.mubr.bf16.mxu0 %v14782_v57 }
 0x561   : > { %v3200_v26 = vmul.f32 1.442695, %v2930_v38  ;;  %v3202_v6 = vmul.f32 1.442695, %v2931_v45  ;;  %8434 = vpow2.f32 %v3198_v29 }
 0x562   : > { %v10629_v13 = vpop.eup %8424  ;;  %2611 = vmax.xlane.f32.xlu0 %v14784_v49  ;;  %v10634_v23 = vpop.f32.mrb[136].mxu0 }
 0x563   : > { %3694 = vadd.xlane.f32.xlu1 %v3693_v14  ;;  %14783 = vst [vmem:[#allocation43_spill] sm:$0xff] %v10629_v13  ;;  %8436 = vpow2.f32 %v3200_v26  ;;  %v10636_v12 = vpop.eup %8426  ;;  %v2558_v55 = vpop.xlane.xlu0 %2557 }
 0x564   : > { %14785 = vst [vmem:[#allocation103_spill] sm:$0xff] %v10636_v12  ;;  %8438 = vpow2.f32 %v3202_v6  ;;  %v10638_v51 = vpop.f32.mrb[137].mxu0  ;;  %v2932_v29 = vsub.f32 %v10331_v59, %v2558_v55  ;;  %v2933_v14 = vsub.f32 %v10333_v1, %v2558_v55  ;;  %v3696_v45 = vadd.f32 %v10636_v12, %v10629_v13 }
 0x565   : > { %14786 = vst [vmem:[#allocation104_spill] sm:$0xff] %v10638_v51  ;;  %v10640_v21 = vpop.eup %8428  ;;  %v10646_v38 = vpop.f32.mrb[138].mxu0  ;;  %v14790_v6 = vmax.f32 %v10461_v17, %v10465_v36 }
 0x566   : > { %14787 = vst [vmem:[#allocation105_spill] sm:$0xff] %v10640_v21  ;;  %14788 = vst [vmem:[#allocation106_spill] sm:$0xff] %v10646_v38  ;;  %v10650_v26 = vpop.eup %8430  ;;  %v2561_v49 = vpop.xlane.xlu1 %2560  ;;  %v3204_v59 = vmul.f32 1.442695, %v2932_v29  ;;  %v3206_v37 = vmul.f32 1.442695, %v2933_v14  ;;  %3697 = vadd.xlane.f32.xlu0 %v3696_v45 }
 0x567   : > { %14789 = vst [vmem:[#allocation107_spill] sm:$0xff] %v10650_v26  ;;  %2614 = vmax.xlane.f32.xlu1 %v14790_v6  ;;  %v10655_v11 = vpop.f32.mrb[139].mxu0  ;;  %v2934_v1 = vsub.f32 %v10335_v48, %v2561_v49  ;;  %v2935_v55 = vsub.f32 %v10339_v40, %v2561_v49  ;;  %7548 = vmatmul.mubr.bf16.gmra.mrb[244].mxu0 %v14782_v57 }
 0x568   : > { %14791 = vst [vmem:[#allocation108_spill] sm:$0xff] %v10655_v11  ;;  %v3699_v13 = vadd.f32 %v10650_v26, %v10640_v21  ;;  %8440 = vpow2.f32 %v3204_v59  ;;  %7549 = vmatprep.mubr.bf16.mxu0 %v14792_v8  ;;  %v14794_v48 = vmax.f32 %v10471_v9, %v10473_v25  ;;  %v14803_v26 = vld [vmem:[#allocation45_spill] sm:$0xff] }
 0x569   : > { %v3208_v6 = vmul.f32 1.442695, %v2934_v1  ;;  %v3210_v12 = vmul.f32 1.442695, %v2935_v55  ;;  %8442 = vpow2.f32 %v3206_v37 }
 0x56a   : > { %v10665_v29 = vpop.eup %8432  ;;  %2617 = vmax.xlane.f32.xlu0 %v14794_v48  ;;  %v10670_v40 = vpop.f32.mrb[140].mxu0 }
 0x56b   : > { %3700 = vadd.xlane.f32.xlu1 %v3699_v13  ;;  %14793 = vst [vmem:[#allocation44_spill] sm:$0xff] %v10665_v29  ;;  %8444 = vpow2.f32 %v3208_v6  ;;  %14795 = vst [vmem:[#allocation109_spill] sm:$0xff] %v10670_v40  ;;  %v10672_v57 = vpop.eup %8434  ;;  %v2564_v14 = vpop.xlane.xlu0 %2563 }
 0x56c   : > { %14796 = vst [vmem:[#allocation110_spill] sm:$0xff] %v10672_v57  ;;  %8446 = vpow2.f32 %v3210_v12  ;;  %v10674_v45 = vpop.f32.mrb[141].mxu0  ;;  %v2936_v37 = vsub.f32 %v10345_v54, %v2564_v14  ;;  %v2937_v13 = vsub.f32 %v10347_v3, %v2564_v14  ;;  %v3702_v55 = vadd.f32 %v10672_v57, %v10665_v29 }
 0x56d   : > { %14797 = vst [vmem:[#allocation111_spill] sm:$0xff] %v10674_v45  ;;  %v10676_v49 = vpop.eup %8436  ;;  %v10682_v1 = vpop.f32.mrb[142].mxu0  ;;  %v14801_v12 = vmax.f32 %v10475_v47, %v10479_v16 }
 0x56e   : > { %14798 = vst [vmem:[#allocation112_spill] sm:$0xff] %v10676_v49  ;;  %14799 = vst [vmem:[#allocation113_spill] sm:$0xff] %v10682_v1  ;;  %v10686_v6 = vpop.eup %8438  ;;  %v2567_v48 = vpop.xlane.xlu1 %2566  ;;  %v3212_v54 = vmul.f32 1.442695, %v2936_v37  ;;  %v3214_v21 = vmul.f32 1.442695, %v2937_v13  ;;  %3703 = vadd.xlane.f32.xlu0 %v3702_v55 }
 0x56f   : > { %14800 = vst [vmem:[#allocation114_spill] sm:$0xff] %v10686_v6  ;;  %2620 = vmax.xlane.f32.xlu1 %v14801_v12  ;;  %v10691_v56 = vpop.f32.mrb[143].mxu0  ;;  %v2938_v3 = vsub.f32 %v10349_v52, %v2567_v48  ;;  %v2939_v14 = vsub.f32 %v10353_v30, %v2567_v48  ;;  %7550 = vmatmul.mubr.bf16.gmra.mrb[248].mxu0 %v14792_v8 }
 0x570   : > { %14802 = vst [vmem:[#allocation115_spill] sm:$0xff] %v10691_v56  ;;  %v3705_v29 = vadd.f32 %v10686_v6, %v10676_v49  ;;  %8448 = vpow2.f32 %v3212_v54  ;;  %7551 = vmatprep.mubr.bf16.mxu0 %v14803_v26  ;;  %v14805_v52 = vmax.f32 %v10485_v4, %v10487_v43  ;;  %v14810_v6 = vld [vmem:[#allocation46_spill] sm:$0xff]  ;;  %v14821_v54 = vld [vmem:[#allocation59_spill] sm:$0xff] }
 0x571   : > { %v3216_v12 = vmul.f32 1.442695, %v2938_v3  ;;  %v3218_v57 = vmul.f32 1.442695, %v2939_v14  ;;  %8450 = vpow2.f32 %v3214_v21 }
 0x572   : > { %v10701_v37 = vpop.eup %8440  ;;  %2623 = vmax.xlane.f32.xlu0 %v14805_v52  ;;  %v10706_v30 = vpop.f32.mrb[144].mxu0 }
 0x573   : > { %3706 = vadd.xlane.f32.xlu1 %v3705_v29  ;;  %14804 = vst [vmem:[#allocation45_spill] sm:$0xff] %v10701_v37  ;;  %8452 = vpow2.f32 %v3216_v12  ;;  %v10708_v8 = vpop.eup %8442  ;;  %v2570_v13 = vpop.xlane.xlu0 %2569 }
 0x574   : > { %14806 = vst [vmem:[#allocation116_spill] sm:$0xff] %v10708_v8  ;;  %8454 = vpow2.f32 %v3218_v57  ;;  %v10710_v55 = vpop.f32.mrb[145].mxu0  ;;  %v2940_v21 = vsub.f32 %v10359_v53, %v2570_v13  ;;  %v2941_v29 = vsub.f32 %v10361_v7, %v2570_v13  ;;  %v3708_v14 = vadd.f32 %v10708_v8, %v10701_v37 }
 0x575   : > { %v10712_v48 = vpop.eup %8444  ;;  %v10718_v3 = vpop.f32.mrb[146].mxu0  ;;  %v14809_v57 = vmax.f32 %v10489_v15, %v10493_v24  ;;  %v14825_v24 = vld [vmem:[#allocation69_spill] sm:$0xff] }
 0x576   : > { %14807 = vst [vmem:[#allocation117_spill] sm:$0xff] %v10712_v48  ;;  %v10722_v12 = vpop.eup %8446  ;;  %v2573_v52 = vpop.xlane.xlu1 %2572  ;;  %v3220_v53 = vmul.f32 1.442695, %v2940_v21  ;;  %v3222_v49 = vmul.f32 1.442695, %v2941_v29  ;;  %3709 = vadd.xlane.f32.xlu0 %v3708_v14 }
 0x577   : > { %14808 = vst [vmem:[#allocation118_spill] sm:$0xff] %v10722_v12  ;;  %2626 = vmax.xlane.f32.xlu1 %v14809_v57  ;;  %v10727_v59 = vpop.f32.mrb[147].mxu0  ;;  %v2942_v7 = vsub.f32 %v10363_v10, %v2573_v52  ;;  %v2943_v13 = vsub.f32 %v10367_v50, %v2573_v52  ;;  %7552 = vmatmul.mubr.bf16.gmra.mrb[252].mxu0 %v14803_v26 }
 0x578   : > { %v3711_v37 = vadd.f32 %v10722_v12, %v10712_v48  ;;  %8456 = vpow2.f32 %v3220_v53  ;;  %7553 = vmatprep.mubr.bf16.mxu0 %v14810_v6  ;;  %v14812_v10 = vmax.f32 %v10499_v60, %v10501_v63 }
 0x579   : > { %v3224_v57 = vmul.f32 1.442695, %v2942_v7  ;;  %v3226_v8 = vmul.f32 1.442695, %v2943_v13  ;;  %8458 = vpow2.f32 %v3222_v49 }
 0x57a   : > { %v10737_v21 = vpop.eup %8448  ;;  %2629 = vmax.xlane.f32.xlu0 %v14812_v10  ;;  %v10742_v50 = vpop.f32.mrb[148].mxu0 }
 0x57b   : > { %3712 = vadd.xlane.f32.xlu1 %v3711_v37  ;;  %14811 = vst [vmem:[#allocation46_spill] sm:$0xff] %v10737_v21  ;;  %8460 = vpow2.f32 %v3224_v57  ;;  %14813 = vst [vmem:[#allocation119_spill] sm:$0xff] %v10742_v50  ;;  %v10744_v26 = vpop.eup %8450  ;;  %v2576_v29 = vpop.xlane.xlu0 %2575  ;;  %v14817_v37 = vld [vmem:[#allocation67_spill] sm:$0xff]  ;;  %v14841_v50 = vld [vmem:[#allocation73_spill] sm:$0xff] }
 0x57c   : > { %14814 = vst [vmem:[#allocation120_spill] sm:$0xff] %v10744_v26  ;;  %8462 = vpow2.f32 %v3226_v8  ;;  %v10746_v14 = vpop.f32.mrb[149].mxu0  ;;  %v2944_v49 = vsub.f32 %v10373_v5, %v2576_v29  ;;  %v2945_v53 = vsub.f32 %v14817_v37, %v2576_v29  ;;  %v3714_v57 = vadd.f32 %v10744_v26, %v10737_v21  ;;  %v14820_v8 = vld [vmem:[#allocation57_spill] sm:$0xff]  ;;  %v14824_v29 = vld [vmem:[#allocation68_spill] sm:$0xff] }
 0x57d   : > { %14815 = vst [vmem:[#allocation121_spill] sm:$0xff] %v10746_v14  ;;  %v10748_v52 = vpop.eup %8452  ;;  %v10754_v13 = vpop.f32.mrb[150].mxu0  ;;  %v14822_v48 = vmax.f32 %v14820_v8, %v14821_v54  ;;  %v14826_v54 = vld [vmem:[#allocation48_spill] sm:$0xff] }
 0x57e   : > { %14816 = vst [vmem:[#allocation122_spill] sm:$0xff] %v10748_v52  ;;  %14818 = vst [vmem:[#allocation67_spill] sm:$0xff] %v10754_v13  ;;  %v10758_v10 = vpop.eup %8454  ;;  %v2579_v12 = vpop.xlane.xlu1 %2578  ;;  %v3228_v5 = vmul.f32 1.442695, %v2944_v49  ;;  %v3230_v60 = vmul.f32 1.442695, %v2945_v53  ;;  %3715 = vadd.xlane.f32.xlu0 %v3714_v57 }
 0x57f   : > { %14819 = vst [vmem:[#allocation123_spill] sm:$0xff] %v10758_v10  ;;  %2632 = vmax.xlane.f32.xlu1 %v14822_v48  ;;  %v10763_v63 = vpop.f32.mrb[151].mxu0  ;;  %v2946_v37 = vsub.f32 %v14824_v29, %v2579_v12  ;;  %v2947_v7 = vsub.f32 %v14825_v24, %v2579_v12  ;;  %7554 = vmatmul.mubr.bf16.gmra.mrb[0].mxu0 %v14810_v6  ;;  %v14828_v24 = vld [vmem:[#allocation61_spill] sm:$0xff]  ;;  %v14829_v12 = vld [vmem:[#allocation84_spill] sm:$0xff] }
 0x580   : > { %14823 = vst [vmem:[#allocation124_spill] sm:$0xff] %v10763_v63  ;;  %v3717_v21 = vadd.f32 %v10758_v10, %v10748_v52  ;;  %8464 = vpow2.f32 %v3228_v5  ;;  %7555 = vmatprep.mubr.bf16.mxu0 %v14826_v54  ;;  %v14830_v53 = vmax.f32 %v14828_v24, %v14829_v12  ;;  %v14838_v12 = vld [vmem:[#allocation86_spill] sm:$0xff] }
 0x581   : > { %v3232_v48 = vmul.f32 1.442695, %v2946_v37  ;;  %v3234_v26 = vmul.f32 1.442695, %v2947_v7  ;;  %8466 = vpow2.f32 %v3230_v60  ;;  %v14834_v37 = vld [vmem:[#allocation70_spill] sm:$0xff] }
 0x582   : > { %v10773_v49 = vpop.eup %8456  ;;  %2635 = vmax.xlane.f32.xlu0 %v14830_v53  ;;  %v10778_v57 = vpop.f32.mrb[152].mxu0 }
 0x583   : > { %3718 = vadd.xlane.f32.xlu1 %v3717_v21  ;;  %14827 = vst [vmem:[#allocation68_spill] sm:$0xff] %v10773_v49  ;;  %8468 = vpow2.f32 %v3232_v48  ;;  %v10780_v6 = vpop.eup %8458  ;;  %v2582_v29 = vpop.xlane.xlu0 %2581  ;;  %v14835_v21 = vld [vmem:[#allocation71_spill] sm:$0xff] }
 0x584   : > { %14831 = vst [vmem:[#allocation69_spill] sm:$0xff] %v10780_v6  ;;  %8470 = vpow2.f32 %v3234_v26  ;;  %v10782_v5 = vpop.f32.mrb[153].mxu0  ;;  %v2948_v60 = vsub.f32 %v14834_v37, %v2582_v29  ;;  %v2949_v14 = vsub.f32 %v14835_v21, %v2582_v29  ;;  %v3720_v53 = vadd.f32 %v10780_v6, %v10773_v49  ;;  %v14837_v26 = vld [vmem:[#allocation85_spill] sm:$0xff]  ;;  %v14840_v29 = vld [vmem:[#allocation72_spill] sm:$0xff] }
 0x585   : > { %14832 = vst [vmem:[#allocation48_spill] sm:$0xff] %v10782_v5  ;;  %v10784_v7 = vpop.eup %8460  ;;  %v10790_v52 = vpop.f32.mrb[154].mxu0  ;;  %v14839_v24 = vmax.f32 %v14837_v26, %v14838_v12  ;;  %v14842_v12 = vld [vmem:[#allocation50_spill] sm:$0xff] }
 0x586   : > { %14833 = vst [vmem:[#allocation125_spill] sm:$0xff] %v10784_v7  ;;  %v10794_v10 = vpop.eup %8462  ;;  %v2585_v8 = vpop.xlane.xlu1 %2584  ;;  %v3236_v37 = vmul.f32 1.442695, %v2948_v60  ;;  %v3238_v13 = vmul.f32 1.442695, %v2949_v14  ;;  %3721 = vadd.xlane.f32.xlu0 %v3720_v53 }
 0x587   : > { %14836 = vst [vmem:[#allocation70_spill] sm:$0xff] %v10794_v10  ;;  %2638 = vmax.xlane.f32.xlu1 %v14839_v24  ;;  %v10799_v63 = vpop.f32.mrb[155].mxu0  ;;  %v2950_v21 = vsub.f32 %v14840_v29, %v2585_v8  ;;  %v2951_v48 = vsub.f32 %v14841_v50, %v2585_v8  ;;  %7556 = vmatmul.mubr.bf16.gmra.mrb[4].mxu0 %v14826_v54 }
 0x588   : > { %v3723_v49 = vadd.f32 %v10794_v10, %v10784_v7  ;;  %8472 = vpow2.f32 %v3236_v37  ;;  %7557 = vmatprep.mubr.bf16.mxu0 %v14842_v12  ;;  %v14844_v50 = vmax.f32 %v10527_v22, %v10529_v33  ;;  %v14848_v37 = vld [vmem:[#allocation74_spill] sm:$0xff]  ;;  %v14854_v22 = vld [vmem:[#allocation77_spill] sm:$0xff] }
 0x589   : > { %v3240_v24 = vmul.f32 1.442695, %v2950_v21  ;;  %v3242_v6 = vmul.f32 1.442695, %v2951_v48  ;;  %8474 = vpow2.f32 %v3238_v13 }
 0x58a   : > { %v10809_v14 = vpop.eup %8464  ;;  %2641 = vmax.xlane.f32.xlu0 %v14844_v50  ;;  %v10814_v8 = vpop.f32.mrb[156].mxu0 }
 0x58b   : > { %3724 = vadd.xlane.f32.xlu1 %v3723_v49  ;;  %14843 = vst [vmem:[#allocation71_spill] sm:$0xff] %v10809_v14  ;;  %8476 = vpow2.f32 %v3240_v24  ;;  %v10816_v54 = vpop.eup %8466  ;;  %v2588_v60 = vpop.xlane.xlu0 %2587  ;;  %v14849_v49 = vld [vmem:[#allocation75_spill] sm:$0xff] }
 0x58c   : > { %14845 = vst [vmem:[#allocation85_spill] sm:$0xff] %v10816_v54  ;;  %8478 = vpow2.f32 %v3242_v6  ;;  %v10818_v53 = vpop.f32.mrb[157].mxu0  ;;  %v2952_v13 = vsub.f32 %v14848_v37, %v2588_v60  ;;  %v2953_v29 = vsub.f32 %v14849_v49, %v2588_v60  ;;  %v3726_v50 = vadd.f32 %v10816_v54, %v10809_v14  ;;  %v14853_v60 = vld [vmem:[#allocation76_spill] sm:$0xff] }
 0x58d   : > { %14846 = vst [vmem:[#allocation72_spill] sm:$0xff] %v10818_v53  ;;  %v10820_v48 = vpop.eup %8468  ;;  %v10826_v24 = vpop.f32.mrb[158].mxu0  ;;  %v14851_v6 = vmax.f32 %v10535_v39, %v10537_v61  ;;  %v14855_v61 = vld [vmem:[#allocation52_spill] sm:$0xff] }
 0x58e   : > { %14847 = vst [vmem:[#allocation73_spill] sm:$0xff] %v10820_v48  ;;  %v10830_v5 = vpop.eup %8470  ;;  %v2591_v7 = vpop.xlane.xlu1 %2590  ;;  %v3244_v37 = vmul.f32 1.442695, %v2952_v13  ;;  %v3246_v33 = vmul.f32 1.442695, %v2953_v29  ;;  %3727 = vadd.xlane.f32.xlu0 %v3726_v50  ;;  %v14867_v39 = vld [vmem:[#allocation80_spill] sm:$0xff] }
 0x58f   : > { %14850 = vst [vmem:[#allocation50_spill] sm:$0xff] %v10830_v5  ;;  %2644 = vmax.xlane.f32.xlu1 %v14851_v6  ;;  %v10835_v10 = vpop.f32.mrb[159].mxu0  ;;  %v2954_v49 = vsub.f32 %v14853_v60, %v2591_v7  ;;  %v2955_v21 = vsub.f32 %v14854_v22, %v2591_v7  ;;  %7558 = vmatmul.mubr.bf16.gmra.mrb[8].mxu0 %v14842_v12 }
 0x590   : > { %14852 = vst [vmem:[#allocation74_spill] sm:$0xff] %v10835_v10  ;;  %v3729_v14 = vadd.f32 %v10830_v5, %v10820_v48  ;;  %8480 = vpow2.f32 %v3244_v37  ;;  %7559 = vmatprep.mubr.bf16.mxu0 %v14855_v61  ;;  %v14857_v22 = vmax.f32 %v10545_v31, %v10547_v42  ;;  %v14861_v37 = vld [vmem:[#allocation47_spill] sm:$0xff] }
 0x591   : > { %v3248_v6 = vmul.f32 1.442695, %v2954_v49  ;;  %v3250_v54 = vmul.f32 1.442695, %v2955_v21  ;;  %8482 = vpow2.f32 %v3246_v33 }
 0x592   : > { %v10845_v13 = vpop.eup %8472  ;;  %2647 = vmax.xlane.f32.xlu0 %v14857_v22  ;;  %v10850_v7 = vpop.f32.mrb[160].mxu0 }
 0x593   : > { %3730 = vadd.xlane.f32.xlu1 %v3729_v14  ;;  %14856 = vst [vmem:[#allocation75_spill] sm:$0xff] %v10845_v13  ;;  %8484 = vpow2.f32 %v3248_v6  ;;  %v10852_v12 = vpop.eup %8474  ;;  %v2594_v29 = vpop.xlane.xlu0 %2593  ;;  %v14862_v14 = vld [vmem:[#allocation78_spill] sm:$0xff] }
 0x594   : > { %14858 = vst [vmem:[#allocation76_spill] sm:$0xff] %v10852_v12  ;;  %8486 = vpow2.f32 %v3250_v54  ;;  %v10854_v50 = vpop.f32.mrb[161].mxu0  ;;  %v2956_v33 = vsub.f32 %v14861_v37, %v2594_v29  ;;  %v2957_v60 = vsub.f32 %v14862_v14, %v2594_v29  ;;  %v3732_v22 = vadd.f32 %v10852_v12, %v10845_v13  ;;  %v14864_v54 = vld [vmem:[#allocation92_spill] sm:$0xff]  ;;  %v14866_v29 = vld [vmem:[#allocation79_spill] sm:$0xff] }
 0x595   : > { %14859 = vst [vmem:[#allocation77_spill] sm:$0xff] %v10854_v50  ;;  %v10856_v21 = vpop.eup %8476  ;;  %v10862_v6 = vpop.f32.mrb[162].mxu0  ;;  %v14865_v48 = vmax.f32 %v10553_v20, %v14864_v54  ;;  %v14868_v54 = vld [vmem:[#allocation54_spill] sm:$0xff] }
 0x596   : > { %14860 = vst [vmem:[#allocation52_spill] sm:$0xff] %v10856_v21  ;;  %v10866_v53 = vpop.eup %8478  ;;  %v2597_v5 = vpop.xlane.xlu1 %2596  ;;  %v3252_v37 = vmul.f32 1.442695, %v2956_v33  ;;  %v3254_v31 = vmul.f32 1.442695, %v2957_v60  ;;  %3733 = vadd.xlane.f32.xlu0 %v3732_v22 }
 0x597   : > { %14863 = vst [vmem:[#allocation47_spill] sm:$0xff] %v10866_v53  ;;  %2650 = vmax.xlane.f32.xlu1 %v14865_v48  ;;  %v10871_v42 = vpop.f32.mrb[163].mxu0  ;;  %v2958_v14 = vsub.f32 %v14866_v29, %v2597_v5  ;;  %v2959_v49 = vsub.f32 %v14867_v39, %v2597_v5  ;;  %7560 = vmatmul.mubr.bf16.gmra.mrb[12].mxu0 %v14855_v61 }
 0x598   : > { %v3735_v13 = vadd.f32 %v10866_v53, %v10856_v21  ;;  %8488 = vpow2.f32 %v3252_v37  ;;  %7561 = vmatprep.mubr.bf16.mxu0 %v14868_v54  ;;  %v14870_v39 = vmax.f32 %v10565_v58, %v10569_v34  ;;  %v14874_v37 = vld [vmem:[#allocation49_spill] sm:$0xff]  ;;  %v14879_v58 = vld [vmem:[#allocation83_spill] sm:$0xff] }
 0x599   : > { %v3256_v48 = vmul.f32 1.442695, %v2958_v14  ;;  %v3258_v12 = vmul.f32 1.442695, %v2959_v49  ;;  %8490 = vpow2.f32 %v3254_v31 }
 0x59a   : > { %v10881_v33 = vpop.eup %8480  ;;  %2653 = vmax.xlane.f32.xlu0 %v14870_v39  ;;  %v10886_v5 = vpop.f32.mrb[164].mxu0 }
 0x59b   : > { %3736 = vadd.xlane.f32.xlu1 %v3735_v13  ;;  %14869 = vst [vmem:[#allocation78_spill] sm:$0xff] %v10881_v33  ;;  %8492 = vpow2.f32 %v3256_v48  ;;  %v10888_v61 = vpop.eup %8482  ;;  %v2600_v60 = vpop.xlane.xlu0 %2599  ;;  %v14875_v13 = vld [vmem:[#allocation81_spill] sm:$0xff] }
 0x59c   : > { %14871 = vst [vmem:[#allocation79_spill] sm:$0xff] %v10888_v61  ;;  %8494 = vpow2.f32 %v3258_v12  ;;  %v10890_v22 = vpop.f32.mrb[165].mxu0  ;;  %v2960_v31 = vsub.f32 %v14874_v37, %v2600_v60  ;;  %v2961_v29 = vsub.f32 %v14875_v13, %v2600_v60  ;;  %v3738_v39 = vadd.f32 %v10888_v61, %v10881_v33  ;;  %v14878_v60 = vld [vmem:[#allocation82_spill] sm:$0xff] }
 0x59d   : > { %14872 = vst [vmem:[#allocation80_spill] sm:$0xff] %v10890_v22  ;;  %v10892_v49 = vpop.eup %8484  ;;  %v10898_v48 = vpop.f32.mrb[166].mxu0  ;;  %v14877_v12 = vmax.f32 %v10577_v2, %v10583_v0  ;;  %v14880_v0 = vld [vmem:[#allocation56_spill] sm:$0xff]  ;;  %v14889_v22 = vmax.f32 %v10634_v23, %v10638_v51 }
 0x59e   : > { %14873 = vst [vmem:[#allocation54_spill] sm:$0xff] %v10892_v49  ;;  %v10902_v50 = vpop.eup %8486  ;;  %v2603_v21 = vpop.xlane.xlu1 %2602  ;;  %v3260_v37 = vmul.f32 1.442695, %v2960_v31  ;;  %v3262_v34 = vmul.f32 1.442695, %v2961_v29  ;;  %3739 = vadd.xlane.f32.xlu0 %v3738_v39 }
 0x59f   : > { %14876 = vst [vmem:[#allocation49_spill] sm:$0xff] %v10902_v50  ;;  %2656 = vmax.xlane.f32.xlu1 %v14877_v12  ;;  %v10907_v53 = vpop.f32.mrb[167].mxu0  ;;  %v2962_v13 = vsub.f32 %v14878_v60, %v2603_v21  ;;  %v2963_v14 = vsub.f32 %v14879_v58, %v2603_v21  ;;  %7562 = vmatmul.mubr.bf16.gmra.mrb[16].mxu0 %v14868_v54 }
 0x5a0   : > { %v3741_v33 = vadd.f32 %v10902_v50, %v10892_v49  ;;  %8496 = vpow2.f32 %v3260_v37  ;;  %7563 = vmatprep.mubr.bf16.mxu0 %v14880_v0  ;;  %v14882_v58 = vmax.f32 %v10598_v46, %v10602_v35  ;;  %v14886_v60 = vmax.f32 %v10610_v27, %v10619_v32  ;;  %v14896_v50 = vld [vmem:[#allocation60_spill] sm:$0xff] }
 0x5a1   : > { %v3264_v12 = vmul.f32 1.442695, %v2962_v13  ;;  %v3266_v61 = vmul.f32 1.442695, %v2963_v14  ;;  %8498 = vpow2.f32 %v3262_v34 }
 0x5a2   : > { %v10917_v31 = vpop.eup %8488  ;;  %2659 = vmax.xlane.f32.xlu0 %v14882_v58  ;;  %v10922_v21 = vpop.f32.mrb[168].mxu0  ;;  %v14887_v58 = vld [vmem:[#allocation58_spill] sm:$0xff] }
 0x5a3   : > { %3742 = vadd.xlane.f32.xlu1 %v3741_v33  ;;  %14881 = vst [vmem:[#allocation81_spill] sm:$0xff] %v10917_v31  ;;  %8500 = vpow2.f32 %v3264_v12  ;;  %v10924_v54 = vpop.eup %8490  ;;  %v10926_v29 = vpop.f32.mrb[169].mxu0 }
 0x5a4   : > { %14883 = vst [vmem:[#allocation82_spill] sm:$0xff] %v10924_v54  ;;  %8502 = vpow2.f32 %v3266_v61  ;;  %v10932_v33 = vpop.f32.mrb[170].mxu0  ;;  %v3744_v14 = vadd.f32 %v10924_v54, %v10917_v31 }
 0x5a5   : > { %v10928_v39 = vpop.eup %8492  ;;  %v10941_v13 = vpop.f32.mrb[171].mxu0 }
 0x5a6   : > { %14884 = vst [vmem:[#allocation83_spill] sm:$0xff] %v10928_v39  ;;  %v10936_v37 = vpop.eup %8494  ;;  %3745 = vadd.xlane.f32.xlu0 %v3744_v14 }
 0x5a7   : > { %14885 = vst [vmem:[#allocation56_spill] sm:$0xff] %v10936_v37  ;;  %2662 = vmax.xlane.f32.xlu1 %v14886_v60  ;;  %v3747_v12 = vadd.f32 %v10936_v37, %v10928_v39  ;;  %7564 = vmatmul.mubr.bf16.gmra.mrb[20].mxu0 %v14880_v0 }
 0x5a8   : > { %7565 = vmatprep.mubr.bf16.mxu0 %v14887_v58 }
 0x5aa   : > { %v10949_v34 = vpop.eup %8496  ;;  %2665 = vmax.xlane.f32.xlu0 %v14889_v22  ;;  %v10954_v60 = vpop.f32.mrb[172].mxu0  ;;  %v14894_v22 = vmax.f32 %v10646_v38, %v10655_v11 }
 0x5ab   : > { %3748 = vadd.xlane.f32.xlu1 %v3747_v12  ;;  %14888 = vst [vmem:[#allocation58_spill] sm:$0xff] %v10949_v34  ;;  %v10956_v14 = vpop.eup %8498  ;;  %v10958_v31 = vpop.f32.mrb[173].mxu0 }
 0x5ac   : > { %14890 = vst [vmem:[#allocation126_spill] sm:$0xff] %v10956_v14  ;;  %v10964_v39 = vpop.f32.mrb[174].mxu0  ;;  %v3750_v12 = vadd.f32 %v10956_v14, %v10949_v34  ;;  %v14897_v34 = vmax.f32 %v10670_v40, %v10674_v45 }
 0x5ad   : > { %v10960_v61 = vpop.eup %8500  ;;  %14892 = vst [vmem:[#allocation128_spill] sm:$0xff] %v10964_v39  ;;  %v10973_v54 = vpop.f32.mrb[175].mxu0 }
 0x5ae   : > { %14891 = vst [vmem:[#allocation127_spill] sm:$0xff] %v10960_v61  ;;  %v10968_v37 = vpop.eup %8502  ;;  %14895 = vst [vmem:[#allocation130_spill] sm:$0xff] %v10973_v54  ;;  %3751 = vadd.xlane.f32.xlu0 %v3750_v12 }
 0x5af   : > { %14893 = vst [vmem:[#allocation129_spill] sm:$0xff] %v10968_v37  ;;  %2668 = vmax.xlane.f32.xlu1 %v14894_v22  ;;  %v3753_v0 = vadd.f32 %v10968_v37, %v10960_v61  ;;  %7566 = vmatmul.mubr.bf16.gmra.mrb[24].mxu0 %v14887_v58  ;;  %v14901_v61 = vmax.f32 %v10682_v1, %v10691_v56 }
 0x5b0   : > { %7567 = vmatprep.mubr.bf16.mxu0 %v14896_v50 }
 0x5b2   : > { %2671 = vmax.xlane.f32.xlu0 %v14897_v34  ;;  %v10984_v14 = vpop.f32.mrb[176].mxu0  ;;  %v14903_v34 = vld [vmem:[#allocation62_spill] sm:$0xff] }
 0x5b3   : > { %3754 = vadd.xlane.f32.xlu1 %v3753_v0  ;;  %14898 = vst [vmem:[#allocation60_spill] sm:$0xff] %v10984_v14  ;;  %v10986_v22 = vpop.f32.mrb[177].mxu0  ;;  %v14908_v0 = vld [vmem:[#allocation64_spill] sm:$0xff] }
 0x5b4   : > { %14899 = vst [vmem:[#allocation131_spill] sm:$0xff] %v10986_v22  ;;  %v10990_v49 = vpop.f32.mrb[178].mxu0 }
 0x5b5   : > { %14900 = vst [vmem:[#allocation132_spill] sm:$0xff] %v10990_v49  ;;  %v10995_v58 = vpop.f32.mrb[179].mxu0 }
 0x5b6   : > { %14902 = vst [vmem:[#allocation133_spill] sm:$0xff] %v10995_v58 }
 0x5b7   : > { %2674 = vmax.xlane.f32.xlu1 %v14901_v61  ;;  %7568 = vmatmul.mubr.bf16.gmra.mrb[28].mxu0 %v14896_v50  ;;  %v14913_v61 = vld [vmem:[#allocation65_spill] sm:$0xff] }
 0x5b8   : > { %7569 = vmatprep.mubr.bf16.mxu0 %v14903_v34 }
 0x5ba   : > { %v11001_v37 = vpop.f32.mrb[180].mxu0 }
 0x5bb   : > { %14904 = vst [vmem:[#allocation62_spill] sm:$0xff] %v11001_v37  ;;  %v11003_v45 = vpop.f32.mrb[181].mxu0 }
 0x5bc   : > { %14905 = vst [vmem:[#allocation134_spill] sm:$0xff] %v11003_v45  ;;  %v11007_v40 = vpop.f32.mrb[182].mxu0  ;;  %v14918_v45 = vld [vmem:[#allocation66_spill] sm:$0xff] }
 0x5bd   : > { %14906 = vst [vmem:[#allocation135_spill] sm:$0xff] %v11007_v40  ;;  %v11009_v56 = vpop.f32.mrb[183].mxu0 }
 0x5be   : > { %14907 = vst [vmem:[#allocation136_spill] sm:$0xff] %v11009_v56 }
 0x5bf   : > { %7570 = vmatmul.mubr.bf16.gmra.mrb[32].mxu0 %v14903_v34 }
 0x5c0   : > { %7571 = vmatprep.mubr.bf16.mxu0 %v14908_v0 }
 0x5c2   : > { %v11015_v50 = vpop.f32.mrb[184].mxu0 }
 0x5c3   : > { %14909 = vst [vmem:[#allocation64_spill] sm:$0xff] %v11015_v50  ;;  %v11017_v1 = vpop.f32.mrb[185].mxu0 }
 0x5c4   : > { %14910 = vst [vmem:[#allocation137_spill] sm:$0xff] %v11017_v1  ;;  %v11021_v49 = vpop.f32.mrb[186].mxu0 }
 0x5c5   : > { %14911 = vst [vmem:[#allocation138_spill] sm:$0xff] %v11021_v49  ;;  %v11023_v12 = vpop.f32.mrb[187].mxu0 }
 0x5c6   : > { %14912 = vst [vmem:[#allocation139_spill] sm:$0xff] %v11023_v12 }
 0x5c7   : > { %7572 = vmatmul.mubr.bf16.gmra.mrb[36].mxu0 %v14908_v0 }
 0x5c8   : > { %7573 = vmatprep.mubr.bf16.mxu0 %v14913_v61 }
 0x5ca   : > { %v11029_v34 = vpop.f32.mrb[188].mxu0 }
 0x5cb   : > { %14914 = vst [vmem:[#allocation65_spill] sm:$0xff] %v11029_v34  ;;  %v11031_v56 = vpop.f32.mrb[189].mxu0 }
 0x5cc   : > { %14915 = vst [vmem:[#allocation140_spill] sm:$0xff] %v11031_v56  ;;  %v11035_v37 = vpop.f32.mrb[190].mxu0 }
 0x5cd   : > { %14916 = vst [vmem:[#allocation141_spill] sm:$0xff] %v11035_v37  ;;  %v11037_v58 = vpop.f32.mrb[191].mxu0 }
 0x5ce   : > { %14917 = vst [vmem:[#allocation142_spill] sm:$0xff] %v11037_v58 }
 0x5cf   : > { %7574 = vmatmul.mubr.bf16.gmra.mrb[40].mxu0 %v14913_v61 }
 0x5d0   : > { %7575 = vmatprep.mubr.bf16.mxu0 %v14918_v45 }
 0x5d2   : > { %v11043_v0 = vpop.f32.mrb[192].mxu0 }
 0x5d3   : > { %14919 = vst [vmem:[#allocation66_spill] sm:$0xff] %v11043_v0  ;;  %v11045_v12 = vpop.f32.mrb[193].mxu0 }
 0x5d4   : > { %14920 = vst [vmem:[#allocation143_spill] sm:$0xff] %v11045_v12  ;;  %v11049_v50 = vpop.f32.mrb[194].mxu0 }
 0x5d5   : > { %14921 = vst [vmem:[#allocation144_spill] sm:$0xff] %v11049_v50  ;;  %v11051_v40 = vpop.f32.mrb[195].mxu0 }
 0x5d6   : > { %14922 = vst [vmem:[#allocation145_spill] sm:$0xff] %v11051_v40 }
 0x5d7   : > { %7576 = vmatmul.mubr.bf16.gmra.mrb[44].mxu0 %v14918_v45 }
 0x5da   : > { %v11056_v1 = vpop.f32.mrb[196].mxu0 }
 0x5db   : > { %14923 = vst [vmem:[#allocation146_spill] sm:$0xff] %v11056_v1  ;;  %v11058_v61 = vpop.f32.mrb[197].mxu0 }
 0x5dc   : > { %14924 = vst [vmem:[#allocation147_spill] sm:$0xff] %v11058_v61  ;;  %v11062_v37 = vpop.f32.mrb[198].mxu0 }
 0x5dd   : > { %14925 = vst [vmem:[#allocation148_spill] sm:$0xff] %v11062_v37  ;;  %v11064_v34 = vpop.f32.mrb[199].mxu0 }
 0x5de   : > { %14926 = vst [vmem:[#allocation149_spill] sm:$0xff] %v11064_v34 }
 0x5e2   : > { %v11068_v12 = vpop.f32.mrb[200].mxu0 }
 0x5e3   : > { %14927 = vst [vmem:[#allocation150_spill] sm:$0xff] %v11068_v12  ;;  %v3686_v0 = vpop.xlane.xlu0 %3685  ;;  %v11070_v56 = vpop.f32.mrb[201].mxu0 }
 0x5e4   : > { %14928 = vst [vmem:[#allocation151_spill] sm:$0xff] %v11070_v56  ;;  %8504 = vrcp.f32 %v3686_v0  ;;  %v11074_v40 = vpop.f32.mrb[202].mxu0 }
 0x5e5   : > { %14929 = vst [vmem:[#allocation152_spill] sm:$0xff] %v11074_v40  ;;  %v11076_v50 = vpop.f32.mrb[203].mxu0  ;;  %v3689_v58 = vpop.xlane.xlu1 %3688 }
 0x5e6   : > { %14930 = vst [vmem:[#allocation153_spill] sm:$0xff] %v11076_v50  ;;  %8506 = vrcp.f32 %v3689_v58 }
 0x5e7   : > { %v2606_v1 = vpop.xlane.xlu0 %2605 }
 0x5e8   : > { %v2964_v49 = vsub.f32 %v10443_v62, %v2606_v1  ;;  %v2965_v34 = vsub.f32 %v10445_v28, %v2606_v1 }
 0x5ea   : > { %v3268_v37 = vmul.f32 1.442695, %v2964_v49  ;;  %v3270_v22 = vmul.f32 1.442695, %v2965_v34  ;;  %v11082_v11 = vpop.f32.mrb[204].mxu0 }
 0x5eb   : > { %14931 = vst [vmem:[#allocation154_spill] sm:$0xff] %v11082_v11  ;;  %v3692_v12 = vpop.xlane.xlu0 %3691  ;;  %v11086_v38 = vpop.f32.mrb[205].mxu0 }
 0x5ec   : > { %v2609_v14 = vpop.xlane.xlu1 %2608  ;;  %14932 = vst [vmem:[#allocation155_spill] sm:$0xff] %v11086_v38  ;;  %8508 = vpow2.f32 %v3268_v37  ;;  %v11090_v50 = vpop.f32.mrb[206].mxu0 }
 0x5ed   : > { %v2966_v45 = vsub.f32 %v10447_v44, %v2609_v14  ;;  %v2967_v56 = vsub.f32 %v10451_v19, %v2609_v14  ;;  %14933 = vst [vmem:[#allocation156_spill] sm:$0xff] %v11090_v50  ;;  %8510 = vpow2.f32 %v3270_v22  ;;  %v11092_v1 = vpop.f32.mrb[207].mxu0  ;;  %v14942_v19 = vld [vmem:[#allocation97_spill] sm:$0xff] }
 0x5ee   : > { %14934 = vst [vmem:[#allocation157_spill] sm:$0xff] %v11092_v1  ;;  %v8505_v49 = vpop.eup %8504  ;;  %8512 = vrcp.f32 %v3692_v12 }
 0x5ef   : > { %v3272_v62 = vmul.f32 1.442695, %v2966_v45  ;;  %v3274_v28 = vmul.f32 1.442695, %v2967_v56  ;;  %v4196_v44 = vmul.f32 %v8505_v49, %v3686_v0  ;;  %v2612_v37 = vpop.xlane.xlu0 %2611 }
 0x5f0   : > { %v11094_v34 = vpop.xlane.xlu1 %3694  ;;  %v2968_v14 = vsub.f32 %v10457_v18, %v2612_v37  ;;  %v2969_v61 = vsub.f32 %v10459_v41, %v2612_v37  ;;  %v8507_v22 = vpop.eup %8506 }
 0x5f1   : > { %8514 = vpow2.f32 %v3272_v62  ;;  %v4324_v45 = vsub.f32 2.0, %v4196_v44  ;;  %v4197_v56 = vmul.f32 %v8507_v22, %v3689_v58 }
 0x5f2   : > { %8516 = vpow2.f32 %v3274_v28  ;;  %v3276_v38 = vmul.f32 1.442695, %v2968_v14  ;;  %v3278_v11 = vmul.f32 1.442695, %v2969_v61  ;;  %v11101_v54 = vpop.f32.mrb[208].mxu0 }
 0x5f3   : > { %8518 = vrcp.f32 %v11094_v34  ;;  %14935 = vst [vmem:[#allocation158_spill] sm:$0xff] %v11101_v54  ;;  %v4452_v39 = vmul.f32 %v8505_v49, %v4324_v45  ;;  %v11105_v28 = vpop.xlane.xlu0 %3697  ;;  %v11107_v18 = vpop.f32.mrb[209].mxu0  ;;  %v4325_v41 = vsub.f32 2.0, %v4197_v56  ;;  %v14940_v45 = vld [vmem:[#allocation93_spill] sm:$0xff] }
 0x5f4   : > { %v2615_v40 = vpop.xlane.xlu1 %2614  ;;  %14936 = vst [vmem:[#allocation159_spill] sm:$0xff] %v11107_v18  ;;  %8520 = vpow2.f32 %v3276_v38  ;;  %v11111_v58 = vpop.f32.mrb[210].mxu0 }
 0x5f5   : > { %v2970_v0 = vsub.f32 %v10461_v17, %v2615_v40  ;;  %v2971_v62 = vsub.f32 %v10465_v36, %v2615_v40  ;;  %14937 = vst [vmem:[#allocation160_spill] sm:$0xff] %v11111_v58  ;;  %8522 = vpow2.f32 %v3278_v11  ;;  %v11113_v14 = vpop.f32.mrb[211].mxu0  ;;  %v4453_v17 = vmul.f32 %v8507_v22, %v4325_v41 }
 0x5f6   : > { %14938 = vst [vmem:[#allocation161_spill] sm:$0xff] %v11113_v14  ;;  %v11115_v49 = vpop.eup %8508  ;;  %8524 = vrcp.f32 %v11105_v28  ;;  %v4580_v56 = vmul.f32 %v14940_v45, %v4452_v39 }
 0x5f7   : > { %v3280_v61 = vmul.f32 1.442695, %v2970_v0  ;;  %v3282_v37 = vmul.f32 1.442695, %v2971_v62  ;;  %14939 = vst [vmem:[#allocation162_spill] sm:$0xff] %v11115_v49  ;;  %v11122_v40 = vpop.eup %8510  ;;  %v2618_v11 = vpop.xlane.xlu0 %2617  ;;  %v14941_v0 = vld [vmem:[#allocation95_spill] sm:$0xff]  ;;  %v4582_v18 = vmul.f32 %v14942_v19, %v4453_v17 }
 0x5f8   : > { %v11118_v36 = vpop.xlane.xlu1 %3700  ;;  %v4581_v62 = vmul.f32 %v14941_v0, %v4452_v39  ;;  %v8513_v44 = vpop.eup %8512  ;;  %v2972_v22 = vsub.f32 %v10471_v9, %v2618_v11  ;;  %v2973_v41 = vsub.f32 %v10473_v25, %v2618_v11  ;;  %v3756_v45 = vadd.f32 %v11122_v40, %v11115_v49 }
 0x5f9   : > { %8526 = vpow2.f32 %v3280_v61  ;;  %v4198_v1 = vmul.f32 %v8513_v44, %v3692_v12  ;;  %v14944_v61 = vld [vmem:[#allocation98_spill] sm:$0xff]  ;;  %v4836_v39 = vpack.c.bf16 %v4582_v18, %v4580_v56 }
 0x5fa   : > { %8528 = vpow2.f32 %v3282_v37  ;;  %v4583_v38 = vmul.f32 %v14944_v61, %v4453_v17  ;;  %v3284_v0 = vmul.f32 1.442695, %v2972_v22  ;;  %v3286_v19 = vmul.f32 1.442695, %v2973_v41  ;;  %v11137_v58 = vpop.f32.mrb[212].mxu0  ;;  %3757 = vadd.xlane.f32.xlu0 %v3756_v45 }
 0x5fb   : > { %v11129_v54 = vpop.eup %8514  ;;  %8530 = vrcp.f32 %v11118_v36  ;;  %14946 = vst [vmem:[#allocation97_spill] sm:$0xff] %v11137_v58  ;;  %v4326_v25 = vsub.f32 2.0, %v4198_v1  ;;  %v11141_v51 = vpop.xlane.xlu0 %3703 }
 0x5fc   : > { %14943 = vst [vmem:[#allocation93_spill] sm:$0xff] %v11129_v54  ;;  %v11135_v14 = vpop.eup %8516  ;;  %v2621_v37 = vpop.xlane.xlu1 %2620  ;;  %v4837_v50 = vpack.c.bf16 %v4583_v38, %v4581_v62  ;;  %8532 = vpow2.f32 %v3284_v0  ;;  %v14953_v0 = vld [vmem:[#allocation100_spill] sm:$0xff] }
 0x5fd   : > { %14945 = vst [vmem:[#allocation95_spill] sm:$0xff] %v11135_v14  ;;  %v8519_v9 = vpop.eup %8518  ;;  %v2974_v11 = vsub.f32 %v10475_v47, %v2621_v37  ;;  %v2975_v12 = vsub.f32 %v10479_v16, %v2621_v37  ;;  %v11143_v49 = vpop.f32.mrb[213].mxu0  ;;  %v3759_v18 = vadd.f32 %v11135_v14, %v11129_v54  ;;  %v4454_v47 = vmul.f32 %v8513_v44, %v4326_v25 }
 0x5fe   : > { %14947 = vst [vmem:[#allocation98_spill] sm:$0xff] %v11143_v49  ;;  %v4199_v17 = vmul.f32 %v8519_v9, %v11094_v34  ;;  %v11150_v1 = vpop.f32.mrb[214].mxu0  ;;  %8534 = vpow2.f32 %v3286_v19  ;;  %5012 = vmatprep.mubr.bf16.mxu1 %v4837_v50  ;;  %v11154_v62 = vpop.eup %8520  ;;  %v14952_v50 = vmax.f32 %v10706_v30, %v10710_v55 }
 0x5ff   : > { %14948 = vst [vmem:[#allocation163_spill] sm:$0xff] %v11150_v1  ;;  %v3288_v16 = vmul.f32 1.442695, %v2974_v11  ;;  %v3290_v22 = vmul.f32 1.442695, %v2975_v12  ;;  %v11152_v38 = vpop.f32.mrb[215].mxu0  ;;  %8536 = vrcp.f32 %v11141_v51  ;;  %3760 = vadd.xlane.f32.xlu1 %v3759_v18  ;;  %5013 = vmatmul.mubr.bf16.vlgmr.msra.gmra.mrb[80].mxu1 %v4836_v39  ;;  %v11161_v61 = vpop.eup %8522  ;;  %v4585_v19 = vmul.f32 %v14953_v0, %v4454_v47 }
 0x600   : > { %14949 = vst [vmem:[#allocation164_spill] sm:$0xff] %v11152_v38  ;;  %14950 = vst [vmem:[#allocation165_spill] sm:$0xff] %v11154_v62  ;;  %v4327_v41 = vsub.f32 2.0, %v4199_v17  ;;  %v11157_v34 = vpop.xlane.xlu1 %3706  ;;  %2677 = vmax.xlane.f32.xlu0 %v14952_v50  ;;  %v2624_v44 = vpop.xlane.xlu0 %2623  ;;  %v3762_v18 = vadd.f32 %v11161_v61, %v11154_v62 }
 0x601   : > { %14951 = vst [vmem:[#allocation166_spill] sm:$0xff] %v11161_v61  ;;  %8538 = vpow2.f32 %v3288_v16  ;;  %v8525_v37 = vpop.eup %8524  ;;  %v2976_v39 = vsub.f32 %v10485_v4, %v2624_v44  ;;  %v2977_v11 = vsub.f32 %v10487_v43, %v2624_v44  ;;  %v14955_v16 = vld [vmem:[#allocation42_spill] sm:$0xff]  ;;  %v14957_v4 = vmax.f32 %v10718_v3, %v10727_v59 }
 0x602   : > { %v4455_v25 = vmul.f32 %v8519_v9, %v4327_v41  ;;  %8540 = vpow2.f32 %v3290_v22  ;;  %v4200_v17 = vmul.f32 %v8525_v37, %v11105_v28  ;;  %v4584_v50 = vmul.f32 %v14955_v16, %v4454_v47  ;;  %v14958_v22 = vld [vmem:[#allocation102_spill] sm:$0xff]  ;;  %v11182_v44 = vpop.f32.mrb[216].mxu0  ;;  %v14960_v28 = vld [vmem:[#allocation101_spill] sm:$0xff]  ;;  %v14961_v47 = vld [vmem:[#allocation51_spill] sm:$0xff] }
 0x603   : > { %v11169_v12 = vpop.eup %8526  ;;  %8542 = vrcp.f32 %v11157_v34  ;;  %v3292_v0 = vmul.f32 1.442695, %v2976_v39  ;;  %v3294_v9 = vmul.f32 1.442695, %v2977_v11  ;;  %2680 = vmax.xlane.f32.xlu1 %v14957_v4  ;;  %14959 = vst [vmem:[#allocation102_spill] sm:$0xff] %v11182_v44  ;;  %v11191_v4 = vpop.f32.mrb[217].mxu0 }
 0x604   : > { %14954 = vst [vmem:[#allocation100_spill] sm:$0xff] %v11169_v12  ;;  %v11176_v45 = vpop.eup %8528  ;;  %v2627_v43 = vpop.xlane.xlu1 %2626  ;;  %v4587_v41 = vmul.f32 %v14958_v22, %v4455_v25  ;;  %v4586_v56 = vmul.f32 %v14960_v28, %v4455_v25  ;;  %v4328_v1 = vsub.f32 2.0, %v4200_v17  ;;  %3763 = vadd.xlane.f32.xlu0 %v3762_v18  ;;  %14962 = vst [vmem:[#allocation101_spill] sm:$0xff] %v11191_v4 }
 0x605   : > { %14956 = vst [vmem:[#allocation42_spill] sm:$0xff] %v11176_v45  ;;  %v8531_v38 = vpop.eup %8530  ;;  %v2978_v49 = vsub.f32 %v10489_v15, %v2627_v43  ;;  %v2979_v16 = vsub.f32 %v14961_v47, %v2627_v43  ;;  %v11187_v39 = vpop.xlane.xlu0 %3709  ;;  %v3765_v11 = vadd.f32 %v11176_v45, %v11169_v12  ;;  %8544 = vpow2.f32 %v3292_v0 }
 0x606   : > { %v4201_v22 = vmul.f32 %v8531_v38, %v11118_v36  ;;  %v4839_v58 = vpack.c.bf16 %v4587_v41, %v4585_v19  ;;  %v11196_v17 = vpop.f32.mrb[218].mxu0  ;;  %v4456_v15 = vmul.f32 %v8525_v37, %v4328_v1  ;;  %8546 = vpow2.f32 %v3294_v9  ;;  %v11200_v47 = vpop.eup %8532  ;;  %v14968_v1 = vld [vmem:[#allocation121_spill] sm:$0xff] }
 0x607   : > { %14963 = vst [vmem:[#allocation51_spill] sm:$0xff] %v11196_v17  ;;  %v3296_v43 = vmul.f32 1.442695, %v2978_v49  ;;  %v3298_v18 = vmul.f32 1.442695, %v2979_v16  ;;  %v11198_v28 = vpop.f32.mrb[219].mxu0  ;;  %8548 = vrcp.f32 %v11187_v39  ;;  %3766 = vadd.xlane.f32.xlu1 %v3765_v11  ;;  %v4838_v36 = vpack.c.bf16 %v4586_v56, %v4584_v50 }
 0x608   : > { %14964 = vst [vmem:[#allocation167_spill] sm:$0xff] %v11198_v28  ;;  %14965 = vst [vmem:[#allocation168_spill] sm:$0xff] %v11200_v47  ;;  %v4329_v12 = vsub.f32 2.0, %v4201_v22  ;;  %5020 = vmatprep.mubr.bf16.mxu1 %v4839_v58  ;;  %v11203_v19 = vpop.xlane.xlu1 %3712  ;;  %v11207_v41 = vpop.eup %8534  ;;  %v14967_v49 = vld [vmem:[#allocation119_spill] sm:$0xff]  ;;  %v14971_v56 = vld [vmem:[#allocation53_spill] sm:$0xff] }
 0x609   : > { %14966 = vst [vmem:[#allocation169_spill] sm:$0xff] %v11207_v41  ;;  %8550 = vpow2.f32 %v3296_v43  ;;  %v14969_v37 = vmax.f32 %v14967_v49, %v14968_v1  ;;  %v2630_v9 = vpop.xlane.xlu0 %2629  ;;  %v14970_v16 = vld [vmem:[#allocation103_spill] sm:$0xff]  ;;  %v8537_v58 = vpop.eup %8536  ;;  %5021 = vmatmul.mubr.bf16.gmra.mrb[84].mxu1 %v4838_v36  ;;  %v3768_v43 = vadd.f32 %v11207_v41, %v11200_v47  ;;  %v14977_v36 = vld [vmem:[#allocation124_spill] sm:$0xff]  ;;  %v14982_v47 = vld [vmem:[#allocation57_spill] sm:$0xff] }
 0x60a   : > { %v4589_v22 = vmul.f32 %v14970_v16, %v4456_v15  ;;  %v4457_v25 = vmul.f32 %v8531_v38, %v4329_v12  ;;  %8552 = vpow2.f32 %v3298_v18  ;;  %v2980_v50 = vsub.f32 %v14971_v56, %v2630_v9  ;;  %v14972_v11 = vld [vmem:[#allocation55_spill] sm:$0xff]  ;;  %v11228_v45 = vpop.f32.mrb[220].mxu0 }
 0x60b   : > { %2683 = vmax.xlane.f32.xlu0 %v14969_v37  ;;  %v2981_v4 = vsub.f32 %v14972_v11, %v2630_v9  ;;  %v11215_v44 = vpop.eup %8538  ;;  %v4202_v0 = vmul.f32 %v8537_v58, %v11141_v51  ;;  %8554 = vrcp.f32 %v11203_v19  ;;  %v14974_v37 = vld [vmem:[#allocation43_spill] sm:$0xff]  ;;  %14980 = vst [vmem:[#allocation103_spill] sm:$0xff] %v11228_v45  ;;  %v14981_v51 = vld [vmem:[#allocation105_spill] sm:$0xff] }
 0x60c   : > { %14973 = vst [vmem:[#allocation119_spill] sm:$0xff] %v11215_v44  ;;  %v4588_v28 = vmul.f32 %v14974_v37, %v4456_v15  ;;  %v11222_v16 = vpop.eup %8540  ;;  %v3300_v38 = vmul.f32 1.442695, %v2980_v50  ;;  %v14976_v18 = vld [vmem:[#allocation67_spill] sm:$0xff]  ;;  %v2633_v9 = vpop.xlane.xlu1 %2632  ;;  %v4590_v62 = vmul.f32 %v14981_v51, %v4457_v25 }
 0x60d   : > { %14975 = vst [vmem:[#allocation121_spill] sm:$0xff] %v11222_v16  ;;  %v3302_v12 = vmul.f32 1.442695, %v2981_v4  ;;  %v14978_v56 = vmax.f32 %v14976_v18, %v14977_v36  ;;  %v14979_v11 = vld [vmem:[#allocation107_spill] sm:$0xff]  ;;  %v8543_v61 = vpop.eup %8542  ;;  %v4330_v54 = vsub.f32 2.0, %v4202_v0  ;;  %v2982_v41 = vsub.f32 %v14982_v47, %v2633_v9  ;;  %v11233_v50 = vpop.xlane.xlu0 %3715 }
 0x60e   : > { %v4591_v17 = vmul.f32 %v14979_v11, %v4457_v25  ;;  %v14983_v15 = vld [vmem:[#allocation59_spill] sm:$0xff]  ;;  %v3771_v4 = vadd.f32 %v11222_v16, %v11215_v44  ;;  %v4203_v11 = vmul.f32 %v8543_v61, %v11157_v34  ;;  %8556 = vpow2.f32 %v3300_v38 }
 0x60f   : > { %2686 = vmax.xlane.f32.xlu1 %v14978_v56  ;;  %v2983_v37 = vsub.f32 %v14983_v15, %v2633_v9  ;;  %3769 = vadd.xlane.f32.xlu0 %v3768_v43  ;;  %v11237_v56 = vpop.f32.mrb[221].mxu0  ;;  %v4458_v47 = vmul.f32 %v8537_v58, %v4330_v54  ;;  %8558 = vpow2.f32 %v3302_v12  ;;  %v3304_v9 = vmul.f32 1.442695, %v2982_v41  ;;  %v11246_v15 = vpop.eup %8544  ;;  %v14989_v54 = vld [vmem:[#allocation48_spill] sm:$0xff]  ;;  %v14991_v12 = vld [vmem:[#allocation110_spill] sm:$0xff] }
 0x610   : > { %14984 = vst [vmem:[#allocation53_spill] sm:$0xff] %v11237_v56  ;;  %v4841_v14 = vpack.c.bf16 %v4591_v17, %v4589_v22  ;;  %v11242_v0 = vpop.f32.mrb[222].mxu0  ;;  %14987 = vst [vmem:[#allocation67_spill] sm:$0xff] %v11246_v15  ;;  %v4331_v44 = vsub.f32 2.0, %v4203_v11  ;;  %8560 = vrcp.f32 %v11233_v50  ;;  %v4840_v34 = vpack.c.bf16 %v4590_v62, %v4588_v28  ;;  %v11249_v17 = vpop.xlane.xlu1 %3718  ;;  %v14992_v62 = vld [vmem:[#allocation61_spill] sm:$0xff] }
 0x611   : > { %14985 = vst [vmem:[#allocation55_spill] sm:$0xff] %v11242_v0  ;;  %v3306_v43 = vmul.f32 1.442695, %v2983_v37  ;;  %v11244_v51 = vpop.f32.mrb[223].mxu0  ;;  %v11253_v38 = vpop.eup %8546  ;;  %8562 = vpow2.f32 %v3304_v9  ;;  %v14990_v41 = vmax.f32 %v10778_v57, %v14989_v54  ;;  %v4593_v37 = vmul.f32 %v14991_v12, %v4458_v47 }
 0x612   : > { %14986 = vst [vmem:[#allocation43_spill] sm:$0xff] %v11244_v51  ;;  %5028 = vmatprep.mubr.bf16.mxu1 %v4841_v14  ;;  %14988 = vst [vmem:[#allocation124_spill] sm:$0xff] %v11253_v38  ;;  %v2636_v58 = vpop.xlane.xlu0 %2635  ;;  %v8549_v14 = vpop.eup %8548  ;;  %v4459_v11 = vmul.f32 %v8543_v61, %v4331_v44  ;;  %v3774_v9 = vadd.f32 %v11253_v38, %v11246_v15 }
 0x613   : > { %3772 = vadd.xlane.f32.xlu1 %v3771_v4  ;;  %2689 = vmax.xlane.f32.xlu0 %v14990_v41  ;;  %8564 = vpow2.f32 %v3306_v43  ;;  %v2984_v28 = vsub.f32 %v14992_v62, %v2636_v58  ;;  %v14993_v4 = vld [vmem:[#allocation84_spill] sm:$0xff]  ;;  %v11261_v56 = vpop.eup %8550  ;;  %v4204_v22 = vmul.f32 %v8549_v14, %v11187_v39  ;;  %v14997_v43 = vmax.f32 %v10790_v52, %v10799_v63 }
 0x614   : > { %5029 = vmatmul.mubr.bf16.gmra.mrb[88].mxu1 %v4840_v34  ;;  %v2985_v25 = vsub.f32 %v14993_v4, %v2636_v58  ;;  %14994 = vst [vmem:[#allocation107_spill] sm:$0xff] %v11261_v56  ;;  %8566 = vrcp.f32 %v11249_v17  ;;  %v14995_v41 = vld [vmem:[#allocation44_spill] sm:$0xff]  ;;  %v11268_v12 = vpop.eup %8552  ;;  %v2639_v34 = vpop.xlane.xlu1 %2638  ;;  %v14998_v58 = vld [vmem:[#allocation114_spill] sm:$0xff] }
 0x615   : > { %v4592_v51 = vmul.f32 %v14995_v41, %v4458_v47  ;;  %14996 = vst [vmem:[#allocation105_spill] sm:$0xff] %v11268_v12  ;;  %v3308_v61 = vmul.f32 1.442695, %v2984_v28  ;;  %v4595_v62 = vmul.f32 %v14998_v58, %v4459_v11  ;;  %v11274_v4 = vpop.f32.mrb[224].mxu0  ;;  %v15000_v39 = vld [vmem:[#allocation112_spill] sm:$0xff]  ;;  %v8555_v45 = vpop.eup %8554  ;;  %v4332_v16 = vsub.f32 2.0, %v4204_v22 }
 0x616   : > { %v3310_v44 = vmul.f32 1.442695, %v2985_v25  ;;  %14999 = vst [vmem:[#allocation57_spill] sm:$0xff] %v11274_v4  ;;  %v4594_v0 = vmul.f32 %v15000_v39, %v4459_v11  ;;  %v2986_v15 = vsub.f32 %v14837_v26, %v2639_v34  ;;  %v15001_v47 = vld [vmem:[#allocation86_spill] sm:$0xff]  ;;  %v11279_v28 = vpop.xlane.xlu0 %3721  ;;  %v3777_v25 = vadd.f32 %v11268_v12, %v11261_v56 }
 0x617   : > { %2692 = vmax.xlane.f32.xlu1 %v14997_v43  ;;  %v2987_v41 = vsub.f32 %v15001_v47, %v2639_v34  ;;  %3775 = vadd.xlane.f32.xlu0 %v3774_v9  ;;  %v11283_v43 = vpop.f32.mrb[225].mxu0  ;;  %v4205_v58 = vmul.f32 %v8555_v45, %v11203_v19  ;;  %8568 = vpow2.f32 %v3308_v61  ;;  %v4843_v38 = vpack.c.bf16 %v4595_v62, %v4593_v37 }
 0x618   : > { %15002 = vst [vmem:[#allocation59_spill] sm:$0xff] %v11283_v43  ;;  %v11288_v22 = vpop.f32.mrb[226].mxu0  ;;  %v4460_v26 = vmul.f32 %v8549_v14, %v4332_v16  ;;  %8570 = vpow2.f32 %v3310_v44  ;;  %v3312_v34 = vmul.f32 1.442695, %v2986_v15  ;;  %v11292_v47 = vpop.eup %8556  ;;  %v4842_v19 = vpack.c.bf16 %v4594_v0, %v4592_v51  ;;  %v15007_v16 = vld [vmem:[#allocation72_spill] sm:$0xff]  ;;  %v15010_v0 = vld [vmem:[#allocation63_spill] sm:$0xff] }
 0x619   : > { %15003 = vst [vmem:[#allocation48_spill] sm:$0xff] %v11288_v22  ;;  %v3314_v9 = vmul.f32 1.442695, %v2987_v41  ;;  %v11290_v39 = vpop.f32.mrb[227].mxu0  ;;  %15005 = vst [vmem:[#allocation61_spill] sm:$0xff] %v11292_v47  ;;  %v4333_v56 = vsub.f32 2.0, %v4205_v58  ;;  %5036 = vmatprep.mubr.bf16.mxu1 %v4843_v38  ;;  %8572 = vrcp.f32 %v11279_v28  ;;  %v11295_v37 = vpop.xlane.xlu1 %3724  ;;  %v15008_v15 = vmax.f32 %v10814_v8, %v15007_v16 }
 0x61a   : > { %15004 = vst [vmem:[#allocation110_spill] sm:$0xff] %v11290_v39  ;;  %v11299_v62 = vpop.eup %8558  ;;  %8574 = vpow2.f32 %v3312_v34  ;;  %v2642_v14 = vpop.xlane.xlu0 %2641  ;;  %v15009_v44 = vld [vmem:[#allocation116_spill] sm:$0xff] }
 0x61b   : > { %3778 = vadd.xlane.f32.xlu1 %v3777_v25  ;;  %15006 = vst [vmem:[#allocation84_spill] sm:$0xff] %v11299_v62  ;;  %2695 = vmax.xlane.f32.xlu0 %v15008_v15  ;;  %v4597_v41 = vmul.f32 %v15009_v44, %v4460_v26  ;;  %v8561_v38 = vpop.eup %8560  ;;  %v4461_v58 = vmul.f32 %v8555_v45, %v4333_v56  ;;  %8576 = vpow2.f32 %v3314_v9  ;;  %v15011_v25 = vld [vmem:[#allocation87_spill] sm:$0xff]  ;;  %v15013_v15 = vld [vmem:[#allocation45_spill] sm:$0xff] }
 0x61c   : > { %5037 = vmatmul.mubr.bf16.gmra.mrb[92].mxu1 %v4842_v19  ;;  %v2988_v51 = vsub.f32 %v15010_v0, %v2642_v14  ;;  %v2989_v11 = vsub.f32 %v15011_v25, %v2642_v14  ;;  %v11307_v43 = vpop.eup %8562  ;;  %v4206_v61 = vmul.f32 %v8561_v38, %v11233_v50  ;;  %8578 = vrcp.f32 %v11295_v37  ;;  %v15016_v14 = vld [vmem:[#allocation118_spill] sm:$0xff]  ;;  %v11320_v25 = vpop.f32.mrb[228].mxu0  ;;  %v15018_v50 = vld [vmem:[#allocation117_spill] sm:$0xff] }
 0x61d   : > { %15012 = vst [vmem:[#allocation44_spill] sm:$0xff] %v11307_v43  ;;  %v3780_v34 = vadd.f32 %v11299_v62, %v11292_v47  ;;  %v4596_v39 = vmul.f32 %v15013_v15, %v4460_v26  ;;  %v11314_v44 = vpop.eup %8564  ;;  %v15015_v9 = vmax.f32 %v10826_v24, %v10835_v10  ;;  %v2645_v19 = vpop.xlane.xlu1 %2644  ;;  %v4599_v0 = vmul.f32 %v15016_v14, %v4461_v58  ;;  %v15019_v47 = vld [vmem:[#allocation88_spill] sm:$0xff]  ;;  %v15020_v26 = vld [vmem:[#allocation89_spill] sm:$0xff] }
 0x61e   : > { %15014 = vst [vmem:[#allocation114_spill] sm:$0xff] %v11314_v44  ;;  %v3316_v45 = vmul.f32 1.442695, %v2988_v51  ;;  %v3318_v56 = vmul.f32 1.442695, %v2989_v11  ;;  %15017 = vst [vmem:[#allocation112_spill] sm:$0xff] %v11320_v25  ;;  %v4598_v22 = vmul.f32 %v15018_v50, %v4461_v58  ;;  %v8567_v4 = vpop.eup %8566  ;;  %v2990_v62 = vsub.f32 %v15019_v47, %v2645_v19  ;;  %v11325_v51 = vpop.xlane.xlu0 %3727 }
 0x61f   : > { %2698 = vmax.xlane.f32.xlu1 %v15015_v9  ;;  %v4334_v12 = vsub.f32 2.0, %v4206_v61  ;;  %v2991_v15 = vsub.f32 %v15020_v26, %v2645_v19  ;;  %3781 = vadd.xlane.f32.xlu0 %v3780_v34  ;;  %v3783_v11 = vadd.f32 %v11314_v44, %v11307_v43  ;;  %v11329_v9 = vpop.f32.mrb[229].mxu0  ;;  %v4207_v14 = vmul.f32 %v8567_v4, %v11249_v17 }
 0x620   : > { %15021 = vst [vmem:[#allocation86_spill] sm:$0xff] %v11329_v9  ;;  %8580 = vpow2.f32 %v3316_v45  ;;  %v4845_v10 = vpack.c.bf16 %v4599_v0, %v4597_v41  ;;  %v11334_v61 = vpop.f32.mrb[230].mxu0  ;;  %v3320_v19 = vmul.f32 1.442695, %v2990_v62  ;;  %v4844_v17 = vpack.c.bf16 %v4598_v22, %v4596_v39  ;;  %v15029_v22 = vld [vmem:[#allocation90_spill] sm:$0xff] }
 0x621   : > { %15022 = vst [vmem:[#allocation72_spill] sm:$0xff] %v11334_v61  ;;  %v4462_v47 = vmul.f32 %v8561_v38, %v4334_v12  ;;  %8582 = vpow2.f32 %v3318_v56  ;;  %v3322_v34 = vmul.f32 1.442695, %v2991_v15  ;;  %v11336_v50 = vpop.f32.mrb[231].mxu0  ;;  %v11338_v26 = vpop.eup %8568  ;;  %v4335_v43 = vsub.f32 2.0, %v4207_v14  ;;  %v15026_v12 = vld [vmem:[#allocation77_spill] sm:$0xff] }
 0x622   : > { %15023 = vst [vmem:[#allocation116_spill] sm:$0xff] %v11336_v50  ;;  %15024 = vst [vmem:[#allocation63_spill] sm:$0xff] %v11338_v26  ;;  %5044 = vmatprep.mubr.bf16.mxu1 %v4845_v10  ;;  %8584 = vrcp.f32 %v11325_v51  ;;  %v11341_v41 = vpop.xlane.xlu1 %3730  ;;  %v11345_v0 = vpop.eup %8570  ;;  %v15027_v62 = vmax.f32 %v10850_v7, %v15026_v12  ;;  %v15028_v56 = vld [vmem:[#allocation120_spill] sm:$0xff] }
 0x623   : > { %3784 = vadd.xlane.f32.xlu1 %v3783_v11  ;;  %15025 = vst [vmem:[#allocation87_spill] sm:$0xff] %v11345_v0  ;;  %8586 = vpow2.f32 %v3320_v19  ;;  %v2648_v38 = vpop.xlane.xlu0 %2647  ;;  %v4601_v15 = vmul.f32 %v15028_v56, %v4462_v47  ;;  %v8573_v10 = vpop.eup %8572  ;;  %v4463_v14 = vmul.f32 %v8567_v4, %v4335_v43  ;;  %v15030_v11 = vld [vmem:[#allocation91_spill] sm:$0xff]  ;;  %v3786_v19 = vadd.f32 %v11345_v0, %v11338_v26 }
 0x624   : > { %2701 = vmax.xlane.f32.xlu0 %v15027_v62  ;;  %8588 = vpow2.f32 %v3322_v34  ;;  %5045 = vmatmul.mubr.bf16.gmra.mrb[96].mxu1 %v4844_v17  ;;  %v2992_v39 = vsub.f32 %v15029_v22, %v2648_v38  ;;  %v2993_v58 = vsub.f32 %v15030_v11, %v2648_v38  ;;  %v11353_v9 = vpop.eup %8574  ;;  %v4208_v45 = vmul.f32 %v8573_v10, %v11279_v28  ;;  %v15032_v62 = vld [vmem:[#allocation46_spill] sm:$0xff]  ;;  %v15035_v38 = vld [vmem:[#allocation123_spill] sm:$0xff]  ;;  %v11366_v11 = vpop.f32.mrb[232].mxu0 }
 0x625   : > { %15031 = vst [vmem:[#allocation45_spill] sm:$0xff] %v11353_v9  ;;  %8590 = vrcp.f32 %v11341_v41  ;;  %v4600_v50 = vmul.f32 %v15032_v62, %v4462_v47  ;;  %v11360_v56 = vpop.eup %8576  ;;  %v15034_v34 = vmax.f32 %v10862_v6, %v10871_v42  ;;  %v4603_v22 = vmul.f32 %v15035_v38, %v4463_v14  ;;  %15036 = vst [vmem:[#allocation117_spill] sm:$0xff] %v11366_v11  ;;  %v15037_v28 = vld [vmem:[#allocation122_spill] sm:$0xff]  ;;  %v15038_v47 = vld [vmem:[#allocation92_spill] sm:$0xff] }
 0x626   : > { %15033 = vst [vmem:[#allocation118_spill] sm:$0xff] %v11360_v56  ;;  %v3324_v4 = vmul.f32 1.442695, %v2992_v39  ;;  %v3326_v43 = vmul.f32 1.442695, %v2993_v58  ;;  %v2651_v17 = vpop.xlane.xlu1 %2650  ;;  %v4602_v61 = vmul.f32 %v15037_v28, %v4463_v14  ;;  %v8579_v25 = vpop.eup %8578  ;;  %v4336_v44 = vsub.f32 2.0, %v4208_v45 }
 0x627   : > { %2704 = vmax.xlane.f32.xlu1 %v15034_v34  ;;  %v2994_v26 = vsub.f32 %v10553_v20, %v2651_v17  ;;  %v2995_v62 = vsub.f32 %v15038_v47, %v2651_v17  ;;  %v11371_v39 = vpop.xlane.xlu0 %3733  ;;  %v3789_v58 = vadd.f32 %v11360_v56, %v11353_v9  ;;  %v11375_v34 = vpop.f32.mrb[233].mxu0  ;;  %v4209_v38 = vmul.f32 %v8579_v25, %v11295_v37 }
 0x628   : > { %3787 = vadd.xlane.f32.xlu0 %v3786_v19  ;;  %15039 = vst [vmem:[#allocation88_spill] sm:$0xff] %v11375_v34  ;;  %8592 = vpow2.f32 %v3324_v4  ;;  %v4847_v0 = vpack.c.bf16 %v4603_v22, %v4601_v15  ;;  %v11380_v45 = vpop.f32.mrb[234].mxu0  ;;  %v4464_v20 = vmul.f32 %v8573_v10, %v4336_v44  ;;  %v4846_v37 = vpack.c.bf16 %v4602_v61, %v4600_v50  ;;  %v15044_v44 = vld [vmem:[#allocation80_spill] sm:$0xff]  ;;  %v15047_v61 = vld [vmem:[#allocation94_spill] sm:$0xff] }
 0x629   : > { %15040 = vst [vmem:[#allocation89_spill] sm:$0xff] %v11380_v45  ;;  %8594 = vpow2.f32 %v3326_v43  ;;  %v3328_v17 = vmul.f32 1.442695, %v2994_v26  ;;  %v3330_v19 = vmul.f32 1.442695, %v2995_v62  ;;  %v11382_v28 = vpop.f32.mrb[235].mxu0  ;;  %v15045_v26 = vmax.f32 %v10886_v5, %v15044_v44 }
 0x62a   : > { %15041 = vst [vmem:[#allocation77_spill] sm:$0xff] %v11382_v28  ;;  %v11384_v47 = vpop.eup %8580  ;;  %v4337_v9 = vsub.f32 2.0, %v4209_v38  ;;  %5052 = vmatprep.mubr.bf16.mxu1 %v4847_v0  ;;  %8596 = vrcp.f32 %v11371_v39  ;;  %v11387_v15 = vpop.xlane.xlu1 %3736  ;;  %v15046_v43 = vld [vmem:[#allocation69_spill] sm:$0xff] }
 0x62b   : > { %15042 = vst [vmem:[#allocation120_spill] sm:$0xff] %v11384_v47  ;;  %3790 = vadd.xlane.f32.xlu1 %v3789_v58  ;;  %v11391_v22 = vpop.eup %8582  ;;  %8598 = vpow2.f32 %v3328_v17  ;;  %v2654_v10 = vpop.xlane.xlu0 %2653  ;;  %v4605_v62 = vmul.f32 %v15046_v43, %v4464_v20  ;;  %v15048_v58 = vld [vmem:[#allocation96_spill] sm:$0xff] }
 0x62c   : > { %15043 = vst [vmem:[#allocation90_spill] sm:$0xff] %v11391_v22  ;;  %2707 = vmax.xlane.f32.xlu0 %v15045_v26  ;;  %v8585_v0 = vpop.eup %8584  ;;  %v4465_v38 = vmul.f32 %v8579_v25, %v4337_v9  ;;  %8600 = vpow2.f32 %v3330_v19  ;;  %5053 = vmatmul.mubr.bf16.gmra.mrb[100].mxu1 %v4846_v37  ;;  %v2996_v50 = vsub.f32 %v15047_v61, %v2654_v10  ;;  %v15050_v26 = vld [vmem:[#allocation68_spill] sm:$0xff] }
 0x62d   : > { %v2997_v14 = vsub.f32 %v15048_v58, %v2654_v10  ;;  %v11399_v34 = vpop.eup %8586  ;;  %v4210_v4 = vmul.f32 %v8585_v0, %v11325_v51  ;;  %8602 = vrcp.f32 %v11387_v15  ;;  %v3792_v17 = vadd.f32 %v11391_v22, %v11384_v47  ;;  %v15053_v10 = vld [vmem:[#allocation70_spill] sm:$0xff]  ;;  %v11412_v58 = vpop.f32.mrb[236].mxu0  ;;  %v15055_v51 = vld [vmem:[#allocation125_spill] sm:$0xff] }
 0x62e   : > { %15049 = vst [vmem:[#allocation91_spill] sm:$0xff] %v11399_v34  ;;  %v4604_v28 = vmul.f32 %v15050_v26, %v4464_v20  ;;  %v11406_v43 = vpop.eup %8588  ;;  %v3332_v25 = vmul.f32 1.442695, %v2996_v50  ;;  %v15052_v19 = vmax.f32 %v10898_v48, %v10907_v53  ;;  %v2657_v37 = vpop.xlane.xlu1 %2656  ;;  %v4607_v61 = vmul.f32 %v15053_v10, %v4465_v38  ;;  %15054 = vst [vmem:[#allocation123_spill] sm:$0xff] %v11412_v58  ;;  %v15056_v20 = vld [vmem:[#allocation99_spill] sm:$0xff] }
 0x62f   : > { %15051 = vst [vmem:[#allocation46_spill] sm:$0xff] %v11406_v43  ;;  %v3334_v9 = vmul.f32 1.442695, %v2997_v14  ;;  %v4606_v45 = vmul.f32 %v15055_v51, %v4465_v38  ;;  %v8591_v11 = vpop.eup %8590  ;;  %v4338_v56 = vsub.f32 2.0, %v4210_v4  ;;  %v2998_v47 = vsub.f32 %v10577_v2, %v2657_v37  ;;  %v11417_v50 = vpop.xlane.xlu0 %3739 }
 0x630   : > { %2710 = vmax.xlane.f32.xlu1 %v15052_v19  ;;  %v2999_v26 = vsub.f32 %v15056_v20, %v2657_v37  ;;  %3793 = vadd.xlane.f32.xlu0 %v3792_v17  ;;  %v3795_v14 = vadd.f32 %v11406_v43, %v11399_v34  ;;  %v11421_v19 = vpop.f32.mrb[237].mxu0  ;;  %v4211_v10 = vmul.f32 %v8591_v11, %v11341_v41  ;;  %8604 = vpow2.f32 %v3332_v25 }
 0x631   : > { %15057 = vst [vmem:[#allocation122_spill] sm:$0xff] %v11421_v19  ;;  %v4849_v22 = vpack.c.bf16 %v4607_v61, %v4605_v62  ;;  %v11426_v4 = vpop.f32.mrb[238].mxu0  ;;  %v4466_v2 = vmul.f32 %v8585_v0, %v4338_v56  ;;  %8606 = vpow2.f32 %v3334_v9  ;;  %v3336_v37 = vmul.f32 1.442695, %v2998_v47  ;;  %v15063_v0 = vld [vmem:[#allocation85_spill] sm:$0xff] }
 0x632   : > { %15058 = vst [vmem:[#allocation92_spill] sm:$0xff] %v11426_v4  ;;  %v3338_v17 = vmul.f32 1.442695, %v2999_v26  ;;  %v11428_v51 = vpop.f32.mrb[239].mxu0  ;;  %v11430_v20 = vpop.eup %8592  ;;  %v4339_v34 = vsub.f32 2.0, %v4211_v10  ;;  %8608 = vrcp.f32 %v11417_v50  ;;  %v4848_v41 = vpack.c.bf16 %v4606_v45, %v4604_v28 }
 0x633   : > { %15059 = vst [vmem:[#allocation80_spill] sm:$0xff] %v11428_v51  ;;  %15060 = vst [vmem:[#allocation69_spill] sm:$0xff] %v11430_v20  ;;  %5060 = vmatprep.mubr.bf16.mxu1 %v4849_v22  ;;  %v11433_v62 = vpop.xlane.xlu1 %3742  ;;  %v11437_v61 = vpop.eup %8594  ;;  %8610 = vpow2.f32 %v3336_v37  ;;  %v15062_v56 = vmax.f32 %v10922_v21, %v10926_v29  ;;  %v4609_v9 = vmul.f32 %v15063_v0, %v4466_v2 }
 0x634   : > { %3796 = vadd.xlane.f32.xlu1 %v3795_v14  ;;  %15061 = vst [vmem:[#allocation94_spill] sm:$0xff] %v11437_v61  ;;  %v2660_v47 = vpop.xlane.xlu0 %2659  ;;  %v8597_v22 = vpop.eup %8596  ;;  %v4467_v26 = vmul.f32 %v8591_v11, %v4339_v34  ;;  %8612 = vpow2.f32 %v3338_v17  ;;  %5061 = vmatmul.mubr.bf16.gmra.mrb[104].mxu1 %v4848_v41  ;;  %v3798_v37 = vadd.f32 %v11437_v61, %v11430_v20  ;;  %v15068_v17 = vld [vmem:[#allocation50_spill] sm:$0xff] }
 0x635   : > { %2713 = vmax.xlane.f32.xlu0 %v15062_v56  ;;  %v3000_v45 = vsub.f32 %v10598_v46, %v2660_v47  ;;  %v3001_v28 = vsub.f32 %v10602_v35, %v2660_v47  ;;  %v11445_v14 = vpop.eup %8598  ;;  %v4212_v10 = vmul.f32 %v8597_v22, %v11371_v39  ;;  %8614 = vrcp.f32 %v11433_v62  ;;  %v15065_v56 = vld [vmem:[#allocation71_spill] sm:$0xff]  ;;  %v11458_v47 = vpop.f32.mrb[240].mxu0  ;;  %v15070_v39 = vld [vmem:[#allocation73_spill] sm:$0xff] }
 0x636   : > { %15064 = vst [vmem:[#allocation96_spill] sm:$0xff] %v11445_v14  ;;  %v4608_v25 = vmul.f32 %v15065_v56, %v4466_v2  ;;  %v11452_v0 = vpop.eup %8600  ;;  %v15067_v46 = vmax.f32 %v10932_v33, %v10941_v13  ;;  %v4611_v41 = vmul.f32 %v15068_v17, %v4467_v26  ;;  %15069 = vst [vmem:[#allocation70_spill] sm:$0xff] %v11458_v47  ;;  %v11467_v56 = vpop.f32.mrb[241].mxu0 }
 0x637   : > { %15066 = vst [vmem:[#allocation68_spill] sm:$0xff] %v11452_v0  ;;  %v3340_v11 = vmul.f32 1.442695, %v3000_v45  ;;  %v3342_v34 = vmul.f32 1.442695, %v3001_v28  ;;  %v2663_v35 = vpop.xlane.xlu1 %2662  ;;  %v4610_v38 = vmul.f32 %v15070_v39, %v4467_v26  ;;  %v8603_v51 = vpop.eup %8602  ;;  %v4340_v4 = vsub.f32 2.0, %v4212_v10 }
 0x638   : > { %2716 = vmax.xlane.f32.xlu1 %v15067_v46  ;;  %v3002_v19 = vsub.f32 %v10610_v27, %v2663_v35  ;;  %v3003_v2 = vsub.f32 %v10619_v32, %v2663_v35  ;;  %v11463_v45 = vpop.xlane.xlu0 %3745  ;;  %v3801_v28 = vadd.f32 %v11452_v0, %v11445_v14  ;;  %15071 = vst [vmem:[#allocation125_spill] sm:$0xff] %v11467_v56  ;;  %v11472_v10 = vpop.f32.mrb[242].mxu0 }
 0x639   : > { %3799 = vadd.xlane.f32.xlu0 %v3798_v37  ;;  %v4213_v46 = vmul.f32 %v8603_v51, %v11387_v15  ;;  %8616 = vpow2.f32 %v3340_v11  ;;  %v4851_v17 = vpack.c.bf16 %v4611_v41, %v4609_v9  ;;  %15072 = vst [vmem:[#allocation99_spill] sm:$0xff] %v11472_v10  ;;  %v4468_v27 = vmul.f32 %v8597_v22, %v4340_v4  ;;  %v11474_v35 = vpop.f32.mrb[243].mxu0  ;;  %v15077_v22 = vld [vmem:[#allocation76_spill] sm:$0xff] }
 0x63a   : > { %8618 = vpow2.f32 %v3342_v34  ;;  %v3344_v32 = vmul.f32 1.442695, %v3002_v19  ;;  %v3346_v37 = vmul.f32 1.442695, %v3003_v2  ;;  %15073 = vst [vmem:[#allocation85_spill] sm:$0xff] %v11474_v35  ;;  %v11476_v39 = vpop.eup %8604  ;;  %v4850_v15 = vpack.c.bf16 %v4610_v38, %v4608_v25  ;;  %v15078_v25 = vld [vmem:[#allocation104_spill] sm:$0xff] }
 0x63b   : > { %15074 = vst [vmem:[#allocation71_spill] sm:$0xff] %v11476_v39  ;;  %v4341_v58 = vsub.f32 2.0, %v4213_v46  ;;  %5068 = vmatprep.mubr.bf16.mxu1 %v4851_v17  ;;  %8620 = vrcp.f32 %v11463_v45  ;;  %v11479_v9 = vpop.xlane.xlu1 %3748  ;;  %v11483_v41 = vpop.eup %8606  ;;  %v15076_v19 = vmax.f32 %v10954_v60, %v10958_v31  ;;  %v4613_v34 = vmul.f32 %v15077_v22, %v4468_v27 }
 0x63c   : > { %3802 = vadd.xlane.f32.xlu1 %v3801_v28  ;;  %15075 = vst [vmem:[#allocation50_spill] sm:$0xff] %v11483_v41  ;;  %8622 = vpow2.f32 %v3344_v32  ;;  %v2666_v4 = vpop.xlane.xlu0 %2665  ;;  %v8609_v2 = vpop.eup %8608  ;;  %5069 = vmatmul.mubr.bf16.gmra.mrb[108].mxu1 %v4850_v15  ;;  %v3804_v32 = vadd.f32 %v11483_v41, %v11476_v39  ;;  %v15083_v15 = vld [vmem:[#allocation130_spill] sm:$0xff] }
 0x63d   : > { %2719 = vmax.xlane.f32.xlu0 %v15076_v19  ;;  %v4469_v46 = vmul.f32 %v8603_v51, %v4341_v58  ;;  %8624 = vpow2.f32 %v3346_v37  ;;  %v3004_v38 = vsub.f32 %v10634_v23, %v2666_v4  ;;  %v3005_v28 = vsub.f32 %v15078_v25, %v2666_v4  ;;  %v11491_v17 = vpop.eup %8610  ;;  %v15080_v19 = vld [vmem:[#allocation75_spill] sm:$0xff]  ;;  %v15082_v37 = vld [vmem:[#allocation128_spill] sm:$0xff]  ;;  %v11504_v10 = vpop.f32.mrb[244].mxu0  ;;  %v15088_v39 = vld [vmem:[#allocation106_spill] sm:$0xff] }
 0x63e   : > { %15079 = vst [vmem:[#allocation73_spill] sm:$0xff] %v11491_v17  ;;  %v4214_v11 = vmul.f32 %v8609_v2, %v11417_v50  ;;  %8626 = vrcp.f32 %v11479_v9  ;;  %v4612_v26 = vmul.f32 %v15080_v19, %v4468_v27  ;;  %v11498_v22 = vpop.eup %8612  ;;  %v15084_v23 = vmax.f32 %v15082_v37, %v15083_v15  ;;  %v15085_v25 = vld [vmem:[#allocation47_spill] sm:$0xff]  ;;  %15086 = vst [vmem:[#allocation104_spill] sm:$0xff] %v11504_v10  ;;  %v15087_v50 = vld [vmem:[#allocation52_spill] sm:$0xff] }
 0x63f   : > { %15081 = vst [vmem:[#allocation76_spill] sm:$0xff] %v11498_v22  ;;  %v3348_v58 = vmul.f32 1.442695, %v3004_v38  ;;  %v3350_v51 = vmul.f32 1.442695, %v3005_v28  ;;  %v2669_v4 = vpop.xlane.xlu1 %2668  ;;  %v4615_v35 = vmul.f32 %v15085_v25, %v4469_v46  ;;  %v4614_v56 = vmul.f32 %v15087_v50, %v4469_v46  ;;  %v8615_v47 = vpop.eup %8614  ;;  %v15089_v27 = vld [vmem:[#allocation108_spill] sm:$0xff] }
 0x640   : > { %2722 = vmax.xlane.f32.xlu1 %v15084_v23  ;;  %v4342_v14 = vsub.f32 2.0, %v4214_v11  ;;  %v3006_v41 = vsub.f32 %v15088_v39, %v2669_v4  ;;  %v3007_v19 = vsub.f32 %v15089_v27, %v2669_v4  ;;  %v11509_v38 = vpop.xlane.xlu0 %3751  ;;  %v3807_v28 = vadd.f32 %v11498_v22, %v11491_v17  ;;  %v11513_v23 = vpop.f32.mrb[245].mxu0 }
 0x641   : > { %3805 = vadd.xlane.f32.xlu0 %v3804_v32  ;;  %15090 = vst [vmem:[#allocation75_spill] sm:$0xff] %v11513_v23  ;;  %v4215_v25 = vmul.f32 %v8615_v47, %v11433_v62  ;;  %8628 = vpow2.f32 %v3348_v58  ;;  %v4853_v0 = vpack.c.bf16 %v4615_v35, %v4613_v34  ;;  %v11518_v11 = vpop.f32.mrb[246].mxu0  ;;  %v4852_v62 = vpack.c.bf16 %v4614_v56, %v4612_v26  ;;  %v15099_v56 = vld [vmem:[#allocation109_spill] sm:$0xff] }
 0x642   : > { %15091 = vst [vmem:[#allocation128_spill] sm:$0xff] %v11518_v11  ;;  %v4470_v39 = vmul.f32 %v8609_v2, %v4342_v14  ;;  %8630 = vpow2.f32 %v3350_v51  ;;  %v3352_v4 = vmul.f32 1.442695, %v3006_v41  ;;  %v3354_v32 = vmul.f32 1.442695, %v3007_v19  ;;  %v11520_v50 = vpop.f32.mrb[247].mxu0 }
 0x643   : > { %15092 = vst [vmem:[#allocation130_spill] sm:$0xff] %v11520_v50  ;;  %v11522_v27 = vpop.eup %8616  ;;  %v4343_v17 = vsub.f32 2.0, %v4215_v25  ;;  %5076 = vmatprep.mubr.bf16.mxu1 %v4853_v0  ;;  %8632 = vrcp.f32 %v11509_v38  ;;  %v11525_v35 = vpop.xlane.xlu1 %3754  ;;  %v15095_v14 = vld [vmem:[#allocation60_spill] sm:$0xff]  ;;  %v15096_v41 = vld [vmem:[#allocation131_spill] sm:$0xff] }
 0x644   : > { %15093 = vst [vmem:[#allocation47_spill] sm:$0xff] %v11522_v27  ;;  %3808 = vadd.xlane.f32.xlu1 %v3807_v28  ;;  %v11529_v58 = vpop.eup %8618  ;;  %8634 = vpow2.f32 %v3352_v4  ;;  %v15097_v2 = vmax.f32 %v15095_v14, %v15096_v41  ;;  %v2672_v51 = vpop.xlane.xlu0 %2671  ;;  %v15098_v19 = vld [vmem:[#allocation79_spill] sm:$0xff]  ;;  %5077 = vmatmul.mubr.bf16.gmra.mrb[112].mxu1 %v4852_v62  ;;  %v15105_v62 = vld [vmem:[#allocation133_spill] sm:$0xff] }
 0x645   : > { %15094 = vst [vmem:[#allocation52_spill] sm:$0xff] %v11529_v58  ;;  %v4617_v25 = vmul.f32 %v15098_v19, %v4470_v39  ;;  %v8621_v0 = vpop.eup %8620  ;;  %v4471_v46 = vmul.f32 %v8615_v47, %v4343_v17  ;;  %8636 = vpow2.f32 %v3354_v32  ;;  %v3008_v26 = vsub.f32 %v15099_v56, %v2672_v51  ;;  %v15100_v28 = vld [vmem:[#allocation111_spill] sm:$0xff]  ;;  %v15104_v32 = vld [vmem:[#allocation132_spill] sm:$0xff]  ;;  %v11550_v22 = vpop.f32.mrb[248].mxu0 }
 0x646   : > { %2725 = vmax.xlane.f32.xlu0 %v15097_v2  ;;  %v3009_v23 = vsub.f32 %v15100_v28, %v2672_v51  ;;  %v11537_v10 = vpop.eup %8622  ;;  %v4216_v34 = vmul.f32 %v8621_v0, %v11463_v45  ;;  %8638 = vrcp.f32 %v11525_v35  ;;  %v3810_v4 = vadd.f32 %v11529_v58, %v11522_v27  ;;  %v15102_v2 = vld [vmem:[#allocation78_spill] sm:$0xff]  ;;  %v15107_v28 = vld [vmem:[#allocation49_spill] sm:$0xff]  ;;  %15108 = vst [vmem:[#allocation60_spill] sm:$0xff] %v11550_v22 }
 0x647   : > { %15101 = vst [vmem:[#allocation106_spill] sm:$0xff] %v11537_v10  ;;  %v4616_v50 = vmul.f32 %v15102_v2, %v4470_v39  ;;  %v11544_v19 = vpop.eup %8624  ;;  %v3356_v47 = vmul.f32 1.442695, %v3008_v26  ;;  %v15106_v56 = vmax.f32 %v15104_v32, %v15105_v62  ;;  %v2675_v51 = vpop.xlane.xlu1 %2674  ;;  %v4619_v11 = vmul.f32 %v15107_v28, %v4471_v46  ;;  %v15109_v45 = vld [vmem:[#allocation54_spill] sm:$0xff]  ;;  %v15110_v27 = vld [vmem:[#allocation113_spill] sm:$0xff]  ;;  %v15111_v39 = vld [vmem:[#allocation115_spill] sm:$0xff] }
 0x648   : > { %15103 = vst [vmem:[#allocation108_spill] sm:$0xff] %v11544_v19  ;;  %v3358_v17 = vmul.f32 1.442695, %v3009_v23  ;;  %v4618_v20 = vmul.f32 %v15109_v45, %v4471_v46  ;;  %v8627_v61 = vpop.eup %8626  ;;  %v4344_v43 = vsub.f32 2.0, %v4216_v34  ;;  %v3010_v58 = vsub.f32 %v15110_v27, %v2675_v51  ;;  %v11557_v26 = vpop.f32.mrb[249].mxu0 }
 0x649   : > { %2728 = vmax.xlane.f32.xlu1 %v15106_v56  ;;  %v3011_v2 = vsub.f32 %v15111_v39, %v2675_v51  ;;  %v3813_v23 = vadd.f32 %v11544_v19, %v11537_v10  ;;  %15112 = vst [vmem:[#allocation131_spill] sm:$0xff] %v11557_v26  ;;  %v4217_v56 = vmul.f32 %v8627_v61, %v11479_v9  ;;  %8640 = vpow2.f32 %v3356_v47  ;;  %v11562_v46 = vpop.f32.mrb[250].mxu0  ;;  %v15118_v47 = vld [vmem:[#allocation134_spill] sm:$0xff] }
 0x64a   : > { %3811 = vadd.xlane.f32.xlu0 %v3810_v4  ;;  %v4855_v28 = vpack.c.bf16 %v4619_v11, %v4617_v25  ;;  %15113 = vst [vmem:[#allocation79_spill] sm:$0xff] %v11562_v46  ;;  %8642 = vpow2.f32 %v3358_v17  ;;  %v3360_v34 = vmul.f32 1.442695, %v3010_v58  ;;  %v11564_v45 = vpop.f32.mrb[251].mxu0  ;;  %v4472_v51 = vmul.f32 %v8621_v0, %v4344_v43  ;;  %v15117_v25 = vld [vmem:[#allocation62_spill] sm:$0xff] }
 0x64b   : > { %v3362_v27 = vmul.f32 1.442695, %v3011_v2  ;;  %15114 = vst [vmem:[#allocation109_spill] sm:$0xff] %v11564_v45  ;;  %v11566_v4 = vpop.eup %8628  ;;  %v4345_v39 = vsub.f32 2.0, %v4217_v56  ;;  %v4854_v10 = vpack.c.bf16 %v4618_v20, %v4616_v50  ;;  %v15119_v17 = vmax.f32 %v15117_v25, %v15118_v47  ;;  %v15123_v56 = vld [vmem:[#allocation136_spill] sm:$0xff] }
 0x64c   : > { %15115 = vst [vmem:[#allocation111_spill] sm:$0xff] %v11566_v4  ;;  %5084 = vmatprep.mubr.bf16.mxu1 %v4855_v28  ;;  %v11570_v11 = vpop.eup %8630  ;;  %8644 = vpow2.f32 %v3360_v34  ;;  %v15125_v34 = vld [vmem:[#allocation82_spill] sm:$0xff] }
 0x64d   : > { %3814 = vadd.xlane.f32.xlu1 %v3813_v23  ;;  %15116 = vst [vmem:[#allocation78_spill] sm:$0xff] %v11570_v11  ;;  %v8633_v58 = vpop.eup %8632  ;;  %v4473_v2 = vmul.f32 %v8627_v61, %v4345_v39  ;;  %8646 = vpow2.f32 %v3362_v27  ;;  %5085 = vmatmul.mubr.bf16.gmra.mrb[116].mxu1 %v4854_v10  ;;  %v3816_v43 = vadd.f32 %v11570_v11, %v11566_v4  ;;  %v15122_v23 = vld [vmem:[#allocation135_spill] sm:$0xff]  ;;  %v11587_v61 = vpop.f32.mrb[252].mxu0  ;;  %v15128_v10 = vld [vmem:[#allocation81_spill] sm:$0xff] }
 0x64e   : > { %2731 = vmax.xlane.f32.xlu0 %v15119_v17  ;;  %v11577_v0 = vpop.eup %8634  ;;  %v4218_v20 = vmul.f32 %v8633_v58, %v11509_v38  ;;  %v15124_v28 = vmax.f32 %v15122_v23, %v15123_v56  ;;  %v4621_v9 = vmul.f32 %v15125_v34, %v4472_v51  ;;  %v15126_v17 = vld [vmem:[#allocation56_spill] sm:$0xff]  ;;  %15127 = vst [vmem:[#allocation54_spill] sm:$0xff] %v11587_v61  ;;  %v15129_v39 = vld [vmem:[#allocation83_spill] sm:$0xff]  ;;  %v11593_v22 = vpop.f32.mrb[253].mxu0 }
 0x64f   : > { %15120 = vst [vmem:[#allocation132_spill] sm:$0xff] %v11577_v0  ;;  %v11580_v50 = vpop.eup %8636  ;;  %v4623_v62 = vmul.f32 %v15126_v17, %v4473_v2  ;;  %v4620_v27 = vmul.f32 %v15128_v10, %v4472_v51  ;;  %v4622_v45 = vmul.f32 %v15129_v39, %v4473_v2  ;;  %15130 = vst [vmem:[#allocation113_spill] sm:$0xff] %v11593_v22  ;;  %v11598_v11 = vpop.f32.mrb[254].mxu0 }
 0x650   : > { %15121 = vst [vmem:[#allocation49_spill] sm:$0xff] %v11580_v50  ;;  %v8639_v46 = vpop.eup %8638  ;;  %v4346_v26 = vsub.f32 2.0, %v4218_v20  ;;  %v3819_v38 = vadd.f32 %v11580_v50, %v11577_v0  ;;  %15131 = vst [vmem:[#allocation115_spill] sm:$0xff] %v11598_v11  ;;  %v11600_v51 = vpop.f32.mrb[255].mxu0 }
 0x651   : > { %2734 = vmax.xlane.f32.xlu1 %v15124_v28  ;;  %v4219_v28 = vmul.f32 %v8639_v46, %v11525_v35  ;;  %v4857_v4 = vpack.c.bf16 %v4623_v62, %v4621_v9  ;;  %v4856_v17 = vpack.c.bf16 %v4622_v45, %v4620_v27  ;;  %15132 = vst [vmem:[#allocation62_spill] sm:$0xff] %v11600_v51  ;;  %v15135_v35 = vld [vmem:[#allocation64_spill] sm:$0xff]  ;;  %v15136_v62 = vld [vmem:[#allocation137_spill] sm:$0xff] }
 0x652   : > { %3817 = vadd.xlane.f32.xlu0 %v3816_v43  ;;  %v4474_v20 = vmul.f32 %v8633_v58, %v4346_v26  ;;  %v15137_v9 = vmax.f32 %v15135_v35, %v15136_v62  ;;  %v15141_v58 = vld [vmem:[#allocation139_spill] sm:$0xff]  ;;  %v15144_v51 = vld [vmem:[#allocation129_spill] sm:$0xff]  ;;  %v11622_v22 = vpop.f32.mrb[0].mxu0 }
 0x653   : > { %v11602_v2 = vpop.eup %8640  ;;  %v4347_v43 = vsub.f32 2.0, %v4219_v28  ;;  %5092 = vmatprep.mubr.bf16.mxu1 %v4857_v4  ;;  %v15140_v4 = vld [vmem:[#allocation138_spill] sm:$0xff]  ;;  %15145 = vst [vmem:[#allocation56_spill] sm:$0xff] %v11622_v22 }
 0x654   : > { %15133 = vst [vmem:[#allocation134_spill] sm:$0xff] %v11602_v2  ;;  %v11606_v39 = vpop.eup %8642  ;;  %v15143_v28 = vld [vmem:[#allocation126_spill] sm:$0xff] }
 0x655   : > { %3820 = vadd.xlane.f32.xlu1 %v3819_v38  ;;  %15134 = vst [vmem:[#allocation135_spill] sm:$0xff] %v11606_v39  ;;  %v4475_v45 = vmul.f32 %v8639_v46, %v4347_v43  ;;  %5093 = vmatmul.mubr.bf16.gmra.mrb[120].mxu1 %v4856_v17  ;;  %v3822_v27 = vadd.f32 %v11606_v39, %v11602_v2  ;;  %v15147_v17 = vld [vmem:[#allocation127_spill] sm:$0xff]  ;;  %v11628_v2 = vpop.f32.mrb[1].mxu0 }
 0x656   : > { %2737 = vmax.xlane.f32.xlu0 %v15137_v9  ;;  %v11613_v34 = vpop.eup %8644  ;;  %v15142_v38 = vmax.f32 %v15140_v4, %v15141_v58  ;;  %v4625_v10 = vmul.f32 %v15143_v28, %v4474_v20  ;;  %v15146_v9 = vld [vmem:[#allocation58_spill] sm:$0xff]  ;;  %15148 = vst [vmem:[#allocation81_spill] sm:$0xff] %v11628_v2  ;;  %v11632_v28 = vpop.f32.mrb[2].mxu0 }
 0x657   : > { %15138 = vst [vmem:[#allocation136_spill] sm:$0xff] %v11613_v34  ;;  %v11615_v26 = vpop.eup %8646  ;;  %v4627_v11 = vmul.f32 %v15144_v51, %v4475_v45  ;;  %v4624_v46 = vmul.f32 %v15146_v9, %v4474_v20  ;;  %v4626_v43 = vmul.f32 %v15147_v17, %v4475_v45  ;;  %15149 = vst [vmem:[#allocation83_spill] sm:$0xff] %v11632_v28  ;;  %v11634_v51 = vpop.f32.mrb[3].mxu0  ;;  %v15151_v45 = vld [vmem:[#allocation65_spill] sm:$0xff] }
 0x658   : > { %15139 = vst [vmem:[#allocation82_spill] sm:$0xff] %v11615_v26  ;;  %v3825_v61 = vadd.f32 %v11615_v26, %v11613_v34  ;;  %15150 = vst [vmem:[#allocation64_spill] sm:$0xff] %v11634_v51  ;;  %v15154_v17 = vld [vmem:[#allocation141_spill] sm:$0xff] }
 0x659   : > { %2740 = vmax.xlane.f32.xlu1 %v15142_v38  ;;  %v4859_v39 = vpack.c.bf16 %v4627_v11, %v4625_v10  ;;  %v4858_v0 = vpack.c.bf16 %v4626_v43, %v4624_v46  ;;  %v15155_v11 = vld [vmem:[#allocation142_spill] sm:$0xff] }
 0x65a   : > { %3823 = vadd.xlane.f32.xlu0 %v3822_v27  ;;  %v15152_v27 = vld [vmem:[#allocation140_spill] sm:$0xff]  ;;  %v15156_v10 = vmax.f32 %v15154_v17, %v15155_v11  ;;  %v11644_v38 = vpop.f32.mrb[4].mxu0 }
 0x65b   : > { %5100 = vmatprep.mubr.bf16.mxu1 %v4859_v39  ;;  %v15153_v9 = vmax.f32 %v15151_v45, %v15152_v27  ;;  %15157 = vst [vmem:[#allocation137_spill] sm:$0xff] %v11644_v38  ;;  %v11646_v46 = vpop.f32.mrb[5].mxu0 }
 0x65c   : > { %15158 = vst [vmem:[#allocation138_spill] sm:$0xff] %v11646_v46 }
 0x65d   : > { %3826 = vadd.xlane.f32.xlu1 %v3825_v61  ;;  %5101 = vmatmul.mubr.bf16.gmra.mrb[124].mxu1 %v4858_v0  ;;  %v11650_v61 = vpop.f32.mrb[6].mxu0 }
 0x65e   : > { %2743 = vmax.xlane.f32.xlu0 %v15153_v9  ;;  %15159 = vst [vmem:[#allocation139_spill] sm:$0xff] %v11650_v61  ;;  %v11652_v43 = vpop.f32.mrb[7].mxu0 }
 0x65f   : > { %15160 = vst [vmem:[#allocation126_spill] sm:$0xff] %v11652_v43 }
 0x661   : > { %2746 = vmax.xlane.f32.xlu1 %v15156_v10 }
 0x662   : > { %v11656_v9 = vpop.f32.mrb[8].mxu0 }
 0x663   : > { %15161 = vst [vmem:[#allocation129_spill] sm:$0xff] %v11656_v9  ;;  %v11658_v0 = vpop.f32.mrb[9].mxu0 }
 0x664   : > { %15162 = vst [vmem:[#allocation58_spill] sm:$0xff] %v11658_v0  ;;  %v11662_v51 = vpop.f32.mrb[10].mxu0 }
 0x665   : > { %15163 = vst [vmem:[#allocation127_spill] sm:$0xff] %v11662_v51  ;;  %v11664_v28 = vpop.f32.mrb[11].mxu0 }
 0x666   : > { %15164 = vst [vmem:[#allocation65_spill] sm:$0xff] %v11664_v28 }
 0x66a   : > { %v11668_v46 = vpop.f32.mrb[12].mxu0 }
 0x66b   : > { %15165 = vst [vmem:[#allocation140_spill] sm:$0xff] %v11668_v46  ;;  %v11670_v38 = vpop.f32.mrb[13].mxu0 }
 0x66c   : > { %15166 = vst [vmem:[#allocation170_spill] sm:$0xff] %v11670_v38  ;;  %v11674_v43 = vpop.f32.mrb[14].mxu0 }
 0x66d   : > { %15167 = vst [vmem:[#allocation171_spill] sm:$0xff] %v11674_v43  ;;  %v11676_v61 = vpop.f32.mrb[15].mxu0 }
 0x66e   : > { %15168 = vst [vmem:[#allocation172_spill] sm:$0xff] %v11676_v61 }
 0x672   : > { %v11680_v0 = vpop.f32.mrb[16].mxu0 }
 0x673   : > { %15169 = vst [vmem:[#allocation173_spill] sm:$0xff] %v11680_v0  ;;  %v11682_v9 = vpop.f32.mrb[17].mxu0 }
 0x674   : > { %15170 = vst [vmem:[#allocation174_spill] sm:$0xff] %v11682_v9  ;;  %v11686_v28 = vpop.f32.mrb[18].mxu0 }
 0x675   : > { %15171 = vst [vmem:[#allocation175_spill] sm:$0xff] %v11686_v28  ;;  %v11688_v51 = vpop.f32.mrb[19].mxu0 }
 0x676   : > { %15172 = vst [vmem:[#allocation176_spill] sm:$0xff] %v11688_v51 }
 0x67a   : > { %v11692_v38 = vpop.f32.mrb[20].mxu0 }
 0x67b   : > { %15173 = vst [vmem:[#allocation177_spill] sm:$0xff] %v11692_v38  ;;  %v11694_v46 = vpop.f32.mrb[21].mxu0 }
 0x67c   : > { %15174 = vst [vmem:[#allocation178_spill] sm:$0xff] %v11694_v46  ;;  %v11698_v61 = vpop.f32.mrb[22].mxu0 }
 0x67d   : > { %15175 = vst [vmem:[#allocation179_spill] sm:$0xff] %v11698_v61  ;;  %v11700_v43 = vpop.f32.mrb[23].mxu0 }
 0x67e   : > { %15176 = vst [vmem:[#allocation180_spill] sm:$0xff] %v11700_v43 }
 0x682   : > { %v11704_v9 = vpop.f32.mrb[24].mxu0 }
 0x683   : > { %15177 = vst [vmem:[#allocation181_spill] sm:$0xff] %v11704_v9  ;;  %v11706_v0 = vpop.f32.mrb[25].mxu0 }
 0x684   : > { %15178 = vst [vmem:[#allocation182_spill] sm:$0xff] %v11706_v0  ;;  %v11710_v51 = vpop.f32.mrb[26].mxu0 }
 0x685   : > { %15179 = vst [vmem:[#allocation183_spill] sm:$0xff] %v11710_v51  ;;  %v11712_v28 = vpop.f32.mrb[27].mxu0 }
 0x686   : > { %15180 = vst [vmem:[#allocation184_spill] sm:$0xff] %v11712_v28 }
 0x687   : > { %v3758_v46 = vpop.xlane.xlu0 %3757 }
 0x688   : > { %8648 = vrcp.f32 %v3758_v46 }
 0x68a   : > { %v11716_v38 = vpop.f32.mrb[28].mxu0 }
 0x68b   : > { %15181 = vst [vmem:[#allocation185_spill] sm:$0xff] %v11716_v38  ;;  %v11718_v39 = vpop.f32.mrb[29].mxu0 }
 0x68c   : > { %v3761_v2 = vpop.xlane.xlu1 %3760  ;;  %15182 = vst [vmem:[#allocation186_spill] sm:$0xff] %v11718_v39  ;;  %v11722_v20 = vpop.f32.mrb[30].mxu0 }
 0x68d   : > { %8650 = vrcp.f32 %v3761_v2  ;;  %v2678_v43 = vpop.xlane.xlu0 %2677  ;;  %15183 = vst [vmem:[#allocation187_spill] sm:$0xff] %v11722_v20  ;;  %v11726_v22 = vpop.f32.mrb[31].mxu0 }
 0x68e   : > { %v3012_v0 = vsub.f32 %v10706_v30, %v2678_v43  ;;  %v3013_v9 = vsub.f32 %v10710_v55, %v2678_v43  ;;  %15184 = vst [vmem:[#allocation188_spill] sm:$0xff] %v11726_v22 }
 0x690   : > { %v3364_v28 = vmul.f32 1.442695, %v3012_v0  ;;  %v3366_v51 = vmul.f32 1.442695, %v3013_v9  ;;  %v2681_v34 = vpop.xlane.xlu1 %2680 }
 0x691   : > { %v3014_v26 = vsub.f32 %v10718_v3, %v2681_v34  ;;  %v3015_v50 = vsub.f32 %v10727_v59, %v2681_v34  ;;  %v3764_v11 = vpop.xlane.xlu0 %3763 }
 0x692   : > { %8652 = vpow2.f32 %v3364_v28  ;;  %v11732_v30 = vpop.f32.mrb[32].mxu0  ;;  %v8649_v55 = vpop.eup %8648 }
 0x693   : > { %8654 = vpow2.f32 %v3366_v51  ;;  %v3368_v61 = vmul.f32 1.442695, %v3014_v26  ;;  %v3370_v39 = vmul.f32 1.442695, %v3015_v50  ;;  %15185 = vst [vmem:[#allocation189_spill] sm:$0xff] %v11732_v30  ;;  %v11736_v38 = vpop.f32.mrb[33].mxu0  ;;  %v4220_v0 = vmul.f32 %v8649_v55, %v3758_v46 }
 0x694   : > { %8656 = vrcp.f32 %v3764_v11  ;;  %v11734_v43 = vpop.xlane.xlu1 %3766  ;;  %15186 = vst [vmem:[#allocation190_spill] sm:$0xff] %v11736_v38  ;;  %v11740_v59 = vpop.f32.mrb[34].mxu0 }
 0x695   : > { %8658 = vpow2.f32 %v3368_v61  ;;  %15187 = vst [vmem:[#allocation191_spill] sm:$0xff] %v11740_v59  ;;  %v11744_v26 = vpop.f32.mrb[35].mxu0  ;;  %v4348_v51 = vsub.f32 2.0, %v4220_v0 }
 0x696   : > { %8660 = vpow2.f32 %v3370_v39  ;;  %15188 = vst [vmem:[#allocation192_spill] sm:$0xff] %v11744_v26 }
 0x697   : > { %v8651_v28 = vpop.eup %8650  ;;  %8662 = vrcp.f32 %v11734_v43  ;;  %v4476_v38 = vmul.f32 %v8649_v55, %v4348_v51 }
 0x698   : > { %v2684_v9 = vpop.xlane.xlu0 %2683  ;;  %v4221_v61 = vmul.f32 %v8651_v28, %v3761_v2 }
 0x699   : > { %v3016_v34 = vsub.f32 %v14967_v49, %v2684_v9  ;;  %v3017_v50 = vsub.f32 %v14968_v1, %v2684_v9 }
 0x69a   : > { %v4349_v1 = vsub.f32 2.0, %v4221_v61  ;;  %v11753_v20 = vpop.f32.mrb[36].mxu0 }
 0x69b   : > { %v3372_v10 = vmul.f32 1.442695, %v3016_v34  ;;  %v3374_v22 = vmul.f32 1.442695, %v3017_v50  ;;  %15189 = vst [vmem:[#allocation193_spill] sm:$0xff] %v11753_v20  ;;  %v11760_v55 = vpop.f32.mrb[37].mxu0 }
 0x69c   : > { %v2687_v3 = vpop.xlane.xlu1 %2686  ;;  %v11751_v30 = vpop.xlane.xlu0 %3769  ;;  %v4477_v2 = vmul.f32 %v8651_v28, %v4349_v1  ;;  %15191 = vst [vmem:[#allocation195_spill] sm:$0xff] %v11760_v55  ;;  %v15198_v20 = vld [vmem:[#allocation93_spill] sm:$0xff] }
 0x69d   : > { %v3018_v39 = vsub.f32 %v14976_v18, %v2687_v3  ;;  %v3019_v49 = vsub.f32 %v14977_v36, %v2687_v3  ;;  %8664 = vpow2.f32 %v3372_v10  ;;  %v11755_v17 = vpop.eup %8652  ;;  %v11766_v10 = vpop.f32.mrb[38].mxu0  ;;  %v4629_v3 = vmul.f32 %v11122_v40, %v4476_v38 }
 0x69e   : > { %8666 = vpow2.f32 %v3374_v22  ;;  %15190 = vst [vmem:[#allocation194_spill] sm:$0xff] %v11755_v17  ;;  %v11762_v18 = vpop.eup %8654  ;;  %15193 = vst [vmem:[#allocation197_spill] sm:$0xff] %v11766_v10  ;;  %v4630_v26 = vmul.f32 %v15198_v20, %v4477_v2 }
 0x69f   : > { %v3376_v0 = vmul.f32 1.442695, %v3018_v39  ;;  %v3378_v9 = vmul.f32 1.442695, %v3019_v49  ;;  %8668 = vrcp.f32 %v11751_v30  ;;  %15192 = vst [vmem:[#allocation196_spill] sm:$0xff] %v11762_v18  ;;  %v8657_v50 = vpop.eup %8656  ;;  %v3828_v61 = vadd.f32 %v11762_v18, %v11755_v17  ;;  %v11773_v39 = vpop.f32.mrb[39].mxu0 }
 0x6a0   : > { %v11758_v34 = vpop.xlane.xlu1 %3772  ;;  %v2690_v36 = vpop.xlane.xlu0 %2689  ;;  %15194 = vst [vmem:[#allocation198_spill] sm:$0xff] %v11773_v39  ;;  %v4222_v1 = vmul.f32 %v8657_v50, %v3764_v11 }
 0x6a1   : > { %8670 = vpow2.f32 %v3376_v0  ;;  %v3020_v28 = vsub.f32 %v10778_v57, %v2690_v36  ;;  %v3021_v51 = vsub.f32 %v14989_v54, %v2690_v36  ;;  %v11775_v49 = vpop.eup %8658  ;;  %v15196_v0 = vld [vmem:[#allocation95_spill] sm:$0xff]  ;;  %3829 = vadd.xlane.f32.xlu0 %v3828_v61  ;;  %v15197_v36 = vld [vmem:[#allocation162_spill] sm:$0xff] }
 0x6a2   : > { %8672 = vpow2.f32 %v3378_v9  ;;  %15195 = vst [vmem:[#allocation199_spill] sm:$0xff] %v11775_v49  ;;  %v4631_v22 = vmul.f32 %v15196_v0, %v4477_v2  ;;  %v11781_v9 = vpop.eup %8660  ;;  %v4628_v55 = vmul.f32 %v15197_v36, %v4476_v38  ;;  %v4350_v17 = vsub.f32 2.0, %v4222_v1  ;;  %v11792_v2 = vpop.f32.mrb[40].mxu0  ;;  %v15207_v1 = vld [vmem:[#allocation166_spill] sm:$0xff] }
 0x6a3   : > { %8674 = vrcp.f32 %v11758_v34  ;;  %v3380_v57 = vmul.f32 1.442695, %v3020_v28  ;;  %v3382_v46 = vmul.f32 1.442695, %v3021_v51  ;;  %v8663_v59 = vpop.eup %8662  ;;  %v3831_v28 = vadd.f32 %v11781_v9, %v11775_v49  ;;  %15199 = vst [vmem:[#allocation95_spill] sm:$0xff] %v11792_v2 }
 0x6a4   : > { %v2693_v54 = vpop.xlane.xlu1 %2692  ;;  %v4861_v0 = vpack.c.bf16 %v4631_v22, %v4629_v3  ;;  %v11787_v19 = vpop.xlane.xlu0 %3775  ;;  %v4223_v40 = vmul.f32 %v8663_v59, %v11734_v43  ;;  %v4860_v51 = vpack.c.bf16 %v4630_v26, %v4628_v55  ;;  %v4478_v61 = vmul.f32 %v8657_v50, %v4350_v17  ;;  %v15203_v17 = vld [vmem:[#allocation66_spill] sm:$0xff]  ;;  %v15204_v26 = vld [vmem:[#allocation143_spill] sm:$0xff] }
 0x6a5   : > { %v3022_v11 = vsub.f32 %v10790_v52, %v2693_v54  ;;  %v3023_v18 = vsub.f32 %v10799_v63, %v2693_v54  ;;  %8676 = vpow2.f32 %v3380_v57  ;;  %3832 = vadd.xlane.f32.xlu1 %v3831_v28  ;;  %v11799_v22 = vpop.f32.mrb[41].mxu0  ;;  %v15208_v57 = vld [vmem:[#allocation165_spill] sm:$0xff] }
 0x6a6   : > { %8678 = vpow2.f32 %v3382_v46  ;;  %5108 = vmatprep.mubr.bf16.mxu1 %v4861_v0  ;;  %v4351_v63 = vsub.f32 2.0, %v4223_v40  ;;  %15201 = vst [vmem:[#allocation93_spill] sm:$0xff] %v11799_v22  ;;  %v15205_v46 = vmax.f32 %v15203_v17, %v15204_v26  ;;  %v11808_v50 = vpop.f32.mrb[42].mxu0  ;;  %v4633_v40 = vmul.f32 %v15207_v1, %v4478_v61 }
 0x6a7   : > { %v3384_v38 = vmul.f32 1.442695, %v3022_v11  ;;  %v3386_v20 = vmul.f32 1.442695, %v3023_v18  ;;  %v11794_v52 = vpop.eup %8664  ;;  %8680 = vrcp.f32 %v11787_v19  ;;  %5109 = vmatmul.mubr.bf16.gmra.mrb[128].mxu1 %v4860_v51  ;;  %15206 = vst [vmem:[#allocation66_spill] sm:$0xff] %v11808_v50  ;;  %v4632_v54 = vmul.f32 %v15208_v57, %v4478_v61  ;;  %v11814_v51 = vpop.f32.mrb[43].mxu0 }
 0x6a8   : > { %15200 = vst [vmem:[#allocation162_spill] sm:$0xff] %v11794_v52  ;;  %v11797_v43 = vpop.xlane.xlu1 %3778  ;;  %v11801_v3 = vpop.eup %8666  ;;  %2749 = vmax.xlane.f32.xlu0 %v15205_v46  ;;  %v4479_v11 = vmul.f32 %v8663_v59, %v4351_v63  ;;  %15209 = vst [vmem:[#allocation143_spill] sm:$0xff] %v11814_v51  ;;  %v15212_v63 = vld [vmem:[#allocation144_spill] sm:$0xff]  ;;  %v15215_v18 = vld [vmem:[#allocation42_spill] sm:$0xff] }
 0x6a9   : > { %15202 = vst [vmem:[#allocation200_spill] sm:$0xff] %v11801_v3  ;;  %8682 = vpow2.f32 %v3384_v38  ;;  %v2696_v55 = vpop.xlane.xlu0 %2695  ;;  %v8669_v36 = vpop.eup %8668  ;;  %v3834_v1 = vadd.f32 %v11801_v3, %v11794_v52  ;;  %v15217_v3 = vld [vmem:[#allocation74_spill] sm:$0xff] }
 0x6aa   : > { %8684 = vpow2.f32 %v3386_v20  ;;  %v3024_v0 = vsub.f32 %v10814_v8, %v2696_v55  ;;  %v3025_v28 = vsub.f32 %v15007_v16, %v2696_v55  ;;  %v4224_v46 = vmul.f32 %v8669_v36, %v11751_v30  ;;  %v15213_v16 = vld [vmem:[#allocation145_spill] sm:$0xff]  ;;  %v15216_v30 = vld [vmem:[#allocation100_spill] sm:$0xff] }
 0x6ab   : > { %v11816_v38 = vpop.eup %8670  ;;  %8686 = vrcp.f32 %v11797_v43  ;;  %v15214_v55 = vmax.f32 %v15212_v63, %v15213_v16  ;;  %v4635_v22 = vmul.f32 %v15215_v18, %v4479_v11  ;;  %v4634_v2 = vmul.f32 %v15216_v30, %v4479_v11 }
 0x6ac   : > { %15210 = vst [vmem:[#allocation166_spill] sm:$0xff] %v11816_v38  ;;  %v11824_v59 = vpop.eup %8672  ;;  %v3388_v20 = vmul.f32 1.442695, %v3024_v0  ;;  %v3390_v8 = vmul.f32 1.442695, %v3025_v28  ;;  %v2699_v57 = vpop.xlane.xlu1 %2698  ;;  %v4352_v10 = vsub.f32 2.0, %v4224_v46  ;;  %3835 = vadd.xlane.f32.xlu0 %v3834_v1 }
 0x6ad   : > { %15211 = vst [vmem:[#allocation165_spill] sm:$0xff] %v11824_v59  ;;  %2752 = vmax.xlane.f32.xlu1 %v15214_v55  ;;  %v8675_v39 = vpop.eup %8674  ;;  %v3026_v52 = vsub.f32 %v10826_v24, %v2699_v57  ;;  %v3027_v49 = vsub.f32 %v15217_v3, %v2699_v57  ;;  %v11833_v61 = vpop.xlane.xlu0 %3781  ;;  %v3837_v0 = vadd.f32 %v11824_v59, %v11816_v38 }
 0x6ae   : > { %v4225_v28 = vmul.f32 %v8675_v39, %v11758_v34  ;;  %8688 = vpow2.f32 %v3388_v20  ;;  %v4863_v55 = vpack.c.bf16 %v4635_v22, %v4633_v40  ;;  %v4862_v51 = vpack.c.bf16 %v4634_v2, %v4632_v54  ;;  %v11838_v46 = vpop.f32.mrb[44].mxu0  ;;  %v15223_v2 = vld [vmem:[#allocation147_spill] sm:$0xff]  ;;  %v15226_v54 = vld [vmem:[#allocation169_spill] sm:$0xff]  ;;  %v15227_v20 = vld [vmem:[#allocation168_spill] sm:$0xff] }
 0x6af   : > { %v4480_v18 = vmul.f32 %v8669_v36, %v4352_v10  ;;  %8690 = vpow2.f32 %v3390_v8  ;;  %v3392_v11 = vmul.f32 1.442695, %v3026_v52  ;;  %v3394_v30 = vmul.f32 1.442695, %v3027_v49  ;;  %15218 = vst [vmem:[#allocation144_spill] sm:$0xff] %v11838_v46  ;;  %v11840_v24 = vpop.eup %8676  ;;  %v11845_v57 = vpop.f32.mrb[45].mxu0 }
 0x6b0   : > { %15219 = vst [vmem:[#allocation145_spill] sm:$0xff] %v11840_v24  ;;  %v4353_v3 = vsub.f32 2.0, %v4225_v28  ;;  %5116 = vmatprep.mubr.bf16.mxu1 %v4863_v55  ;;  %8692 = vrcp.f32 %v11833_v61  ;;  %v11843_v1 = vpop.xlane.xlu1 %3784  ;;  %15220 = vst [vmem:[#allocation42_spill] sm:$0xff] %v11845_v57  ;;  %v11847_v34 = vpop.eup %8678  ;;  %v15222_v10 = vld [vmem:[#allocation146_spill] sm:$0xff]  ;;  %v15234_v22 = vld [vmem:[#allocation121_spill] sm:$0xff] }
 0x6b1   : > { %3838 = vadd.xlane.f32.xlu1 %v3837_v0  ;;  %15221 = vst [vmem:[#allocation100_spill] sm:$0xff] %v11847_v34  ;;  %8694 = vpow2.f32 %v3392_v11  ;;  %5117 = vmatmul.mubr.bf16.gmra.mrb[132].mxu1 %v4862_v51  ;;  %v15224_v49 = vmax.f32 %v15222_v10, %v15223_v2  ;;  %v2702_v52 = vpop.xlane.xlu0 %2701  ;;  %v11854_v40 = vpop.f32.mrb[46].mxu0  ;;  %v4637_v36 = vmul.f32 %v15226_v54, %v4480_v18 }
 0x6b2   : > { %15225 = vst [vmem:[#allocation74_spill] sm:$0xff] %v11854_v40  ;;  %v4636_v8 = vmul.f32 %v15227_v20, %v4480_v18  ;;  %v8681_v0 = vpop.eup %8680  ;;  %v4481_v28 = vmul.f32 %v8675_v39, %v4353_v3  ;;  %8696 = vpow2.f32 %v3394_v30  ;;  %v3028_v55 = vsub.f32 %v10850_v7, %v2702_v52  ;;  %v11860_v11 = vpop.f32.mrb[47].mxu0  ;;  %v15231_v3 = vld [vmem:[#allocation148_spill] sm:$0xff] }
 0x6b3   : > { %2755 = vmax.xlane.f32.xlu0 %v15224_v49  ;;  %v3029_v51 = vsub.f32 %v15026_v12, %v2702_v52  ;;  %15228 = vst [vmem:[#allocation146_spill] sm:$0xff] %v11860_v11  ;;  %v11862_v49 = vpop.eup %8682  ;;  %v4226_v50 = vmul.f32 %v8681_v0, %v11787_v19  ;;  %8698 = vrcp.f32 %v11843_v1  ;;  %v3840_v54 = vadd.f32 %v11847_v34, %v11840_v24  ;;  %v15232_v12 = vld [vmem:[#allocation149_spill] sm:$0xff]  ;;  %v15235_v19 = vld [vmem:[#allocation119_spill] sm:$0xff] }
 0x6b4   : > { %15229 = vst [vmem:[#allocation147_spill] sm:$0xff] %v11862_v49  ;;  %v11870_v39 = vpop.eup %8684  ;;  %v3396_v30 = vmul.f32 1.442695, %v3028_v55  ;;  %v15233_v52 = vmax.f32 %v15231_v3, %v15232_v12  ;;  %v2705_v20 = vpop.xlane.xlu1 %2704  ;;  %v4639_v57 = vmul.f32 %v15234_v22, %v4481_v28  ;;  %v4638_v46 = vmul.f32 %v15235_v19, %v4481_v28 }
 0x6b5   : > { %15230 = vst [vmem:[#allocation169_spill] sm:$0xff] %v11870_v39  ;;  %v3398_v7 = vmul.f32 1.442695, %v3029_v51  ;;  %v8687_v38 = vpop.eup %8686  ;;  %v4354_v59 = vsub.f32 2.0, %v4226_v50  ;;  %v3030_v24 = vsub.f32 %v10862_v6, %v2705_v20  ;;  %v3031_v34 = vsub.f32 %v10871_v42, %v2705_v20  ;;  %v11879_v18 = vpop.xlane.xlu0 %3787 }
 0x6b6   : > { %2758 = vmax.xlane.f32.xlu1 %v15233_v52  ;;  %v3843_v55 = vadd.f32 %v11870_v39, %v11862_v49  ;;  %v4227_v51 = vmul.f32 %v8687_v38, %v11797_v43  ;;  %8700 = vpow2.f32 %v3396_v30  ;;  %v4865_v52 = vpack.c.bf16 %v4639_v57, %v4637_v36  ;;  %v15238_v43 = vld [vmem:[#allocation150_spill] sm:$0xff]  ;;  %v15239_v57 = vld [vmem:[#allocation151_spill] sm:$0xff] }
 0x6b7   : > { %3841 = vadd.xlane.f32.xlu0 %v3840_v54  ;;  %v4864_v11 = vpack.c.bf16 %v4638_v46, %v4636_v8  ;;  %v4482_v22 = vmul.f32 %v8681_v0, %v4354_v59  ;;  %8702 = vpow2.f32 %v3398_v7  ;;  %v3400_v28 = vmul.f32 1.442695, %v3030_v24  ;;  %v15241_v24 = vld [vmem:[#allocation124_spill] sm:$0xff] }
 0x6b8   : > { %v3402_v19 = vmul.f32 1.442695, %v3031_v34  ;;  %v11884_v50 = vpop.eup %8688  ;;  %v4355_v6 = vsub.f32 2.0, %v4227_v51  ;;  %5124 = vmatprep.mubr.bf16.mxu1 %v4865_v52  ;;  %8704 = vrcp.f32 %v11879_v18  ;;  %v11887_v42 = vpop.xlane.xlu1 %3790  ;;  %v15240_v46 = vmax.f32 %v15238_v43, %v15239_v57 }
 0x6b9   : > { %15236 = vst [vmem:[#allocation168_spill] sm:$0xff] %v11884_v50  ;;  %v11889_v54 = vpop.eup %8690  ;;  %8706 = vpow2.f32 %v3400_v28  ;;  %5125 = vmatmul.mubr.bf16.gmra.mrb[136].mxu1 %v4864_v11  ;;  %v2708_v59 = vpop.xlane.xlu0 %2707  ;;  %v4641_v34 = vmul.f32 %v15241_v24, %v4482_v22  ;;  %v15249_v24 = vld [vmem:[#allocation107_spill] sm:$0xff] }
 0x6ba   : > { %3844 = vadd.xlane.f32.xlu1 %v3843_v55  ;;  %15237 = vst [vmem:[#allocation148_spill] sm:$0xff] %v11889_v54  ;;  %v8693_v36 = vpop.eup %8692  ;;  %v4483_v8 = vmul.f32 %v8687_v38, %v4355_v6  ;;  %8708 = vpow2.f32 %v3402_v19  ;;  %v3032_v0 = vsub.f32 %v10886_v5, %v2708_v59  ;;  %v3033_v30 = vsub.f32 %v15044_v44, %v2708_v59  ;;  %v15243_v55 = vld [vmem:[#allocation67_spill] sm:$0xff]  ;;  %v15245_v19 = vld [vmem:[#allocation152_spill] sm:$0xff]  ;;  %v15246_v6 = vld [vmem:[#allocation153_spill] sm:$0xff] }
 0x6bb   : > { %2761 = vmax.xlane.f32.xlu0 %v15240_v46  ;;  %v11897_v7 = vpop.eup %8694  ;;  %v4228_v20 = vmul.f32 %v8693_v36, %v11833_v61  ;;  %8710 = vrcp.f32 %v11887_v42  ;;  %v3846_v11 = vadd.f32 %v11889_v54, %v11884_v50  ;;  %v4640_v51 = vmul.f32 %v15243_v55, %v4482_v22  ;;  %v15248_v46 = vld [vmem:[#allocation105_spill] sm:$0xff] }
 0x6bc   : > { %15242 = vst [vmem:[#allocation149_spill] sm:$0xff] %v11897_v7  ;;  %v11904_v52 = vpop.eup %8696  ;;  %v3404_v28 = vmul.f32 1.442695, %v3032_v0  ;;  %v3406_v38 = vmul.f32 1.442695, %v3033_v30  ;;  %v15247_v5 = vmax.f32 %v15245_v19, %v15246_v6  ;;  %v4643_v59 = vmul.f32 %v15248_v46, %v4483_v8 }
 0x6bd   : > { %15244 = vst [vmem:[#allocation121_spill] sm:$0xff] %v11904_v52  ;;  %v2711_v44 = vpop.xlane.xlu1 %2710  ;;  %v4642_v61 = vmul.f32 %v15249_v24, %v4483_v8  ;;  %v8699_v40 = vpop.eup %8698  ;;  %v4356_v49 = vsub.f32 2.0, %v4228_v20  ;;  %v3849_v0 = vadd.f32 %v11904_v52, %v11897_v7 }
 0x6be   : > { %2764 = vmax.xlane.f32.xlu1 %v15247_v5  ;;  %v3034_v39 = vsub.f32 %v10898_v48, %v2711_v44  ;;  %v3035_v50 = vsub.f32 %v10907_v53, %v2711_v44  ;;  %v11913_v22 = vpop.xlane.xlu0 %3793  ;;  %v4229_v30 = vmul.f32 %v8699_v40, %v11843_v1  ;;  %8712 = vpow2.f32 %v3404_v28  ;;  %v15252_v1 = vld [vmem:[#allocation154_spill] sm:$0xff] }
 0x6bf   : > { %3847 = vadd.xlane.f32.xlu0 %v3846_v11  ;;  %v4867_v55 = vpack.c.bf16 %v4643_v59, %v4641_v34  ;;  %v4866_v5 = vpack.c.bf16 %v4642_v61, %v4640_v51  ;;  %v4484_v46 = vmul.f32 %v8693_v36, %v4356_v49  ;;  %8714 = vpow2.f32 %v3406_v38  ;;  %v15253_v34 = vld [vmem:[#allocation155_spill] sm:$0xff] }
 0x6c0   : > { %v3408_v8 = vmul.f32 1.442695, %v3034_v39  ;;  %v3410_v24 = vmul.f32 1.442695, %v3035_v50  ;;  %v11918_v20 = vpop.eup %8700  ;;  %v4357_v48 = vsub.f32 2.0, %v4229_v30  ;;  %8716 = vrcp.f32 %v11913_v22  ;;  %v15255_v39 = vld [vmem:[#allocation84_spill] sm:$0xff] }
 0x6c1   : > { %15250 = vst [vmem:[#allocation119_spill] sm:$0xff] %v11918_v20  ;;  %5132 = vmatprep.mubr.bf16.mxu1 %v4867_v55  ;;  %v11921_v53 = vpop.xlane.xlu1 %3796  ;;  %v11923_v11 = vpop.eup %8702  ;;  %v15254_v51 = vmax.f32 %v15252_v1, %v15253_v34  ;;  %v4645_v50 = vmul.f32 %v15255_v39, %v4484_v46  ;;  %v15257_v30 = vld [vmem:[#allocation61_spill] sm:$0xff]  ;;  %v15263_v39 = vld [vmem:[#allocation44_spill] sm:$0xff] }
 0x6c2   : > { %3850 = vadd.xlane.f32.xlu1 %v3849_v0  ;;  %15251 = vst [vmem:[#allocation150_spill] sm:$0xff] %v11923_v11  ;;  %8718 = vpow2.f32 %v3408_v8  ;;  %5133 = vmatmul.mubr.bf16.gmra.mrb[140].mxu1 %v4866_v5  ;;  %v2714_v49 = vpop.xlane.xlu0 %2713  ;;  %v8705_v36 = vpop.eup %8704  ;;  %v4485_v28 = vmul.f32 %v8699_v40, %v4357_v48  ;;  %v3852_v0 = vadd.f32 %v11923_v11, %v11918_v20  ;;  %v15260_v48 = vld [vmem:[#allocation157_spill] sm:$0xff] }
 0x6c3   : > { %2767 = vmax.xlane.f32.xlu0 %v15254_v51  ;;  %8720 = vpow2.f32 %v3410_v24  ;;  %v3036_v38 = vsub.f32 %v10922_v21, %v2714_v49  ;;  %v3037_v44 = vsub.f32 %v10926_v29, %v2714_v49  ;;  %v11931_v59 = vpop.eup %8706  ;;  %v4230_v61 = vmul.f32 %v8705_v36, %v11879_v18  ;;  %v15259_v24 = vld [vmem:[#allocation156_spill] sm:$0xff]  ;;  %v15262_v51 = vld [vmem:[#allocation114_spill] sm:$0xff] }
 0x6c4   : > { %15256 = vst [vmem:[#allocation151_spill] sm:$0xff] %v11931_v59  ;;  %8722 = vrcp.f32 %v11921_v53  ;;  %v4644_v55 = vmul.f32 %v15257_v30, %v4484_v46  ;;  %v11938_v5 = vpop.eup %8708  ;;  %v15261_v21 = vmax.f32 %v15259_v24, %v15260_v48  ;;  %v4647_v49 = vmul.f32 %v15262_v51, %v4485_v28 }
 0x6c5   : > { %15258 = vst [vmem:[#allocation124_spill] sm:$0xff] %v11938_v5  ;;  %v3412_v8 = vmul.f32 1.442695, %v3036_v38  ;;  %v3414_v40 = vmul.f32 1.442695, %v3037_v44  ;;  %v2717_v29 = vpop.xlane.xlu1 %2716  ;;  %v4646_v18 = vmul.f32 %v15263_v39, %v4485_v28  ;;  %v8711_v7 = vpop.eup %8710  ;;  %v4358_v52 = vsub.f32 2.0, %v4230_v61 }
 0x6c6   : > { %2770 = vmax.xlane.f32.xlu1 %v15261_v21  ;;  %v3038_v54 = vsub.f32 %v10932_v33, %v2717_v29  ;;  %v3039_v20 = vsub.f32 %v10941_v13, %v2717_v29  ;;  %v11947_v46 = vpop.xlane.xlu0 %3799  ;;  %v3855_v38 = vadd.f32 %v11938_v5, %v11931_v59  ;;  %v4231_v44 = vmul.f32 %v8711_v7, %v11887_v42  ;;  %v15266_v42 = vld [vmem:[#allocation158_spill] sm:$0xff] }
 0x6c7   : > { %3853 = vadd.xlane.f32.xlu0 %v3852_v0  ;;  %8724 = vpow2.f32 %v3412_v8  ;;  %v4869_v30 = vpack.c.bf16 %v4647_v49, %v4645_v50  ;;  %v4868_v21 = vpack.c.bf16 %v4646_v18, %v4644_v55  ;;  %v4486_v51 = vmul.f32 %v8705_v36, %v4358_v52  ;;  %v15267_v50 = vld [vmem:[#allocation159_spill] sm:$0xff] }
 0x6c8   : > { %8726 = vpow2.f32 %v3414_v40  ;;  %v3416_v28 = vmul.f32 1.442695, %v3038_v54  ;;  %v3418_v39 = vmul.f32 1.442695, %v3039_v20  ;;  %v11952_v61 = vpop.eup %8712  ;;  %v4359_v33 = vsub.f32 2.0, %v4231_v44  ;;  %v15269_v54 = vld [vmem:[#allocation87_spill] sm:$0xff] }
 0x6c9   : > { %15264 = vst [vmem:[#allocation67_spill] sm:$0xff] %v11952_v61  ;;  %5140 = vmatprep.mubr.bf16.mxu1 %v4869_v30  ;;  %8728 = vrcp.f32 %v11947_v46  ;;  %v11955_v13 = vpop.xlane.xlu1 %3802  ;;  %v11957_v0 = vpop.eup %8714  ;;  %v15268_v55 = vmax.f32 %v15266_v42, %v15267_v50  ;;  %v4649_v20 = vmul.f32 %v15269_v54, %v4486_v51  ;;  %v15271_v44 = vld [vmem:[#allocation63_spill] sm:$0xff]  ;;  %v15277_v54 = vld [vmem:[#allocation45_spill] sm:$0xff] }
 0x6ca   : > { %3856 = vadd.xlane.f32.xlu1 %v3855_v38  ;;  %15265 = vst [vmem:[#allocation152_spill] sm:$0xff] %v11957_v0  ;;  %8730 = vpow2.f32 %v3416_v28  ;;  %5141 = vmatmul.mubr.bf16.gmra.mrb[144].mxu1 %v4868_v21  ;;  %v2720_v52 = vpop.xlane.xlu0 %2719  ;;  %v8717_v36 = vpop.eup %8716  ;;  %v4487_v8 = vmul.f32 %v8711_v7, %v4359_v33  ;;  %v3858_v38 = vadd.f32 %v11957_v0, %v11952_v61  ;;  %v15274_v33 = vld [vmem:[#allocation161_spill] sm:$0xff] }
 0x6cb   : > { %2773 = vmax.xlane.f32.xlu0 %v15268_v55  ;;  %8732 = vpow2.f32 %v3418_v39  ;;  %v3040_v40 = vsub.f32 %v10954_v60, %v2720_v52  ;;  %v3041_v29 = vsub.f32 %v10958_v31, %v2720_v52  ;;  %v4232_v18 = vmul.f32 %v8717_v36, %v11913_v22  ;;  %v15273_v39 = vld [vmem:[#allocation160_spill] sm:$0xff]  ;;  %v15276_v55 = vld [vmem:[#allocation118_spill] sm:$0xff] }
 0x6cc   : > { %v11965_v49 = vpop.eup %8718  ;;  %8734 = vrcp.f32 %v11955_v13  ;;  %v4648_v30 = vmul.f32 %v15271_v44, %v4486_v51  ;;  %v15275_v60 = vmax.f32 %v15273_v39, %v15274_v33  ;;  %v4651_v52 = vmul.f32 %v15276_v55, %v4487_v8 }
 0x6cd   : > { %15270 = vst [vmem:[#allocation153_spill] sm:$0xff] %v11965_v49  ;;  %v11972_v21 = vpop.eup %8720  ;;  %v3420_v28 = vmul.f32 1.442695, %v3040_v40  ;;  %v3422_v7 = vmul.f32 1.442695, %v3041_v29  ;;  %v2723_v31 = vpop.xlane.xlu1 %2722  ;;  %v4650_v22 = vmul.f32 %v15277_v54, %v4487_v8  ;;  %v4360_v5 = vsub.f32 2.0, %v4232_v18 }
 0x6ce   : > { %15272 = vst [vmem:[#allocation105_spill] sm:$0xff] %v11972_v21  ;;  %2776 = vmax.xlane.f32.xlu1 %v15275_v60  ;;  %v8723_v59 = vpop.eup %8722  ;;  %v3042_v11 = vsub.f32 %v15082_v37, %v2723_v31  ;;  %v3043_v61 = vsub.f32 %v15083_v15, %v2723_v31  ;;  %v11981_v51 = vpop.xlane.xlu0 %3805  ;;  %v3861_v40 = vadd.f32 %v11972_v21, %v11965_v49 }
 0x6cf   : > { %3859 = vadd.xlane.f32.xlu0 %v3858_v38  ;;  %v4233_v29 = vmul.f32 %v8723_v59, %v11921_v53  ;;  %8736 = vpow2.f32 %v3420_v28  ;;  %v4871_v44 = vpack.c.bf16 %v4651_v52, %v4649_v20  ;;  %v4870_v60 = vpack.c.bf16 %v4650_v22, %v4648_v30  ;;  %v15280_v53 = vld [vmem:[#allocation97_spill] sm:$0xff]  ;;  %v15281_v20 = vld [vmem:[#allocation98_spill] sm:$0xff] }
 0x6d0   : > { %v4488_v55 = vmul.f32 %v8717_v36, %v4360_v5  ;;  %8738 = vpow2.f32 %v3422_v7  ;;  %v3424_v8 = vmul.f32 1.442695, %v3042_v11  ;;  %v3426_v54 = vmul.f32 1.442695, %v3043_v61  ;;  %v15283_v11 = vld [vmem:[#allocation90_spill] sm:$0xff] }
 0x6d1   : > { %v11986_v18 = vpop.eup %8724  ;;  %v4361_v37 = vsub.f32 2.0, %v4233_v29  ;;  %5148 = vmatprep.mubr.bf16.mxu1 %v4871_v44  ;;  %8740 = vrcp.f32 %v11981_v51  ;;  %v11989_v15 = vpop.xlane.xlu1 %3808  ;;  %v15282_v30 = vmax.f32 %v15280_v53, %v15281_v20  ;;  %v15285_v29 = vld [vmem:[#allocation120_spill] sm:$0xff] }
 0x6d2   : > { %15278 = vst [vmem:[#allocation107_spill] sm:$0xff] %v11986_v18  ;;  %3862 = vadd.xlane.f32.xlu1 %v3861_v40  ;;  %v11991_v38 = vpop.eup %8726  ;;  %8742 = vpow2.f32 %v3424_v8  ;;  %5149 = vmatmul.mubr.bf16.gmra.mrb[148].mxu1 %v4870_v60  ;;  %v4653_v61 = vmul.f32 %v15283_v11, %v4488_v55  ;;  %v4652_v44 = vmul.f32 %v15285_v29, %v4488_v55  ;;  %v15291_v11 = vld [vmem:[#allocation91_spill] sm:$0xff] }
 0x6d3   : > { %15279 = vst [vmem:[#allocation154_spill] sm:$0xff] %v11991_v38  ;;  %2779 = vmax.xlane.f32.xlu0 %v15282_v30  ;;  %v2726_v5 = vpop.xlane.xlu0 %2725  ;;  %v8729_v36 = vpop.eup %8728  ;;  %v4489_v28 = vmul.f32 %v8723_v59, %v4361_v37  ;;  %8744 = vpow2.f32 %v3426_v54  ;;  %v3864_v40 = vadd.f32 %v11991_v38, %v11986_v18  ;;  %v15287_v54 = vld [vmem:[#allocation163_spill] sm:$0xff]  ;;  %v15288_v37 = vld [vmem:[#allocation164_spill] sm:$0xff]  ;;  %v15290_v30 = vld [vmem:[#allocation46_spill] sm:$0xff] }
 0x6d4   : > { %v3044_v7 = vsub.f32 %v15095_v14, %v2726_v5  ;;  %v3045_v31 = vsub.f32 %v15096_v41, %v2726_v5  ;;  %v11999_v52 = vpop.eup %8730  ;;  %v4234_v22 = vmul.f32 %v8729_v36, %v11947_v46  ;;  %8746 = vrcp.f32 %v11989_v15  ;;  %v15292_v18 = vld [vmem:[#allocation133_spill] sm:$0xff] }
 0x6d5   : > { %15284 = vst [vmem:[#allocation155_spill] sm:$0xff] %v11999_v52  ;;  %v12006_v60 = vpop.eup %8732  ;;  %v15289_v14 = vmax.f32 %v15287_v54, %v15288_v37  ;;  %v4655_v5 = vmul.f32 %v15290_v30, %v4489_v28  ;;  %v4654_v46 = vmul.f32 %v15291_v11, %v4489_v28 }
 0x6d6   : > { %15286 = vst [vmem:[#allocation84_spill] sm:$0xff] %v12006_v60  ;;  %v3428_v8 = vmul.f32 1.442695, %v3044_v7  ;;  %v3430_v59 = vmul.f32 1.442695, %v3045_v31  ;;  %v2729_v41 = vpop.xlane.xlu1 %2728  ;;  %v8735_v49 = vpop.eup %8734  ;;  %v4362_v21 = vsub.f32 2.0, %v4234_v22  ;;  %v3867_v7 = vadd.f32 %v12006_v60, %v11999_v52 }
 0x6d7   : > { %2782 = vmax.xlane.f32.xlu1 %v15289_v14  ;;  %v3046_v0 = vsub.f32 %v15104_v32, %v2729_v41  ;;  %v3047_v38 = vsub.f32 %v15292_v18, %v2729_v41  ;;  %3865 = vadd.xlane.f32.xlu0 %v3864_v40  ;;  %v12015_v55 = vpop.xlane.xlu0 %3811  ;;  %v4235_v31 = vmul.f32 %v8735_v49, %v11955_v13  ;;  %v12020_v14 = vpop.f32.mrb[80].mxu1 }
 0x6d8   : > { %8748 = vpow2.f32 %v3428_v8  ;;  %v4873_v29 = vpack.c.bf16 %v4655_v5, %v4653_v61  ;;  %15293 = vst [vmem:[#allocation61_spill] sm:$0xff] %v12020_v14  ;;  %v4872_v30 = vpack.c.bf16 %v4654_v46, %v4652_v44  ;;  %v4490_v28 = vmul.f32 %v8729_v36, %v4362_v21  ;;  %v5016_v32 = vpop.f32.mrb[81].mxu1  ;;  %v15297_v21 = vld [vmem:[#allocation102_spill] sm:$0xff]  ;;  %v15298_v36 = vld [vmem:[#allocation101_spill] sm:$0xff] }
 0x6d9   : > { %8750 = vpow2.f32 %v3430_v59  ;;  %v3432_v22 = vmul.f32 1.442695, %v3046_v0  ;;  %v3434_v11 = vmul.f32 1.442695, %v3047_v38  ;;  %v12022_v37 = vpop.eup %8736  ;;  %v4363_v18 = vsub.f32 2.0, %v4235_v31  ;;  %v12027_v13 = vpop.f32.mrb[82].mxu1 }
 0x6da   : > { %15294 = vst [vmem:[#allocation156_spill] sm:$0xff] %v12022_v37  ;;  %5156 = vmatprep.mubr.bf16.mxu1 %v4873_v29  ;;  %8752 = vrcp.f32 %v12015_v55  ;;  %v12025_v40 = vpop.xlane.xlu1 %3814  ;;  %15295 = vst [vmem:[#allocation157_spill] sm:$0xff] %v12027_v13  ;;  %v12029_v61 = vpop.eup %8738  ;;  %v15299_v0 = vmax.f32 %v15297_v21, %v15298_v36  ;;  %v15300_v8 = vld [vmem:[#allocation94_spill] sm:$0xff]  ;;  %v15308_v13 = vld [vmem:[#allocation96_spill] sm:$0xff] }
 0x6db   : > { %3868 = vadd.xlane.f32.xlu1 %v3867_v7  ;;  %15296 = vst [vmem:[#allocation114_spill] sm:$0xff] %v12029_v61  ;;  %8754 = vpow2.f32 %v3432_v22  ;;  %5157 = vmatmul.mubr.bf16.gmra.mrb[152].mxu1 %v4872_v30  ;;  %v5019_v38 = vpop.f32.mrb[83].mxu1  ;;  %v2732_v44 = vpop.xlane.xlu0 %2731  ;;  %v4657_v59 = vmul.f32 %v15300_v8, %v4490_v28  ;;  %v4491_v5 = vmul.f32 %v8735_v49, %v4363_v18  ;;  %v15302_v22 = vld [vmem:[#allocation69_spill] sm:$0xff]  ;;  %v15305_v18 = vld [vmem:[#allocation167_spill] sm:$0xff] }
 0x6dc   : > { %2785 = vmax.xlane.f32.xlu0 %v15299_v0  ;;  %v8741_v41 = vpop.eup %8740  ;;  %8756 = vpow2.f32 %v3434_v11  ;;  %v3048_v46 = vsub.f32 %v15117_v25, %v2732_v44  ;;  %v3049_v7 = vsub.f32 %v15118_v47, %v2732_v44  ;;  %v3870_v30 = vadd.f32 %v12029_v61, %v12022_v37  ;;  %v15304_v11 = vld [vmem:[#allocation51_spill] sm:$0xff]  ;;  %v15307_v44 = vld [vmem:[#allocation68_spill] sm:$0xff] }
 0x6dd   : > { %v12037_v31 = vpop.eup %8742  ;;  %v4236_v29 = vmul.f32 %v8741_v41, %v11981_v51  ;;  %8758 = vrcp.f32 %v12025_v40  ;;  %v4656_v32 = vmul.f32 %v15302_v22, %v4490_v28  ;;  %v15306_v25 = vmax.f32 %v15304_v11, %v15305_v18 }
 0x6de   : > { %15301 = vst [vmem:[#allocation44_spill] sm:$0xff] %v12037_v31  ;;  %v12044_v0 = vpop.eup %8744  ;;  %v3436_v38 = vmul.f32 1.442695, %v3048_v46  ;;  %v3438_v49 = vmul.f32 1.442695, %v3049_v7  ;;  %v2735_v47 = vpop.xlane.xlu1 %2734  ;;  %v4659_v8 = vmul.f32 %v15307_v44, %v4491_v5  ;;  %v4658_v51 = vmul.f32 %v15308_v13, %v4491_v5 }
 0x6df   : > { %15303 = vst [vmem:[#allocation158_spill] sm:$0xff] %v12044_v0  ;;  %2788 = vmax.xlane.f32.xlu1 %v15306_v25  ;;  %v8747_v14 = vpop.eup %8746  ;;  %v4364_v52 = vsub.f32 2.0, %v4236_v29  ;;  %v3050_v60 = vsub.f32 %v15122_v23, %v2735_v47  ;;  %v3051_v37 = vsub.f32 %v15123_v56, %v2735_v47  ;;  %v12053_v28 = vpop.xlane.xlu0 %3817  ;;  %v3873_v46 = vadd.f32 %v12044_v0, %v12037_v31 }
 0x6e0   : > { %3871 = vadd.xlane.f32.xlu0 %v3870_v30  ;;  %v4237_v7 = vmul.f32 %v8747_v14, %v11989_v15  ;;  %8760 = vpow2.f32 %v3436_v38  ;;  %v4875_v22 = vpack.c.bf16 %v4659_v8, %v4657_v59  ;;  %v4874_v25 = vpack.c.bf16 %v4658_v51, %v4656_v32  ;;  %v12061_v56 = vpop.f32.mrb[84].mxu1  ;;  %v15313_v59 = vld [vmem:[#allocation53_spill] sm:$0xff] }
 0x6e1   : > { %v4492_v44 = vmul.f32 %v8741_v41, %v4364_v52  ;;  %8762 = vpow2.f32 %v3438_v49  ;;  %v3440_v13 = vmul.f32 1.442695, %v3050_v60  ;;  %v3442_v5 = vmul.f32 1.442695, %v3051_v37  ;;  %15310 = vst [vmem:[#allocation87_spill] sm:$0xff] %v12061_v56  ;;  %v5024_v15 = vpop.f32.mrb[85].mxu1 }
 0x6e2   : > { %v12058_v29 = vpop.eup %8748  ;;  %v4365_v23 = vsub.f32 2.0, %v4237_v7  ;;  %5164 = vmatprep.mubr.bf16.mxu1 %v4875_v22  ;;  %8764 = vrcp.f32 %v12053_v28  ;;  %v12063_v30 = vpop.xlane.xlu1 %3820  ;;  %v15312_v52 = vld [vmem:[#allocation103_spill] sm:$0xff]  ;;  %v15315_v41 = vld [vmem:[#allocation50_spill] sm:$0xff] }
 0x6e3   : > { %15309 = vst [vmem:[#allocation159_spill] sm:$0xff] %v12058_v29  ;;  %3874 = vadd.xlane.f32.xlu1 %v3873_v46  ;;  %v12065_v47 = vpop.eup %8750  ;;  %8766 = vpow2.f32 %v3440_v13  ;;  %5165 = vmatmul.mubr.bf16.gmra.mrb[156].mxu1 %v4874_v25  ;;  %v15314_v60 = vmax.f32 %v15312_v52, %v15313_v59  ;;  %v2738_v37 = vpop.xlane.xlu0 %2737  ;;  %v4661_v32 = vmul.f32 %v15315_v41, %v4492_v44  ;;  %v15318_v15 = vld [vmem:[#allocation71_spill] sm:$0xff] }
 0x6e4   : > { %15311 = vst [vmem:[#allocation63_spill] sm:$0xff] %v12065_v47  ;;  %v8753_v38 = vpop.eup %8752  ;;  %v4493_v49 = vmul.f32 %v8747_v14, %v4365_v23  ;;  %8768 = vpow2.f32 %v3442_v5  ;;  %v12071_v8 = vpop.f32.mrb[86].mxu1  ;;  %v3052_v51 = vsub.f32 %v15135_v35, %v2738_v37  ;;  %v3053_v46 = vsub.f32 %v15136_v62, %v2738_v37  ;;  %v15320_v41 = vld [vmem:[#allocation55_spill] sm:$0xff]  ;;  %v15323_v37 = vld [vmem:[#allocation76_spill] sm:$0xff] }
 0x6e5   : > { %2791 = vmax.xlane.f32.xlu0 %v15314_v60  ;;  %15316 = vst [vmem:[#allocation160_spill] sm:$0xff] %v12071_v8  ;;  %v12075_v7 = vpop.eup %8754  ;;  %v4238_v22 = vmul.f32 %v8753_v38, %v12015_v55  ;;  %8770 = vrcp.f32 %v12063_v30  ;;  %v5027_v25 = vpop.f32.mrb[87].mxu1  ;;  %v3876_v13 = vadd.f32 %v12065_v47, %v12058_v29  ;;  %v4660_v60 = vmul.f32 %v15318_v15, %v4492_v44  ;;  %v15321_v35 = vld [vmem:[#allocation43_spill] sm:$0xff]  ;;  %v15324_v55 = vld [vmem:[#allocation73_spill] sm:$0xff] }
 0x6e6   : > { %15317 = vst [vmem:[#allocation161_spill] sm:$0xff] %v12075_v7  ;;  %v12082_v14 = vpop.eup %8756  ;;  %v3444_v5 = vmul.f32 1.442695, %v3052_v51  ;;  %v3446_v23 = vmul.f32 1.442695, %v3053_v46  ;;  %v15322_v8 = vmax.f32 %v15320_v41, %v15321_v35  ;;  %v2741_v62 = vpop.xlane.xlu1 %2740  ;;  %v4663_v56 = vmul.f32 %v15323_v37, %v4493_v49  ;;  %v15339_v47 = vld [vmem:[#allocation141_spill] sm:$0xff] }
 0x6e7   : > { %15319 = vst [vmem:[#allocation118_spill] sm:$0xff] %v12082_v14  ;;  %v4662_v31 = vmul.f32 %v15324_v55, %v4493_v49  ;;  %v8759_v0 = vpop.eup %8758  ;;  %v4366_v25 = vsub.f32 2.0, %v4238_v22  ;;  %v3054_v61 = vsub.f32 %v15140_v4, %v2741_v62  ;;  %v3055_v29 = vsub.f32 %v15141_v58, %v2741_v62  ;;  %v12091_v44 = vpop.xlane.xlu0 %3823 }
 0x6e8   : > { %2794 = vmax.xlane.f32.xlu1 %v15322_v8  ;;  %v3879_v51 = vadd.f32 %v12082_v14, %v12075_v7  ;;  %v4239_v46 = vmul.f32 %v8759_v0, %v12025_v40  ;;  %8772 = vpow2.f32 %v3444_v5  ;;  %v4877_v8 = vpack.c.bf16 %v4663_v56, %v4661_v32  ;;  %v12099_v58 = vpop.f32.mrb[88].mxu1  ;;  %v15329_v56 = vld [vmem:[#allocation59_spill] sm:$0xff]  ;;  %v15331_v32 = vld [vmem:[#allocation52_spill] sm:$0xff] }
 0x6e9   : > { %3877 = vadd.xlane.f32.xlu0 %v3876_v13  ;;  %v4876_v15 = vpack.c.bf16 %v4662_v31, %v4660_v60  ;;  %v4494_v37 = vmul.f32 %v8753_v38, %v4366_v25  ;;  %8774 = vpow2.f32 %v3446_v23  ;;  %v3448_v49 = vmul.f32 1.442695, %v3054_v61  ;;  %15326 = vst [vmem:[#allocation97_spill] sm:$0xff] %v12099_v58  ;;  %v5032_v40 = vpop.f32.mrb[89].mxu1  ;;  %v15328_v31 = vld [vmem:[#allocation57_spill] sm:$0xff] }
 0x6ea   : > { %v3450_v55 = vmul.f32 1.442695, %v3055_v29  ;;  %v12096_v22 = vpop.eup %8760  ;;  %v4367_v4 = vsub.f32 2.0, %v4239_v46  ;;  %5172 = vmatprep.mubr.bf16.mxu1 %v4877_v8  ;;  %8776 = vrcp.f32 %v12091_v44  ;;  %v12101_v13 = vpop.xlane.xlu1 %3826  ;;  %v15330_v61 = vmax.f32 %v15328_v31, %v15329_v56  ;;  %v15333_v40 = vld [vmem:[#allocation47_spill] sm:$0xff] }
 0x6eb   : > { %15325 = vst [vmem:[#allocation45_spill] sm:$0xff] %v12096_v22  ;;  %v12103_v62 = vpop.eup %8762  ;;  %8778 = vpow2.f32 %v3448_v49  ;;  %5173 = vmatmul.mubr.bf16.gmra.mrb[160].mxu1 %v4876_v15  ;;  %v2744_v29 = vpop.xlane.xlu0 %2743  ;;  %v4665_v38 = vmul.f32 %v15331_v32, %v4494_v37  ;;  %v15334_v32 = vld [vmem:[#allocation48_spill] sm:$0xff] }
 0x6ec   : > { %3880 = vadd.xlane.f32.xlu1 %v3879_v51  ;;  %15327 = vst [vmem:[#allocation98_spill] sm:$0xff] %v12103_v62  ;;  %v8765_v60 = vpop.eup %8764  ;;  %v4495_v5 = vmul.f32 %v8759_v0, %v4367_v4  ;;  %8780 = vpow2.f32 %v3450_v55  ;;  %v12109_v23 = vpop.f32.mrb[90].mxu1  ;;  %v3056_v25 = vsub.f32 %v15151_v45, %v2744_v29  ;;  %v3057_v51 = vsub.f32 %v15152_v27, %v2744_v29  ;;  %v15335_v45 = vld [vmem:[#allocation110_spill] sm:$0xff]  ;;  %v15337_v29 = vld [vmem:[#allocation108_spill] sm:$0xff] }
 0x6ed   : > { %2797 = vmax.xlane.f32.xlu0 %v15330_v61  ;;  %15332 = vst [vmem:[#allocation90_spill] sm:$0xff] %v12109_v23  ;;  %v12113_v46 = vpop.eup %8766  ;;  %v4240_v8 = vmul.f32 %v8765_v60, %v12053_v28  ;;  %8782 = vrcp.f32 %v12101_v13  ;;  %v5035_v15 = vpop.f32.mrb[91].mxu1  ;;  %v3882_v49 = vadd.f32 %v12103_v62, %v12096_v22  ;;  %v4664_v61 = vmul.f32 %v15333_v40, %v4494_v37  ;;  %v15338_v28 = vld [vmem:[#allocation106_spill] sm:$0xff] }
 0x6ee   : > { %v12120_v0 = vpop.eup %8768  ;;  %v3452_v55 = vmul.f32 1.442695, %v3056_v25  ;;  %v3454_v4 = vmul.f32 1.442695, %v3057_v51  ;;  %v15336_v23 = vmax.f32 %v15334_v32, %v15335_v45  ;;  %v2747_v27 = vpop.xlane.xlu1 %2746  ;;  %v4667_v58 = vmul.f32 %v15337_v29, %v4495_v5  ;;  %v15340_v22 = vld [vmem:[#allocation142_spill] sm:$0xff] }
 0x6ef   : > { %v4666_v7 = vmul.f32 %v15338_v28, %v4495_v5  ;;  %v8771_v14 = vpop.eup %8770  ;;  %v4368_v15 = vsub.f32 2.0, %v4240_v8  ;;  %v3058_v56 = vsub.f32 %v15339_v47, %v2747_v27  ;;  %v3059_v62 = vsub.f32 %v15340_v22, %v2747_v27  ;;  %v12134_v47 = vpop.f32.mrb[92].mxu1  ;;  %v15350_v28 = vld [vmem:[#allocation72_spill] sm:$0xff] }
 0x6f0   : > { %2800 = vmax.xlane.f32.xlu1 %v15336_v23  ;;  %v3885_v37 = vadd.f32 %v12120_v0, %v12113_v46  ;;  %v4241_v25 = vmul.f32 %v8771_v14, %v12063_v30  ;;  %8784 = vpow2.f32 %v3452_v55  ;;  %v4879_v51 = vpack.c.bf16 %v4667_v58, %v4665_v38  ;;  %15342 = vst [vmem:[#allocation163_spill] sm:$0xff] %v12134_v47  ;;  %v15344_v30 = vld [vmem:[#allocation112_spill] sm:$0xff]  ;;  %v15345_v55 = vld [vmem:[#allocation86_spill] sm:$0xff] }
 0x6f1   : > { %3883 = vadd.xlane.f32.xlu0 %v3882_v49  ;;  %v4878_v23 = vpack.c.bf16 %v4666_v7, %v4664_v61  ;;  %8786 = vpow2.f32 %v3454_v4  ;;  %v3456_v40 = vmul.f32 1.442695, %v3058_v56  ;;  %v3458_v29 = vmul.f32 1.442695, %v3059_v62  ;;  %v5040_v49 = vpop.f32.mrb[93].mxu1 }
 0x6f2   : > { %v12132_v45 = vpop.eup %8772  ;;  %v4496_v5 = vmul.f32 %v8765_v60, %v4368_v15  ;;  %v4369_v8 = vsub.f32 2.0, %v4241_v25  ;;  %5180 = vmatprep.mubr.bf16.mxu1 %v4879_v51  ;;  %v15346_v58 = vmax.f32 %v15344_v30, %v15345_v55  ;;  %v12141_v62 = vpop.f32.mrb[94].mxu1  ;;  %v15351_v15 = vld [vmem:[#allocation116_spill] sm:$0xff]  ;;  %v15353_v25 = vld [vmem:[#allocation78_spill] sm:$0xff] }
 0x6f3   : > { %15341 = vst [vmem:[#allocation120_spill] sm:$0xff] %v12132_v45  ;;  %v12136_v22 = vpop.eup %8774  ;;  %8788 = vpow2.f32 %v3456_v40  ;;  %5181 = vmatmul.mubr.bf16.gmra.mrb[164].mxu1 %v4878_v23  ;;  %15347 = vst [vmem:[#allocation91_spill] sm:$0xff] %v12141_v62  ;;  %v5043_v4 = vpop.f32.mrb[95].mxu1  ;;  %v15355_v40 = vld [vmem:[#allocation111_spill] sm:$0xff] }
 0x6f4   : > { %3886 = vadd.xlane.f32.xlu1 %v3885_v37  ;;  %15343 = vst [vmem:[#allocation46_spill] sm:$0xff] %v12136_v22  ;;  %v8777_v7 = vpop.eup %8776  ;;  %v4497_v56 = vmul.f32 %v8771_v14, %v4369_v8  ;;  %8790 = vpow2.f32 %v3458_v29  ;;  %v3888_v38 = vadd.f32 %v12136_v22, %v12132_v45  ;;  %v15352_v37 = vmax.f32 %v15350_v28, %v15351_v15  ;;  %v15354_v14 = vld [vmem:[#allocation49_spill] sm:$0xff]  ;;  %v15356_v8 = vld [vmem:[#allocation132_spill] sm:$0xff] }
 0x6f5   : > { %2803 = vmax.xlane.f32.xlu0 %v15346_v58  ;;  %v12145_v60 = vpop.eup %8778  ;;  %v4242_v61 = vmul.f32 %v8777_v7, %v12091_v44  ;;  %v4669_v51 = vmul.f32 %v15353_v25, %v4496_v5  ;;  %v4668_v29 = vmul.f32 %v15355_v40, %v4496_v5 }
 0x6f6   : > { %15348 = vst [vmem:[#allocation133_spill] sm:$0xff] %v12145_v60  ;;  %v12148_v27 = vpop.eup %8780  ;;  %v4671_v23 = vmul.f32 %v15354_v14, %v4497_v56  ;;  %v4670_v49 = vmul.f32 %v15356_v8, %v4497_v56 }
 0x6f7   : > { %15349 = vst [vmem:[#allocation102_spill] sm:$0xff] %v12148_v27  ;;  %v8783_v58 = vpop.eup %8782  ;;  %v4370_v62 = vsub.f32 2.0, %v4242_v61  ;;  %v3891_v44 = vadd.f32 %v12148_v27, %v12145_v60  ;;  %v12162_v14 = vpop.f32.mrb[96].mxu1  ;;  %v15361_v61 = vld [vmem:[#allocation88_spill] sm:$0xff]  ;;  %v15374_v60 = vld [vmem:[#allocation123_spill] sm:$0xff] }
 0x6f8   : > { %2806 = vmax.xlane.f32.xlu1 %v15352_v37  ;;  %v4243_v4 = vmul.f32 %v8783_v58, %v12101_v13  ;;  %v4881_v47 = vpack.c.bf16 %v4671_v23, %v4669_v51  ;;  %v4880_v45 = vpack.c.bf16 %v4670_v49, %v4668_v29  ;;  %15358 = vst [vmem:[#allocation94_spill] sm:$0xff] %v12162_v14  ;;  %v5048_v56 = vpop.f32.mrb[97].mxu1  ;;  %v15366_v23 = vld [vmem:[#allocation89_spill] sm:$0xff] }
 0x6f9   : > { %3889 = vadd.xlane.f32.xlu0 %v3888_v38  ;;  %v4498_v37 = vmul.f32 %v8777_v7, %v4370_v62  ;;  %v15360_v38 = vld [vmem:[#allocation117_spill] sm:$0xff]  ;;  %v12169_v13 = vpop.f32.mrb[98].mxu1 }
 0x6fa   : > { %v12160_v22 = vpop.eup %8784  ;;  %v4371_v25 = vsub.f32 2.0, %v4243_v4  ;;  %5188 = vmatprep.mubr.bf16.mxu1 %v4881_v47  ;;  %v15362_v40 = vmax.f32 %v15360_v38, %v15361_v61  ;;  %15363 = vst [vmem:[#allocation51_spill] sm:$0xff] %v12169_v13  ;;  %v5051_v47 = vpop.f32.mrb[99].mxu1  ;;  %v15367_v29 = vld [vmem:[#allocation77_spill] sm:$0xff]  ;;  %v15370_v4 = vld [vmem:[#allocation82_spill] sm:$0xff] }
 0x6fb   : > { %15357 = vst [vmem:[#allocation101_spill] sm:$0xff] %v12160_v22  ;;  %v12164_v5 = vpop.eup %8786  ;;  %5189 = vmatmul.mubr.bf16.gmra.mrb[168].mxu1 %v4880_v45  ;;  %v15368_v49 = vmax.f32 %v15366_v23, %v15367_v29  ;;  %v15369_v45 = vld [vmem:[#allocation135_spill] sm:$0xff] }
 0x6fc   : > { %3892 = vadd.xlane.f32.xlu1 %v3891_v44  ;;  %15359 = vst [vmem:[#allocation69_spill] sm:$0xff] %v12164_v5  ;;  %v4499_v8 = vmul.f32 %v8783_v58, %v4371_v25  ;;  %v3894_v51 = vadd.f32 %v12164_v5, %v12160_v22  ;;  %v4673_v44 = vmul.f32 %v15369_v45, %v4498_v37  ;;  %v15372_v25 = vld [vmem:[#allocation136_spill] sm:$0xff]  ;;  %v15375_v45 = vld [vmem:[#allocation122_spill] sm:$0xff] }
 0x6fd   : > { %2809 = vmax.xlane.f32.xlu0 %v15362_v40  ;;  %v12173_v7 = vpop.eup %8788  ;;  %v15371_v40 = vld [vmem:[#allocation134_spill] sm:$0xff]  ;;  %v15376_v27 = vmax.f32 %v15374_v60, %v15375_v45 }
 0x6fe   : > { %15364 = vst [vmem:[#allocation167_spill] sm:$0xff] %v12173_v7  ;;  %v12175_v62 = vpop.eup %8790  ;;  %v4675_v56 = vmul.f32 %v15370_v4, %v4499_v8  ;;  %v4672_v58 = vmul.f32 %v15371_v40, %v4498_v37  ;;  %v4674_v13 = vmul.f32 %v15372_v25, %v4499_v8  ;;  %v15378_v8 = vld [vmem:[#allocation92_spill] sm:$0xff] }
 0x6ff   : > { %15365 = vst [vmem:[#allocation68_spill] sm:$0xff] %v12175_v62  ;;  %v3897_v14 = vadd.f32 %v12175_v62, %v12173_v7  ;;  %v12186_v5 = vpop.f32.mrb[100].mxu1  ;;  %v5750_v7 = vld [vmem:[#allocation2 + $0x48] sm:$0xff] }
 0x700   : > { %2812 = vmax.xlane.f32.xlu1 %v15368_v49  ;;  %v4883_v22 = vpack.c.bf16 %v4675_v56, %v4673_v44  ;;  %v4882_v47 = vpack.c.bf16 %v4674_v13, %v4672_v58  ;;  %15373 = vst [vmem:[#allocation96_spill] sm:$0xff] %v12186_v5  ;;  %v5056_v49 = vpop.f32.mrb[101].mxu1 }
 0x701   : > { %3895 = vadd.xlane.f32.xlu0 %v3894_v51  ;;  %v12191_v4 = vpop.f32.mrb[102].mxu1  ;;  %v15379_v51 = vld [vmem:[#allocation80_spill] sm:$0xff] }
 0x702   : > { %5196 = vmatprep.mubr.bf16.mxu1 %v4883_v22  ;;  %15377 = vst [vmem:[#allocation103_spill] sm:$0xff] %v12191_v4  ;;  %v5059_v37 = vpop.f32.mrb[103].mxu1  ;;  %v15380_v40 = vmax.f32 %v15378_v8, %v15379_v51 }
 0x703   : > { %5197 = vmatmul.mubr.bf16.gmra.mrb[172].mxu1 %v4882_v47 }
 0x704   : > { %3898 = vadd.xlane.f32.xlu1 %v3897_v14 }
 0x705   : > { %2815 = vmax.xlane.f32.xlu0 %v15376_v27 }
 0x707   : > { %v12196_v25 = vpop.f32.mrb[104].mxu1 }
 0x708   : > { %2818 = vmax.xlane.f32.xlu1 %v15380_v40  ;;  %15381 = vst [vmem:[#allocation53_spill] sm:$0xff] %v12196_v25  ;;  %v5064_v13 = vpop.f32.mrb[105].mxu1 }
 0x709   : > { %v12198_v22 = vpop.f32.mrb[106].mxu1 }
 0x70a   : > { %15382 = vst [vmem:[#allocation50_spill] sm:$0xff] %v12198_v22  ;;  %v5067_v14 = vpop.f32.mrb[107].mxu1 }
 0x70f   : > { %v12200_v44 = vpop.f32.mrb[108].mxu1 }
 0x710   : > { %15383 = vst [vmem:[#allocation71_spill] sm:$0xff] %v12200_v44  ;;  %v5072_v56 = vpop.f32.mrb[109].mxu1 }
 0x711   : > { %v12202_v58 = vpop.f32.mrb[110].mxu1 }
 0x712   : > { %15384 = vst [vmem:[#allocation55_spill] sm:$0xff] %v12202_v58  ;;  %v5075_v47 = vpop.f32.mrb[111].mxu1 }
 0x717   : > { %v12204_v27 = vpop.f32.mrb[112].mxu1 }
 0x718   : > { %15385 = vst [vmem:[#allocation43_spill] sm:$0xff] %v12204_v27  ;;  %v5080_v49 = vpop.f32.mrb[113].mxu1 }
 0x719   : > { %v12206_v37 = vpop.f32.mrb[114].mxu1  ;;  %v5749_v49 = vld [vmem:[#allocation2 + $0x18] sm:$0xff] }
 0x71a   : > { %15386 = vst [vmem:[#allocation76_spill] sm:$0xff] %v12206_v37  ;;  %v5083_v4 = vpop.f32.mrb[115].mxu1 }
 0x71b   : > { %v8189_v4 = vpack.c.bf16 %v5750_v7, %v5749_v49 }
 0x71d   : > { %8190 = vmatprep.subr.bf16.mxu0 %v8189_v4 }
 0x71e   : > { %8192 = vmatpush3.bf16.msra.mxu0 %v8189_v4 }
 0x720   : > { %v12208_v5 = vpop.f32.mrb[116].mxu1 }
 0x721   : > { %15387 = vst [vmem:[#allocation73_spill] sm:$0xff] %v12208_v5  ;;  %v5088_v40 = vpop.f32.mrb[117].mxu1 }
 0x722   : > { %v12210_v25 = vpop.f32.mrb[118].mxu1 }
 0x723   : > { %15388 = vst [vmem:[#allocation57_spill] sm:$0xff] %v12210_v25  ;;  %v5091_v13 = vpop.f32.mrb[119].mxu1 }
 0x728   : > { %v12212_v22 = vpop.f32.mrb[120].mxu1 }
 0x729   : > { %15389 = vst [vmem:[#allocation52_spill] sm:$0xff] %v12212_v22  ;;  %v5096_v14 = vpop.f32.mrb[121].mxu1 }
 0x72a   : > { %v12214_v44 = vpop.f32.mrb[122].mxu1 }
 0x72b   : > { %15390 = vst [vmem:[#allocation47_spill] sm:$0xff] %v12214_v44  ;;  %v5099_v56 = vpop.f32.mrb[123].mxu1 }
 0x72e   : > { %v3830_v27 = vpop.xlane.xlu0 %3829 }
 0x72f   : > { %8792 = vrcp.f32 %v3830_v27 }
 0x730   : > { %v12216_v58 = vpop.f32.mrb[124].mxu1 }
 0x731   : > { %15391 = vst [vmem:[#allocation48_spill] sm:$0xff] %v12216_v58  ;;  %v5104_v47 = vpop.f32.mrb[125].mxu1 }
 0x732   : > { %v12218_v37 = vpop.f32.mrb[126].mxu1  ;;  %v3833_v25 = vpop.xlane.xlu1 %3832 }
 0x733   : > { %15392 = vst [vmem:[#allocation108_spill] sm:$0xff] %v12218_v37  ;;  %v5107_v40 = vpop.f32.mrb[127].mxu1  ;;  %8794 = vrcp.f32 %v3833_v25 }
 0x735   : > { %v2750_v13 = vpop.xlane.xlu0 %2749 }
 0x736   : > { %v3060_v14 = vsub.f32 %v15203_v17, %v2750_v13  ;;  %v3061_v56 = vsub.f32 %v15204_v26, %v2750_v13 }
 0x738   : > { %v3460_v44 = vmul.f32 1.442695, %v3060_v14  ;;  %v3462_v58 = vmul.f32 1.442695, %v3061_v56 }
 0x739   : > { %v3836_v37 = vpop.xlane.xlu0 %3835  ;;  %v8793_v7 = vpop.eup %8792 }
 0x73a   : > { %v2753_v47 = vpop.xlane.xlu1 %2752  ;;  %8796 = vpow2.f32 %v3460_v44  ;;  %v4244_v4 = vmul.f32 %v8793_v7, %v3830_v27 }
 0x73b   : > { %v3062_v22 = vsub.f32 %v15212_v63, %v2753_v47  ;;  %v3063_v5 = vsub.f32 %v15213_v16, %v2753_v47  ;;  %8798 = vpow2.f32 %v3462_v58 }
 0x73c   : > { %8800 = vrcp.f32 %v3836_v37  ;;  %v4372_v51 = vsub.f32 2.0, %v4244_v4 }
 0x73d   : > { %v3464_v49 = vmul.f32 1.442695, %v3062_v22  ;;  %v3466_v40 = vmul.f32 1.442695, %v3063_v5  ;;  %v8795_v63 = vpop.eup %8794 }
 0x73e   : > { %v3839_v62 = vpop.xlane.xlu1 %3838  ;;  %v4245_v16 = vmul.f32 %v8795_v63, %v3833_v25  ;;  %v4500_v58 = vmul.f32 %v8793_v7, %v4372_v51  ;;  %v15395_v7 = vld [vmem:[#allocation196_spill] sm:$0xff] }
 0x73f   : > { %8802 = vpow2.f32 %v3464_v49 }
 0x740   : > { %v2756_v17 = vpop.xlane.xlu0 %2755  ;;  %8804 = vpow2.f32 %v3466_v40  ;;  %v4373_v47 = vsub.f32 2.0, %v4245_v16 }
 0x741   : > { %v3064_v26 = vsub.f32 %v15222_v10, %v2756_v17  ;;  %v3065_v13 = vsub.f32 %v15223_v2, %v2756_v17  ;;  %8806 = vrcp.f32 %v3839_v62 }
 0x742   : > { %v4501_v2 = vmul.f32 %v8795_v63, %v4373_v47 }
 0x743   : > { %v3468_v14 = vmul.f32 1.442695, %v3064_v26  ;;  %v3470_v44 = vmul.f32 1.442695, %v3065_v13  ;;  %v2759_v56 = vpop.xlane.xlu1 %2758 }
 0x744   : > { %v3066_v5 = vsub.f32 %v15231_v3, %v2759_v56  ;;  %v3067_v22 = vsub.f32 %v15232_v12, %v2759_v56  ;;  %v3842_v27 = vpop.xlane.xlu0 %3841  ;;  %v12228_v10 = vpop.eup %8796  ;;  %v4677_v3 = vmul.f32 %v15395_v7, %v4500_v58 }
 0x745   : > { %8808 = vpow2.f32 %v3468_v14  ;;  %15393 = vst [vmem:[#allocation106_spill] sm:$0xff] %v12228_v10  ;;  %v12232_v25 = vpop.eup %8798  ;;  %v4679_v14 = vmul.f32 %v11781_v9, %v4501_v2 }
 0x746   : > { %8810 = vpow2.f32 %v3470_v44  ;;  %v3472_v49 = vmul.f32 1.442695, %v3066_v5  ;;  %v3474_v40 = vmul.f32 1.442695, %v3067_v22  ;;  %15394 = vst [vmem:[#allocation141_spill] sm:$0xff] %v12232_v25  ;;  %v8801_v17 = vpop.eup %8800  ;;  %v3900_v13 = vadd.f32 %v12232_v25, %v12228_v10  ;;  %v15397_v44 = vld [vmem:[#allocation199_spill] sm:$0xff] }
 0x747   : > { %8812 = vrcp.f32 %v3842_v27  ;;  %v12230_v4 = vpop.xlane.xlu1 %3844  ;;  %v4246_v63 = vmul.f32 %v8801_v17, %v3836_v37  ;;  %v4678_v56 = vmul.f32 %v15397_v44, %v4501_v2  ;;  %v4885_v10 = vpack.c.bf16 %v4679_v14, %v4677_v3  ;;  %v15403_v3 = vld [vmem:[#allocation125_spill] sm:$0xff] }
 0x748   : > { %8814 = vpow2.f32 %v3472_v49  ;;  %v2762_v51 = vpop.xlane.xlu0 %2761  ;;  %3901 = vadd.xlane.f32.xlu0 %v3900_v13 }
 0x749   : > { %8816 = vpow2.f32 %v3474_v40  ;;  %v3068_v12 = vsub.f32 %v15238_v43, %v2762_v51  ;;  %v3069_v26 = vsub.f32 %v15239_v57, %v2762_v51  ;;  %v12239_v16 = vpop.eup %8802  ;;  %v15399_v43 = vld [vmem:[#allocation194_spill] sm:$0xff]  ;;  %v4374_v51 = vsub.f32 2.0, %v4246_v63  ;;  %5204 = vmatprep.mubr.bf16.mxu1 %v4885_v10 }
 0x74a   : > { %15396 = vst [vmem:[#allocation142_spill] sm:$0xff] %v12239_v16  ;;  %8818 = vrcp.f32 %v12230_v4  ;;  %v12244_v5 = vpop.eup %8804  ;;  %v4676_v57 = vmul.f32 %v15399_v43, %v4500_v58 }
 0x74b   : > { %15398 = vst [vmem:[#allocation112_spill] sm:$0xff] %v12244_v5  ;;  %v3476_v22 = vmul.f32 1.442695, %v3068_v12  ;;  %v3478_v47 = vmul.f32 1.442695, %v3069_v26  ;;  %v2765_v49 = vpop.xlane.xlu1 %2764  ;;  %v8807_v40 = vpop.eup %8806  ;;  %v3903_v2 = vadd.f32 %v12244_v5, %v12239_v16  ;;  %v4502_v26 = vmul.f32 %v8801_v17, %v4374_v51 }
 0x74c   : > { %v3070_v7 = vsub.f32 %v15245_v19, %v2765_v49  ;;  %v3071_v37 = vsub.f32 %v15246_v6, %v2765_v49  ;;  %v12249_v25 = vpop.xlane.xlu0 %3847  ;;  %v4247_v9 = vmul.f32 %v8807_v40, %v3839_v62  ;;  %v4884_v12 = vpack.c.bf16 %v4678_v56, %v4676_v57  ;;  %v15402_v62 = vld [vmem:[#allocation70_spill] sm:$0xff]  ;;  %v15405_v56 = vld [vmem:[#allocation200_spill] sm:$0xff] }
 0x74d   : > { %8820 = vpow2.f32 %v3476_v22  ;;  %3904 = vadd.xlane.f32.xlu1 %v3903_v2  ;;  %v15404_v14 = vmax.f32 %v15402_v62, %v15403_v3  ;;  %v4681_v22 = vmul.f32 %v15405_v56, %v4502_v26 }
 0x74e   : > { %8822 = vpow2.f32 %v3478_v47  ;;  %v3480_v13 = vmul.f32 1.442695, %v3070_v7  ;;  %v3482_v44 = vmul.f32 1.442695, %v3071_v37  ;;  %v4375_v63 = vsub.f32 2.0, %v4247_v9  ;;  %5205 = vmatmul.mubr.bf16.gmra.mrb[176].mxu1 %v4884_v12  ;;  %v15407_v37 = vld [vmem:[#allocation162_spill] sm:$0xff] }
 0x74f   : > { %v12253_v58 = vpop.eup %8808  ;;  %8824 = vrcp.f32 %v12249_v25  ;;  %v12256_v19 = vpop.xlane.xlu1 %3850  ;;  %2821 = vmax.xlane.f32.xlu0 %v15404_v14  ;;  %v4680_v9 = vmul.f32 %v15407_v37, %v4502_v26 }
 0x750   : > { %15400 = vst [vmem:[#allocation86_spill] sm:$0xff] %v12253_v58  ;;  %v12258_v6 = vpop.eup %8810  ;;  %8826 = vpow2.f32 %v3480_v13  ;;  %v2768_v17 = vpop.xlane.xlu0 %2767  ;;  %v4503_v47 = vmul.f32 %v8807_v40, %v4375_v63  ;;  %v15409_v40 = vld [vmem:[#allocation99_spill] sm:$0xff] }
 0x751   : > { %15401 = vst [vmem:[#allocation72_spill] sm:$0xff] %v12258_v6  ;;  %v8813_v10 = vpop.eup %8812  ;;  %8828 = vpow2.f32 %v3482_v44  ;;  %v3072_v49 = vsub.f32 %v15252_v1, %v2768_v17  ;;  %v3073_v43 = vsub.f32 %v15253_v34, %v2768_v17  ;;  %v3906_v7 = vadd.f32 %v12258_v6, %v12253_v58  ;;  %v15410_v44 = vld [vmem:[#allocation85_spill] sm:$0xff]  ;;  %v15413_v17 = vld [vmem:[#allocation166_spill] sm:$0xff] }
 0x752   : > { %v12266_v57 = vpop.eup %8814  ;;  %v4248_v51 = vmul.f32 %v8813_v10, %v3842_v27  ;;  %8830 = vrcp.f32 %v12256_v19  ;;  %v15411_v63 = vmax.f32 %v15409_v40, %v15410_v44  ;;  %v15412_v34 = vld [vmem:[#allocation165_spill] sm:$0xff]  ;;  %v4682_v27 = vmul.f32 %v15413_v17, %v4503_v47 }
 0x753   : > { %15406 = vst [vmem:[#allocation116_spill] sm:$0xff] %v12266_v57  ;;  %v12272_v2 = vpop.eup %8816  ;;  %v3484_v12 = vmul.f32 1.442695, %v3072_v49  ;;  %v3486_v13 = vmul.f32 1.442695, %v3073_v43  ;;  %v2771_v1 = vpop.xlane.xlu1 %2770  ;;  %v4683_v14 = vmul.f32 %v15412_v34, %v4503_v47  ;;  %3907 = vadd.xlane.f32.xlu0 %v3906_v7 }
 0x754   : > { %15408 = vst [vmem:[#allocation78_spill] sm:$0xff] %v12272_v2  ;;  %2824 = vmax.xlane.f32.xlu1 %v15411_v63  ;;  %v8819_v56 = vpop.eup %8818  ;;  %v4376_v16 = vsub.f32 2.0, %v4248_v51  ;;  %v3074_v5 = vsub.f32 %v15259_v24, %v2771_v1  ;;  %v3075_v58 = vsub.f32 %v15260_v48, %v2771_v1  ;;  %v12281_v26 = vpop.xlane.xlu0 %3853  ;;  %v3909_v49 = vadd.f32 %v12272_v2, %v12266_v57 }
 0x755   : > { %v4249_v43 = vmul.f32 %v8819_v56, %v12230_v4  ;;  %8832 = vpow2.f32 %v3484_v12  ;;  %v4887_v37 = vpack.c.bf16 %v4683_v14, %v4681_v22  ;;  %v4886_v63 = vpack.c.bf16 %v4682_v27, %v4680_v9  ;;  %v15416_v4 = vld [vmem:[#allocation104_spill] sm:$0xff]  ;;  %v15417_v22 = vld [vmem:[#allocation75_spill] sm:$0xff] }
 0x756   : > { %v4504_v34 = vmul.f32 %v8813_v10, %v4376_v16  ;;  %8834 = vpow2.f32 %v3486_v13  ;;  %v3488_v47 = vmul.f32 1.442695, %v3074_v5  ;;  %v3490_v17 = vmul.f32 1.442695, %v3075_v58  ;;  %v15419_v5 = vld [vmem:[#allocation100_spill] sm:$0xff] }
 0x757   : > { %v12286_v51 = vpop.eup %8820  ;;  %v4377_v24 = vsub.f32 2.0, %v4249_v43  ;;  %5212 = vmatprep.mubr.bf16.mxu1 %v4887_v37  ;;  %8836 = vrcp.f32 %v12281_v26  ;;  %v12289_v48 = vpop.xlane.xlu1 %3856  ;;  %v15418_v9 = vmax.f32 %v15416_v4, %v15417_v22  ;;  %v15421_v43 = vld [vmem:[#allocation145_spill] sm:$0xff] }
 0x758   : > { %15414 = vst [vmem:[#allocation49_spill] sm:$0xff] %v12286_v51  ;;  %3910 = vadd.xlane.f32.xlu1 %v3909_v49  ;;  %v12291_v7 = vpop.eup %8822  ;;  %8838 = vpow2.f32 %v3488_v47  ;;  %5213 = vmatmul.mubr.bf16.gmra.mrb[180].mxu1 %v4886_v63  ;;  %v2774_v16 = vpop.xlane.xlu0 %2773  ;;  %v4685_v58 = vmul.f32 %v15419_v5, %v4504_v34  ;;  %v4684_v37 = vmul.f32 %v15421_v43, %v4504_v34  ;;  %v15427_v5 = vld [vmem:[#allocation147_spill] sm:$0xff] }
 0x759   : > { %15415 = vst [vmem:[#allocation111_spill] sm:$0xff] %v12291_v7  ;;  %2827 = vmax.xlane.f32.xlu0 %v15418_v9  ;;  %v8825_v10 = vpop.eup %8824  ;;  %v4505_v12 = vmul.f32 %v8819_v56, %v4377_v24  ;;  %8840 = vpow2.f32 %v3490_v17  ;;  %v3076_v13 = vsub.f32 %v15266_v42, %v2774_v16  ;;  %v3077_v1 = vsub.f32 %v15267_v50, %v2774_v16  ;;  %v15423_v17 = vld [vmem:[#allocation128_spill] sm:$0xff]  ;;  %v15424_v24 = vld [vmem:[#allocation130_spill] sm:$0xff]  ;;  %v15426_v9 = vld [vmem:[#allocation169_spill] sm:$0xff] }
 0x75a   : > { %v12299_v14 = vpop.eup %8826  ;;  %v4250_v27 = vmul.f32 %v8825_v10, %v12249_v25  ;;  %8842 = vrcp.f32 %v12289_v48  ;;  %v3912_v49 = vadd.f32 %v12291_v7, %v12286_v51  ;;  %v15425_v42 = vmax.f32 %v15423_v17, %v15424_v24 }
 0x75b   : > { %15420 = vst [vmem:[#allocation132_spill] sm:$0xff] %v12299_v14  ;;  %v12306_v63 = vpop.eup %8828  ;;  %v3492_v47 = vmul.f32 1.442695, %v3076_v13  ;;  %v3494_v56 = vmul.f32 1.442695, %v3077_v1  ;;  %v2777_v50 = vpop.xlane.xlu1 %2776  ;;  %v4687_v16 = vmul.f32 %v15426_v9, %v4505_v12  ;;  %v4686_v25 = vmul.f32 %v15427_v5, %v4505_v12 }
 0x75c   : > { %15422 = vst [vmem:[#allocation117_spill] sm:$0xff] %v12306_v63  ;;  %2830 = vmax.xlane.f32.xlu1 %v15425_v42  ;;  %v8831_v57 = vpop.eup %8830  ;;  %v4378_v2 = vsub.f32 2.0, %v4250_v27  ;;  %v3078_v6 = vsub.f32 %v15273_v39, %v2777_v50  ;;  %v3079_v51 = vsub.f32 %v15274_v33, %v2777_v50  ;;  %v12315_v34 = vpop.xlane.xlu0 %3859  ;;  %v3915_v13 = vadd.f32 %v12306_v63, %v12299_v14 }
 0x75d   : > { %3913 = vadd.xlane.f32.xlu0 %v3912_v49  ;;  %v4251_v1 = vmul.f32 %v8831_v57, %v12256_v19  ;;  %8844 = vpow2.f32 %v3492_v47  ;;  %v4889_v43 = vpack.c.bf16 %v4687_v16, %v4685_v58  ;;  %v4888_v42 = vpack.c.bf16 %v4686_v25, %v4684_v37  ;;  %v15430_v19 = vld [vmem:[#allocation60_spill] sm:$0xff]  ;;  %v15431_v58 = vld [vmem:[#allocation131_spill] sm:$0xff] }
 0x75e   : > { %v4506_v9 = vmul.f32 %v8825_v10, %v4378_v2  ;;  %8846 = vpow2.f32 %v3494_v56  ;;  %v3496_v12 = vmul.f32 1.442695, %v3078_v6  ;;  %v3498_v5 = vmul.f32 1.442695, %v3079_v51  ;;  %v15433_v6 = vld [vmem:[#allocation148_spill] sm:$0xff] }
 0x75f   : > { %v12320_v27 = vpop.eup %8832  ;;  %v4379_v39 = vsub.f32 2.0, %v4251_v1  ;;  %5220 = vmatprep.mubr.bf16.mxu1 %v4889_v43  ;;  %8848 = vrcp.f32 %v12315_v34  ;;  %v12323_v33 = vpop.xlane.xlu1 %3862  ;;  %v15432_v37 = vmax.f32 %v15430_v19, %v15431_v58  ;;  %v15435_v1 = vld [vmem:[#allocation168_spill] sm:$0xff] }
 0x760   : > { %15428 = vst [vmem:[#allocation88_spill] sm:$0xff] %v12320_v27  ;;  %3916 = vadd.xlane.f32.xlu1 %v3915_v13  ;;  %v12325_v49 = vpop.eup %8834  ;;  %8850 = vpow2.f32 %v3496_v12  ;;  %5221 = vmatmul.mubr.bf16.gmra.mrb[184].mxu1 %v4888_v42  ;;  %v2780_v2 = vpop.xlane.xlu0 %2779  ;;  %v4689_v51 = vmul.f32 %v15433_v6, %v4506_v9  ;;  %v4688_v43 = vmul.f32 %v15435_v1, %v4506_v9  ;;  %v15441_v6 = vld [vmem:[#allocation149_spill] sm:$0xff] }
 0x761   : > { %15429 = vst [vmem:[#allocation89_spill] sm:$0xff] %v12325_v49  ;;  %2833 = vmax.xlane.f32.xlu0 %v15432_v37  ;;  %v8837_v10 = vpop.eup %8836  ;;  %v4507_v47 = vmul.f32 %v8831_v57, %v4379_v39  ;;  %8852 = vpow2.f32 %v3498_v5  ;;  %v3080_v56 = vsub.f32 %v15280_v53, %v2780_v2  ;;  %v3081_v50 = vsub.f32 %v15281_v20, %v2780_v2  ;;  %v15437_v5 = vld [vmem:[#allocation79_spill] sm:$0xff]  ;;  %v15438_v39 = vld [vmem:[#allocation109_spill] sm:$0xff] }
 0x762   : > { %v12333_v16 = vpop.eup %8838  ;;  %v4252_v25 = vmul.f32 %v8837_v10, %v12281_v26  ;;  %8854 = vrcp.f32 %v12323_v33  ;;  %v3918_v13 = vadd.f32 %v12325_v49, %v12320_v27  ;;  %v15439_v53 = vmax.f32 %v15437_v5, %v15438_v39  ;;  %v15440_v37 = vld [vmem:[#allocation121_spill] sm:$0xff]  ;;  %v15442_v27 = vld [vmem:[#allocation164_spill] sm:$0xff] }
 0x763   : > { %15434 = vst [vmem:[#allocation77_spill] sm:$0xff] %v12333_v16  ;;  %v12340_v42 = vpop.eup %8840  ;;  %v3500_v12 = vmul.f32 1.442695, %v3080_v56  ;;  %v3502_v57 = vmul.f32 1.442695, %v3081_v50  ;;  %v4691_v2 = vmul.f32 %v15440_v37, %v4507_v47  ;;  %v4690_v26 = vmul.f32 %v15441_v6, %v4507_v47 }
 0x764   : > { %15436 = vst [vmem:[#allocation135_spill] sm:$0xff] %v12340_v42  ;;  %2836 = vmax.xlane.f32.xlu1 %v15439_v53  ;;  %v2783_v20 = vpop.xlane.xlu1 %2782  ;;  %v8843_v14 = vpop.eup %8842  ;;  %v4380_v63 = vsub.f32 2.0, %v4252_v25  ;;  %v3921_v56 = vadd.f32 %v12340_v42, %v12333_v16 }
 0x765   : > { %v3082_v7 = vsub.f32 %v15287_v54, %v2783_v20  ;;  %v3083_v49 = vsub.f32 %v15442_v27, %v2783_v20  ;;  %3919 = vadd.xlane.f32.xlu0 %v3918_v13  ;;  %v12349_v9 = vpop.xlane.xlu0 %3865  ;;  %v4253_v50 = vmul.f32 %v8843_v14, %v12289_v48  ;;  %8856 = vpow2.f32 %v3500_v12  ;;  %v15445_v48 = vld [vmem:[#allocation54_spill] sm:$0xff] }
 0x766   : > { %v4891_v1 = vpack.c.bf16 %v4691_v2, %v4689_v51  ;;  %v4890_v53 = vpack.c.bf16 %v4690_v26, %v4688_v43  ;;  %v4508_v37 = vmul.f32 %v8837_v10, %v4380_v63  ;;  %8858 = vpow2.f32 %v3502_v57  ;;  %v15446_v51 = vld [vmem:[#allocation113_spill] sm:$0xff] }
 0x767   : > { %v3504_v47 = vmul.f32 1.442695, %v3082_v7  ;;  %v3506_v6 = vmul.f32 1.442695, %v3083_v49  ;;  %v12354_v25 = vpop.eup %8844  ;;  %v4381_v54 = vsub.f32 2.0, %v4253_v50  ;;  %8860 = vrcp.f32 %v12349_v9  ;;  %v15448_v7 = vld [vmem:[#allocation150_spill] sm:$0xff] }
 0x768   : > { %15443 = vst [vmem:[#allocation82_spill] sm:$0xff] %v12354_v25  ;;  %5228 = vmatprep.mubr.bf16.mxu1 %v4891_v1  ;;  %3922 = vadd.xlane.f32.xlu1 %v3921_v56  ;;  %v12357_v27 = vpop.xlane.xlu1 %3868  ;;  %v12359_v13 = vpop.eup %8846  ;;  %v15447_v43 = vmax.f32 %v15445_v48, %v15446_v51  ;;  %v4693_v49 = vmul.f32 %v15448_v7, %v4508_v37  ;;  %v15450_v50 = vld [vmem:[#allocation119_spill] sm:$0xff] }
 0x769   : > { %15444 = vst [vmem:[#allocation134_spill] sm:$0xff] %v12359_v13  ;;  %8862 = vpow2.f32 %v3504_v47  ;;  %5229 = vmatmul.mubr.bf16.gmra.mrb[188].mxu1 %v4890_v53  ;;  %v2786_v63 = vpop.xlane.xlu0 %2785  ;;  %v8849_v10 = vpop.eup %8848  ;;  %v4509_v12 = vmul.f32 %v8843_v14, %v4381_v54  ;;  %v3924_v56 = vadd.f32 %v12359_v13, %v12354_v25  ;;  %v4692_v1 = vmul.f32 %v15450_v50, %v4508_v37  ;;  %v15453_v54 = vld [vmem:[#allocation62_spill] sm:$0xff]  ;;  %v15456_v7 = vld [vmem:[#allocation151_spill] sm:$0xff] }
 0x76a   : > { %2839 = vmax.xlane.f32.xlu0 %v15447_v43  ;;  %8864 = vpow2.f32 %v3506_v6  ;;  %v3084_v57 = vsub.f32 %v15297_v21, %v2786_v63  ;;  %v3085_v20 = vsub.f32 %v15298_v36, %v2786_v63  ;;  %v12367_v2 = vpop.eup %8850  ;;  %v4254_v26 = vmul.f32 %v8849_v10, %v12315_v34  ;;  %v15452_v6 = vld [vmem:[#allocation115_spill] sm:$0xff]  ;;  %v15455_v43 = vld [vmem:[#allocation124_spill] sm:$0xff] }
 0x76b   : > { %15449 = vst [vmem:[#allocation136_spill] sm:$0xff] %v12367_v2  ;;  %8866 = vrcp.f32 %v12357_v27  ;;  %v12374_v53 = vpop.eup %8852  ;;  %v15454_v21 = vmax.f32 %v15452_v6, %v15453_v54  ;;  %v4695_v63 = vmul.f32 %v15455_v43, %v4509_v12  ;;  %v4694_v34 = vmul.f32 %v15456_v7, %v4509_v12 }
 0x76c   : > { %15451 = vst [vmem:[#allocation123_spill] sm:$0xff] %v12374_v53  ;;  %v3508_v47 = vmul.f32 1.442695, %v3084_v57  ;;  %v3510_v14 = vmul.f32 1.442695, %v3085_v20  ;;  %v2789_v36 = vpop.xlane.xlu1 %2788  ;;  %v8855_v16 = vpop.eup %8854  ;;  %v4382_v42 = vsub.f32 2.0, %v4254_v26  ;;  %v3927_v57 = vadd.f32 %v12374_v53, %v12367_v2 }
 0x76d   : > { %2842 = vmax.xlane.f32.xlu1 %v15454_v21  ;;  %v3086_v51 = vsub.f32 %v15304_v11, %v2789_v36  ;;  %v3087_v25 = vsub.f32 %v15305_v18, %v2789_v36  ;;  %v12383_v37 = vpop.xlane.xlu0 %3871  ;;  %v4255_v20 = vmul.f32 %v8855_v16, %v12323_v33  ;;  %v4893_v50 = vpack.c.bf16 %v4695_v63, %v4693_v49  ;;  %v15459_v33 = vld [vmem:[#allocation56_spill] sm:$0xff]  ;;  %v15460_v49 = vld [vmem:[#allocation81_spill] sm:$0xff] }
 0x76e   : > { %3925 = vadd.xlane.f32.xlu0 %v3924_v56  ;;  %8868 = vpow2.f32 %v3508_v47  ;;  %v4892_v21 = vpack.c.bf16 %v4694_v34, %v4692_v1  ;;  %v4510_v43 = vmul.f32 %v8849_v10, %v4382_v42  ;;  %v15461_v1 = vmax.f32 %v15459_v33, %v15460_v49 }
 0x76f   : > { %8870 = vpow2.f32 %v3510_v14  ;;  %v3512_v12 = vmul.f32 1.442695, %v3086_v51  ;;  %v3514_v7 = vmul.f32 1.442695, %v3087_v25  ;;  %v12388_v26 = vpop.eup %8856  ;;  %v4383_v11 = vsub.f32 2.0, %v4255_v20  ;;  %5236 = vmatprep.mubr.bf16.mxu1 %v4893_v50  ;;  %v15462_v51 = vld [vmem:[#allocation152_spill] sm:$0xff] }
 0x770   : > { %15457 = vst [vmem:[#allocation122_spill] sm:$0xff] %v12388_v26  ;;  %8872 = vrcp.f32 %v12383_v37  ;;  %v12391_v18 = vpop.xlane.xlu1 %3874  ;;  %v12393_v56 = vpop.eup %8858  ;;  %v4697_v25 = vmul.f32 %v15462_v51, %v4510_v43  ;;  %v15464_v20 = vld [vmem:[#allocation67_spill] sm:$0xff]  ;;  %v15470_v51 = vld [vmem:[#allocation153_spill] sm:$0xff] }
 0x771   : > { %3928 = vadd.xlane.f32.xlu1 %v3927_v57  ;;  %15458 = vst [vmem:[#allocation92_spill] sm:$0xff] %v12393_v56  ;;  %8874 = vpow2.f32 %v3512_v12  ;;  %5237 = vmatmul.mubr.bf16.gmra.mrb[192].mxu1 %v4892_v21  ;;  %v8861_v10 = vpop.eup %8860  ;;  %v4511_v47 = vmul.f32 %v8855_v16, %v4383_v11  ;;  %v3930_v57 = vadd.f32 %v12393_v56, %v12388_v26  ;;  %v15467_v11 = vld [vmem:[#allocation64_spill] sm:$0xff] }
 0x772   : > { %2845 = vmax.xlane.f32.xlu0 %v15461_v1  ;;  %v2792_v42 = vpop.xlane.xlu0 %2791  ;;  %8876 = vpow2.f32 %v3514_v7  ;;  %v4256_v34 = vmul.f32 %v8861_v10, %v12349_v9  ;;  %v4696_v50 = vmul.f32 %v15464_v20, %v4510_v43  ;;  %v15466_v7 = vld [vmem:[#allocation83_spill] sm:$0xff]  ;;  %v15469_v1 = vld [vmem:[#allocation105_spill] sm:$0xff] }
 0x773   : > { %v3088_v14 = vsub.f32 %v15312_v52, %v2792_v42  ;;  %v3089_v36 = vsub.f32 %v15313_v59, %v2792_v42  ;;  %v12401_v63 = vpop.eup %8862  ;;  %8878 = vrcp.f32 %v12391_v18  ;;  %v15468_v52 = vmax.f32 %v15466_v7, %v15467_v11 }
 0x774   : > { %15463 = vst [vmem:[#allocation196_spill] sm:$0xff] %v12401_v63  ;;  %v12408_v21 = vpop.eup %8864  ;;  %v4699_v42 = vmul.f32 %v15469_v1, %v4511_v47  ;;  %v4698_v9 = vmul.f32 %v15470_v51, %v4511_v47  ;;  %v4384_v53 = vsub.f32 2.0, %v4256_v34 }
 0x775   : > { %15465 = vst [vmem:[#allocation199_spill] sm:$0xff] %v12408_v21  ;;  %v3516_v12 = vmul.f32 1.442695, %v3088_v14  ;;  %v3518_v16 = vmul.f32 1.442695, %v3089_v36  ;;  %2848 = vmax.xlane.f32.xlu1 %v15468_v52  ;;  %v2795_v59 = vpop.xlane.xlu1 %2794  ;;  %v8867_v2 = vpop.eup %8866  ;;  %v3933_v14 = vadd.f32 %v12408_v21, %v12401_v63  ;;  %v15485_v63 = vld [vmem:[#allocation155_spill] sm:$0xff] }
 0x776   : > { %v3090_v13 = vsub.f32 %v15320_v41, %v2795_v59  ;;  %v3091_v26 = vsub.f32 %v15321_v35, %v2795_v59  ;;  %3931 = vadd.xlane.f32.xlu0 %v3930_v57  ;;  %v12417_v43 = vpop.xlane.xlu0 %3877  ;;  %v4257_v36 = vmul.f32 %v8867_v2, %v12357_v27  ;;  %v4895_v20 = vpack.c.bf16 %v4699_v42, %v4697_v25  ;;  %v15473_v27 = vld [vmem:[#allocation137_spill] sm:$0xff]  ;;  %v15474_v25 = vld [vmem:[#allocation138_spill] sm:$0xff]  ;;  %v15477_v59 = vld [vmem:[#allocation59_spill] sm:$0xff] }
 0x777   : > { %8880 = vpow2.f32 %v3516_v12  ;;  %v4894_v52 = vpack.c.bf16 %v4698_v9, %v4696_v50  ;;  %v4512_v1 = vmul.f32 %v8861_v10, %v4384_v53  ;;  %v15475_v50 = vmax.f32 %v15473_v27, %v15474_v25 }
 0x778   : > { %8882 = vpow2.f32 %v3518_v16  ;;  %v3520_v47 = vmul.f32 1.442695, %v3090_v13  ;;  %v3522_v51 = vmul.f32 1.442695, %v3091_v26  ;;  %v12422_v34 = vpop.eup %8868  ;;  %v4385_v41 = vsub.f32 2.0, %v4257_v36  ;;  %5244 = vmatprep.mubr.bf16.mxu1 %v4895_v20  ;;  %v15476_v13 = vld [vmem:[#allocation154_spill] sm:$0xff] }
 0x779   : > { %15471 = vst [vmem:[#allocation194_spill] sm:$0xff] %v12422_v34  ;;  %8884 = vrcp.f32 %v12417_v43  ;;  %3934 = vadd.xlane.f32.xlu1 %v3933_v14  ;;  %v12425_v35 = vpop.xlane.xlu1 %3880  ;;  %v12427_v57 = vpop.eup %8870  ;;  %5245 = vmatmul.mubr.bf16.gmra.mrb[196].mxu1 %v4894_v52  ;;  %v4701_v26 = vmul.f32 %v15476_v13, %v4512_v1  ;;  %v15479_v20 = vld [vmem:[#allocation107_spill] sm:$0xff]  ;;  %v15484_v13 = vld [vmem:[#allocation84_spill] sm:$0xff] }
 0x77a   : > { %15472 = vst [vmem:[#allocation70_spill] sm:$0xff] %v12427_v57  ;;  %8886 = vpow2.f32 %v3520_v47  ;;  %2851 = vmax.xlane.f32.xlu0 %v15475_v50  ;;  %v2798_v53 = vpop.xlane.xlu0 %2797  ;;  %v8873_v10 = vpop.eup %8872  ;;  %v4513_v12 = vmul.f32 %v8867_v2, %v4385_v41  ;;  %v3936_v36 = vadd.f32 %v12427_v57, %v12422_v34  ;;  %v4700_v52 = vmul.f32 %v15479_v20, %v4512_v1  ;;  %v15482_v41 = vld [vmem:[#allocation126_spill] sm:$0xff] }
 0x77b   : > { %8888 = vpow2.f32 %v3522_v51  ;;  %v3092_v16 = vsub.f32 %v15328_v31, %v2798_v53  ;;  %v3093_v42 = vsub.f32 %v15477_v59, %v2798_v53  ;;  %v12435_v9 = vpop.eup %8874  ;;  %v4258_v14 = vmul.f32 %v8873_v10, %v12383_v37  ;;  %v15481_v51 = vld [vmem:[#allocation139_spill] sm:$0xff]  ;;  %v15486_v34 = vld [vmem:[#allocation110_spill] sm:$0xff] }
 0x77c   : > { %15478 = vst [vmem:[#allocation125_spill] sm:$0xff] %v12435_v9  ;;  %8890 = vrcp.f32 %v12425_v35  ;;  %v12442_v47 = vpop.eup %8876  ;;  %v15483_v31 = vmax.f32 %v15481_v51, %v15482_v41  ;;  %v4703_v59 = vmul.f32 %v15484_v13, %v4513_v12  ;;  %v4702_v37 = vmul.f32 %v15485_v63, %v4513_v12 }
 0x77d   : > { %15480 = vst [vmem:[#allocation200_spill] sm:$0xff] %v12442_v47  ;;  %v3524_v50 = vmul.f32 1.442695, %v3092_v16  ;;  %v3526_v2 = vmul.f32 1.442695, %v3093_v42  ;;  %v2801_v53 = vpop.xlane.xlu1 %2800  ;;  %v8879_v21 = vpop.eup %8878  ;;  %v4386_v56 = vsub.f32 2.0, %v4258_v14  ;;  %v3939_v16 = vadd.f32 %v12442_v47, %v12435_v9 }
 0x77e   : > { %2854 = vmax.xlane.f32.xlu1 %v15483_v31  ;;  %v3094_v25 = vsub.f32 %v15334_v32, %v2801_v53  ;;  %v3095_v57 = vsub.f32 %v15486_v34, %v2801_v53  ;;  %3937 = vadd.xlane.f32.xlu0 %v3936_v36  ;;  %v12451_v1 = vpop.xlane.xlu0 %3883  ;;  %v4259_v42 = vmul.f32 %v8879_v21, %v12391_v18  ;;  %v12456_v31 = vpop.f32.mrb[128].mxu1 }
 0x77f   : > { %8892 = vpow2.f32 %v3524_v50  ;;  %v4897_v20 = vpack.c.bf16 %v4703_v59, %v4701_v26  ;;  %15487 = vst [vmem:[#allocation162_spill] sm:$0xff] %v12456_v31  ;;  %v4896_v13 = vpack.c.bf16 %v4702_v37, %v4700_v52  ;;  %v4514_v63 = vmul.f32 %v8873_v10, %v4386_v56  ;;  %v5112_v32 = vpop.f32.mrb[129].mxu1  ;;  %v15491_v56 = vld [vmem:[#allocation129_spill] sm:$0xff]  ;;  %v15492_v10 = vld [vmem:[#allocation58_spill] sm:$0xff] }
 0x780   : > { %8894 = vpow2.f32 %v3526_v2  ;;  %v3528_v12 = vmul.f32 1.442695, %v3094_v25  ;;  %v3530_v14 = vmul.f32 1.442695, %v3095_v57  ;;  %v4387_v34 = vsub.f32 2.0, %v4259_v42  ;;  %v12463_v18 = vpop.f32.mrb[130].mxu1 }
 0x781   : > { %v12458_v41 = vpop.eup %8880  ;;  %5252 = vmatprep.mubr.bf16.mxu1 %v4897_v20  ;;  %8896 = vrcp.f32 %v12451_v1  ;;  %v12461_v36 = vpop.xlane.xlu1 %3886  ;;  %15489 = vst [vmem:[#allocation85_spill] sm:$0xff] %v12463_v18  ;;  %v15493_v25 = vmax.f32 %v15491_v56, %v15492_v10  ;;  %v15494_v50 = vld [vmem:[#allocation114_spill] sm:$0xff]  ;;  %v15502_v18 = vld [vmem:[#allocation44_spill] sm:$0xff] }
 0x782   : > { %15488 = vst [vmem:[#allocation99_spill] sm:$0xff] %v12458_v41  ;;  %3940 = vadd.xlane.f32.xlu1 %v3939_v16  ;;  %v12465_v26 = vpop.eup %8882  ;;  %8898 = vpow2.f32 %v3528_v12  ;;  %5253 = vmatmul.mubr.bf16.gmra.mrb[200].mxu1 %v4896_v13  ;;  %v5115_v57 = vpop.f32.mrb[131].mxu1  ;;  %v4705_v2 = vmul.f32 %v15494_v50, %v4514_v63  ;;  %v4515_v59 = vmul.f32 %v8879_v21, %v4387_v34  ;;  %v15496_v12 = vld [vmem:[#allocation156_spill] sm:$0xff]  ;;  %v15499_v34 = vld [vmem:[#allocation65_spill] sm:$0xff] }
 0x783   : > { %15490 = vst [vmem:[#allocation165_spill] sm:$0xff] %v12465_v26  ;;  %2857 = vmax.xlane.f32.xlu0 %v15493_v25  ;;  %v2804_v52 = vpop.xlane.xlu0 %2803  ;;  %v8885_v53 = vpop.eup %8884  ;;  %8900 = vpow2.f32 %v3530_v14  ;;  %v3942_v13 = vadd.f32 %v12465_v26, %v12458_v41  ;;  %v4704_v32 = vmul.f32 %v15496_v12, %v4514_v63  ;;  %v15498_v14 = vld [vmem:[#allocation127_spill] sm:$0xff]  ;;  %v5752_v12 = vld [vmem:[#allocation2 + $0xa8] sm:$0xff] }
 0x784   : > { %v3096_v37 = vsub.f32 %v15344_v30, %v2804_v52  ;;  %v3097_v16 = vsub.f32 %v15345_v55, %v2804_v52  ;;  %v12473_v42 = vpop.eup %8886  ;;  %v4260_v20 = vmul.f32 %v8885_v53, %v12417_v43  ;;  %8902 = vrcp.f32 %v12461_v36  ;;  %v15501_v52 = vld [vmem:[#allocation158_spill] sm:$0xff] }
 0x785   : > { %15495 = vst [vmem:[#allocation166_spill] sm:$0xff] %v12473_v42  ;;  %v12480_v25 = vpop.eup %8888  ;;  %v15500_v30 = vmax.f32 %v15498_v14, %v15499_v34  ;;  %v2807_v55 = vpop.xlane.xlu1 %2806  ;;  %v4707_v50 = vmul.f32 %v15501_v52, %v4515_v59  ;;  %v4706_v43 = vmul.f32 %v15502_v18, %v4515_v59 }
 0x786   : > { %15497 = vst [vmem:[#allocation104_spill] sm:$0xff] %v12480_v25  ;;  %v3532_v57 = vmul.f32 1.442695, %v3096_v37  ;;  %v3534_v21 = vmul.f32 1.442695, %v3097_v16  ;;  %v8891_v31 = vpop.eup %8890  ;;  %v4388_v9 = vsub.f32 2.0, %v4260_v20  ;;  %v3098_v47 = vsub.f32 %v15350_v28, %v2807_v55 }
 0x787   : > { %2860 = vmax.xlane.f32.xlu1 %v15500_v30  ;;  %v3099_v41 = vsub.f32 %v15351_v15, %v2807_v55  ;;  %3943 = vadd.xlane.f32.xlu0 %v3942_v13  ;;  %v12489_v63 = vpop.xlane.xlu0 %3889  ;;  %v3945_v37 = vadd.f32 %v12480_v25, %v12473_v42  ;;  %v5751_v16 = vld [vmem:[#allocation2 + $0x78] sm:$0xff]  ;;  %v4261_v30 = vmul.f32 %v8891_v31, %v12425_v35  ;;  %v12494_v28 = vpop.f32.mrb[132].mxu1 }
 0x788   : > { %8904 = vpow2.f32 %v3532_v57  ;;  %v4899_v52 = vpack.c.bf16 %v4707_v50, %v4705_v2  ;;  %v4898_v26 = vpack.c.bf16 %v4706_v43, %v4704_v32  ;;  %v4516_v18 = vmul.f32 %v8885_v53, %v4388_v9  ;;  %15503 = vst [vmem:[#allocation75_spill] sm:$0xff] %v12494_v28  ;;  %v5120_v55 = vpop.f32.mrb[133].mxu1  ;;  %v15506_v9 = vld [vmem:[#allocation140_spill] sm:$0xff] }
 0x789   : > { %8906 = vpow2.f32 %v3534_v21  ;;  %v3536_v59 = vmul.f32 1.442695, %v3098_v47  ;;  %v3538_v20 = vmul.f32 1.442695, %v3099_v41  ;;  %v12496_v15 = vpop.eup %8892  ;;  %v4389_v13 = vsub.f32 2.0, %v4261_v30  ;;  %v12499_v42 = vpop.xlane.xlu1 %3892  ;;  %v15507_v47 = vld [vmem:[#allocation170_spill] sm:$0xff] }
 0x78a   : > { %15504 = vst [vmem:[#allocation100_spill] sm:$0xff] %v12496_v15  ;;  %5260 = vmatprep.mubr.bf16.mxu1 %v4899_v52  ;;  %8908 = vrcp.f32 %v12489_v63  ;;  %v8193_v35 = vpack.c.bf16 %v5752_v12, %v5751_v16  ;;  %v12501_v57 = vpop.eup %8894  ;;  %v15508_v41 = vmax.f32 %v15506_v9, %v15507_v47  ;;  %v12506_v2 = vpop.f32.mrb[134].mxu1 }
 0x78b   : > { %3946 = vadd.xlane.f32.xlu1 %v3945_v37  ;;  %15505 = vst [vmem:[#allocation145_spill] sm:$0xff] %v12501_v57  ;;  %8910 = vpow2.f32 %v3536_v59  ;;  %5261 = vmatmul.mubr.bf16.gmra.mrb[204].mxu1 %v4898_v26  ;;  %15509 = vst [vmem:[#allocation128_spill] sm:$0xff] %v12506_v2  ;;  %v2810_v53 = vpop.xlane.xlu0 %2809  ;;  %v8897_v32 = vpop.eup %8896  ;;  %v4517_v21 = vmul.f32 %v8891_v31, %v4389_v13  ;;  %v15510_v37 = vld [vmem:[#allocation63_spill] sm:$0xff]  ;;  %v3948_v52 = vadd.f32 %v12501_v57, %v12496_v15  ;;  %v15517_v2 = vld [vmem:[#allocation161_spill] sm:$0xff] }
 0x78c   : > { %2863 = vmax.xlane.f32.xlu0 %v15508_v41  ;;  %8912 = vpow2.f32 %v3538_v20  ;;  %v5123_v50 = vpop.f32.mrb[135].mxu1  ;;  %v3100_v43 = vsub.f32 %v15360_v38, %v2810_v53  ;;  %v4709_v30 = vmul.f32 %v15510_v37, %v4516_v18  ;;  %8194 = vmatprep.subr.bf16.mxu0 %v8193_v35  ;;  %v12510_v16 = vpop.eup %8898  ;;  %v4262_v26 = vmul.f32 %v8897_v32, %v12451_v1  ;;  %v15512_v20 = vld [vmem:[#allocation171_spill] sm:$0xff]  ;;  %v15513_v38 = vld [vmem:[#allocation172_spill] sm:$0xff]  ;;  %v15515_v41 = vld [vmem:[#allocation118_spill] sm:$0xff] }
 0x78d   : > { %8914 = vrcp.f32 %v12499_v42  ;;  %v3101_v12 = vsub.f32 %v15361_v61, %v2810_v53  ;;  %8196 = vmatpush3.bf16.msra.mxu0 %v8193_v35  ;;  %v12517_v31 = vpop.eup %8900  ;;  %v15514_v13 = vmax.f32 %v15512_v20, %v15513_v38  ;;  %v2813_v55 = vpop.xlane.xlu1 %2812  ;;  %v4711_v50 = vmul.f32 %v15515_v41, %v4517_v21  ;;  %v15516_v37 = vld [vmem:[#allocation159_spill] sm:$0xff] }
 0x78e   : > { %15511 = vst [vmem:[#allocation130_spill] sm:$0xff] %v12517_v31  ;;  %v3540_v59 = vmul.f32 1.442695, %v3100_v43  ;;  %v4708_v1 = vmul.f32 %v15516_v37, %v4516_v18  ;;  %v4710_v28 = vmul.f32 %v15517_v2, %v4517_v21  ;;  %v8903_v25 = vpop.eup %8902  ;;  %v4390_v61 = vsub.f32 2.0, %v4262_v26  ;;  %v12532_v26 = vpop.f32.mrb[136].mxu1 }
 0x78f   : > { %2866 = vmax.xlane.f32.xlu1 %v15514_v13  ;;  %v3542_v53 = vmul.f32 1.442695, %v3101_v12  ;;  %v3102_v57 = vsub.f32 %v15366_v23, %v2813_v55  ;;  %v3103_v35 = vsub.f32 %v15367_v29, %v2813_v55  ;;  %v12527_v43 = vpop.xlane.xlu0 %3895  ;;  %v4263_v15 = vmul.f32 %v8903_v25, %v12461_v36  ;;  %15518 = vst [vmem:[#allocation169_spill] sm:$0xff] %v12532_v26  ;;  %v5128_v36 = vpop.f32.mrb[137].mxu1 }
 0x790   : > { %3949 = vadd.xlane.f32.xlu0 %v3948_v52  ;;  %8916 = vpow2.f32 %v3540_v59  ;;  %v4901_v13 = vpack.c.bf16 %v4711_v50, %v4709_v30  ;;  %v3951_v41 = vadd.f32 %v12517_v31, %v12510_v16  ;;  %v4518_v18 = vmul.f32 %v8897_v32, %v4390_v61  ;;  %v15521_v32 = vld [vmem:[#allocation173_spill] sm:$0xff]  ;;  %v15522_v59 = vld [vmem:[#allocation174_spill] sm:$0xff]  ;;  %v12544_v55 = vpop.f32.mrb[138].mxu1 }
 0x791   : > { %8918 = vpow2.f32 %v3542_v53  ;;  %v3544_v2 = vmul.f32 1.442695, %v3102_v57  ;;  %v3546_v21 = vmul.f32 1.442695, %v3103_v35  ;;  %v4391_v23 = vsub.f32 2.0, %v4263_v15  ;;  %v12537_v52 = vpop.xlane.xlu1 %3898  ;;  %15524 = vst [vmem:[#allocation131_spill] sm:$0xff] %v12544_v55 }
 0x792   : > { %v12534_v12 = vpop.eup %8904  ;;  %5268 = vmatprep.mubr.bf16.mxu1 %v4901_v13  ;;  %8920 = vrcp.f32 %v12527_v43  ;;  %v4900_v29 = vpack.c.bf16 %v4710_v28, %v4708_v1  ;;  %v15523_v57 = vmax.f32 %v15521_v32, %v15522_v59  ;;  %v5131_v61 = vpop.f32.mrb[139].mxu1  ;;  %v15525_v1 = vld [vmem:[#allocation98_spill] sm:$0xff] }
 0x793   : > { %15519 = vst [vmem:[#allocation147_spill] sm:$0xff] %v12534_v12  ;;  %3952 = vadd.xlane.f32.xlu1 %v3951_v41  ;;  %v12539_v30 = vpop.eup %8906  ;;  %8922 = vpow2.f32 %v3544_v2  ;;  %v2816_v50 = vpop.xlane.xlu0 %2815  ;;  %v4519_v15 = vmul.f32 %v8903_v25, %v4391_v23  ;;  %v4713_v53 = vmul.f32 %v15525_v1, %v4518_v18  ;;  %v15529_v23 = vld [vmem:[#allocation176_spill] sm:$0xff]  ;;  %v15531_v61 = vld [vmem:[#allocation45_spill] sm:$0xff] }
 0x794   : > { %15520 = vst [vmem:[#allocation60_spill] sm:$0xff] %v12539_v30  ;;  %2869 = vmax.xlane.f32.xlu0 %v15523_v57  ;;  %v8909_v37 = vpop.eup %8908  ;;  %8924 = vpow2.f32 %v3546_v21  ;;  %5269 = vmatmul.mubr.bf16.gmra.mrb[208].mxu1 %v4900_v29  ;;  %v3104_v28 = vsub.f32 %v15374_v60, %v2816_v50  ;;  %v3105_v41 = vsub.f32 %v15375_v45, %v2816_v50  ;;  %v15528_v21 = vld [vmem:[#allocation175_spill] sm:$0xff] }
 0x795   : > { %v12548_v35 = vpop.eup %8910  ;;  %v4264_v13 = vmul.f32 %v8909_v37, %v12489_v63  ;;  %8926 = vrcp.f32 %v12537_v52  ;;  %v3954_v2 = vadd.f32 %v12539_v30, %v12534_v12  ;;  %v15530_v29 = vmax.f32 %v15528_v21, %v15529_v23  ;;  %v2819_v60 = vpop.xlane.xlu1 %2818  ;;  %v15532_v30 = vld [vmem:[#allocation80_spill] sm:$0xff] }
 0x796   : > { %15526 = vst [vmem:[#allocation148_spill] sm:$0xff] %v12548_v35  ;;  %v12555_v36 = vpop.eup %8912  ;;  %v3548_v25 = vmul.f32 1.442695, %v3104_v28  ;;  %v4715_v57 = vmul.f32 %v12120_v0, %v4519_v15  ;;  %v4712_v1 = vmul.f32 %v15531_v61, %v4518_v18  ;;  %v4714_v63 = vmul.f32 %v12113_v46, %v4519_v15  ;;  %v12568_v61 = vpop.f32.mrb[140].mxu1 }
 0x797   : > { %15527 = vst [vmem:[#allocation168_spill] sm:$0xff] %v12555_v36  ;;  %2872 = vmax.xlane.f32.xlu1 %v15530_v29  ;;  %v8915_v55 = vpop.eup %8914  ;;  %v4392_v26 = vsub.f32 2.0, %v4264_v13  ;;  %v3550_v45 = vmul.f32 1.442695, %v3105_v41  ;;  %v3106_v50 = vsub.f32 %v15378_v8, %v2819_v60  ;;  %v3107_v12 = vsub.f32 %v15532_v30, %v2819_v60  ;;  %15533 = vst [vmem:[#allocation79_spill] sm:$0xff] %v12568_v61  ;;  %v5136_v30 = vpop.f32.mrb[141].mxu1 }
 0x798   : > { %3955 = vadd.xlane.f32.xlu0 %v3954_v2  ;;  %v4265_v28 = vmul.f32 %v8915_v55, %v12499_v42  ;;  %8928 = vpow2.f32 %v3548_v25  ;;  %v4903_v31 = vpack.c.bf16 %v4715_v57, %v4713_v53  ;;  %v3957_v29 = vadd.f32 %v12555_v36, %v12548_v35  ;;  %v15536_v42 = vld [vmem:[#allocation177_spill] sm:$0xff]  ;;  %v15537_v53 = vld [vmem:[#allocation178_spill] sm:$0xff]  ;;  %v12577_v25 = vpop.f32.mrb[142].mxu1 }
 0x799   : > { %8930 = vpow2.f32 %v3550_v45  ;;  %v3552_v0 = vmul.f32 1.442695, %v3106_v50  ;;  %v3554_v18 = vmul.f32 1.442695, %v3107_v12  ;;  %v4520_v15 = vmul.f32 %v8909_v37, %v4392_v26  ;;  %15539 = vst [vmem:[#allocation149_spill] sm:$0xff] %v12577_v25  ;;  %v5139_v57 = vpop.f32.mrb[143].mxu1 }
 0x79a   : > { %v12570_v46 = vpop.eup %8916  ;;  %v4393_v13 = vsub.f32 2.0, %v4265_v28  ;;  %5276 = vmatprep.mubr.bf16.mxu1 %v4903_v31  ;;  %v4902_v8 = vpack.c.bf16 %v4714_v63, %v4712_v1  ;;  %v15538_v2 = vmax.f32 %v15536_v42, %v15537_v53  ;;  %v15542_v63 = vld [vmem:[#allocation179_spill] sm:$0xff]  ;;  %v15543_v45 = vld [vmem:[#allocation180_spill] sm:$0xff]  ;;  %v15545_v28 = vld [vmem:[#allocation46_spill] sm:$0xff] }
 0x79b   : > { %15534 = vst [vmem:[#allocation109_spill] sm:$0xff] %v12570_v46  ;;  %3958 = vadd.xlane.f32.xlu1 %v3957_v29  ;;  %v12572_v41 = vpop.eup %8918  ;;  %8932 = vpow2.f32 %v3552_v0  ;;  %v15544_v50 = vmax.f32 %v15542_v63, %v15543_v45  ;;  %v4717_v29 = vmul.f32 %v15545_v28, %v4520_v15  ;;  %v15546_v0 = vld [vmem:[#allocation102_spill] sm:$0xff]  ;;  %v15550_v28 = vld [vmem:[#allocation41_spill] sm:$0xff] }
 0x79c   : > { %15535 = vst [vmem:[#allocation121_spill] sm:$0xff] %v12572_v41  ;;  %2875 = vmax.xlane.f32.xlu0 %v15538_v2  ;;  %v8921_v12 = vpop.eup %8920  ;;  %v4521_v60 = vmul.f32 %v8915_v55, %v4393_v13  ;;  %8934 = vpow2.f32 %v3554_v18  ;;  %5277 = vmatmul.mubr.bf16.gmra.mrb[212].mxu1 %v4902_v8  ;;  %v3960_v31 = vadd.f32 %v12572_v41, %v12570_v46  ;;  %v15547_v18 = vld [vmem:[#allocation120_spill] sm:$0xff]  ;;  %v15548_v8 = vld [vmem:[#allocation133_spill] sm:$0xff] }
 0x79d   : > { %v12581_v26 = vpop.eup %8922  ;;  %v4266_v37 = vmul.f32 %v8921_v12, %v12527_v43  ;;  %v4716_v13 = vmul.f32 %v15547_v18, %v4520_v15 }
 0x79e   : > { %15540 = vst [vmem:[#allocation164_spill] sm:$0xff] %v12581_v26  ;;  %v12584_v1 = vpop.eup %8924  ;;  %v4719_v55 = vmul.f32 %v15546_v0, %v4521_v60  ;;  %v4718_v30 = vmul.f32 %v15548_v8, %v4521_v60  ;;  %v15551_v0 = vld [vmem:[#allocation61_spill] sm:$0xff]  ;;  %v15552_v60 = vld [vmem:[#allocation6_spill] sm:$0xff] }
 0x79f   : > { %15541 = vst [vmem:[#allocation54_spill] sm:$0xff] %v12584_v1  ;;  %2878 = vmax.xlane.f32.xlu1 %v15544_v50  ;;  %v8927_v2 = vpop.eup %8926  ;;  %v4394_v57 = vsub.f32 2.0, %v4266_v37  ;;  %v3963_v43 = vadd.f32 %v12584_v1, %v12581_v26  ;;  %v5142_v50 = vpop.f32.mrb[144].mxu1  ;;  %v5525_v35 = vmul.f32 %v15551_v0, %v15550_v28  ;;  %v15554_v8 = vld [vmem:[#allocation157_spill] sm:$0xff]  ;;  %v15564_v26 = vld [vmem:[#allocation184_spill] sm:$0xff] }
 0x7a0   : > { %3961 = vadd.xlane.f32.xlu0 %v3960_v31  ;;  %v4267_v25 = vmul.f32 %v8927_v2, %v12537_v52  ;;  %v4905_v61 = vpack.c.bf16 %v4719_v55, %v4717_v29  ;;  %v4904_v46 = vpack.c.bf16 %v4718_v30, %v4716_v13  ;;  %v5557_v37 = vmul.f32 %v5142_v50, %v15552_v60  ;;  %v5144_v31 = vpop.f32.mrb[145].mxu1  ;;  %v15555_v29 = vld [vmem:[#allocation181_spill] sm:$0xff]  ;;  %v15556_v55 = vld [vmem:[#allocation182_spill] sm:$0xff] }
 0x7a1   : > { %v4522_v41 = vmul.f32 %v8921_v12, %v4394_v57  ;;  %v5526_v52 = vmul.f32 %v15554_v8, %v15550_v28  ;;  %v15557_v12 = vmax.f32 %v15555_v29, %v15556_v55  ;;  %v5145_v13 = vpop.f32.mrb[146].mxu1  ;;  %v15560_v0 = vld [vmem:[#allocation69_spill] sm:$0xff] }
 0x7a2   : > { %v12596_v36 = vpop.eup %8928  ;;  %v4395_v15 = vsub.f32 2.0, %v4267_v25  ;;  %5284 = vmatprep.mubr.bf16.mxu1 %v4905_v61  ;;  %v12608_v57 = vadd.f32 %v5557_v37, %v5525_v35  ;;  %v5558_v61 = vmul.f32 %v5145_v13, %v15552_v60  ;;  %v5147_v25 = vpop.f32.mrb[147].mxu1  ;;  %v15566_v35 = vld [vmem:[#allocation68_spill] sm:$0xff]  ;;  %v15568_v13 = vld [vmem:[#allocation167_spill] sm:$0xff] }
 0x7a3   : > { %15549 = vst [vmem:[#allocation150_spill] sm:$0xff] %v12596_v36  ;;  %3964 = vadd.xlane.f32.xlu1 %v3963_v43  ;;  %v12601_v18 = vpop.eup %8930  ;;  %v4721_v31 = vmul.f32 %v15560_v0, %v4522_v41 }
 0x7a4   : > { %15553 = vst [vmem:[#allocation119_spill] sm:$0xff] %v12601_v18  ;;  %2881 = vmax.xlane.f32.xlu0 %v15557_v12  ;;  %v4523_v30 = vmul.f32 %v8927_v2, %v4395_v15  ;;  %15558 = vst [vmem:[#allocation115_spill] sm:$0xff] %v12608_v57  ;;  %5285 = vmatmul.mubr.bf16.gmra.mrb[216].mxu1 %v4904_v46  ;;  %v3966_v43 = vadd.f32 %v12601_v18, %v12596_v36  ;;  %v15563_v12 = vld [vmem:[#allocation183_spill] sm:$0xff]  ;;  %v15567_v15 = vld [vmem:[#allocation101_spill] sm:$0xff] }
 0x7a5   : > { %v12613_v50 = vpop.eup %8932  ;;  %v12618_v1 = vadd.f32 %v5558_v61, %v5526_v52  ;;  %v15565_v2 = vmax.f32 %v15563_v12, %v15564_v26  ;;  %v4720_v37 = vmul.f32 %v15567_v15, %v4522_v41  ;;  %v5150_v36 = vpop.f32.mrb[148].mxu1  ;;  %v15569_v52 = vld [vmem:[#allocation87_spill] sm:$0xff]  ;;  %v15571_v26 = vld [vmem:[#allocation186_spill] sm:$0xff] }
 0x7a6   : > { %15559 = vst [vmem:[#allocation62_spill] sm:$0xff] %v12613_v50  ;;  %v12616_v8 = vpop.eup %8934  ;;  %v4723_v46 = vmul.f32 %v15566_v35, %v4523_v30  ;;  %v4722_v25 = vmul.f32 %v15568_v13, %v4523_v30  ;;  %v5527_v61 = vmul.f32 %v15569_v52, %v15550_v28  ;;  %v15570_v35 = vld [vmem:[#allocation185_spill] sm:$0xff] }
 0x7a7   : > { %15561 = vst [vmem:[#allocation124_spill] sm:$0xff] %v12616_v8  ;;  %15562 = vst [vmem:[#allocation151_spill] sm:$0xff] %v12618_v1  ;;  %2884 = vmax.xlane.f32.xlu1 %v15565_v2  ;;  %v3969_v57 = vadd.f32 %v12616_v8, %v12613_v50  ;;  %v5559_v2 = vmul.f32 %v5150_v36, %v15552_v60  ;;  %v5152_v1 = vpop.f32.mrb[149].mxu1  ;;  %v15572_v41 = vmax.f32 %v15570_v35, %v15571_v26 }
 0x7a8   : > { %3967 = vadd.xlane.f32.xlu0 %v3966_v43  ;;  %v4907_v18 = vpack.c.bf16 %v4723_v46, %v4721_v31  ;;  %v4906_v0 = vpack.c.bf16 %v4722_v25, %v4720_v37  ;;  %v5153_v30 = vpop.f32.mrb[150].mxu1  ;;  %v15573_v43 = vld [vmem:[#allocation160_spill] sm:$0xff]  ;;  %v15579_v25 = vld [vmem:[#allocation97_spill] sm:$0xff] }
 0x7a9   : > { %v5528_v15 = vmul.f32 %v15573_v43, %v15550_v28  ;;  %v12636_v13 = vadd.f32 %v5559_v2, %v5527_v61  ;;  %v5560_v31 = vmul.f32 %v5153_v30, %v15552_v60  ;;  %v5155_v46 = vpop.f32.mrb[151].mxu1  ;;  %v5529_v52 = vmul.f32 %v15579_v25, %v15550_v28  ;;  %v15580_v61 = vld [vmem:[#allocation90_spill] sm:$0xff] }
 0x7aa   : > { %5292 = vmatprep.mubr.bf16.mxu1 %v4907_v18  ;;  %v15576_v18 = vld [vmem:[#allocation187_spill] sm:$0xff] }
 0x7ab   : > { %3970 = vadd.xlane.f32.xlu1 %v3969_v57  ;;  %15574 = vst [vmem:[#allocation56_spill] sm:$0xff] %v12636_v13  ;;  %v12639_v37 = vadd.f32 %v5560_v31, %v5528_v15  ;;  %v15577_v57 = vld [vmem:[#allocation188_spill] sm:$0xff] }
 0x7ac   : > { %2887 = vmax.xlane.f32.xlu0 %v15572_v41  ;;  %5293 = vmatmul.mubr.bf16.gmra.mrb[220].mxu1 %v4906_v0  ;;  %v15578_v36 = vmax.f32 %v15576_v18, %v15577_v57  ;;  %v5530_v0 = vmul.f32 %v15580_v61, %v15550_v28 }
 0x7ad   : > { %15575 = vst [vmem:[#allocation81_spill] sm:$0xff] %v12639_v37 }
 0x7ae   : > { %v5158_v1 = vpop.f32.mrb[152].mxu1 }
 0x7af   : > { %2890 = vmax.xlane.f32.xlu1 %v15578_v36  ;;  %v5561_v41 = vmul.f32 %v5158_v1, %v15552_v60  ;;  %v5160_v8 = vpop.f32.mrb[153].mxu1  ;;  %v15583_v36 = vld [vmem:[#allocation163_spill] sm:$0xff] }
 0x7b0   : > { %v5161_v43 = vpop.f32.mrb[154].mxu1  ;;  %v5531_v37 = vmul.f32 %v15583_v36, %v15550_v28  ;;  %v15584_v8 = vld [vmem:[#allocation91_spill] sm:$0xff] }
 0x7b1   : > { %v12649_v2 = vadd.f32 %v5561_v41, %v5529_v52  ;;  %v5562_v30 = vmul.f32 %v5161_v43, %v15552_v60  ;;  %v5163_v15 = vpop.f32.mrb[155].mxu1  ;;  %v5532_v50 = vmul.f32 %v15584_v8, %v15550_v28  ;;  %v15591_v8 = vld [vmem:[#allocation96_spill] sm:$0xff] }
 0x7b3   : > { %15581 = vst [vmem:[#allocation152_spill] sm:$0xff] %v12649_v2  ;;  %v12652_v31 = vadd.f32 %v5562_v30, %v5530_v0  ;;  %v15587_v0 = vld [vmem:[#allocation94_spill] sm:$0xff] }
 0x7b4   : > { %v5533_v30 = vmul.f32 %v15587_v0, %v15550_v28 }
 0x7b5   : > { %15582 = vst [vmem:[#allocation67_spill] sm:$0xff] %v12652_v31 }
 0x7b6   : > { %v5166_v46 = vpop.f32.mrb[156].mxu1 }
 0x7b7   : > { %v5563_v25 = vmul.f32 %v5166_v46, %v15552_v60  ;;  %v5168_v13 = vpop.f32.mrb[157].mxu1 }
 0x7b8   : > { %v5169_v1 = vpop.f32.mrb[158].mxu1  ;;  %v15588_v13 = vld [vmem:[#allocation51_spill] sm:$0xff] }
 0x7b9   : > { %v12659_v57 = vadd.f32 %v5563_v25, %v5531_v37  ;;  %v5564_v52 = vmul.f32 %v5169_v1, %v15552_v60  ;;  %v5171_v41 = vpop.f32.mrb[159].mxu1  ;;  %v5534_v31 = vmul.f32 %v15588_v13, %v15550_v28 }
 0x7bb   : > { %15585 = vst [vmem:[#allocation83_spill] sm:$0xff] %v12659_v57  ;;  %v12662_v43 = vadd.f32 %v5564_v52, %v5532_v50  ;;  %v5535_v52 = vmul.f32 %v15591_v8, %v15550_v28  ;;  %v15592_v57 = vld [vmem:[#allocation103_spill] sm:$0xff] }
 0x7bc   : > { %v5536_v13 = vmul.f32 %v15592_v57, %v15550_v28  ;;  %v15596_v57 = vld [vmem:[#allocation50_spill] sm:$0xff] }
 0x7bd   : > { %15586 = vst [vmem:[#allocation64_spill] sm:$0xff] %v12662_v43  ;;  %v5754_v43 = vld [vmem:[#allocation2 + $0x108] sm:$0xff] }
 0x7be   : > { %v5174_v61 = vpop.f32.mrb[160].mxu1 }
 0x7bf   : > { %v5565_v15 = vmul.f32 %v5174_v61, %v15552_v60  ;;  %v5176_v36 = vpop.f32.mrb[161].mxu1 }
 0x7c0   : > { %v5177_v46 = vpop.f32.mrb[162].mxu1  ;;  %v5753_v36 = vld [vmem:[#allocation2 + $0xd8] sm:$0xff] }
 0x7c1   : > { %v12669_v2 = vadd.f32 %v5565_v15, %v5533_v30  ;;  %v5566_v37 = vmul.f32 %v5177_v46, %v15552_v60  ;;  %v5179_v25 = vpop.f32.mrb[163].mxu1 }
 0x7c3   : > { %15589 = vst [vmem:[#allocation105_spill] sm:$0xff] %v12669_v2  ;;  %v12672_v1 = vadd.f32 %v5566_v37, %v5534_v31  ;;  %v8197_v31 = vpack.c.bf16 %v5754_v43, %v5753_v36 }
 0x7c5   : > { %15590 = vst [vmem:[#allocation153_spill] sm:$0xff] %v12672_v1  ;;  %8198 = vmatprep.subr.bf16.mxu0 %v8197_v31 }
 0x7c6   : > { %v5182_v50 = vpop.f32.mrb[164].mxu1  ;;  %8200 = vmatpush3.bf16.msra.mxu0 %v8197_v31 }
 0x7c7   : > { %v5567_v41 = vmul.f32 %v5182_v50, %v15552_v60  ;;  %v5184_v0 = vpop.f32.mrb[165].mxu1  ;;  %v15595_v50 = vld [vmem:[#allocation53_spill] sm:$0xff] }
 0x7c8   : > { %v5185_v61 = vpop.f32.mrb[166].mxu1  ;;  %v5537_v8 = vmul.f32 %v15595_v50, %v15550_v28 }
 0x7c9   : > { %v12679_v30 = vadd.f32 %v5567_v41, %v5535_v52  ;;  %v5568_v15 = vmul.f32 %v5185_v61, %v15552_v60  ;;  %v5187_v46 = vpop.f32.mrb[167].mxu1  ;;  %v5538_v52 = vmul.f32 %v15596_v57, %v15550_v28 }
 0x7cb   : > { %15593 = vst [vmem:[#allocation137_spill] sm:$0xff] %v12679_v30  ;;  %v12682_v37 = vadd.f32 %v5568_v15, %v5536_v13  ;;  %v15599_v15 = vld [vmem:[#allocation71_spill] sm:$0xff] }
 0x7cc   : > { %v5539_v46 = vmul.f32 %v15599_v15, %v15550_v28 }
 0x7cd   : > { %15594 = vst [vmem:[#allocation154_spill] sm:$0xff] %v12682_v37  ;;  %v15600_v37 = vld [vmem:[#allocation55_spill] sm:$0xff] }
 0x7ce   : > { %v5190_v25 = vpop.f32.mrb[168].mxu1  ;;  %v5540_v30 = vmul.f32 %v15600_v37, %v15550_v28 }
 0x7cf   : > { %v5569_v0 = vmul.f32 %v5190_v25, %v15552_v60  ;;  %v5192_v1 = vpop.f32.mrb[169].mxu1 }
 0x7d0   : > { %v5193_v2 = vpop.f32.mrb[170].mxu1 }
 0x7d1   : > { %v12689_v41 = vadd.f32 %v5569_v0, %v5537_v8  ;;  %v5570_v61 = vmul.f32 %v5193_v2, %v15552_v60  ;;  %v5195_v43 = vpop.f32.mrb[171].mxu1 }
 0x7d3   : > { %15597 = vst [vmem:[#allocation59_spill] sm:$0xff] %v12689_v41  ;;  %v12692_v36 = vadd.f32 %v5570_v61, %v5538_v52 }
 0x7d5   : > { %15598 = vst [vmem:[#allocation107_spill] sm:$0xff] %v12692_v36  ;;  %v3902_v1 = vpop.xlane.xlu0 %3901 }
 0x7d6   : > { %v5198_v13 = vpop.f32.mrb[172].mxu1  ;;  %8936 = vrcp.f32 %v3902_v1 }
 0x7d7   : > { %v5571_v31 = vmul.f32 %v5198_v13, %v15552_v60  ;;  %v5200_v50 = vpop.f32.mrb[173].mxu1 }
 0x7d8   : > { %v5201_v25 = vpop.f32.mrb[174].mxu1 }
 0x7d9   : > { %v12699_v57 = vadd.f32 %v5571_v31, %v5539_v46  ;;  %v5572_v8 = vmul.f32 %v5201_v25, %v15552_v60  ;;  %v5203_v2 = vpop.f32.mrb[175].mxu1 }
 0x7da   : > { %v3905_v52 = vpop.xlane.xlu1 %3904 }
 0x7db   : > { %15601 = vst [vmem:[#allocation139_spill] sm:$0xff] %v12699_v57  ;;  %v12702_v0 = vadd.f32 %v5572_v8, %v5540_v30  ;;  %8938 = vrcp.f32 %v3905_v52 }
 0x7dc   : > { %v2822_v61 = vpop.xlane.xlu0 %2821 }
 0x7dd   : > { %15602 = vst [vmem:[#allocation84_spill] sm:$0xff] %v12702_v0  ;;  %v3108_v43 = vsub.f32 %v15402_v62, %v2822_v61  ;;  %v3109_v13 = vsub.f32 %v15403_v3, %v2822_v61 }
 0x7df   : > { %v3556_v15 = vmul.f32 1.442695, %v3108_v43  ;;  %v3558_v50 = vmul.f32 1.442695, %v3109_v13 }
 0x7e0   : > { %v3908_v31 = vpop.xlane.xlu0 %3907  ;;  %v8937_v25 = vpop.eup %8936 }
 0x7e1   : > { %v2825_v36 = vpop.xlane.xlu1 %2824  ;;  %8940 = vpow2.f32 %v3556_v15  ;;  %v4268_v2 = vmul.f32 %v8937_v25, %v3902_v1 }
 0x7e2   : > { %v3110_v37 = vsub.f32 %v15409_v40, %v2825_v36  ;;  %v3111_v46 = vsub.f32 %v15410_v44, %v2825_v36  ;;  %8942 = vpow2.f32 %v3558_v50 }
 0x7e3   : > { %8944 = vrcp.f32 %v3908_v31  ;;  %v4396_v57 = vsub.f32 2.0, %v4268_v2 }
 0x7e4   : > { %v3560_v30 = vmul.f32 1.442695, %v3110_v37  ;;  %v3562_v8 = vmul.f32 1.442695, %v3111_v46 }
 0x7e5   : > { %v3911_v0 = vpop.xlane.xlu1 %3910  ;;  %v8939_v40 = vpop.eup %8938  ;;  %v4524_v15 = vmul.f32 %v8937_v25, %v4396_v57  ;;  %v15605_v25 = vld [vmem:[#allocation141_spill] sm:$0xff] }
 0x7e6   : > { %8946 = vpow2.f32 %v3560_v30  ;;  %v2828_v62 = vpop.xlane.xlu0 %2827  ;;  %v4269_v44 = vmul.f32 %v8939_v40, %v3905_v52 }
 0x7e7   : > { %8948 = vpow2.f32 %v3562_v8  ;;  %v3112_v3 = vsub.f32 %v15416_v4, %v2828_v62  ;;  %v3113_v61 = vsub.f32 %v15417_v22, %v2828_v62 }
 0x7e8   : > { %8950 = vrcp.f32 %v3911_v0  ;;  %v4397_v46 = vsub.f32 2.0, %v4269_v44 }
 0x7e9   : > { %v3564_v36 = vmul.f32 1.442695, %v3112_v3  ;;  %v3566_v43 = vmul.f32 1.442695, %v3113_v61  ;;  %v2831_v13 = vpop.xlane.xlu1 %2830 }
 0x7ea   : > { %v3114_v50 = vsub.f32 %v15423_v17, %v2831_v13  ;;  %v3115_v1 = vsub.f32 %v15424_v24, %v2831_v13  ;;  %v3914_v37 = vpop.xlane.xlu0 %3913  ;;  %v4525_v22 = vmul.f32 %v8939_v40, %v4397_v46  ;;  %v4725_v17 = vmul.f32 %v15605_v25, %v4524_v15  ;;  %v15608_v13 = vld [vmem:[#allocation142_spill] sm:$0xff] }
 0x7eb   : > { %8952 = vpow2.f32 %v3564_v36  ;;  %v12712_v4 = vpop.eup %8940  ;;  %v15607_v36 = vld [vmem:[#allocation112_spill] sm:$0xff] }
 0x7ec   : > { %8954 = vpow2.f32 %v3566_v43  ;;  %v3568_v30 = vmul.f32 1.442695, %v3114_v50  ;;  %v3570_v8 = vmul.f32 1.442695, %v3115_v1  ;;  %15603 = vst [vmem:[#allocation155_spill] sm:$0xff] %v12712_v4  ;;  %v12716_v52 = vpop.eup %8942  ;;  %v4727_v43 = vmul.f32 %v15607_v36, %v4525_v22 }
 0x7ed   : > { %8956 = vrcp.f32 %v3914_v37  ;;  %v12714_v2 = vpop.xlane.xlu1 %3916  ;;  %15604 = vst [vmem:[#allocation110_spill] sm:$0xff] %v12716_v52  ;;  %v8945_v62 = vpop.eup %8944  ;;  %v3972_v61 = vadd.f32 %v12716_v52, %v12712_v4  ;;  %v4726_v50 = vmul.f32 %v15608_v13, %v4525_v22 }
 0x7ee   : > { %8958 = vpow2.f32 %v3568_v30  ;;  %v2834_v57 = vpop.xlane.xlu0 %2833  ;;  %v4270_v40 = vmul.f32 %v8945_v62, %v3908_v31  ;;  %v4909_v52 = vpack.c.bf16 %v4727_v43, %v4725_v17  ;;  %v15614_v17 = vld [vmem:[#allocation190_spill] sm:$0xff] }
 0x7ef   : > { %8960 = vpow2.f32 %v3570_v8  ;;  %v3116_v24 = vsub.f32 %v15430_v19, %v2834_v57  ;;  %v3117_v3 = vsub.f32 %v15431_v58, %v2834_v57  ;;  %3973 = vadd.xlane.f32.xlu0 %v3972_v61  ;;  %v15610_v19 = vld [vmem:[#allocation106_spill] sm:$0xff] }
 0x7f0   : > { %v12723_v44 = vpop.eup %8946  ;;  %8962 = vrcp.f32 %v12714_v2  ;;  %v4724_v58 = vmul.f32 %v15610_v19, %v4524_v15  ;;  %v4398_v25 = vsub.f32 2.0, %v4270_v40  ;;  %5300 = vmatprep.mubr.bf16.mxu1 %v4909_v52 }
 0x7f1   : > { %15606 = vst [vmem:[#allocation129_spill] sm:$0xff] %v12723_v44  ;;  %v12728_v1 = vpop.eup %8948  ;;  %v3572_v46 = vmul.f32 1.442695, %v3116_v24  ;;  %v3574_v30 = vmul.f32 1.442695, %v3117_v3  ;;  %v2837_v8 = vpop.xlane.xlu1 %2836 }
 0x7f2   : > { %15609 = vst [vmem:[#allocation58_spill] sm:$0xff] %v12728_v1  ;;  %v8951_v57 = vpop.eup %8950  ;;  %v3118_v41 = vsub.f32 %v15437_v5, %v2837_v8  ;;  %v3119_v31 = vsub.f32 %v15438_v39, %v2837_v8  ;;  %v12733_v4 = vpop.xlane.xlu0 %3919  ;;  %v3975_v22 = vadd.f32 %v12728_v1, %v12723_v44  ;;  %v4908_v24 = vpack.c.bf16 %v4726_v50, %v4724_v58  ;;  %v15617_v8 = vld [vmem:[#allocation113_spill] sm:$0xff] }
 0x7f3   : > { %v4271_v36 = vmul.f32 %v8951_v57, %v3911_v0  ;;  %8964 = vpow2.f32 %v3572_v46  ;;  %v4526_v3 = vmul.f32 %v8945_v62, %v4398_v25  ;;  %v15613_v0 = vld [vmem:[#allocation189_spill] sm:$0xff] }
 0x7f4   : > { %8966 = vpow2.f32 %v3574_v30  ;;  %v3576_v61 = vmul.f32 1.442695, %v3118_v41  ;;  %v3578_v13 = vmul.f32 1.442695, %v3119_v31  ;;  %3976 = vadd.xlane.f32.xlu1 %v3975_v22  ;;  %5301 = vmatmul.mubr.bf16.gmra.mrb[224].mxu1 %v4908_v24  ;;  %v15615_v43 = vmax.f32 %v15613_v0, %v15614_v17  ;;  %v15616_v41 = vld [vmem:[#allocation72_spill] sm:$0xff] }
 0x7f5   : > { %v12737_v15 = vpop.eup %8952  ;;  %v4399_v40 = vsub.f32 2.0, %v4271_v36  ;;  %8968 = vrcp.f32 %v12733_v4  ;;  %v12740_v5 = vpop.xlane.xlu1 %3922  ;;  %v4729_v50 = vmul.f32 %v15616_v41, %v4526_v3  ;;  %v15619_v36 = vld [vmem:[#allocation86_spill] sm:$0xff] }
 0x7f6   : > { %15611 = vst [vmem:[#allocation114_spill] sm:$0xff] %v12737_v15  ;;  %v12742_v39 = vpop.eup %8954  ;;  %8970 = vpow2.f32 %v3576_v61  ;;  %2893 = vmax.xlane.f32.xlu0 %v15615_v43  ;;  %v4728_v22 = vmul.f32 %v15619_v36, %v4526_v3  ;;  %v5756_v36 = vld [vmem:[#allocation2 + $0x168] sm:$0xff] }
 0x7f7   : > { %15612 = vst [vmem:[#allocation156_spill] sm:$0xff] %v12742_v39  ;;  %v2840_v62 = vpop.xlane.xlu0 %2839  ;;  %v8957_v52 = vpop.eup %8956  ;;  %v4527_v46 = vmul.f32 %v8951_v57, %v4399_v40  ;;  %8972 = vpow2.f32 %v3578_v13  ;;  %v3978_v31 = vadd.f32 %v12742_v39, %v12737_v15  ;;  %v15621_v57 = vld [vmem:[#allocation191_spill] sm:$0xff]  ;;  %v15622_v13 = vld [vmem:[#allocation192_spill] sm:$0xff] }
 0x7f8   : > { %v3120_v30 = vsub.f32 %v15445_v48, %v2840_v62  ;;  %v3121_v19 = vsub.f32 %v15617_v8, %v2840_v62  ;;  %v12750_v58 = vpop.eup %8958  ;;  %v4272_v25 = vmul.f32 %v8957_v52, %v3914_v37  ;;  %8974 = vrcp.f32 %v12740_v5  ;;  %v15624_v62 = vld [vmem:[#allocation78_spill] sm:$0xff]  ;;  %v15625_v8 = vld [vmem:[#allocation116_spill] sm:$0xff] }
 0x7f9   : > { %15618 = vst [vmem:[#allocation127_spill] sm:$0xff] %v12750_v58  ;;  %v12756_v24 = vpop.eup %8960  ;;  %v15623_v40 = vmax.f32 %v15621_v57, %v15622_v13  ;;  %v4731_v41 = vmul.f32 %v15624_v62, %v4527_v46  ;;  %v4730_v37 = vmul.f32 %v15625_v8, %v4527_v46 }
 0x7fa   : > { %15620 = vst [vmem:[#allocation65_spill] sm:$0xff] %v12756_v24  ;;  %v3580_v61 = vmul.f32 1.442695, %v3120_v30  ;;  %v3582_v43 = vmul.f32 1.442695, %v3121_v19  ;;  %v2843_v48 = vpop.xlane.xlu1 %2842  ;;  %v8963_v1 = vpop.eup %8962  ;;  %v4400_v44 = vsub.f32 2.0, %v4272_v25  ;;  %3979 = vadd.xlane.f32.xlu0 %v3978_v31  ;;  %v3981_v30 = vadd.f32 %v12756_v24, %v12750_v58 }
 0x7fb   : > { %2896 = vmax.xlane.f32.xlu1 %v15623_v40  ;;  %v3122_v17 = vsub.f32 %v15452_v6, %v2843_v48  ;;  %v3123_v39 = vsub.f32 %v15453_v54, %v2843_v48  ;;  %v12765_v3 = vpop.xlane.xlu0 %3925  ;;  %v5755_v19 = vld [vmem:[#allocation2 + $0x138] sm:$0xff]  ;;  %v4273_v40 = vmul.f32 %v8963_v1, %v12714_v2  ;;  %v4911_v62 = vpack.c.bf16 %v4731_v41, %v4729_v50  ;;  %v15628_v2 = vld [vmem:[#allocation193_spill] sm:$0xff]  ;;  %v15629_v50 = vld [vmem:[#allocation195_spill] sm:$0xff] }
 0x7fc   : > { %8976 = vpow2.f32 %v3580_v61  ;;  %v4910_v15 = vpack.c.bf16 %v4730_v37, %v4728_v22  ;;  %v4528_v46 = vmul.f32 %v8957_v52, %v4400_v44  ;;  %v8201_v48 = vpack.c.bf16 %v5756_v36, %v5755_v19  ;;  %v15633_v19 = vld [vmem:[#allocation49_spill] sm:$0xff] }
 0x7fd   : > { %8978 = vpow2.f32 %v3582_v43  ;;  %v3584_v25 = vmul.f32 1.442695, %v3122_v17  ;;  %v3586_v8 = vmul.f32 1.442695, %v3123_v39  ;;  %v12770_v6 = vpop.eup %8964  ;;  %v4401_v54 = vsub.f32 2.0, %v4273_v40  ;;  %5308 = vmatprep.mubr.bf16.mxu1 %v4911_v62  ;;  %v15631_v39 = vld [vmem:[#allocation111_spill] sm:$0xff] }
 0x7fe   : > { %15626 = vst [vmem:[#allocation158_spill] sm:$0xff] %v12770_v6  ;;  %8980 = vrcp.f32 %v12765_v3  ;;  %v12773_v31 = vpop.xlane.xlu1 %3928  ;;  %v12775_v24 = vpop.eup %8966  ;;  %5309 = vmatmul.mubr.bf16.gmra.mrb[228].mxu1 %v4910_v15  ;;  %v15630_v44 = vmax.f32 %v15628_v2, %v15629_v50  ;;  %v4733_v52 = vmul.f32 %v15631_v39, %v4528_v46  ;;  %8202 = vmatprep.subr.bf16.mxu0 %v8201_v48 }
 0x7ff   : > { %3982 = vadd.xlane.f32.xlu1 %v3981_v30  ;;  %15627 = vst [vmem:[#allocation44_spill] sm:$0xff] %v12775_v24  ;;  %8982 = vpow2.f32 %v3584_v25  ;;  %v2846_v17 = vpop.xlane.xlu0 %2845  ;;  %v8969_v22 = vpop.eup %8968  ;;  %v4529_v61 = vmul.f32 %v8963_v1, %v4401_v54  ;;  %v3984_v15 = vadd.f32 %v12775_v24, %v12770_v6  ;;  %v4732_v36 = vmul.f32 %v15633_v19, %v4528_v46  ;;  %v15636_v25 = vld [vmem:[#allocation198_spill] sm:$0xff]  ;;  %v15638_v54 = vld [vmem:[#allocation117_spill] sm:$0xff] }
 0x800   : > { %2899 = vmax.xlane.f32.xlu0 %v15630_v44  ;;  %8984 = vpow2.f32 %v3586_v8  ;;  %v3124_v43 = vsub.f32 %v15459_v33, %v2846_v17  ;;  %v3125_v41 = vsub.f32 %v15460_v49, %v2846_v17  ;;  %v12783_v37 = vpop.eup %8970  ;;  %v4274_v30 = vmul.f32 %v8969_v22, %v12733_v4  ;;  %8204 = vmatpush3.bf16.msra.mxu0 %v8201_v48  ;;  %v15635_v33 = vld [vmem:[#allocation197_spill] sm:$0xff]  ;;  %v15639_v4 = vld [vmem:[#allocation132_spill] sm:$0xff] }
 0x801   : > { %15632 = vst [vmem:[#allocation140_spill] sm:$0xff] %v12783_v37  ;;  %8986 = vrcp.f32 %v12773_v31  ;;  %v12790_v40 = vpop.eup %8972  ;;  %v15637_v49 = vmax.f32 %v15635_v33, %v15636_v25  ;;  %v4735_v44 = vmul.f32 %v15638_v54, %v4529_v61  ;;  %v4734_v17 = vmul.f32 %v15639_v4, %v4529_v61 }
 0x802   : > { %15634 = vst [vmem:[#allocation170_spill] sm:$0xff] %v12790_v40  ;;  %v3588_v1 = vmul.f32 1.442695, %v3124_v43  ;;  %v3590_v62 = vmul.f32 1.442695, %v3125_v41  ;;  %v2849_v8 = vpop.xlane.xlu1 %2848  ;;  %v8975_v39 = vpop.eup %8974  ;;  %v4402_v58 = vsub.f32 2.0, %v4274_v30  ;;  %v3987_v43 = vadd.f32 %v12790_v40, %v12783_v37 }
 0x803   : > { %2902 = vmax.xlane.f32.xlu1 %v15637_v49  ;;  %v3126_v24 = vsub.f32 %v15466_v7, %v2849_v8  ;;  %v3127_v46 = vsub.f32 %v15467_v11, %v2849_v8  ;;  %v12799_v48 = vpop.xlane.xlu0 %3931  ;;  %v4275_v41 = vmul.f32 %v8975_v39, %v12740_v5  ;;  %v4913_v19 = vpack.c.bf16 %v4735_v44, %v4733_v52  ;;  %v15642_v5 = vld [vmem:[#allocation95_spill] sm:$0xff]  ;;  %v15643_v52 = vld [vmem:[#allocation93_spill] sm:$0xff]  ;;  %v15646_v44 = vld [vmem:[#allocation138_spill] sm:$0xff] }
 0x804   : > { %3985 = vadd.xlane.f32.xlu0 %v3984_v15  ;;  %8988 = vpow2.f32 %v3588_v1  ;;  %v4912_v49 = vpack.c.bf16 %v4734_v17, %v4732_v36  ;;  %v4530_v54 = vmul.f32 %v8969_v22, %v4402_v58  ;;  %v15644_v36 = vmax.f32 %v15642_v5, %v15643_v52  ;;  %v15654_v40 = vld [vmem:[#allocation77_spill] sm:$0xff] }
 0x805   : > { %8990 = vpow2.f32 %v3590_v62  ;;  %v3592_v61 = vmul.f32 1.442695, %v3126_v24  ;;  %v3594_v4 = vmul.f32 1.442695, %v3127_v46  ;;  %v4403_v7 = vsub.f32 2.0, %v4275_v41  ;;  %5316 = vmatprep.mubr.bf16.mxu1 %v4913_v19  ;;  %v15645_v24 = vld [vmem:[#allocation89_spill] sm:$0xff] }
 0x806   : > { %v12804_v30 = vpop.eup %8976  ;;  %8992 = vrcp.f32 %v12799_v48  ;;  %v12807_v11 = vpop.xlane.xlu1 %3934  ;;  %5317 = vmatmul.mubr.bf16.gmra.mrb[232].mxu1 %v4912_v49  ;;  %v4737_v22 = vmul.f32 %v15645_v24, %v4530_v54  ;;  %v15648_v19 = vld [vmem:[#allocation88_spill] sm:$0xff]  ;;  %v15653_v24 = vld [vmem:[#allocation135_spill] sm:$0xff] }
 0x807   : > { %15640 = vst [vmem:[#allocation63_spill] sm:$0xff] %v12804_v30  ;;  %3988 = vadd.xlane.f32.xlu1 %v3987_v43  ;;  %v12809_v15 = vpop.eup %8978  ;;  %8994 = vpow2.f32 %v3592_v61  ;;  %v2852_v58 = vpop.xlane.xlu0 %2851  ;;  %v4531_v62 = vmul.f32 %v8975_v39, %v4403_v7  ;;  %v4736_v49 = vmul.f32 %v15648_v19, %v4530_v54  ;;  %v15651_v7 = vld [vmem:[#allocation143_spill] sm:$0xff] }
 0x808   : > { %15641 = vst [vmem:[#allocation171_spill] sm:$0xff] %v12809_v15  ;;  %2905 = vmax.xlane.f32.xlu0 %v15644_v36  ;;  %v8981_v1 = vpop.eup %8980  ;;  %8996 = vpow2.f32 %v3594_v4  ;;  %v3128_v8 = vsub.f32 %v15473_v27, %v2852_v58  ;;  %v3129_v17 = vsub.f32 %v15646_v44, %v2852_v58  ;;  %v3990_v41 = vadd.f32 %v12809_v15, %v12804_v30  ;;  %v15650_v4 = vld [vmem:[#allocation66_spill] sm:$0xff] }
 0x809   : > { %v12817_v46 = vpop.eup %8982  ;;  %v4276_v43 = vmul.f32 %v8981_v1, %v12765_v3  ;;  %8998 = vrcp.f32 %v12807_v11  ;;  %v15652_v27 = vmax.f32 %v15650_v4, %v15651_v7  ;;  %v4739_v44 = vmul.f32 %v15653_v24, %v4531_v62  ;;  %v15655_v15 = vld [vmem:[#allocation126_spill] sm:$0xff] }
 0x80a   : > { %15647 = vst [vmem:[#allocation172_spill] sm:$0xff] %v12817_v46  ;;  %v12824_v61 = vpop.eup %8984  ;;  %v3596_v36 = vmul.f32 1.442695, %v3128_v8  ;;  %v3598_v39 = vmul.f32 1.442695, %v3129_v17  ;;  %v4738_v3 = vmul.f32 %v15654_v40, %v4531_v62 }
 0x80b   : > { %15649 = vst [vmem:[#allocation118_spill] sm:$0xff] %v12824_v61  ;;  %2908 = vmax.xlane.f32.xlu1 %v15652_v27  ;;  %v2855_v58 = vpop.xlane.xlu1 %2854  ;;  %v8987_v37 = vpop.eup %8986  ;;  %v4404_v6 = vsub.f32 2.0, %v4276_v43  ;;  %v3993_v8 = vadd.f32 %v12824_v61, %v12817_v46  ;;  %v4915_v19 = vpack.c.bf16 %v4739_v44, %v4737_v22  ;;  %v15658_v22 = vld [vmem:[#allocation42_spill] sm:$0xff] }
 0x80c   : > { %v3130_v52 = vsub.f32 %v15481_v51, %v2855_v58  ;;  %v3131_v30 = vsub.f32 %v15655_v15, %v2855_v58  ;;  %3991 = vadd.xlane.f32.xlu0 %v3990_v41  ;;  %v12833_v54 = vpop.xlane.xlu0 %3937  ;;  %v4277_v17 = vmul.f32 %v8987_v37, %v12773_v31  ;;  %9000 = vpow2.f32 %v3596_v36  ;;  %v15657_v31 = vld [vmem:[#allocation144_spill] sm:$0xff] }
 0x80d   : > { %v4914_v27 = vpack.c.bf16 %v4738_v3, %v4736_v49  ;;  %v4532_v24 = vmul.f32 %v8981_v1, %v4404_v6  ;;  %9002 = vpow2.f32 %v3598_v39  ;;  %5324 = vmatprep.mubr.bf16.mxu1 %v4915_v19  ;;  %v15659_v49 = vmax.f32 %v15657_v31, %v15658_v22 }
 0x80e   : > { %v3600_v40 = vmul.f32 1.442695, %v3130_v52  ;;  %v3602_v62 = vmul.f32 1.442695, %v3131_v30  ;;  %v12838_v43 = vpop.eup %8988  ;;  %v4405_v51 = vsub.f32 2.0, %v4277_v17  ;;  %9004 = vrcp.f32 %v12833_v54  ;;  %v15660_v52 = vld [vmem:[#allocation134_spill] sm:$0xff] }
 0x80f   : > { %3994 = vadd.xlane.f32.xlu1 %v3993_v8  ;;  %v12841_v15 = vpop.xlane.xlu1 %3940  ;;  %v12843_v41 = vpop.eup %8990  ;;  %5325 = vmatmul.mubr.bf16.gmra.mrb[236].mxu1 %v4914_v27  ;;  %v4741_v30 = vmul.f32 %v15660_v52, %v4532_v24  ;;  %v15661_v17 = vld [vmem:[#allocation82_spill] sm:$0xff]  ;;  %v15666_v52 = vld [vmem:[#allocation136_spill] sm:$0xff] }
 0x810   : > { %15656 = vst [vmem:[#allocation159_spill] sm:$0xff] %v12843_v41  ;;  %9006 = vpow2.f32 %v3600_v40  ;;  %2911 = vmax.xlane.f32.xlu0 %v15659_v49  ;;  %v2858_v6 = vpop.xlane.xlu0 %2857  ;;  %v8993_v1 = vpop.eup %8992  ;;  %v4533_v36 = vmul.f32 %v8987_v37, %v4405_v51  ;;  %v3996_v8 = vadd.f32 %v12843_v41, %v12838_v43  ;;  %v4740_v19 = vmul.f32 %v15661_v17, %v4532_v24  ;;  %v15663_v51 = vld [vmem:[#allocation146_spill] sm:$0xff]  ;;  %v15665_v49 = vld [vmem:[#allocation123_spill] sm:$0xff] }
 0x811   : > { %9008 = vpow2.f32 %v3602_v62  ;;  %v3132_v39 = vsub.f32 %v15491_v56, %v2858_v6  ;;  %v3133_v58 = vsub.f32 %v15492_v10, %v2858_v6  ;;  %v12851_v44 = vpop.eup %8994  ;;  %v4278_v3 = vmul.f32 %v8993_v1, %v12799_v48  ;;  %v15662_v62 = vld [vmem:[#allocation74_spill] sm:$0xff] }
 0x812   : > { %9010 = vrcp.f32 %v12841_v15  ;;  %v12858_v27 = vpop.eup %8996  ;;  %v15664_v56 = vmax.f32 %v15662_v62, %v15663_v51  ;;  %v4743_v6 = vmul.f32 %v15665_v49, %v4533_v36  ;;  %v4742_v48 = vmul.f32 %v15666_v52, %v4533_v36 }
 0x813   : > { %v3604_v40 = vmul.f32 1.442695, %v3132_v39  ;;  %v3606_v37 = vmul.f32 1.442695, %v3133_v58  ;;  %v8999_v61 = vpop.eup %8998  ;;  %v4406_v46 = vsub.f32 2.0, %v4278_v3  ;;  %v3999_v39 = vadd.f32 %v12858_v27, %v12851_v44 }
 0x814   : > { %2914 = vmax.xlane.f32.xlu1 %v15664_v56  ;;  %v2861_v10 = vpop.xlane.xlu1 %2860  ;;  %3997 = vadd.xlane.f32.xlu0 %v3996_v8  ;;  %v12867_v24 = vpop.xlane.xlu0 %3943  ;;  %v4279_v58 = vmul.f32 %v8999_v61, %v12807_v11  ;;  %v4917_v17 = vpack.c.bf16 %v4743_v6, %v4741_v30  ;;  %v4916_v56 = vpack.c.bf16 %v4742_v48, %v4740_v19  ;;  %v15668_v30 = vld [vmem:[#allocation92_spill] sm:$0xff]  ;;  %v15670_v6 = vld [vmem:[#allocation122_spill] sm:$0xff] }
 0x815   : > { %v3134_v22 = vsub.f32 %v15498_v14, %v2861_v10  ;;  %v3135_v41 = vsub.f32 %v15499_v34, %v2861_v10  ;;  %9012 = vpow2.f32 %v3604_v40  ;;  %v4534_v49 = vmul.f32 %v8993_v1, %v4406_v46 }
 0x816   : > { %9014 = vpow2.f32 %v3606_v37  ;;  %v12872_v3 = vpop.eup %9000  ;;  %v4407_v14 = vsub.f32 2.0, %v4279_v58  ;;  %5332 = vmatprep.mubr.bf16.mxu1 %v4917_v17 }
 0x817   : > { %v3608_v36 = vmul.f32 1.442695, %v3134_v22  ;;  %v3610_v52 = vmul.f32 1.442695, %v3135_v41  ;;  %15667 = vst [vmem:[#allocation161_spill] sm:$0xff] %v12872_v3  ;;  %9016 = vrcp.f32 %v12867_v24  ;;  %v12877_v8 = vpop.eup %9002  ;;  %5333 = vmatmul.mubr.bf16.gmra.mrb[240].mxu1 %v4916_v56  ;;  %v4745_v19 = vmul.f32 %v15668_v30, %v4534_v49  ;;  %v15672_v56 = vld [vmem:[#allocation199_spill] sm:$0xff] }
 0x818   : > { %4000 = vadd.xlane.f32.xlu1 %v3999_v39  ;;  %v12875_v34 = vpop.xlane.xlu1 %3946  ;;  %v9005_v46 = vpop.eup %9004  ;;  %v4535_v1 = vmul.f32 %v8999_v61, %v4407_v14  ;;  %v4002_v10 = vadd.f32 %v12877_v8, %v12872_v3  ;;  %v4744_v48 = vmul.f32 %v15670_v6, %v4534_v49 }
 0x819   : > { %9018 = vpow2.f32 %v3608_v36  ;;  %v2864_v11 = vpop.xlane.xlu0 %2863  ;;  %v4280_v37 = vmul.f32 %v9005_v46, %v12833_v54  ;;  %v15673_v36 = vld [vmem:[#allocation196_spill] sm:$0xff] }
 0x81a   : > { %9020 = vpow2.f32 %v3610_v52  ;;  %v3136_v41 = vsub.f32 %v15506_v9, %v2864_v11  ;;  %v3137_v22 = vsub.f32 %v15507_v47, %v2864_v11  ;;  %v12882_v40 = vpop.eup %9006  ;;  %v4747_v9 = vmul.f32 %v15672_v56, %v4535_v1  ;;  %4003 = vadd.xlane.f32.xlu0 %v4002_v10 }
 0x81b   : > { %15669 = vst [vmem:[#allocation173_spill] sm:$0xff] %v12882_v40  ;;  %9022 = vrcp.f32 %v12875_v34  ;;  %v12889_v39 = vpop.eup %9008  ;;  %v4746_v47 = vmul.f32 %v15673_v36, %v4535_v1  ;;  %v4408_v14 = vsub.f32 2.0, %v4280_v37 }
 0x81c   : > { %15671 = vst [vmem:[#allocation174_spill] sm:$0xff] %v12889_v39  ;;  %v3612_v58 = vmul.f32 1.442695, %v3136_v41  ;;  %v3614_v61 = vmul.f32 1.442695, %v3137_v22  ;;  %v2867_v17 = vpop.xlane.xlu1 %2866  ;;  %v9011_v52 = vpop.eup %9010  ;;  %v4005_v49 = vadd.f32 %v12889_v39, %v12882_v40  ;;  %v4919_v22 = vpack.c.bf16 %v4747_v9, %v4745_v19  ;;  %v15676_v19 = vld [vmem:[#allocation76_spill] sm:$0xff] }
 0x81d   : > { %v3138_v54 = vsub.f32 %v15512_v20, %v2867_v17  ;;  %v3139_v11 = vsub.f32 %v15513_v38, %v2867_v17  ;;  %v12895_v30 = vpop.xlane.xlu0 %3949  ;;  %v4281_v41 = vmul.f32 %v9011_v52, %v12841_v15  ;;  %v4918_v6 = vpack.c.bf16 %v4746_v47, %v4744_v48  ;;  %v15675_v20 = vld [vmem:[#allocation43_spill] sm:$0xff]  ;;  %v15677_v48 = vld [vmem:[#allocation73_spill] sm:$0xff]  ;;  %v15678_v9 = vld [vmem:[#allocation70_spill] sm:$0xff] }
 0x81e   : > { %9024 = vpow2.f32 %v3612_v58  ;;  %v4536_v56 = vmul.f32 %v9005_v46, %v4408_v14  ;;  %4006 = vadd.xlane.f32.xlu1 %v4005_v49  ;;  %v12904_v38 = vmul.f32 %v15675_v20, %v15550_v28  ;;  %5340 = vmatprep.mubr.bf16.mxu1 %v4919_v22  ;;  %v12913_v46 = vmul.f32 %v15676_v19, %v15550_v28 }
 0x81f   : > { %9026 = vpow2.f32 %v3614_v61  ;;  %v3616_v1 = vmul.f32 1.442695, %v3138_v54  ;;  %v3618_v36 = vmul.f32 1.442695, %v3139_v11  ;;  %v12900_v37 = vpop.eup %9012  ;;  %v4409_v10 = vsub.f32 2.0, %v4281_v41  ;;  %5341 = vmatmul.mubr.bf16.gmra.mrb[244].mxu1 %v4918_v6  ;;  %v15679_v6 = vld [vmem:[#allocation194_spill] sm:$0xff] }
 0x820   : > { %15674 = vst [vmem:[#allocation98_spill] sm:$0xff] %v12900_v37  ;;  %9028 = vrcp.f32 %v12895_v30  ;;  %v12907_v17 = vpop.xlane.xlu1 %3952  ;;  %v12909_v15 = vpop.eup %9014  ;;  %v12917_v58 = vmul.f32 %v15677_v48, %v15550_v28  ;;  %v4749_v47 = vmul.f32 %v15678_v9, %v4536_v56  ;;  %v4748_v20 = vmul.f32 %v15679_v6, %v4536_v56  ;;  %v15681_v9 = vld [vmem:[#allocation125_spill] sm:$0xff] }
 0x821   : > { %9030 = vpow2.f32 %v3616_v1  ;;  %v2870_v61 = vpop.xlane.xlu0 %2869  ;;  %v9017_v14 = vpop.eup %9016  ;;  %v4537_v54 = vmul.f32 %v9011_v52, %v4409_v10  ;;  %v4008_v1 = vadd.f32 %v12909_v15, %v12900_v37  ;;  %v15680_v10 = vld [vmem:[#allocation200_spill] sm:$0xff] }
 0x822   : > { %9032 = vpow2.f32 %v3618_v36  ;;  %v3140_v11 = vsub.f32 %v15521_v32, %v2870_v61  ;;  %v3141_v49 = vsub.f32 %v15522_v59, %v2870_v61  ;;  %v4282_v22 = vmul.f32 %v9017_v14, %v12867_v24  ;;  %v5206_v6 = vpop.f32.mrb[176].mxu1 }
 0x823   : > { %v12922_v41 = vpop.eup %9018  ;;  %9034 = vrcp.f32 %v12907_v17  ;;  %v4751_v32 = vmul.f32 %v15680_v10, %v4537_v54  ;;  %v4750_v59 = vmul.f32 %v15681_v9, %v4537_v54  ;;  %4009 = vadd.xlane.f32.xlu0 %v4008_v1 }
 0x824   : > { %v12929_v19 = vpop.eup %9020  ;;  %v3620_v48 = vmul.f32 1.442695, %v3140_v11  ;;  %v3622_v52 = vmul.f32 1.442695, %v3141_v49  ;;  %v2873_v36 = vpop.xlane.xlu1 %2872  ;;  %v4410_v3 = vsub.f32 2.0, %v4282_v22 }
 0x825   : > { %v9023_v61 = vpop.eup %9022  ;;  %v3142_v24 = vsub.f32 %v15528_v21, %v2873_v36  ;;  %v3143_v39 = vsub.f32 %v15529_v23, %v2873_v36  ;;  %v12935_v40 = vpop.xlane.xlu0 %3955  ;;  %v4011_v56 = vadd.f32 %v12929_v19, %v12922_v41  ;;  %v4921_v49 = vpack.c.bf16 %v4751_v32, %v4749_v47  ;;  %v15682_v23 = vld [vmem:[#allocation57_spill] sm:$0xff] }
 0x826   : > { %v4283_v11 = vmul.f32 %v9023_v61, %v12875_v34  ;;  %9036 = vpow2.f32 %v3620_v48  ;;  %v4920_v10 = vpack.c.bf16 %v4750_v59, %v4748_v20  ;;  %v4538_v37 = vmul.f32 %v9017_v14, %v4410_v3  ;;  %v5208_v21 = vpop.f32.mrb[177].mxu1  ;;  %v15684_v59 = vld [vmem:[#allocation99_spill] sm:$0xff] }
 0x827   : > { %9038 = vpow2.f32 %v3622_v52  ;;  %v3624_v54 = vmul.f32 1.442695, %v3142_v24  ;;  %v3626_v22 = vmul.f32 1.442695, %v3143_v39  ;;  %4012 = vadd.xlane.f32.xlu1 %v4011_v56  ;;  %v12944_v1 = vmul.f32 %v15682_v23, %v15550_v28  ;;  %5348 = vmatprep.mubr.bf16.mxu1 %v4921_v49  ;;  %v5209_v3 = vpop.f32.mrb[178].mxu1  ;;  %v15683_v52 = vld [vmem:[#allocation165_spill] sm:$0xff] }
 0x828   : > { %v12940_v9 = vpop.eup %9024  ;;  %v4411_v36 = vsub.f32 2.0, %v4283_v11  ;;  %9040 = vrcp.f32 %v12935_v40  ;;  %v5573_v34 = vmul.f32 %v5206_v6, %v15552_v60  ;;  %v12948_v47 = vpop.xlane.xlu1 %3958  ;;  %5349 = vmatmul.mubr.bf16.gmra.mrb[248].mxu1 %v4920_v10  ;;  %v5574_v39 = vmul.f32 %v5209_v3, %v15552_v60 }
 0x829   : > { %v12950_v14 = vpop.eup %9026  ;;  %9042 = vpow2.f32 %v3624_v54  ;;  %v5211_v20 = vpop.f32.mrb[179].mxu1  ;;  %v4753_v32 = vmul.f32 %v15683_v52, %v4538_v37  ;;  %v4752_v24 = vmul.f32 %v15684_v59, %v4538_v37 }
 0x82a   : > { %v2876_v48 = vpop.xlane.xlu0 %2875  ;;  %v9029_v56 = vpop.eup %9028  ;;  %v4539_v11 = vmul.f32 %v9023_v61, %v4411_v36  ;;  %9044 = vpow2.f32 %v3626_v22  ;;  %v12956_v49 = vadd.f32 %v5573_v34, %v12904_v38  ;;  %v12964_v54 = vadd.f32 %v5574_v39, %v12913_v46  ;;  %v15686_v36 = vld [vmem:[#allocation104_spill] sm:$0xff]  ;;  %v15687_v34 = vld [vmem:[#allocation166_spill] sm:$0xff] }
 0x82b   : > { %v3144_v6 = vsub.f32 %v15536_v42, %v2876_v48  ;;  %v12959_v21 = vpop.eup %9030  ;;  %v4284_v10 = vmul.f32 %v9029_v56, %v12895_v30  ;;  %9046 = vrcp.f32 %v12948_v47  ;;  %v3145_v23 = vsub.f32 %v15537_v53, %v2876_v48 }
 0x82c   : > { %15685 = vst [vmem:[#allocation175_spill] sm:$0xff] %v12964_v54  ;;  %v12967_v37 = vpop.eup %9032  ;;  %v2879_v22 = vpop.xlane.xlu1 %2878  ;;  %v4014_v38 = vadd.f32 %v12950_v14, %v12940_v9  ;;  %v4755_v42 = vmul.f32 %v15686_v36, %v4539_v11  ;;  %v4754_v3 = vmul.f32 %v15687_v34, %v4539_v11 }
 0x82d   : > { %v3628_v61 = vmul.f32 1.442695, %v3144_v6  ;;  %v9035_v20 = vpop.eup %9034  ;;  %v4412_v30 = vsub.f32 2.0, %v4284_v10  ;;  %v3630_v52 = vmul.f32 1.442695, %v3145_v23  ;;  %v3146_v59 = vsub.f32 %v15542_v63, %v2879_v22  ;;  %v5214_v10 = vpop.f32.mrb[180].mxu1 }
 0x82e   : > { %v3147_v46 = vsub.f32 %v15543_v45, %v2879_v22  ;;  %v12975_v39 = vpop.xlane.xlu0 %3961  ;;  %v4285_v53 = vmul.f32 %v9035_v20, %v12907_v17  ;;  %4015 = vadd.xlane.f32.xlu0 %v4014_v38  ;;  %v4923_v48 = vpack.c.bf16 %v4755_v42, %v4753_v32  ;;  %v4017_v6 = vadd.f32 %v12967_v37, %v12959_v21  ;;  %v15689_v42 = vld [vmem:[#allocation100_spill] sm:$0xff] }
 0x82f   : > { %9048 = vpow2.f32 %v3628_v61  ;;  %v4540_v36 = vmul.f32 %v9029_v56, %v4412_v30  ;;  %v3632_v11 = vmul.f32 1.442695, %v3146_v59  ;;  %v5575_v45 = vmul.f32 %v5214_v10, %v15552_v60  ;;  %v5216_v61 = vpop.f32.mrb[181].mxu1  ;;  %v15688_v56 = vld [vmem:[#allocation52_spill] sm:$0xff] }
 0x830   : > { %9050 = vpow2.f32 %v3630_v52  ;;  %v3634_v34 = vmul.f32 1.442695, %v3147_v46  ;;  %v12980_v23 = vpop.eup %9036  ;;  %v4413_v63 = vsub.f32 2.0, %v4285_v53  ;;  %5356 = vmatprep.mubr.bf16.mxu1 %v4923_v48  ;;  %4018 = vadd.xlane.f32.xlu1 %v4017_v6  ;;  %v4922_v17 = vpack.c.bf16 %v4754_v3, %v4752_v24  ;;  %v12984_v32 = vpop.xlane.xlu1 %3964  ;;  %v15690_v46 = vld [vmem:[#allocation145_spill] sm:$0xff] }
 0x831   : > { %9052 = vrcp.f32 %v12975_v39  ;;  %v12986_v22 = vpop.eup %9038  ;;  %v5545_v38 = vmul.f32 %v15688_v56, %v15550_v28  ;;  %v4756_v30 = vmul.f32 %v15689_v42, %v4540_v36  ;;  %v5217_v52 = vpop.f32.mrb[182].mxu1  ;;  %v4757_v53 = vmul.f32 %v15690_v46, %v4540_v36 }
 0x832   : > { %9054 = vpow2.f32 %v3632_v11  ;;  %v2882_v59 = vpop.xlane.xlu0 %2881  ;;  %v9041_v48 = vpop.eup %9040  ;;  %v4541_v6 = vmul.f32 %v9035_v20, %v4413_v63  ;;  %v12993_v24 = vadd.f32 %v5575_v45, %v12917_v58  ;;  %5357 = vmatmul.mubr.bf16.gmra.mrb[252].mxu1 %v4922_v17  ;;  %v5576_v3 = vmul.f32 %v5217_v52, %v15552_v60  ;;  %v15693_v45 = vld [vmem:[#allocation130_spill] sm:$0xff] }
 0x833   : > { %9056 = vpow2.f32 %v3634_v34  ;;  %v5219_v10 = vpop.f32.mrb[183].mxu1  ;;  %v12996_v61 = vpop.eup %9042  ;;  %v4286_v56 = vmul.f32 %v9041_v48, %v12935_v40  ;;  %v3148_v11 = vsub.f32 %v15555_v29, %v2882_v59  ;;  %v3149_v36 = vsub.f32 %v15556_v55, %v2882_v59 }
 0x834   : > { %15691 = vst [vmem:[#allocation176_spill] sm:$0xff] %v12993_v24  ;;  %9058 = vrcp.f32 %v12984_v32  ;;  %v13002_v42 = vpop.eup %9044  ;;  %v4758_v20 = vmul.f32 %v12510_v16, %v4541_v6  ;;  %v13006_v58 = vadd.f32 %v5576_v3, %v12944_v1  ;;  %v2885_v34 = vpop.xlane.xlu1 %2884  ;;  %v4020_v63 = vadd.f32 %v12986_v22, %v12980_v23  ;;  %v15694_v24 = vld [vmem:[#allocation184_spill] sm:$0xff] }
 0x835   : > { %v4759_v17 = vmul.f32 %v15693_v45, %v4541_v6  ;;  %v9047_v40 = vpop.eup %9046  ;;  %v4414_v52 = vsub.f32 2.0, %v4286_v56  ;;  %v3636_v46 = vmul.f32 1.442695, %v3148_v11  ;;  %v3638_v10 = vmul.f32 1.442695, %v3149_v36  ;;  %v5222_v56 = vpop.f32.mrb[184].mxu1 }
 0x836   : > { %15692 = vst [vmem:[#allocation45_spill] sm:$0xff] %v13006_v58  ;;  %v3150_v29 = vsub.f32 %v15563_v12, %v2885_v34  ;;  %v13012_v55 = vpop.xlane.xlu0 %3967  ;;  %v4924_v59 = vpack.c.bf16 %v4758_v20, %v4756_v30  ;;  %v4287_v16 = vmul.f32 %v9047_v40, %v12948_v47  ;;  %v3151_v1 = vsub.f32 %v15694_v24, %v2885_v34  ;;  %v5224_v47 = vpop.f32.mrb[185].mxu1  ;;  %v15696_v34 = vld [vmem:[#allocation147_spill] sm:$0xff] }
 0x837   : > { %4021 = vadd.xlane.f32.xlu0 %v4020_v63  ;;  %v4925_v3 = vpack.c.bf16 %v4759_v17, %v4757_v53  ;;  %v4542_v58 = vmul.f32 %v9041_v48, %v4414_v52  ;;  %9060 = vpow2.f32 %v3636_v46  ;;  %v4023_v6 = vadd.f32 %v13002_v42, %v12996_v61  ;;  %v15695_v53 = vld [vmem:[#allocation47_spill] sm:$0xff]  ;;  %v5225_v45 = vpop.f32.mrb[186].mxu1  ;;  %v15697_v52 = vld [vmem:[#allocation60_spill] sm:$0xff] }
 0x838   : > { %v3640_v54 = vmul.f32 1.442695, %v3150_v29  ;;  %v4415_v36 = vsub.f32 2.0, %v4287_v16  ;;  %9062 = vpow2.f32 %v3638_v10  ;;  %v3642_v12 = vmul.f32 1.442695, %v3151_v1  ;;  %v13021_v20 = vpop.xlane.xlu1 %3970 }
 0x839   : > { %v13018_v11 = vpop.eup %9048  ;;  %5364 = vmatprep.mubr.bf16.mxu1 %v4925_v3  ;;  %v5577_v30 = vmul.f32 %v5222_v56, %v15552_v60  ;;  %v5546_v48 = vmul.f32 %v15695_v53, %v15550_v28  ;;  %v4760_v63 = vmul.f32 %v15696_v34, %v4542_v58  ;;  %4024 = vadd.xlane.f32.xlu1 %v4023_v6  ;;  %v5227_v3 = vpop.f32.mrb[187].mxu1 }
 0x83a   : > { %v13023_v24 = vpop.eup %9050  ;;  %9064 = vpow2.f32 %v3640_v54  ;;  %v2888_v17 = vpop.xlane.xlu0 %2887  ;;  %v4761_v46 = vmul.f32 %v15697_v52, %v4542_v58  ;;  %v4543_v29 = vmul.f32 %v9047_v40, %v4415_v36  ;;  %5365 = vmatmul.mubr.bf16.gmra.mrb[0].mxu1 %v4924_v59  ;;  %v5578_v1 = vmul.f32 %v5225_v45, %v15552_v60  ;;  %v15699_v40 = vld [vmem:[#allocation148_spill] sm:$0xff] }
 0x83b   : > { %v9053_v10 = vpop.eup %9052  ;;  %9066 = vpow2.f32 %v3642_v12  ;;  %v13029_v16 = vadd.f32 %v5577_v30, %v5545_v38  ;;  %v3152_v54 = vsub.f32 %v15570_v35, %v2888_v17  ;;  %v3153_v6 = vsub.f32 %v15571_v26, %v2888_v17  ;;  %v15701_v17 = vld [vmem:[#allocation188_spill] sm:$0xff] }
 0x83c   : > { %v13032_v56 = vpop.eup %9054  ;;  %v4288_v47 = vmul.f32 %v9053_v10, %v12975_v39  ;;  %9068 = vrcp.f32 %v13012_v55  ;;  %v4762_v36 = vmul.f32 %v15699_v40, %v4543_v29  ;;  %v13042_v38 = vadd.f32 %v5578_v1, %v5546_v48  ;;  %v2891_v59 = vpop.xlane.xlu1 %2890  ;;  %v15702_v3 = vld [vmem:[#allocation168_spill] sm:$0xff] }
 0x83d   : > { %15698 = vst [vmem:[#allocation80_spill] sm:$0xff] %v13029_v16  ;;  %v13038_v58 = vpop.eup %9056  ;;  %9070 = vrcp.f32 %v13021_v20  ;;  %v4026_v12 = vadd.f32 %v13023_v24, %v13018_v11  ;;  %v3644_v53 = vmul.f32 1.442695, %v3152_v54  ;;  %v3646_v34 = vmul.f32 1.442695, %v3153_v6  ;;  %v5230_v16 = vpop.f32.mrb[188].mxu1 }
 0x83e   : > { %15700 = vst [vmem:[#allocation177_spill] sm:$0xff] %v13042_v38  ;;  %v9059_v30 = vpop.eup %9058  ;;  %v4416_v39 = vsub.f32 2.0, %v4288_v47  ;;  %v3154_v35 = vsub.f32 %v15576_v18, %v2891_v59  ;;  %v4926_v45 = vpack.c.bf16 %v4762_v36, %v4760_v63  ;;  %v3155_v52 = vsub.f32 %v15701_v17, %v2891_v59  ;;  %v5232_v18 = vpop.f32.mrb[189].mxu1  ;;  %v15705_v17 = vld [vmem:[#allocation164_spill] sm:$0xff] }
 0x83f   : > { %v4289_v26 = vmul.f32 %v9059_v30, %v12984_v32  ;;  %4027 = vadd.xlane.f32.xlu0 %v4026_v12  ;;  %v4763_v40 = vmul.f32 %v15702_v3, %v4543_v29  ;;  %9072 = vpow2.f32 %v3644_v53  ;;  %v4029_v38 = vadd.f32 %v13038_v58, %v13032_v56  ;;  %v15703_v32 = vld [vmem:[#allocation48_spill] sm:$0xff]  ;;  %v5233_v29 = vpop.f32.mrb[190].mxu1 }
 0x840   : > { %v4544_v48 = vmul.f32 %v9053_v10, %v4416_v39  ;;  %v3648_v1 = vmul.f32 1.442695, %v3154_v35  ;;  %9074 = vpow2.f32 %v3646_v34  ;;  %v3650_v54 = vmul.f32 1.442695, %v3155_v52  ;;  %v15704_v12 = vld [vmem:[#allocation108_spill] sm:$0xff]  ;;  %v5235_v34 = vpop.f32.mrb[191].mxu1 }
 0x841   : > { %v4417_v47 = vsub.f32 2.0, %v4289_v26  ;;  %v4927_v6 = vpack.c.bf16 %v4763_v40, %v4761_v46  ;;  %v13052_v63 = vpop.eup %9060  ;;  %v5547_v36 = vmul.f32 %v15703_v32, %v15550_v28  ;;  %4030 = vadd.xlane.f32.xlu1 %v4029_v38  ;;  %v5579_v10 = vmul.f32 %v5230_v16, %v15552_v60 }
 0x842   : > { %9076 = vpow2.f32 %v3648_v1  ;;  %v13057_v59 = vpop.eup %9062  ;;  %v5548_v39 = vmul.f32 %v15704_v12, %v15550_v28  ;;  %v5580_v46 = vmul.f32 %v5233_v29, %v15552_v60  ;;  %v15708_v1 = vld [vmem:[#allocation54_spill] sm:$0xff] }
 0x843   : > { %v4545_v53 = vmul.f32 %v9059_v30, %v4417_v47  ;;  %9078 = vpow2.f32 %v3650_v54  ;;  %5372 = vmatprep.mubr.bf16.mxu1 %v4927_v6  ;;  %v13064_v26 = vadd.f32 %v5579_v10, %v5547_v36  ;;  %v4032_v16 = vadd.f32 %v13057_v59, %v13052_v63  ;;  %v15707_v30 = vld [vmem:[#allocation121_spill] sm:$0xff] }
 0x844   : > { %v13062_v35 = vpop.eup %9064  ;;  %5373 = vmatmul.mubr.bf16.gmra.mrb[4].mxu1 %v4926_v45  ;;  %v13071_v3 = vadd.f32 %v5580_v46, %v5548_v39  ;;  %v4765_v40 = vmul.f32 %v15707_v30, %v4544_v48  ;;  %v15709_v6 = vld [vmem:[#allocation109_spill] sm:$0xff]  ;;  %v5238_v39 = vpop.f32.mrb[192].mxu1  ;;  %v15710_v46 = vld [vmem:[#allocation162_spill] sm:$0xff] }
 0x845   : > { %v13068_v38 = vpop.eup %9066  ;;  %v4766_v52 = vmul.f32 %v15705_v17, %v4545_v53  ;;  %v4767_v47 = vmul.f32 %v15708_v1, %v4545_v53  ;;  %v4764_v18 = vmul.f32 %v15709_v6, %v4544_v48  ;;  %4033 = vadd.xlane.f32.xlu0 %v4032_v16  ;;  %v5549_v34 = vmul.f32 %v15710_v46, %v15550_v28  ;;  %v5240_v16 = vpop.f32.mrb[193].mxu1  ;;  %v5757_v17 = vld [vmem:[#allocation2 + $0x198] sm:$0xff]  ;;  %v5758_v30 = vld [vmem:[#allocation2 + $0x1c8] sm:$0xff] }
 0x846   : > { %15706 = vst [vmem:[#allocation178_spill] sm:$0xff] %v13071_v3  ;;  %v9069_v54 = vpop.eup %9068  ;;  %v4035_v45 = vadd.f32 %v13068_v38, %v13062_v35  ;;  %v5581_v48 = vmul.f32 %v5238_v39, %v15552_v60 }
 0x847   : > { %v9071_v32 = vpop.eup %9070  ;;  %v4290_v36 = vmul.f32 %v9069_v54, %v13012_v55  ;;  %v4929_v10 = vpack.c.bf16 %v4767_v47, %v4765_v40  ;;  %v4928_v29 = vpack.c.bf16 %v4766_v52, %v4764_v18  ;;  %v5241_v55 = vpop.f32.mrb[194].mxu1  ;;  %v8205_v40 = vpack.c.bf16 %v5758_v30, %v5757_v17  ;;  %v15713_v17 = vld [vmem:[#allocation150_spill] sm:$0xff] }
 0x848   : > { %v4291_v12 = vmul.f32 %v9071_v32, %v13021_v20  ;;  %4036 = vadd.xlane.f32.xlu1 %v4035_v45  ;;  %v15711_v20 = vld [vmem:[#allocation85_spill] sm:$0xff]  ;;  %v13089_v45 = vadd.f32 %v5581_v48, %v5549_v34 }
 0x849   : > { %v4418_v53 = vsub.f32 2.0, %v4290_v36  ;;  %5380 = vmatprep.mubr.bf16.mxu1 %v4929_v10  ;;  %v13083_v1 = vpop.eup %9072  ;;  %v5550_v47 = vmul.f32 %v15711_v20, %v15550_v28  ;;  %v5582_v36 = vmul.f32 %v5241_v55, %v15552_v60  ;;  %v5243_v10 = vpop.f32.mrb[195].mxu1  ;;  %8206 = vmatprep.subr.bf16.mxu0 %v8205_v40  ;;  %v15717_v55 = vld [vmem:[#allocation124_spill] sm:$0xff] }
 0x84a   : > { %v4419_v6 = vsub.f32 2.0, %v4291_v12  ;;  %v13085_v52 = vpop.eup %9074  ;;  %15712 = vst [vmem:[#allocation179_spill] sm:$0xff] %v13089_v45  ;;  %8208 = vmatpush3.bf16.msra.mxu0 %v8205_v40  ;;  %v15718_v45 = vld [vmem:[#allocation75_spill] sm:$0xff] }
 0x84b   : > { %v4546_v18 = vmul.f32 %v9069_v54, %v4418_v53  ;;  %v4038_v12 = vadd.f32 %v13085_v52, %v13083_v1  ;;  %v13099_v3 = vadd.f32 %v5582_v36, %v5550_v47  ;;  %v15715_v54 = vld [vmem:[#allocation62_spill] sm:$0xff]  ;;  %v15716_v53 = vld [vmem:[#allocation119_spill] sm:$0xff] }
 0x84c   : > { %v13092_v39 = vpop.eup %9076  ;;  %v4547_v46 = vmul.f32 %v9071_v32, %v4419_v6  ;;  %5381 = vmatmul.mubr.bf16.gmra.mrb[8].mxu1 %v4928_v29  ;;  %v5246_v10 = vpop.f32.mrb[196].mxu1 }
 0x84d   : > { %v13096_v16 = vpop.eup %9078  ;;  %v4768_v30 = vmul.f32 %v15713_v17, %v4546_v18  ;;  %15714 = vst [vmem:[#allocation180_spill] sm:$0xff] %v13099_v3  ;;  %4039 = vadd.xlane.f32.xlu0 %v4038_v12  ;;  %v4769_v48 = vmul.f32 %v15716_v53, %v4546_v18  ;;  %v5551_v17 = vmul.f32 %v15718_v45, %v15550_v28  ;;  %v5248_v40 = vpop.f32.mrb[197].mxu1  ;;  %v15719_v12 = vld [vmem:[#allocation128_spill] sm:$0xff] }
 0x84e   : > { %v4770_v34 = vmul.f32 %v15715_v54, %v4547_v46  ;;  %v4771_v20 = vmul.f32 %v15717_v55, %v4547_v46  ;;  %v4041_v32 = vadd.f32 %v13096_v16, %v13092_v39  ;;  %v5583_v47 = vmul.f32 %v5246_v10, %v15552_v60  ;;  %v5249_v36 = vpop.f32.mrb[198].mxu1 }
 0x84f   : > { %v5552_v18 = vmul.f32 %v15719_v12, %v15550_v28  ;;  %v5584_v46 = vmul.f32 %v5249_v36, %v15552_v60  ;;  %v5251_v53 = vpop.f32.mrb[199].mxu1  ;;  %v15726_v12 = vld [vmem:[#allocation79_spill] sm:$0xff] }
 0x850   : > { %v4930_v29 = vpack.c.bf16 %v4770_v34, %v4768_v30  ;;  %v4931_v6 = vpack.c.bf16 %v4771_v20, %v4769_v48  ;;  %4042 = vadd.xlane.f32.xlu1 %v4041_v32  ;;  %v13111_v54 = vadd.f32 %v5583_v47, %v5551_v17  ;;  %v15722_v48 = vld [vmem:[#allocation169_spill] sm:$0xff] }
 0x851   : > { %v13114_v30 = vadd.f32 %v5584_v46, %v5552_v18  ;;  %v5553_v45 = vmul.f32 %v15722_v48, %v15550_v28  ;;  %v5555_v18 = vmul.f32 %v15726_v12, %v15550_v28  ;;  %v15727_v48 = vld [vmem:[#allocation149_spill] sm:$0xff]  ;;  %v15731_v12 = vld [vmem:[#allocation115_spill] sm:$0xff] }
 0x852   : > { %5388 = vmatprep.mubr.bf16.mxu1 %v4931_v6  ;;  %15720 = vst [vmem:[#allocation46_spill] sm:$0xff] %v13111_v54  ;;  %v15723_v6 = vld [vmem:[#allocation131_spill] sm:$0xff] }
 0x853   : > { %15721 = vst [vmem:[#allocation102_spill] sm:$0xff] %v13114_v30  ;;  %v5554_v10 = vmul.f32 %v15723_v6, %v15550_v28  ;;  %v15733_v54 = vld [vmem:[#allocation151_spill] sm:$0xff] }
 0x854   : > { %5389 = vmatmul.mubr.bf16.gmra.mrb[12].mxu1 %v4930_v29 }
 0x855   : > { %v5254_v34 = vpop.f32.mrb[200].mxu1 }
 0x856   : > { %v5585_v55 = vmul.f32 %v5254_v34, %v15552_v60  ;;  %v5256_v20 = vpop.f32.mrb[201].mxu1 }
 0x857   : > { %v5257_v32 = vpop.f32.mrb[202].mxu1  ;;  %v5556_v20 = vmul.f32 %v15727_v48, %v15550_v28  ;;  %v15735_v48 = vld [vmem:[#allocation56_spill] sm:$0xff] }
 0x858   : > { %v13121_v40 = vadd.f32 %v5585_v55, %v5553_v45  ;;  %v5586_v17 = vmul.f32 %v5257_v32, %v15552_v60  ;;  %v5259_v47 = vpop.f32.mrb[203].mxu1 }
 0x85a   : > { %15724 = vst [vmem:[#allocation120_spill] sm:$0xff] %v13121_v40  ;;  %v13124_v36 = vadd.f32 %v5586_v17, %v5554_v10  ;;  %v15730_v10 = vld [vmem:[#allocation7_spill] sm:$0xff] }
 0x85c   : > { %15725 = vst [vmem:[#allocation133_spill] sm:$0xff] %v13124_v36 }
 0x85e   : > { %v5262_v29 = vpop.f32.mrb[204].mxu1 }
 0x85f   : > { %v5587_v46 = vmul.f32 %v5262_v29, %v15552_v60  ;;  %v5264_v53 = vpop.f32.mrb[205].mxu1 }
 0x860   : > { %v5265_v34 = vpop.f32.mrb[206].mxu1 }
 0x861   : > { %v13131_v30 = vadd.f32 %v5587_v46, %v5555_v18  ;;  %v5588_v45 = vmul.f32 %v5265_v34, %v15552_v60  ;;  %v5267_v55 = vpop.f32.mrb[207].mxu1 }
 0x863   : > { %15728 = vst [vmem:[#allocation41_spill] sm:$0xff] %v13131_v30  ;;  %v13134_v32 = vadd.f32 %v5588_v45, %v5556_v20 }
 0x865   : > { %15729 = vst [vmem:[#allocation61_spill] sm:$0xff] %v13134_v32 }
 0x867   : > { %v5270_v6 = vpop.f32.mrb[208].mxu1 }
 0x868   : > { %v5589_v17 = vmul.f32 %v5270_v6, %v15730_v10  ;;  %v5272_v47 = vpop.f32.mrb[209].mxu1  ;;  %v15737_v6 = vld [vmem:[#allocation81_spill] sm:$0xff] }
 0x869   : > { %v5273_v36 = vpop.f32.mrb[210].mxu1 }
 0x86a   : > { %v13138_v40 = vadd.f32 %v15731_v12, %v5589_v17  ;;  %v5590_v29 = vmul.f32 %v5273_v36, %v15730_v10  ;;  %v5275_v53 = vpop.f32.mrb[211].mxu1 }
 0x86c   : > { %15732 = vst [vmem:[#allocation6_spill] sm:$0xff] %v13138_v40  ;;  %v13142_v28 = vadd.f32 %v15733_v54, %v5590_v29  ;;  %v5759_v54 = vld [vmem:[#allocation2 + $0x1f8] sm:$0xff]  ;;  %v5760_v29 = vld [vmem:[#allocation2 + $0x228] sm:$0xff] }
 0x86e   : > { %15734 = vst [vmem:[#allocation157_spill] sm:$0xff] %v13142_v28  ;;  %v8209_v28 = vpack.c.bf16 %v5760_v29, %v5759_v54 }
 0x86f   : > { %v5278_v18 = vpop.f32.mrb[212].mxu1 }
 0x870   : > { %v5591_v60 = vmul.f32 %v5278_v18, %v15730_v10  ;;  %v5280_v46 = vpop.f32.mrb[213].mxu1  ;;  %v15739_v18 = vld [vmem:[#allocation152_spill] sm:$0xff]  ;;  %8210 = vmatprep.subr.bf16.mxu0 %v8209_v28 }
 0x871   : > { %v5281_v34 = vpop.f32.mrb[214].mxu1  ;;  %8212 = vmatpush3.bf16.msra.mxu0 %v8209_v28 }
 0x872   : > { %v13146_v20 = vadd.f32 %v15735_v48, %v5591_v60  ;;  %v5592_v45 = vmul.f32 %v5281_v34, %v15730_v10  ;;  %v5283_v55 = vpop.f32.mrb[215].mxu1  ;;  %v15741_v34 = vld [vmem:[#allocation67_spill] sm:$0xff] }
 0x874   : > { %15736 = vst [vmem:[#allocation181_spill] sm:$0xff] %v13146_v20  ;;  %v13150_v17 = vadd.f32 %v15737_v6, %v5592_v45  ;;  %v15743_v20 = vld [vmem:[#allocation83_spill] sm:$0xff] }
 0x876   : > { %15738 = vst [vmem:[#allocation182_spill] sm:$0xff] %v13150_v17 }
 0x877   : > { %v5286_v47 = vpop.f32.mrb[216].mxu1 }
 0x878   : > { %v5593_v36 = vmul.f32 %v5286_v47, %v15730_v10  ;;  %v5288_v12 = vpop.f32.mrb[217].mxu1 }
 0x879   : > { %v5289_v53 = vpop.f32.mrb[218].mxu1 }
 0x87a   : > { %v13154_v46 = vadd.f32 %v15739_v18, %v5593_v36  ;;  %v5594_v60 = vmul.f32 %v5289_v53, %v15730_v10  ;;  %v5291_v48 = vpop.f32.mrb[219].mxu1  ;;  %v15745_v53 = vld [vmem:[#allocation64_spill] sm:$0xff] }
 0x87c   : > { %15740 = vst [vmem:[#allocation69_spill] sm:$0xff] %v13154_v46  ;;  %v13158_v55 = vadd.f32 %v15741_v34, %v5594_v60  ;;  %v3974_v12 = vpop.xlane.xlu0 %3973  ;;  %v15747_v34 = vld [vmem:[#allocation190_spill] sm:$0xff] }
 0x87d   : > { %9080 = vrcp.f32 %v3974_v12 }
 0x87e   : > { %15742 = vst [vmem:[#allocation183_spill] sm:$0xff] %v13158_v55 }
 0x87f   : > { %v5294_v45 = vpop.f32.mrb[220].mxu1 }
 0x880   : > { %v5595_v6 = vmul.f32 %v5294_v45, %v15730_v10  ;;  %v5296_v47 = vpop.f32.mrb[221].mxu1 }
 0x881   : > { %v5297_v17 = vpop.f32.mrb[222].mxu1  ;;  %v3977_v48 = vpop.xlane.xlu1 %3976 }
 0x882   : > { %v13162_v54 = vadd.f32 %v15743_v20, %v5595_v6  ;;  %v5596_v36 = vmul.f32 %v5297_v17, %v15730_v10  ;;  %v5299_v29 = vpop.f32.mrb[223].mxu1  ;;  %9082 = vrcp.f32 %v3977_v48 }
 0x883   : > { %v2894_v60 = vpop.xlane.xlu0 %2893 }
 0x884   : > { %15744 = vst [vmem:[#allocation68_spill] sm:$0xff] %v13162_v54  ;;  %v13166_v18 = vadd.f32 %v15745_v53, %v5596_v36  ;;  %v3156_v28 = vsub.f32 %v15613_v0, %v2894_v60  ;;  %v3157_v45 = vsub.f32 %v15747_v34, %v2894_v60 }
 0x886   : > { %15746 = vst [vmem:[#allocation101_spill] sm:$0xff] %v13166_v18  ;;  %v3652_v47 = vmul.f32 1.442695, %v3156_v28  ;;  %v3654_v55 = vmul.f32 1.442695, %v3157_v45 }
 0x887   : > { %v3980_v6 = vpop.xlane.xlu0 %3979  ;;  %v9081_v17 = vpop.eup %9080 }
 0x888   : > { %v2897_v46 = vpop.xlane.xlu1 %2896  ;;  %9084 = vpow2.f32 %v3652_v47  ;;  %v4292_v53 = vmul.f32 %v9081_v17, %v3974_v12 }
 0x889   : > { %v3158_v40 = vsub.f32 %v15621_v57, %v2897_v46  ;;  %v3159_v20 = vsub.f32 %v15622_v13, %v2897_v46  ;;  %9086 = vpow2.f32 %v3654_v55 }
 0x88a   : > { %9088 = vrcp.f32 %v3980_v6  ;;  %v4420_v54 = vsub.f32 2.0, %v4292_v53 }
 0x88b   : > { %v3656_v36 = vmul.f32 1.442695, %v3158_v40  ;;  %v3658_v29 = vmul.f32 1.442695, %v3159_v20 }
 0x88c   : > { %v3983_v18 = vpop.xlane.xlu1 %3982  ;;  %v9083_v57 = vpop.eup %9082  ;;  %v4548_v55 = vmul.f32 %v9081_v17, %v4420_v54  ;;  %v15749_v17 = vld [vmem:[#allocation110_spill] sm:$0xff] }
 0x88d   : > { %9090 = vpow2.f32 %v3656_v36  ;;  %v2900_v0 = vpop.xlane.xlu0 %2899  ;;  %v4293_v13 = vmul.f32 %v9083_v57, %v3977_v48 }
 0x88e   : > { %9092 = vpow2.f32 %v3658_v29  ;;  %v3160_v60 = vsub.f32 %v15628_v2, %v2900_v0  ;;  %v3161_v28 = vsub.f32 %v15629_v50, %v2900_v0  ;;  %v15748_v0 = vld [vmem:[#allocation155_spill] sm:$0xff] }
 0x88f   : > { %9094 = vrcp.f32 %v3983_v18  ;;  %v4421_v20 = vsub.f32 2.0, %v4293_v13  ;;  %v4772_v54 = vmul.f32 %v15748_v0, %v4548_v55 }
 0x890   : > { %v3660_v46 = vmul.f32 1.442695, %v3160_v60  ;;  %v3662_v34 = vmul.f32 1.442695, %v3161_v28  ;;  %v2903_v45 = vpop.xlane.xlu1 %2902  ;;  %v15750_v28 = vld [vmem:[#allocation129_spill] sm:$0xff] }
 0x891   : > { %v3162_v40 = vsub.f32 %v15635_v33, %v2903_v45  ;;  %v3163_v12 = vsub.f32 %v15636_v25, %v2903_v45  ;;  %v3986_v47 = vpop.xlane.xlu0 %3985  ;;  %v4549_v50 = vmul.f32 %v9083_v57, %v4421_v20  ;;  %v4773_v25 = vmul.f32 %v15749_v17, %v4548_v55  ;;  %v15752_v20 = vld [vmem:[#allocation58_spill] sm:$0xff] }
 0x892   : > { %9096 = vpow2.f32 %v3660_v46  ;;  %v13176_v2 = vpop.eup %9084 }
 0x893   : > { %9098 = vpow2.f32 %v3662_v34  ;;  %v3664_v36 = vmul.f32 1.442695, %v3162_v40  ;;  %v3666_v29 = vmul.f32 1.442695, %v3163_v12  ;;  %v13180_v48 = vpop.eup %9086  ;;  %v4774_v13 = vmul.f32 %v15750_v28, %v4549_v50  ;;  %v15751_v34 = vld [vmem:[#allocation93_spill] sm:$0xff] }
 0x894   : > { %9100 = vrcp.f32 %v3986_v47  ;;  %v13178_v53 = vpop.xlane.xlu1 %3988  ;;  %v9089_v60 = vpop.eup %9088  ;;  %v4044_v12 = vadd.f32 %v13180_v48, %v13176_v2 }
 0x895   : > { %9102 = vpow2.f32 %v3664_v36  ;;  %v2906_v33 = vpop.xlane.xlu0 %2905  ;;  %v4294_v40 = vmul.f32 %v9089_v60, %v3980_v6  ;;  %v4775_v36 = vmul.f32 %v15752_v20, %v4549_v50  ;;  %v4932_v55 = vpack.c.bf16 %v4774_v13, %v4772_v54 }
 0x896   : > { %9104 = vpow2.f32 %v3666_v29  ;;  %v3164_v46 = vsub.f32 %v15642_v5, %v2906_v33  ;;  %v3165_v45 = vsub.f32 %v15751_v34, %v2906_v33  ;;  %4045 = vadd.xlane.f32.xlu0 %v4044_v12 }
 0x897   : > { %v13187_v57 = vpop.eup %9090  ;;  %9106 = vrcp.f32 %v13178_v53  ;;  %v4422_v5 = vsub.f32 2.0, %v4294_v40  ;;  %v4933_v6 = vpack.c.bf16 %v4775_v36, %v4773_v25 }
 0x898   : > { %v13193_v0 = vpop.eup %9092  ;;  %v3668_v17 = vmul.f32 1.442695, %v3164_v46  ;;  %v3670_v28 = vmul.f32 1.442695, %v3165_v45  ;;  %v2909_v29 = vpop.xlane.xlu1 %2908 }
 0x899   : > { %15753 = vst [vmem:[#allocation167_spill] sm:$0xff] %v13193_v0  ;;  %v9095_v32 = vpop.eup %9094  ;;  %v3166_v33 = vsub.f32 %v15650_v4, %v2909_v29  ;;  %v3167_v34 = vsub.f32 %v15651_v7, %v2909_v29  ;;  %v13197_v30 = vpop.xlane.xlu0 %3991  ;;  %v4047_v50 = vadd.f32 %v13193_v0, %v13187_v57  ;;  %v4550_v20 = vmul.f32 %v9089_v60, %v4422_v5  ;;  %v15757_v5 = vld [vmem:[#allocation156_spill] sm:$0xff] }
 0x89a   : > { %v4295_v3 = vmul.f32 %v9095_v32, %v3983_v18  ;;  %9108 = vpow2.f32 %v3668_v17  ;;  %5396 = vmatprep.mubr.bf16.mxu1 %v4933_v6  ;;  %v15755_v18 = vld [vmem:[#allocation114_spill] sm:$0xff]  ;;  %v15758_v6 = vld [vmem:[#allocation127_spill] sm:$0xff] }
 0x89b   : > { %9110 = vpow2.f32 %v3670_v28  ;;  %v3672_v54 = vmul.f32 1.442695, %v3166_v33  ;;  %v3674_v13 = vmul.f32 1.442695, %v3167_v34  ;;  %4048 = vadd.xlane.f32.xlu1 %v4047_v50  ;;  %5397 = vmatmul.mubr.bf16.gmra.mrb[16].mxu1 %v4932_v55  ;;  %v4776_v25 = vmul.f32 %v15755_v18, %v4550_v20  ;;  %v15756_v17 = vld [vmem:[#allocation42_spill] sm:$0xff] }
 0x89c   : > { %v13201_v46 = vpop.eup %9096  ;;  %v4423_v45 = vsub.f32 2.0, %v4295_v3  ;;  %9112 = vrcp.f32 %v13197_v30  ;;  %v13204_v4 = vpop.xlane.xlu1 %3994  ;;  %v4777_v33 = vmul.f32 %v15757_v5, %v4550_v20 }
 0x89d   : > { %v13206_v7 = vpop.eup %9098  ;;  %9114 = vpow2.f32 %v3672_v54  ;;  %v2912_v40 = vpop.xlane.xlu0 %2911 }
 0x89e   : > { %15754 = vst [vmem:[#allocation87_spill] sm:$0xff] %v13206_v7  ;;  %v9101_v60 = vpop.eup %9100  ;;  %v4551_v12 = vmul.f32 %v9095_v32, %v4423_v45  ;;  %9116 = vpow2.f32 %v3674_v13  ;;  %v3168_v36 = vsub.f32 %v15657_v31, %v2912_v40  ;;  %v3169_v28 = vsub.f32 %v15756_v17, %v2912_v40  ;;  %v15759_v31 = vld [vmem:[#allocation65_spill] sm:$0xff] }
 0x89f   : > { %v13211_v3 = vpop.eup %9102  ;;  %v4296_v29 = vmul.f32 %v9101_v60, %v3986_v47  ;;  %9118 = vrcp.f32 %v13204_v4  ;;  %v4050_v55 = vadd.f32 %v13206_v7, %v13201_v46 }
 0x8a0   : > { %v13217_v34 = vpop.eup %9104  ;;  %v4778_v50 = vmul.f32 %v15758_v6, %v4551_v12  ;;  %v3676_v32 = vmul.f32 1.442695, %v3168_v36  ;;  %v3678_v54 = vmul.f32 1.442695, %v3169_v28  ;;  %v4779_v45 = vmul.f32 %v15759_v31, %v4551_v12 }
 0x8a1   : > { %v2915_v13 = vpop.xlane.xlu1 %2914  ;;  %v9107_v18 = vpop.eup %9106  ;;  %v4424_v40 = vsub.f32 2.0, %v4296_v29  ;;  %4051 = vadd.xlane.f32.xlu0 %v4050_v55  ;;  %v4053_v20 = vadd.f32 %v13217_v34, %v13211_v3 }
 0x8a2   : > { %v3170_v47 = vsub.f32 %v15662_v62, %v2915_v13  ;;  %v3171_v17 = vsub.f32 %v15663_v51, %v2915_v13  ;;  %v3998_v0 = vpop.xlane.xlu0 %3997  ;;  %v4934_v5 = vpack.c.bf16 %v4778_v50, %v4776_v25  ;;  %v4297_v7 = vmul.f32 %v9107_v18, %v13178_v53  ;;  %v15764_v13 = vld [vmem:[#allocation140_spill] sm:$0xff] }
 0x8a3   : > { %9120 = vpow2.f32 %v3676_v32  ;;  %v4935_v36 = vpack.c.bf16 %v4779_v45, %v4777_v33  ;;  %4054 = vadd.xlane.f32.xlu1 %v4053_v20  ;;  %v4552_v29 = vmul.f32 %v9101_v60, %v4424_v40  ;;  %v15765_v45 = vld [vmem:[#allocation44_spill] sm:$0xff] }
 0x8a4   : > { %9122 = vpow2.f32 %v3678_v54  ;;  %v3680_v28 = vmul.f32 1.442695, %v3170_v47  ;;  %v3682_v6 = vmul.f32 1.442695, %v3171_v17  ;;  %v13226_v12 = vpop.eup %9108  ;;  %v4425_v55 = vsub.f32 2.0, %v4297_v7  ;;  %v15763_v7 = vld [vmem:[#allocation158_spill] sm:$0xff] }
 0x8a5   : > { %5404 = vmatprep.mubr.bf16.mxu1 %v4935_v36  ;;  %9124 = vrcp.f32 %v3998_v0  ;;  %v4001_v62 = vpop.xlane.xlu1 %4000  ;;  %v13228_v51 = vpop.eup %9110  ;;  %v4780_v54 = vmul.f32 %v15763_v7, %v4552_v29  ;;  %v4781_v40 = vmul.f32 %v15765_v45, %v4552_v29  ;;  %v15766_v47 = vld [vmem:[#allocation170_spill] sm:$0xff] }
 0x8a6   : > { %15760 = vst [vmem:[#allocation185_spill] sm:$0xff] %v13228_v51  ;;  %9126 = vpow2.f32 %v3680_v28  ;;  %5405 = vmatmul.mubr.bf16.gmra.mrb[20].mxu1 %v4934_v5  ;;  %v9113_v25 = vpop.eup %9112  ;;  %v4553_v50 = vmul.f32 %v9107_v18, %v4425_v55  ;;  %v4056_v53 = vadd.f32 %v13228_v51, %v13226_v12 }
 0x8a7   : > { %9128 = vpow2.f32 %v3682_v6  ;;  %v13232_v33 = vpop.eup %9114  ;;  %v4298_v32 = vmul.f32 %v9113_v25, %v13197_v30  ;;  %v4004_v5 = vpop.xlane.xlu0 %4003 }
 0x8a8   : > { %15761 = vst [vmem:[#allocation186_spill] sm:$0xff] %v13232_v33  ;;  %9130 = vrcp.f32 %v4001_v62  ;;  %v13235_v60 = vpop.eup %9116  ;;  %v4782_v31 = vmul.f32 %v15764_v13, %v4553_v50  ;;  %4057 = vadd.xlane.f32.xlu0 %v4056_v53  ;;  %v4783_v18 = vmul.f32 %v15766_v47, %v4553_v50 }
 0x8a9   : > { %15762 = vst [vmem:[#allocation160_spill] sm:$0xff] %v13235_v60  ;;  %v9119_v17 = vpop.eup %9118  ;;  %v4426_v20 = vsub.f32 2.0, %v4298_v32  ;;  %v4059_v36 = vadd.f32 %v13235_v60, %v13232_v33  ;;  %9132 = vrcp.f32 %v4004_v5 }
 0x8aa   : > { %v4936_v28 = vpack.c.bf16 %v4782_v31, %v4780_v54  ;;  %v4299_v30 = vmul.f32 %v9119_v17, %v13204_v4  ;;  %v4937_v6 = vpack.c.bf16 %v4783_v18, %v4781_v40  ;;  %v15769_v40 = vld [vmem:[#allocation63_spill] sm:$0xff]  ;;  %v15770_v18 = vld [vmem:[#allocation172_spill] sm:$0xff] }
 0x8ab   : > { %4060 = vadd.xlane.f32.xlu1 %v4059_v36  ;;  %v4007_v55 = vpop.xlane.xlu1 %4006  ;;  %v4554_v53 = vmul.f32 %v9113_v25, %v4426_v20  ;;  %v15771_v20 = vld [vmem:[#allocation171_spill] sm:$0xff] }
 0x8ac   : > { %v4427_v13 = vsub.f32 2.0, %v4299_v30  ;;  %5412 = vmatprep.mubr.bf16.mxu1 %v4937_v6  ;;  %9134 = vrcp.f32 %v4007_v55  ;;  %v15772_v30 = vld [vmem:[#allocation118_spill] sm:$0xff] }
 0x8ad   : > { %v13244_v7 = vpop.eup %9120  ;;  %v4784_v47 = vmul.f32 %v15769_v40, %v4554_v53  ;;  %v4785_v36 = vmul.f32 %v15771_v20, %v4554_v53 }
 0x8ae   : > { %15767 = vst [vmem:[#allocation187_spill] sm:$0xff] %v13244_v7  ;;  %v13246_v29 = vpop.eup %9122  ;;  %5413 = vmatmul.mubr.bf16.gmra.mrb[24].mxu1 %v4936_v28  ;;  %v4555_v32 = vmul.f32 %v9119_v17, %v4427_v13 }
 0x8af   : > { %15768 = vst [vmem:[#allocation97_spill] sm:$0xff] %v13246_v29  ;;  %v9125_v50 = vpop.eup %9124  ;;  %v4062_v54 = vadd.f32 %v13246_v29, %v13244_v7 }
 0x8b0   : > { %v13250_v31 = vpop.eup %9126  ;;  %v4300_v4 = vmul.f32 %v9125_v50, %v3998_v0  ;;  %v4786_v25 = vmul.f32 %v15770_v18, %v4555_v32  ;;  %v4787_v6 = vmul.f32 %v15772_v30, %v4555_v32  ;;  %v4010_v17 = vpop.xlane.xlu0 %4009 }
 0x8b1   : > { %v13252_v45 = vpop.eup %9128  ;;  %4063 = vadd.xlane.f32.xlu0 %v4062_v54  ;;  %9136 = vrcp.f32 %v4010_v17 }
 0x8b2   : > { %v9131_v28 = vpop.eup %9130  ;;  %v4428_v60 = vsub.f32 2.0, %v4300_v4  ;;  %v4065_v13 = vadd.f32 %v13252_v45, %v13250_v31  ;;  %v4938_v29 = vpack.c.bf16 %v4786_v25, %v4784_v47  ;;  %v4939_v0 = vpack.c.bf16 %v4787_v6, %v4785_v36 }
 0x8b3   : > { %v4301_v7 = vmul.f32 %v9131_v28, %v4001_v62  ;;  %v9133_v40 = vpop.eup %9132  ;;  %v15773_v62 = vld [vmem:[#allocation159_spill] sm:$0xff] }
 0x8b4   : > { %4066 = vadd.xlane.f32.xlu1 %v4065_v13  ;;  %v4013_v51 = vpop.xlane.xlu1 %4012  ;;  %v4556_v33 = vmul.f32 %v9125_v50, %v4428_v60  ;;  %5420 = vmatprep.mubr.bf16.mxu1 %v4939_v0  ;;  %v4302_v53 = vmul.f32 %v9133_v40, %v4004_v5 }
 0x8b5   : > { %v4429_v18 = vsub.f32 2.0, %v4301_v7  ;;  %9138 = vrcp.f32 %v4013_v51 }
 0x8b6   : > { %5421 = vmatmul.mubr.bf16.gmra.mrb[28].mxu1 %v4938_v29  ;;  %v9135_v32 = vpop.eup %9134  ;;  %v4430_v4 = vsub.f32 2.0, %v4302_v53  ;;  %v4788_v30 = vmul.f32 %v12838_v43, %v4556_v33  ;;  %v4789_v25 = vmul.f32 %v15773_v62, %v4556_v33 }
 0x8b7   : > { %v4557_v54 = vmul.f32 %v9131_v28, %v4429_v18  ;;  %v4303_v20 = vmul.f32 %v9135_v32, %v4007_v55  ;;  %v15774_v28 = vld [vmem:[#allocation173_spill] sm:$0xff] }
 0x8b8   : > { %v4558_v6 = vmul.f32 %v9133_v40, %v4430_v4  ;;  %v15776_v40 = vld [vmem:[#allocation161_spill] sm:$0xff] }
 0x8b9   : > { %v4790_v47 = vmul.f32 %v12851_v44, %v4557_v54  ;;  %v4791_v36 = vmul.f32 %v12858_v27, %v4557_v54  ;;  %v4431_v13 = vsub.f32 2.0, %v4303_v20  ;;  %v15775_v44 = vld [vmem:[#allocation174_spill] sm:$0xff] }
 0x8ba   : > { %v4793_v55 = vmul.f32 %v12877_v8, %v4558_v6  ;;  %v4792_v53 = vmul.f32 %v15776_v40, %v4558_v6 }
 0x8bb   : > { %v4940_v60 = vpack.c.bf16 %v4790_v47, %v4788_v30  ;;  %v4016_v7 = vpop.xlane.xlu0 %4015  ;;  %v4941_v50 = vpack.c.bf16 %v4791_v36, %v4789_v25  ;;  %v4559_v0 = vmul.f32 %v9135_v32, %v4431_v13  ;;  %v9137_v5 = vpop.eup %9136 }
 0x8bc   : > { %9140 = vrcp.f32 %v4016_v7  ;;  %v4304_v18 = vmul.f32 %v9137_v5, %v4010_v17 }
 0x8bd   : > { %5428 = vmatprep.mubr.bf16.mxu1 %v4941_v50  ;;  %v4019_v29 = vpop.xlane.xlu1 %4018  ;;  %v4794_v43 = vmul.f32 %v15774_v28, %v4559_v0  ;;  %v4795_v33 = vmul.f32 %v15775_v44, %v4559_v0  ;;  %v15777_v50 = vld [vmem:[#allocation98_spill] sm:$0xff] }
 0x8be   : > { %5429 = vmatmul.mubr.bf16.gmra.mrb[32].mxu1 %v4940_v60  ;;  %9142 = vrcp.f32 %v4019_v29  ;;  %v4432_v54 = vsub.f32 2.0, %v4304_v18 }
 0x8bf   : > { %v9139_v27 = vpop.eup %9138  ;;  %v4943_v20 = vpack.c.bf16 %v4795_v33, %v4793_v55  ;;  %v4942_v32 = vpack.c.bf16 %v4794_v43, %v4792_v53  ;;  %v5762_v53 = vld [vmem:[#allocation2 + $0x288] sm:$0xff] }
 0x8c0   : > { %v4305_v4 = vmul.f32 %v9139_v27, %v4013_v51  ;;  %v4560_v30 = vmul.f32 %v9137_v5, %v4432_v54 }
 0x8c1   : > { %5436 = vmatprep.mubr.bf16.mxu1 %v4943_v20 }
 0x8c2   : > { %v4433_v47 = vsub.f32 2.0, %v4305_v4  ;;  %v4797_v13 = vmul.f32 %v12909_v15, %v4560_v30  ;;  %v4796_v0 = vmul.f32 %v15777_v50, %v4560_v30  ;;  %v15778_v4 = vld [vmem:[#allocation105_spill] sm:$0xff] }
 0x8c4   : > { %v4022_v62 = vpop.xlane.xlu0 %4021  ;;  %v4561_v25 = vmul.f32 %v9139_v27, %v4433_v47 }
 0x8c5   : > { %9144 = vrcp.f32 %v4022_v62 }
 0x8c6   : > { %v9141_v8 = vpop.eup %9140  ;;  %v4798_v17 = vmul.f32 %v12922_v41, %v4561_v25  ;;  %5437 = vmatmul.mubr.bf16.gmra.mrb[36].mxu1 %v4942_v32  ;;  %v4025_v36 = vpop.xlane.xlu1 %4024  ;;  %v4799_v60 = vmul.f32 %v12929_v19, %v4561_v25 }
 0x8c7   : > { %v4306_v6 = vmul.f32 %v9141_v8, %v4016_v7  ;;  %9146 = vrcp.f32 %v4025_v36  ;;  %v5302_v41 = vpop.f32.mrb[224].mxu1  ;;  %v5761_v7 = vld [vmem:[#allocation2 + $0x258] sm:$0xff] }
 0x8c8   : > { %v9143_v51 = vpop.eup %9142  ;;  %v4945_v5 = vpack.c.bf16 %v4799_v60, %v4797_v13  ;;  %v4944_v43 = vpack.c.bf16 %v4798_v17, %v4796_v0  ;;  %v5597_v27 = vmul.f32 %v5302_v41, %v15730_v10  ;;  %v5304_v15 = vpop.f32.mrb[225].mxu1  ;;  %v8213_v25 = vpack.c.bf16 %v5762_v53, %v5761_v7 }
 0x8c9   : > { %v4434_v55 = vsub.f32 2.0, %v4306_v6  ;;  %v4307_v28 = vmul.f32 %v9143_v51, %v4019_v29  ;;  %v5305_v19 = vpop.f32.mrb[226].mxu1  ;;  %v15779_v6 = vld [vmem:[#allocation153_spill] sm:$0xff] }
 0x8ca   : > { %5444 = vmatprep.mubr.bf16.mxu1 %v4945_v5  ;;  %v13274_v20 = vadd.f32 %v15778_v4, %v5597_v27  ;;  %v5598_v32 = vmul.f32 %v5305_v19, %v15730_v10  ;;  %v5307_v30 = vpop.f32.mrb[227].mxu1  ;;  %8214 = vmatprep.subr.bf16.mxu0 %v8213_v25 }
 0x8cb   : > { %v4562_v18 = vmul.f32 %v9141_v8, %v4434_v55  ;;  %v4435_v44 = vsub.f32 2.0, %v4307_v28  ;;  %8216 = vmatpush3.bf16.msra.mxu0 %v8213_v25  ;;  %v15781_v25 = vld [vmem:[#allocation154_spill] sm:$0xff] }
 0x8cc   : > { %v4028_v33 = vpop.xlane.xlu0 %4027 }
 0x8cd   : > { %9148 = vrcp.f32 %v4028_v33  ;;  %v4563_v40 = vmul.f32 %v9143_v51, %v4435_v44  ;;  %v4801_v47 = vmul.f32 %v12950_v14, %v4562_v18  ;;  %v4800_v60 = vmul.f32 %v12940_v9, %v4562_v18 }
 0x8ce   : > { %5445 = vmatmul.mubr.bf16.gmra.mrb[40].mxu1 %v4944_v43  ;;  %v4031_v29 = vpop.xlane.xlu1 %4030  ;;  %v13282_v51 = vadd.f32 %v15779_v6, %v5598_v32 }
 0x8cf   : > { %v9145_v54 = vpop.eup %9144  ;;  %v4802_v8 = vmul.f32 %v12959_v21, %v4563_v40  ;;  %9150 = vrcp.f32 %v4031_v29  ;;  %v4803_v13 = vmul.f32 %v12967_v37, %v4563_v40  ;;  %v15780_v40 = vld [vmem:[#allocation137_spill] sm:$0xff] }
 0x8d0   : > { %v4308_v17 = vmul.f32 %v9145_v54, %v4022_v62 }
 0x8d1   : > { %v9147_v50 = vpop.eup %9146  ;;  %v4947_v5 = vpack.c.bf16 %v4803_v13, %v4801_v47  ;;  %v4946_v55 = vpack.c.bf16 %v4802_v8, %v4800_v60  ;;  %v5310_v43 = vpop.f32.mrb[228].mxu1 }
 0x8d2   : > { %v4436_v0 = vsub.f32 2.0, %v4308_v17  ;;  %v4309_v28 = vmul.f32 %v9147_v50, %v4025_v36  ;;  %v4034_v14 = vpop.xlane.xlu0 %4033  ;;  %v5599_v37 = vmul.f32 %v5310_v43, %v15730_v10  ;;  %v5312_v9 = vpop.f32.mrb[229].mxu1  ;;  %v5991_v17 = vld [vmem:[#allocation2 + $0x50] sm:$0xff] }
 0x8d3   : > { %9152 = vrcp.f32 %v4034_v14  ;;  %5452 = vmatprep.mubr.bf16.mxu1 %v4947_v5  ;;  %v5313_v27 = vpop.f32.mrb[230].mxu1  ;;  %v15782_v9 = vld [vmem:[#allocation59_spill] sm:$0xff] }
 0x8d4   : > { %v4564_v21 = vmul.f32 %v9145_v54, %v4436_v0  ;;  %v4437_v62 = vsub.f32 2.0, %v4309_v28  ;;  %v13286_v19 = vadd.f32 %v15780_v40, %v5599_v37  ;;  %v5600_v36 = vmul.f32 %v5313_v27, %v15730_v10  ;;  %v5315_v7 = vpop.f32.mrb[231].mxu1 }
 0x8d5   : > { %v4037_v44 = vpop.xlane.xlu1 %4036 }
 0x8d6   : > { %9154 = vrcp.f32 %v4037_v44  ;;  %v4565_v41 = vmul.f32 %v9147_v50, %v4437_v62  ;;  %5453 = vmatmul.mubr.bf16.gmra.mrb[44].mxu1 %v4946_v55  ;;  %v4804_v53 = vmul.f32 %v12980_v23, %v4564_v21  ;;  %v4805_v4 = vmul.f32 %v12986_v22, %v4564_v21 }
 0x8d7   : > { %v9149_v18 = vpop.eup %9148  ;;  %v13294_v8 = vadd.f32 %v15781_v25, %v5600_v36 }
 0x8d8   : > { %v4310_v15 = vmul.f32 %v9149_v18, %v4028_v33  ;;  %v4806_v54 = vmul.f32 %v12996_v61, %v4565_v41  ;;  %v4807_v32 = vmul.f32 %v13002_v42, %v4565_v41  ;;  %v5990_v33 = vld [vmem:[#allocation2 + $0x20] sm:$0xff] }
 0x8d9   : > { %v9151_v30 = vpop.eup %9150  ;;  %v8221_v0 = vpack.c.bf16 %v5991_v17, %v5990_v33  ;;  %v5318_v61 = vpop.f32.mrb[232].mxu1 }
 0x8da   : > { %v4438_v47 = vsub.f32 2.0, %v4310_v15  ;;  %v4948_v13 = vpack.c.bf16 %v4806_v54, %v4804_v53  ;;  %v4311_v60 = vmul.f32 %v9151_v30, %v4031_v29  ;;  %v4040_v6 = vpop.xlane.xlu0 %4039  ;;  %v4949_v50 = vpack.c.bf16 %v4807_v32, %v4805_v4  ;;  %v5320_v28 = vpop.f32.mrb[233].mxu1 }
 0x8db   : > { %9156 = vrcp.f32 %v4040_v6  ;;  %8222 = vmatprep.subr.bf16.mxu1 %v8221_v0  ;;  %v5601_v55 = vmul.f32 %v5318_v61, %v15730_v10  ;;  %v5321_v29 = vpop.f32.mrb[234].mxu1 }
 0x8dc   : > { %v4566_v5 = vmul.f32 %v9149_v18, %v4438_v47  ;;  %v4439_v23 = vsub.f32 2.0, %v4311_v60  ;;  %5460 = vmatprep.mubr.bf16.mxu1 %v4949_v50  ;;  %8224 = vmatpush3.bf16.msra.mxu1 %v8221_v0  ;;  %v5602_v41 = vmul.f32 %v5321_v29, %v15730_v10  ;;  %v5323_v27 = vpop.f32.mrb[235].mxu1  ;;  %v15784_v0 = vld [vmem:[#allocation139_spill] sm:$0xff] }
 0x8dd   : > { %v4043_v22 = vpop.xlane.xlu1 %4042  ;;  %v9153_v42 = vpop.eup %9152  ;;  %v13299_v18 = vadd.f32 %v15782_v9, %v5601_v55 }
 0x8de   : > { %9158 = vrcp.f32 %v4043_v22  ;;  %v4567_v21 = vmul.f32 %v9151_v30, %v4439_v23  ;;  %v4312_v62 = vmul.f32 %v9153_v42, %v4034_v14  ;;  %5461 = vmatmul.mubr.bf16.gmra.mrb[48].mxu1 %v4948_v13  ;;  %v4808_v37 = vmul.f32 %v13018_v11, %v4566_v5  ;;  %v15783_v14 = vld [vmem:[#allocation107_spill] sm:$0xff] }
 0x8df   : > { %v4809_v15 = vmul.f32 %v13023_v24, %v4566_v5  ;;  %v13306_v54 = vadd.f32 %v15783_v14, %v5602_v41  ;;  %v15786_v14 = vld [vmem:[#allocation175_spill] sm:$0xff] }
 0x8e0   : > { %v9155_v43 = vpop.eup %9154  ;;  %v4810_v40 = vmul.f32 %v13032_v56, %v4567_v21  ;;  %v4440_v36 = vsub.f32 2.0, %v4312_v62  ;;  %v4811_v53 = vmul.f32 %v13038_v58, %v4567_v21 }
 0x8e1   : > { %v4313_v7 = vmul.f32 %v9155_v43, %v4037_v44 }
 0x8e2   : > { %v4950_v4 = vpack.c.bf16 %v4810_v40, %v4808_v37  ;;  %v4568_v32 = vmul.f32 %v9153_v42, %v4440_v36  ;;  %v4951_v30 = vpack.c.bf16 %v4811_v53, %v4809_v15  ;;  %v5326_v25 = vpop.f32.mrb[236].mxu1 }
 0x8e3   : > { %v4441_v11 = vsub.f32 2.0, %v4313_v7  ;;  %v5603_v17 = vmul.f32 %v5326_v25, %v15730_v10  ;;  %v5328_v24 = vpop.f32.mrb[237].mxu1  ;;  %v15787_v25 = vld [vmem:[#allocation176_spill] sm:$0xff] }
 0x8e4   : > { %5468 = vmatprep.mubr.bf16.mxu1 %v4951_v30  ;;  %v5329_v44 = vpop.f32.mrb[238].mxu1  ;;  %v4813_v58 = vmul.f32 %v13057_v59, %v4568_v32  ;;  %v4812_v42 = vmul.f32 %v13052_v63, %v4568_v32  ;;  %v5763_v32 = vld [vmem:[#allocation2 + $0x2b8] sm:$0xff]  ;;  %v15788_v24 = vld [vmem:[#allocation45_spill] sm:$0xff] }
 0x8e5   : > { %v4569_v47 = vmul.f32 %v9155_v43, %v4441_v11  ;;  %v9157_v33 = vpop.eup %9156  ;;  %v13313_v5 = vadd.f32 %v15784_v0, %v5603_v17  ;;  %v5604_v23 = vmul.f32 %v5329_v44, %v15730_v10  ;;  %v5331_v61 = vpop.f32.mrb[239].mxu1 }
 0x8e6   : > { %v4314_v13 = vmul.f32 %v9157_v33, %v4040_v6  ;;  %5469 = vmatmul.mubr.bf16.gmra.mrb[52].mxu1 %v4950_v4 }
 0x8e7   : > { %v4814_v56 = vmul.f32 %v13062_v35, %v4569_v47  ;;  %v4815_v60 = vmul.f32 %v13068_v38, %v4569_v47  ;;  %v15785_v35 = vld [vmem:[#allocation84_spill] sm:$0xff] }
 0x8e8   : > { %v9159_v50 = vpop.eup %9158  ;;  %v4442_v55 = vsub.f32 2.0, %v4314_v13  ;;  %v13318_v6 = vadd.f32 %v15785_v35, %v5604_v23 }
 0x8e9   : > { %v4315_v28 = vmul.f32 %v9159_v50, %v4043_v22  ;;  %v4953_v21 = vpack.c.bf16 %v4815_v60, %v4813_v58  ;;  %v4952_v62 = vpack.c.bf16 %v4814_v56, %v4812_v42  ;;  %v15790_v42 = vld [vmem:[#allocation177_spill] sm:$0xff] }
 0x8ea   : > { %v4570_v29 = vmul.f32 %v9157_v33, %v4442_v55  ;;  %v5334_v43 = vpop.f32.mrb[240].mxu1 }
 0x8eb   : > { %v4443_v59 = vsub.f32 2.0, %v4315_v28  ;;  %5476 = vmatprep.mubr.bf16.mxu1 %v4953_v21  ;;  %v5605_v37 = vmul.f32 %v5334_v43, %v15730_v10  ;;  %v5336_v9 = vpop.f32.mrb[241].mxu1  ;;  %v15791_v43 = vld [vmem:[#allocation178_spill] sm:$0xff] }
 0x8ec   : > { %v5337_v27 = vpop.f32.mrb[242].mxu1  ;;  %v4817_v63 = vmul.f32 %v13085_v52, %v4570_v29  ;;  %v4816_v7 = vmul.f32 %v13083_v1, %v4570_v29 }
 0x8ed   : > { %v4571_v38 = vmul.f32 %v9159_v50, %v4443_v59  ;;  %v13325_v15 = vadd.f32 %v12956_v49, %v5605_v37  ;;  %v5606_v40 = vmul.f32 %v5337_v27, %v15730_v10  ;;  %v5339_v36 = vpop.f32.mrb[243].mxu1  ;;  %v15789_v50 = vld [vmem:[#allocation80_spill] sm:$0xff] }
 0x8ee   : > { %5477 = vmatmul.mubr.bf16.gmra.mrb[56].mxu1 %v4952_v62 }
 0x8ef   : > { %v4818_v41 = vmul.f32 %v13092_v39, %v4571_v38  ;;  %v4819_v22 = vmul.f32 %v13096_v16, %v4571_v38  ;;  %v13330_v4 = vadd.f32 %v15786_v14, %v5606_v40  ;;  %v5764_v39 = vld [vmem:[#allocation2 + $0x2e8] sm:$0xff] }
 0x8f0   : > { %v8217_v30 = vpack.c.bf16 %v5764_v39, %v5763_v32 }
 0x8f1   : > { %v4955_v53 = vpack.c.bf16 %v4819_v22, %v4817_v63  ;;  %v4954_v11 = vpack.c.bf16 %v4818_v41, %v4816_v7  ;;  %v15792_v22 = vld [vmem:[#allocation179_spill] sm:$0xff] }
 0x8f2   : > { %v5342_v52 = vpop.f32.mrb[244].mxu1  ;;  %8218 = vmatprep.subr.bf16.mxu0 %v8217_v30 }
 0x8f3   : > { %5484 = vmatprep.mubr.bf16.mxu1 %v4955_v53  ;;  %v5607_v16 = vmul.f32 %v5342_v52, %v15730_v10  ;;  %v5344_v49 = vpop.f32.mrb[245].mxu1  ;;  %8220 = vmatpush3.bf16.msra.mxu0 %v8217_v30  ;;  %v15793_v53 = vld [vmem:[#allocation180_spill] sm:$0xff]  ;;  %v15794_v30 = vld [vmem:[#allocation46_spill] sm:$0xff] }
 0x8f4   : > { %v5345_v47 = vpop.f32.mrb[246].mxu1 }
 0x8f5   : > { %v13334_v33 = vadd.f32 %v15787_v25, %v5607_v16  ;;  %v5608_v1 = vmul.f32 %v5345_v47, %v15730_v10  ;;  %v5347_v17 = vpop.f32.mrb[247].mxu1  ;;  %v15795_v47 = vld [vmem:[#allocation102_spill] sm:$0xff] }
 0x8f6   : > { %5485 = vmatmul.mubr.bf16.gmra.mrb[60].mxu1 %v4954_v11  ;;  %v5992_v17 = vld [vmem:[#allocation2 + $0x80] sm:$0xff] }
 0x8f7   : > { %v13338_v56 = vadd.f32 %v15788_v24, %v5608_v1  ;;  %v5993_v24 = vld [vmem:[#allocation2 + $0xb0] sm:$0xff] }
 0x8fb   : > { %v5350_v13 = vpop.f32.mrb[248].mxu1 }
 0x8fc   : > { %v5609_v44 = vmul.f32 %v5350_v13, %v15730_v10  ;;  %v5352_v58 = vpop.f32.mrb[249].mxu1 }
 0x8fd   : > { %v5353_v60 = vpop.f32.mrb[250].mxu1  ;;  %v8225_v58 = vpack.c.bf16 %v5993_v24, %v5992_v17 }
 0x8fe   : > { %v13342_v0 = vadd.f32 %v15789_v50, %v5609_v44  ;;  %v5610_v23 = vmul.f32 %v5353_v60, %v15730_v10  ;;  %v5355_v61 = vpop.f32.mrb[251].mxu1  ;;  %v15796_v50 = vld [vmem:[#allocation120_spill] sm:$0xff] }
 0x8ff   : > { %8226 = vmatprep.subr.bf16.mxu1 %v8225_v58 }
 0x900   : > { %v13346_v55 = vadd.f32 %v15790_v42, %v5610_v23  ;;  %8228 = vmatpush3.bf16.msra.mxu1 %v8225_v58 }
 0x905   : > { %v5358_v28 = vpop.f32.mrb[252].mxu1 }
 0x906   : > { %v5611_v21 = vmul.f32 %v5358_v28, %v15730_v10  ;;  %v5360_v35 = vpop.f32.mrb[253].mxu1  ;;  %v15797_v28 = vld [vmem:[#allocation133_spill] sm:$0xff] }
 0x907   : > { %v5361_v62 = vpop.f32.mrb[254].mxu1 }
 0x908   : > { %v13350_v29 = vadd.f32 %v13064_v26, %v5611_v21  ;;  %v5612_v59 = vmul.f32 %v5361_v62, %v15730_v10  ;;  %v5363_v38 = vpop.f32.mrb[255].mxu1 }
 0x90a   : > { %v13354_v37 = vadd.f32 %v15791_v43, %v5612_v59 }
 0x90d   : > { %v5366_v9 = vpop.f32.mrb[0].mxu1 }
 0x90e   : > { %v5613_v41 = vmul.f32 %v5366_v9, %v15730_v10  ;;  %v5368_v27 = vpop.f32.mrb[1].mxu1  ;;  %v15798_v9 = vld [vmem:[#allocation41_spill] sm:$0xff] }
 0x90f   : > { %v5369_v63 = vpop.f32.mrb[2].mxu1 }
 0x910   : > { %v13358_v40 = vadd.f32 %v15792_v22, %v5613_v41  ;;  %v5614_v36 = vmul.f32 %v5369_v63, %v15730_v10  ;;  %v5371_v7 = vpop.f32.mrb[3].mxu1 }
 0x912   : > { %v13362_v26 = vadd.f32 %v15793_v53, %v5614_v36  ;;  %v15799_v36 = vld [vmem:[#allocation61_spill] sm:$0xff] }
 0x917   : > { %v5374_v14 = vpop.f32.mrb[4].mxu1 }
 0x918   : > { %v5615_v32 = vmul.f32 %v5374_v14, %v15730_v10  ;;  %v5376_v39 = vpop.f32.mrb[5].mxu1 }
 0x919   : > { %v5377_v11 = vpop.f32.mrb[6].mxu1 }
 0x91a   : > { %v13366_v52 = vadd.f32 %v15794_v30, %v5615_v32  ;;  %v5616_v16 = vmul.f32 %v5377_v11, %v15730_v10  ;;  %v5379_v49 = vpop.f32.mrb[7].mxu1 }
 0x91c   : > { %v13370_v25 = vadd.f32 %v15795_v47, %v5616_v16 }
 0x91f   : > { %v5382_v1 = vpop.f32.mrb[8].mxu1 }
 0x920   : > { %v5617_v13 = vmul.f32 %v5382_v1, %v15730_v10  ;;  %v5384_v44 = vpop.f32.mrb[9].mxu1 }
 0x921   : > { %v5385_v60 = vpop.f32.mrb[10].mxu1 }
 0x922   : > { %v13374_v23 = vadd.f32 %v15796_v50, %v5617_v13  ;;  %v5618_v61 = vmul.f32 %v5385_v60, %v15730_v10  ;;  %v5387_v42 = vpop.f32.mrb[11].mxu1 }
 0x923   : > { %v4046_v38 = vpop.xlane.xlu0 %4045 }
 0x924   : > { %v13378_v21 = vadd.f32 %v15797_v28, %v5618_v61  ;;  %9160 = vrcp.f32 %v4046_v38  ;;  %v15800_v61 = vld [vmem:[#allocation167_spill] sm:$0xff] }
 0x927   : > { %v5390_v35 = vpop.f32.mrb[12].mxu1 }
 0x928   : > { %v5619_v62 = vmul.f32 %v5390_v35, %v15730_v10  ;;  %v5392_v59 = vpop.f32.mrb[13].mxu1  ;;  %v4049_v22 = vpop.xlane.xlu1 %4048 }
 0x929   : > { %v5393_v43 = vpop.f32.mrb[14].mxu1  ;;  %9162 = vrcp.f32 %v4049_v22 }
 0x92a   : > { %v13382_v41 = vadd.f32 %v15798_v9, %v5619_v62  ;;  %v5620_v27 = vmul.f32 %v5393_v43, %v15730_v10  ;;  %v5395_v63 = vpop.f32.mrb[15].mxu1 }
 0x92c   : > { %v13386_v7 = vadd.f32 %v15799_v36, %v5620_v27  ;;  %v15801_v36 = vld [vmem:[#allocation87_spill] sm:$0xff] }
 0x92e   : > { %v4052_v53 = vpop.xlane.xlu0 %4051  ;;  %v9161_v32 = vpop.eup %9160 }
 0x92f   : > { %9164 = vrcp.f32 %v4052_v53  ;;  %v4316_v39 = vmul.f32 %v9161_v32, %v4046_v38 }
 0x930   : > { %v4055_v14 = vpop.xlane.xlu1 %4054 }
 0x931   : > { %9166 = vrcp.f32 %v4055_v14  ;;  %v4444_v30 = vsub.f32 2.0, %v4316_v39 }
 0x933   : > { %v9163_v11 = vpop.eup %9162  ;;  %v4572_v47 = vmul.f32 %v9161_v32, %v4444_v30 }
 0x934   : > { %v4317_v16 = vmul.f32 %v9163_v11, %v4049_v22 }
 0x935   : > { %v4058_v49 = vpop.xlane.xlu0 %4057  ;;  %v4820_v58 = vmul.f32 %v13176_v2, %v4572_v47  ;;  %v4821_v50 = vmul.f32 %v13180_v48, %v4572_v47 }
 0x936   : > { %9168 = vrcp.f32 %v4058_v49  ;;  %v4445_v1 = vsub.f32 2.0, %v4317_v16 }
 0x938   : > { %v4061_v10 = vpop.xlane.xlu1 %4060  ;;  %v4573_v24 = vmul.f32 %v9163_v11, %v4445_v1 }
 0x939   : > { %v9165_v17 = vpop.eup %9164  ;;  %9170 = vrcp.f32 %v4061_v10 }
 0x93a   : > { %v4318_v13 = vmul.f32 %v9165_v17, %v4052_v53  ;;  %v4822_v60 = vmul.f32 %v13187_v57, %v4573_v24  ;;  %v4823_v42 = vmul.f32 %v15800_v61, %v4573_v24 }
 0x93b   : > { %v9167_v44 = vpop.eup %9166 }
 0x93c   : > { %v4446_v28 = vsub.f32 2.0, %v4318_v13  ;;  %v4319_v35 = vmul.f32 %v9167_v44, %v4055_v14  ;;  %v4956_v62 = vpack.c.bf16 %v4822_v60, %v4820_v58  ;;  %v4957_v38 = vpack.c.bf16 %v4823_v42, %v4821_v50  ;;  %v15802_v13 = vld [vmem:[#allocation186_spill] sm:$0xff]  ;;  %v15804_v60 = vld [vmem:[#allocation160_spill] sm:$0xff] }
 0x93e   : > { %v4064_v59 = vpop.xlane.xlu0 %4063  ;;  %v4574_v43 = vmul.f32 %v9165_v17, %v4446_v28  ;;  %v4447_v9 = vsub.f32 2.0, %v4319_v35  ;;  %5492 = vmatprep.mubr.bf16.mxu1 %v4957_v38  ;;  %v5994_v38 = vld [vmem:[#allocation2 + $0xe0] sm:$0xff] }
 0x93f   : > { %9172 = vrcp.f32 %v4064_v59  ;;  %5493 = vmatmul.mubr.bf16.gmra.mrb[64].mxu1 %v4956_v62 }
 0x940   : > { %v9169_v27 = vpop.eup %9168  ;;  %v4575_v63 = vmul.f32 %v9167_v44, %v4447_v9  ;;  %v4824_v57 = vmul.f32 %v13201_v46, %v4574_v43  ;;  %v4825_v53 = vmul.f32 %v15801_v36, %v4574_v43  ;;  %v15803_v44 = vld [vmem:[#allocation185_spill] sm:$0xff]  ;;  %v5995_v43 = vld [vmem:[#allocation2 + $0x110] sm:$0xff] }
 0x941   : > { %v4067_v22 = vpop.xlane.xlu1 %4066  ;;  %v4320_v2 = vmul.f32 %v9169_v27, %v4058_v49 }
 0x942   : > { %9174 = vrcp.f32 %v4067_v22  ;;  %v4826_v48 = vmul.f32 %v13211_v3, %v4575_v63  ;;  %v4827_v14 = vmul.f32 %v13217_v34, %v4575_v63 }
 0x943   : > { %v9171_v32 = vpop.eup %9170  ;;  %v4448_v39 = vsub.f32 2.0, %v4320_v2  ;;  %v15806_v2 = vld [vmem:[#allocation97_spill] sm:$0xff] }
 0x944   : > { %v4958_v11 = vpack.c.bf16 %v4826_v48, %v4824_v57  ;;  %v4321_v30 = vmul.f32 %v9171_v32, %v4061_v10  ;;  %v4959_v16 = vpack.c.bf16 %v4827_v14, %v4825_v53  ;;  %v15807_v14 = vld [vmem:[#allocation8_spill] sm:$0xff] }
 0x945   : > { %v4576_v47 = vmul.f32 %v9169_v27, %v4448_v39 }
 0x946   : > { %v4449_v1 = vsub.f32 2.0, %v4321_v30  ;;  %5500 = vmatprep.mubr.bf16.mxu1 %v4959_v16  ;;  %v15808_v30 = vld [vmem:[#allocation6_spill] sm:$0xff] }
 0x947   : > { %5501 = vmatmul.mubr.bf16.gmra.mrb[68].mxu1 %v4958_v11  ;;  %v4828_v46 = vmul.f32 %v13226_v12, %v4576_v47  ;;  %v4829_v58 = vmul.f32 %v15803_v44, %v4576_v47  ;;  %v15805_v12 = vld [vmem:[#allocation187_spill] sm:$0xff] }
 0x948   : > { %v4577_v24 = vmul.f32 %v9171_v32, %v4449_v1  ;;  %v15809_v1 = vld [vmem:[#allocation157_spill] sm:$0xff] }
 0x949   : > { %v9173_v17 = vpop.eup %9172 }
 0x94a   : > { %v4322_v49 = vmul.f32 %v9173_v17, %v4064_v59  ;;  %v4830_v3 = vmul.f32 %v15802_v13, %v4577_v24  ;;  %v4831_v34 = vmul.f32 %v15804_v60, %v4577_v24  ;;  %v8229_v59 = vpack.c.bf16 %v5995_v43, %v5994_v38  ;;  %v15810_v13 = vld [vmem:[#allocation181_spill] sm:$0xff]  ;;  %v15811_v60 = vld [vmem:[#allocation182_spill] sm:$0xff]  ;;  %v15813_v43 = vld [vmem:[#allocation183_spill] sm:$0xff] }
 0x94c   : > { %v9175_v50 = vpop.eup %9174  ;;  %v4450_v61 = vsub.f32 2.0, %v4322_v49  ;;  %v4960_v42 = vpack.c.bf16 %v4830_v3, %v4828_v46  ;;  %v4961_v28 = vpack.c.bf16 %v4831_v34, %v4829_v58  ;;  %8230 = vmatprep.subr.bf16.mxu1 %v8229_v59 }
 0x94d   : > { %v4323_v10 = vmul.f32 %v9175_v50, %v4067_v22  ;;  %8232 = vmatpush3.bf16.msra.mxu1 %v8229_v59 }
 0x94e   : > { %v4578_v35 = vmul.f32 %v9173_v17, %v4450_v61  ;;  %5508 = vmatprep.mubr.bf16.mxu1 %v4961_v28  ;;  %v15812_v28 = vld [vmem:[#allocation69_spill] sm:$0xff] }
 0x94f   : > { %v4451_v62 = vsub.f32 2.0, %v4323_v10  ;;  %5509 = vmatmul.mubr.bf16.gmra.mrb[72].mxu1 %v4960_v42 }
 0x950   : > { %v4832_v27 = vmul.f32 %v15805_v12, %v4578_v35  ;;  %v4833_v57 = vmul.f32 %v15806_v2, %v4578_v35  ;;  %v15814_v2 = vld [vmem:[#allocation68_spill] sm:$0xff] }
 0x951   : > { %v4579_v9 = vmul.f32 %v9175_v50, %v4451_v62 }
 0x953   : > { %v4834_v63 = vmul.f32 %v13250_v31, %v4579_v9  ;;  %v4835_v48 = vmul.f32 %v13252_v45, %v4579_v9 }
 0x955   : > { %v4962_v22 = vpack.c.bf16 %v4834_v63, %v4832_v27  ;;  %v4963_v36 = vpack.c.bf16 %v4835_v48, %v4833_v57 }
 0x957   : > { %5516 = vmatprep.mubr.bf16.mxu1 %v4963_v36  ;;  %v15815_v36 = vld [vmem:[#allocation101_spill] sm:$0xff] }
 0x958   : > { %5517 = vmatmul.mubr.bf16.gmra.mrb[76].mxu1 %v4962_v22 }
 0x96e   : > { %v5398_v53 = vpop.f32.mrb[16].mxu1 }
 0x96f   : > { %v5621_v32 = vmul.f32 %v5398_v53, %v15807_v14  ;;  %v5400_v39 = vpop.f32.mrb[17].mxu1 }
 0x970   : > { %v5401_v11 = vpop.f32.mrb[18].mxu1 }
 0x971   : > { %v5655_v16 = vadd.f32 %v15808_v30, %v5621_v32  ;;  %v5622_v47 = vmul.f32 %v5401_v11, %v15807_v14  ;;  %v5403_v31 = vpop.f32.mrb[19].mxu1 }
 0x973   : > { %v5658_v17 = vadd.f32 %v15809_v1, %v5622_v47  ;;  %7917 = vmatprep.mubr.f32.mxu0 %v5655_v16 }
 0x975   : > { %7918 = vmatmul.mubr.f32.vlgmr.msra.gmra.mrb[48].mxu0 %v5658_v17 }
 0x979   : > { %v5406_v45 = vpop.f32.mrb[20].mxu1 }
 0x97a   : > { %v5623_v24 = vmul.f32 %v5406_v45, %v15807_v14  ;;  %v5408_v49 = vpop.f32.mrb[21].mxu1 }
 0x97b   : > { %v5409_v46 = vpop.f32.mrb[22].mxu1 }
 0x97c   : > { %v5661_v3 = vadd.f32 %v15810_v13, %v5623_v24  ;;  %v5624_v44 = vmul.f32 %v5409_v46, %v15807_v14  ;;  %v5411_v58 = vpop.f32.mrb[23].mxu1 }
 0x97d   : > { %v5997_v58 = vld [vmem:[#allocation2 + $0x170] sm:$0xff] }
 0x97e   : > { %v5664_v34 = vadd.f32 %v15811_v60, %v5624_v44  ;;  %7920 = vmatprep.mubr.f32.mxu0 %v5661_v3 }
 0x980   : > { %7921 = vmatmul.mubr.f32.gmra.mrb[50].mxu0 %v5664_v34 }
 0x981   : > { %v5414_v50 = vpop.f32.mrb[24].mxu1 }
 0x982   : > { %v5625_v61 = vmul.f32 %v5414_v50, %v15807_v14  ;;  %v5416_v42 = vpop.f32.mrb[25].mxu1 }
 0x983   : > { %v5417_v10 = vpop.f32.mrb[26].mxu1 }
 0x984   : > { %v5667_v35 = vadd.f32 %v15812_v28, %v5625_v61  ;;  %v5626_v62 = vmul.f32 %v5417_v10, %v15807_v14  ;;  %v5419_v38 = vpop.f32.mrb[27].mxu1 }
 0x986   : > { %v5670_v9 = vadd.f32 %v15813_v43, %v5626_v62  ;;  %7923 = vmatprep.mubr.f32.mxu0 %v5667_v35 }
 0x988   : > { %7924 = vmatmul.mubr.f32.gmra.mrb[52].mxu0 %v5670_v9 }
 0x989   : > { %v5422_v59 = vpop.f32.mrb[28].mxu1 }
 0x98a   : > { %v5627_v12 = vmul.f32 %v5422_v59, %v15807_v14  ;;  %v5424_v27 = vpop.f32.mrb[29].mxu1 }
 0x98b   : > { %v5425_v63 = vpop.f32.mrb[30].mxu1 }
 0x98c   : > { %v5673_v57 = vadd.f32 %v15814_v2, %v5627_v12  ;;  %v5628_v48 = vmul.f32 %v5425_v63, %v15807_v14  ;;  %v5427_v22 = vpop.f32.mrb[31].mxu1 }
 0x98e   : > { %v5676_v53 = vadd.f32 %v15815_v36, %v5628_v48  ;;  %7926 = vmatprep.mubr.f32.mxu0 %v5673_v57 }
 0x990   : > { %7927 = vmatmul.mubr.f32.gmra.mrb[54].mxu0 %v5676_v53 }
 0x991   : > { %v5430_v32 = vpop.f32.mrb[32].mxu1 }
 0x992   : > { %v5629_v39 = vmul.f32 %v5430_v32, %v15807_v14  ;;  %v5432_v11 = vpop.f32.mrb[33].mxu1 }
 0x993   : > { %v5433_v30 = vpop.f32.mrb[34].mxu1 }
 0x994   : > { %v5679_v16 = vadd.f32 %v13274_v20, %v5629_v39  ;;  %v5630_v47 = vmul.f32 %v5433_v30, %v15807_v14  ;;  %v5435_v31 = vpop.f32.mrb[35].mxu1  ;;  %v5996_v20 = vld [vmem:[#allocation2 + $0x140] sm:$0xff] }
 0x995   : > { %v8233_v60 = vpack.c.bf16 %v5997_v58, %v5996_v20  ;;  %v5999_v20 = vld [vmem:[#allocation2 + $0x1d0] sm:$0xff] }
 0x996   : > { %v5682_v1 = vadd.f32 %v13282_v51, %v5630_v47  ;;  %7929 = vmatprep.mubr.f32.mxu0 %v5679_v16 }
 0x997   : > { %8234 = vmatprep.subr.bf16.mxu1 %v8233_v60 }
 0x998   : > { %7930 = vmatmul.mubr.f32.gmra.mrb[56].mxu0 %v5682_v1  ;;  %8236 = vmatpush3.bf16.msra.mxu1 %v8233_v60 }
 0x999   : > { %v5438_v17 = vpop.f32.mrb[36].mxu1 }
 0x99a   : > { %v5631_v45 = vmul.f32 %v5438_v17, %v15807_v14  ;;  %v5440_v24 = vpop.f32.mrb[37].mxu1 }
 0x99b   : > { %v5441_v49 = vpop.f32.mrb[38].mxu1 }
 0x99c   : > { %v5685_v46 = vadd.f32 %v13286_v19, %v5631_v45  ;;  %v5632_v13 = vmul.f32 %v5441_v49, %v15807_v14  ;;  %v5443_v3 = vpop.f32.mrb[39].mxu1 }
 0x99e   : > { %v5688_v44 = vadd.f32 %v13294_v8, %v5632_v13  ;;  %7932 = vmatprep.mubr.f32.mxu0 %v5685_v46 }
 0x9a0   : > { %7933 = vmatmul.mubr.f32.gmra.mrb[58].mxu0 %v5688_v44 }
 0x9a1   : > { %v5446_v51 = vpop.f32.mrb[40].mxu1 }
 0x9a2   : > { %v5633_v34 = vmul.f32 %v5446_v51, %v15807_v14  ;;  %v5448_v50 = vpop.f32.mrb[41].mxu1 }
 0x9a3   : > { %v5449_v61 = vpop.f32.mrb[42].mxu1 }
 0x9a4   : > { %v5691_v42 = vadd.f32 %v13299_v18, %v5633_v34  ;;  %v5634_v19 = vmul.f32 %v5449_v61, %v15807_v14  ;;  %v5451_v10 = vpop.f32.mrb[43].mxu1 }
 0x9a6   : > { %v5694_v28 = vadd.f32 %v13306_v54, %v5634_v19  ;;  %7935 = vmatprep.mubr.f32.mxu0 %v5691_v42 }
 0x9a8   : > { %7936 = vmatmul.mubr.f32.gmra.mrb[60].mxu0 %v5694_v28  ;;  %v6000_v28 = vld [vmem:[#allocation2 + $0x200] sm:$0xff] }
 0x9a9   : > { %v5454_v8 = vpop.f32.mrb[44].mxu1 }
 0x9aa   : > { %v5635_v35 = vmul.f32 %v5454_v8, %v15807_v14  ;;  %v5456_v62 = vpop.f32.mrb[45].mxu1  ;;  %v6001_v8 = vld [vmem:[#allocation2 + $0x230] sm:$0xff] }
 0x9ab   : > { %v5457_v38 = vpop.f32.mrb[46].mxu1  ;;  %v8241_v62 = vpack.c.bf16 %v6001_v8, %v6000_v28 }
 0x9ac   : > { %v5697_v43 = vadd.f32 %v13313_v5, %v5635_v35  ;;  %v5636_v9 = vmul.f32 %v5457_v38, %v15807_v14  ;;  %v5459_v59 = vpop.f32.mrb[47].mxu1 }
 0x9ae   : > { %v5700_v12 = vadd.f32 %v13318_v6, %v5636_v9  ;;  %7938 = vmatprep.mubr.f32.mxu0 %v5697_v43 }
 0x9b0   : > { %7939 = vmatmul.mubr.f32.gmra.mrb[62].mxu0 %v5700_v12 }
 0x9b1   : > { %v5462_v18 = vpop.f32.mrb[48].mxu1 }
 0x9b2   : > { %v5637_v27 = vmul.f32 %v5462_v18, %v15807_v14  ;;  %v5464_v54 = vpop.f32.mrb[49].mxu1 }
 0x9b3   : > { %v5465_v63 = vpop.f32.mrb[50].mxu1 }
 0x9b4   : > { %v5703_v2 = vadd.f32 %v13325_v15, %v5637_v27  ;;  %v5638_v57 = vmul.f32 %v5465_v63, %v15807_v14  ;;  %v5467_v48 = vpop.f32.mrb[51].mxu1 }
 0x9b6   : > { %v5706_v22 = vadd.f32 %v13330_v4, %v5638_v57  ;;  %7941 = vmatprep.mubr.f32.mxu0 %v5703_v2 }
 0x9b8   : > { %7942 = vmatmul.mubr.f32.gmra.mrb[64].mxu0 %v5706_v22 }
 0x9b9   : > { %v5470_v5 = vpop.f32.mrb[52].mxu1 }
 0x9ba   : > { %v5639_v36 = vmul.f32 %v5470_v5, %v15807_v14  ;;  %v5472_v6 = vpop.f32.mrb[53].mxu1 }
 0x9bb   : > { %v5473_v53 = vpop.f32.mrb[54].mxu1 }
 0x9bc   : > { %v5709_v32 = vadd.f32 %v13334_v33, %v5639_v36  ;;  %v5640_v39 = vmul.f32 %v5473_v53, %v15807_v14  ;;  %v5475_v11 = vpop.f32.mrb[55].mxu1  ;;  %v15816_v53 = vld [vmem:[#allocation9_spill] sm:$0xff] }
 0x9be   : > { %v5712_v30 = vadd.f32 %v13338_v56, %v5640_v39  ;;  %7944 = vmatprep.mubr.f32.mxu0 %v5709_v32  ;;  %v15817_v39 = vld [vmem:[#allocation10_spill] sm:$0xff] }
 0x9c0   : > { %7945 = vmatmul.mubr.f32.gmra.mrb[66].mxu0 %v5712_v30  ;;  %v15818_v30 = vld [vmem:[#allocation11_spill] sm:$0xff] }
 0x9c1   : > { %v5478_v15 = vpop.f32.mrb[56].mxu1 }
 0x9c2   : > { %v5641_v16 = vmul.f32 %v5478_v15, %v15807_v14  ;;  %v5480_v4 = vpop.f32.mrb[57].mxu1 }
 0x9c3   : > { %v5481_v47 = vpop.f32.mrb[58].mxu1  ;;  %v15819_v4 = vld [vmem:[#allocation12_spill] sm:$0xff] }
 0x9c4   : > { %v5715_v31 = vadd.f32 %v13342_v0, %v5641_v16  ;;  %v5642_v1 = vmul.f32 %v5481_v47, %v15807_v14  ;;  %v5483_v17 = vpop.f32.mrb[59].mxu1  ;;  %v5998_v0 = vld [vmem:[#allocation2 + $0x1a0] sm:$0xff] }
 0x9c5   : > { %v8237_v58 = vpack.c.bf16 %v5999_v20, %v5998_v0 }
 0x9c6   : > { %v5718_v45 = vadd.f32 %v13346_v55, %v5642_v1  ;;  %7947 = vmatprep.mubr.f32.mxu0 %v5715_v31 }
 0x9c7   : > { %8238 = vmatprep.subr.bf16.mxu1 %v8237_v58 }
 0x9c8   : > { %7948 = vmatmul.mubr.f32.gmra.mrb[68].mxu0 %v5718_v45  ;;  %8240 = vmatpush3.bf16.msra.mxu1 %v8237_v58  ;;  %v15820_v45 = vld [vmem:[#allocation13_spill] sm:$0xff]  ;;  %v15822_v58 = vld [vmem:[#allocation15_spill] sm:$0xff] }
 0x9c9   : > { %v5486_v33 = vpop.f32.mrb[60].mxu1  ;;  %8242 = vmatprep.subr.bf16.mxu1 %v8241_v62 }
 0x9ca   : > { %v5643_v24 = vmul.f32 %v5486_v33, %v15807_v14  ;;  %v5488_v56 = vpop.f32.mrb[61].mxu1 }
 0x9cb   : > { %v5489_v49 = vpop.f32.mrb[62].mxu1  ;;  %v15821_v56 = vld [vmem:[#allocation14_spill] sm:$0xff] }
 0x9cc   : > { %v5721_v46 = vadd.f32 %v13350_v29, %v5643_v24  ;;  %v5644_v13 = vmul.f32 %v5489_v49, %v15807_v14  ;;  %v5491_v3 = vpop.f32.mrb[63].mxu1  ;;  %8244 = vmatpush3.bf16.msra.mxu1 %v8241_v62  ;;  %v6004_v62 = vld [vmem:[#allocation2 + $0x2c0] sm:$0xff] }
 0x9ce   : > { %v5724_v44 = vadd.f32 %v13354_v37, %v5644_v13  ;;  %7950 = vmatprep.mubr.f32.mxu0 %v5721_v46  ;;  %v6002_v46 = vld [vmem:[#allocation2 + $0x260] sm:$0xff]  ;;  %v6003_v13 = vld [vmem:[#allocation2 + $0x290] sm:$0xff] }
 0x9cf   : > { %v8245_v3 = vpack.c.bf16 %v6003_v13, %v6002_v46 }
 0x9d0   : > { %7951 = vmatmul.mubr.f32.gmra.mrb[70].mxu0 %v5724_v44 }
 0x9d1   : > { %8246 = vmatprep.subr.bf16.mxu1 %v8245_v3 }
 0x9d2   : > { %8248 = vmatpush3.bf16.msra.mxu1 %v8245_v3  ;;  %v15835_v3 = vld [vmem:[#allocation28_spill] sm:$0xff] }
 0xa12   : > { %v5494_v55 = vpop.f32.mrb[64].mxu1 }
 0xa13   : > { %v5645_v60 = vmul.f32 %v5494_v55, %v15807_v14  ;;  %v5496_v51 = vpop.f32.mrb[65].mxu1 }
 0xa14   : > { %v5497_v34 = vpop.f32.mrb[66].mxu1  ;;  %v15823_v51 = vld [vmem:[#allocation16_spill] sm:$0xff] }
 0xa15   : > { %v5727_v50 = vadd.f32 %v13358_v40, %v5645_v60  ;;  %v5646_v29 = vmul.f32 %v5497_v34, %v15807_v14  ;;  %v5499_v61 = vpop.f32.mrb[67].mxu1 }
 0xa17   : > { %v5730_v42 = vadd.f32 %v13362_v26, %v5646_v29  ;;  %7953 = vmatprep.mubr.f32.mxu0 %v5727_v50 }
 0xa19   : > { %7954 = vmatmul.mubr.f32.gmra.mrb[72].mxu0 %v5730_v42  ;;  %v15824_v42 = vld [vmem:[#allocation17_spill] sm:$0xff] }
 0xa1a   : > { %v5502_v37 = vpop.f32.mrb[68].mxu1 }
 0xa1b   : > { %v5647_v19 = vmul.f32 %v5502_v37, %v15807_v14  ;;  %v5504_v10 = vpop.f32.mrb[69].mxu1 }
 0xa1c   : > { %v5505_v35 = vpop.f32.mrb[70].mxu1  ;;  %v15825_v10 = vld [vmem:[#allocation18_spill] sm:$0xff] }
 0xa1d   : > { %v5733_v38 = vadd.f32 %v13366_v52, %v5647_v19  ;;  %v5648_v43 = vmul.f32 %v5505_v35, %v15807_v14  ;;  %v5507_v40 = vpop.f32.mrb[71].mxu1 }
 0xa1f   : > { %v5736_v9 = vadd.f32 %v13370_v25, %v5648_v43  ;;  %7956 = vmatprep.mubr.f32.mxu0 %v5733_v38  ;;  %v6005_v38 = vld [vmem:[#allocation2 + $0x2f0] sm:$0xff] }
 0xa20   : > { %v8249_v40 = vpack.c.bf16 %v6005_v38, %v6004_v62  ;;  %v15839_v38 = vld [vmem:[#allocation32_spill] sm:$0xff] }
 0xa21   : > { %7957 = vmatmul.mubr.f32.gmra.mrb[74].mxu0 %v5736_v9  ;;  %v15826_v9 = vld [vmem:[#allocation19_spill] sm:$0xff] }
 0xa22   : > { %v5510_v26 = vpop.f32.mrb[72].mxu1  ;;  %8250 = vmatprep.subr.bf16.mxu1 %v8249_v40 }
 0xa23   : > { %v5649_v59 = vmul.f32 %v5510_v26, %v15807_v14  ;;  %v5512_v12 = vpop.f32.mrb[73].mxu1  ;;  %8252 = vmatpush3.bf16.msra.mxu1 %v8249_v40 }
 0xa24   : > { %v5513_v18 = vpop.f32.mrb[74].mxu1  ;;  %v15827_v12 = vld [vmem:[#allocation20_spill] sm:$0xff] }
 0xa25   : > { %v5739_v27 = vadd.f32 %v13374_v23, %v5649_v59  ;;  %v5650_v54 = vmul.f32 %v5513_v18, %v15807_v14  ;;  %v5515_v63 = vpop.f32.mrb[75].mxu1 }
 0xa27   : > { %v5742_v52 = vadd.f32 %v13378_v21, %v5650_v54  ;;  %7959 = vmatprep.mubr.f32.mxu0 %v5739_v27 }
 0xa29   : > { %7960 = vmatmul.mubr.f32.gmra.mrb[76].mxu0 %v5742_v52  ;;  %v15828_v52 = vld [vmem:[#allocation21_spill] sm:$0xff] }
 0xa2b   : > { %v5518_v2 = vpop.f32.mrb[76].mxu1 }
 0xa2c   : > { %v5651_v25 = vmul.f32 %v5518_v2, %v15807_v14  ;;  %v5520_v57 = vpop.f32.mrb[77].mxu1 }
 0xa2d   : > { %v5521_v48 = vpop.f32.mrb[78].mxu1  ;;  %v15829_v57 = vld [vmem:[#allocation22_spill] sm:$0xff] }
 0xa2e   : > { %v5745_v22 = vadd.f32 %v13382_v41, %v5651_v25  ;;  %v5652_v5 = vmul.f32 %v5521_v48, %v15807_v14  ;;  %v5523_v36 = vpop.f32.mrb[79].mxu1 }
 0xa30   : > { %v5748_v6 = vadd.f32 %v13386_v7, %v5652_v5  ;;  %7962 = vmatprep.mubr.f32.mxu0 %v5745_v22 }
 0xa32   : > { %7963 = vmatmul.mubr.f32.gmra.mrb[78].mxu0 %v5748_v6  ;;  %v15830_v6 = vld [vmem:[#allocation23_spill] sm:$0xff] }
 0xa48   : > { %v7919_v23 = vpop.f32.mrb[48].mxu0 }
 0xa49   : > { %v13469_v32 = vadd.f32 %v7919_v23, %v15816_v53  ;;  %v5831_v21 = vpop.f32.mrb[49].mxu0 }
 0xa4a   : > { %v13472_v11 = vadd.f32 %v5831_v21, %v15817_v39  ;;  %v15831_v21 = vld [vmem:[#allocation24_spill] sm:$0xff] }
 0xa4b   : > { %6024 = vadd.xlane.f32.xlu1 %v13469_v32  ;;  %v6119_v41 = vmul.f32 %v13469_v32, %v13469_v32 }
 0xa4c   : > { %6022 = vadd.xlane.f32.xlu0 %v13472_v11  ;;  %v6118_v7 = vmul.f32 %v13472_v11, %v13472_v11 }
 0xa4f   : > { %6152 = vadd.xlane.f32.xlu1 %v6119_v41 }
 0xa50   : > { %6150 = vadd.xlane.f32.xlu0 %v6118_v7 }
 0xa53   : > { %v7922_v14 = vpop.f32.mrb[50].mxu0 }
 0xa54   : > { %v13481_v15 = vadd.f32 %v7922_v14, %v15818_v30  ;;  %v5841_v16 = vpop.f32.mrb[51].mxu0  ;;  %v15832_v30 = vld [vmem:[#allocation25_spill] sm:$0xff] }
 0xa55   : > { %v13484_v47 = vadd.f32 %v5841_v16, %v15819_v4 }
 0xa56   : > { %6028 = vadd.xlane.f32.xlu1 %v13481_v15  ;;  %v6121_v31 = vmul.f32 %v13481_v15, %v13481_v15 }
 0xa57   : > { %6026 = vadd.xlane.f32.xlu0 %v13484_v47  ;;  %v6120_v1 = vmul.f32 %v13484_v47, %v13484_v47 }
 0xa5a   : > { %6156 = vadd.xlane.f32.xlu1 %v6121_v31  ;;  %v15833_v31 = vld [vmem:[#allocation26_spill] sm:$0xff] }
 0xa5b   : > { %v7925_v17 = vpop.f32.mrb[52].mxu0  ;;  %6154 = vadd.xlane.f32.xlu0 %v6120_v1 }
 0xa5c   : > { %v13493_v33 = vadd.f32 %v7925_v17, %v15820_v45  ;;  %v5851_v24 = vpop.f32.mrb[53].mxu0 }
 0xa5d   : > { %v13496_v49 = vadd.f32 %v5851_v24, %v15821_v56  ;;  %v15834_v56 = vld [vmem:[#allocation27_spill] sm:$0xff] }
 0xa5e   : > { %6032 = vadd.xlane.f32.xlu1 %v13493_v33  ;;  %v6123_v44 = vmul.f32 %v13493_v33, %v13493_v33 }
 0xa5f   : > { %6030 = vadd.xlane.f32.xlu0 %v13496_v49  ;;  %v6122_v0 = vmul.f32 %v13496_v49, %v13496_v49 }
 0xa62   : > { %6160 = vadd.xlane.f32.xlu1 %v6123_v44 }
 0xa63   : > { %v7928_v20 = vpop.f32.mrb[54].mxu0  ;;  %6158 = vadd.xlane.f32.xlu0 %v6122_v0 }
 0xa64   : > { %v13505_v55 = vadd.f32 %v7928_v20, %v15822_v58  ;;  %v5861_v60 = vpop.f32.mrb[55].mxu0 }
 0xa65   : > { %v13508_v34 = vadd.f32 %v5861_v60, %v15823_v51  ;;  %v15836_v60 = vld [vmem:[#allocation29_spill] sm:$0xff] }
 0xa66   : > { %6036 = vadd.xlane.f32.xlu1 %v13505_v55  ;;  %v6125_v50 = vmul.f32 %v13505_v55, %v13505_v55 }
 0xa67   : > { %6034 = vadd.xlane.f32.xlu0 %v13508_v34  ;;  %v6124_v29 = vmul.f32 %v13508_v34, %v13508_v34 }
 0xa6a   : > { %6164 = vadd.xlane.f32.xlu1 %v6125_v50 }
 0xa6b   : > { %6162 = vadd.xlane.f32.xlu0 %v6124_v29  ;;  %v7931_v61 = vpop.f32.mrb[56].mxu0  ;;  %v15837_v29 = vld [vmem:[#allocation30_spill] sm:$0xff] }
 0xa6c   : > { %v13517_v37 = vadd.f32 %v7931_v61, %v15824_v42  ;;  %v5871_v19 = vpop.f32.mrb[57].mxu0 }
 0xa6d   : > { %v13520_v28 = vadd.f32 %v5871_v19, %v15825_v10 }
 0xa6e   : > { %6040 = vadd.xlane.f32.xlu1 %v13517_v37  ;;  %v6127_v8 = vmul.f32 %v13517_v37, %v13517_v37 }
 0xa6f   : > { %6038 = vadd.xlane.f32.xlu0 %v13520_v28  ;;  %v6126_v35 = vmul.f32 %v13520_v28, %v13520_v28 }
 0xa72   : > { %6168 = vadd.xlane.f32.xlu1 %v6127_v8  ;;  %v15838_v8 = vld [vmem:[#allocation31_spill] sm:$0xff] }
 0xa73   : > { %6166 = vadd.xlane.f32.xlu0 %v6126_v35  ;;  %v7934_v43 = vpop.f32.mrb[58].mxu0 }
 0xa74   : > { %v13529_v26 = vadd.f32 %v7934_v43, %v15826_v9  ;;  %v5881_v59 = vpop.f32.mrb[59].mxu0 }
 0xa75   : > { %v13532_v18 = vadd.f32 %v5881_v59, %v15827_v12 }
 0xa76   : > { %6044 = vadd.xlane.f32.xlu1 %v13529_v26  ;;  %v6129_v27 = vmul.f32 %v13529_v26, %v13529_v26 }
 0xa77   : > { %6042 = vadd.xlane.f32.xlu0 %v13532_v18  ;;  %v6128_v54 = vmul.f32 %v13532_v18, %v13532_v18 }
 0xa7a   : > { %6172 = vadd.xlane.f32.xlu1 %v6129_v27 }
 0xa7b   : > { %6170 = vadd.xlane.f32.xlu0 %v6128_v54  ;;  %v7937_v63 = vpop.f32.mrb[60].mxu0 }
 0xa7c   : > { %v13541_v2 = vadd.f32 %v7937_v63, %v15828_v52  ;;  %v5891_v25 = vpop.f32.mrb[61].mxu0 }
 0xa7d   : > { %v13544_v48 = vadd.f32 %v5891_v25, %v15829_v57 }
 0xa7e   : > { %6048 = vadd.xlane.f32.xlu1 %v13541_v2  ;;  %v6131_v22 = vmul.f32 %v13541_v2, %v13541_v2 }
 0xa7f   : > { %6046 = vadd.xlane.f32.xlu0 %v13544_v48  ;;  %v6130_v5 = vmul.f32 %v13544_v48, %v13544_v48 }
 0xa82   : > { %6176 = vadd.xlane.f32.xlu1 %v6131_v22 }
 0xa83   : > { %6174 = vadd.xlane.f32.xlu0 %v6130_v5  ;;  %v7940_v36 = vpop.f32.mrb[62].mxu0 }
 0xa84   : > { %v13553_v23 = vadd.f32 %v7940_v36, %v15830_v6  ;;  %v5901_v53 = vpop.f32.mrb[63].mxu0 }
 0xa85   : > { %v13556_v39 = vadd.f32 %v5901_v53, %v15831_v21 }
 0xa86   : > { %6052 = vadd.xlane.f32.xlu1 %v13553_v23  ;;  %v6133_v41 = vmul.f32 %v13553_v23, %v13553_v23 }
 0xa87   : > { %6050 = vadd.xlane.f32.xlu0 %v13556_v39  ;;  %v6132_v7 = vmul.f32 %v13556_v39, %v13556_v39 }
 0xa8a   : > { %6180 = vadd.xlane.f32.xlu1 %v6133_v41 }
 0xa8b   : > { %6178 = vadd.xlane.f32.xlu0 %v6132_v7  ;;  %v7943_v14 = vpop.f32.mrb[64].mxu0 }
 0xa8c   : > { %v13565_v16 = vadd.f32 %v7943_v14, %v15832_v30  ;;  %v5911_v4 = vpop.f32.mrb[65].mxu0 }
 0xa8d   : > { %v13568_v1 = vadd.f32 %v5911_v4, %v15833_v31 }
 0xa8e   : > { %6056 = vadd.xlane.f32.xlu1 %v13565_v16  ;;  %v6135_v17 = vmul.f32 %v13565_v16, %v13565_v16 }
 0xa8f   : > { %6054 = vadd.xlane.f32.xlu0 %v13568_v1  ;;  %v6134_v45 = vmul.f32 %v13568_v1, %v13568_v1 }
 0xa92   : > { %6184 = vadd.xlane.f32.xlu1 %v6135_v17 }
 0xa93   : > { %6182 = vadd.xlane.f32.xlu0 %v6134_v45  ;;  %v7946_v24 = vpop.f32.mrb[66].mxu0 }
 0xa94   : > { %v13577_v46 = vadd.f32 %v7946_v24, %v15834_v56  ;;  %v5921_v13 = vpop.f32.mrb[67].mxu0 }
 0xa95   : > { %v13580_v44 = vadd.f32 %v5921_v13, %v15835_v3 }
 0xa96   : > { %6060 = vadd.xlane.f32.xlu1 %v13577_v46  ;;  %v6137_v0 = vmul.f32 %v13577_v46, %v13577_v46 }
 0xa97   : > { %6058 = vadd.xlane.f32.xlu0 %v13580_v44  ;;  %v6136_v20 = vmul.f32 %v13580_v44, %v13580_v44 }
 0xa9a   : > { %6188 = vadd.xlane.f32.xlu1 %v6137_v0 }
 0xa9b   : > { %6186 = vadd.xlane.f32.xlu0 %v6136_v20  ;;  %v7949_v58 = vpop.f32.mrb[68].mxu0 }
 0xa9c   : > { %v13589_v51 = vadd.f32 %v7949_v58, %v15836_v60  ;;  %v5931_v50 = vpop.f32.mrb[69].mxu0 }
 0xa9d   : > { %v13592_v61 = vadd.f32 %v5931_v50, %v15837_v29 }
 0xa9e   : > { %6064 = vadd.xlane.f32.xlu1 %v13589_v51  ;;  %v6139_v42 = vmul.f32 %v13589_v51, %v13589_v51 }
 0xa9f   : > { %6062 = vadd.xlane.f32.xlu0 %v13592_v61  ;;  %v6138_v19 = vmul.f32 %v13592_v61, %v13592_v61 }
 0xaa2   : > { %6192 = vadd.xlane.f32.xlu1 %v6139_v42 }
 0xaa3   : > { %6190 = vadd.xlane.f32.xlu0 %v6138_v19  ;;  %v7952_v10 = vpop.f32.mrb[70].mxu0 }
 0xaa4   : > { %v13601_v35 = vadd.f32 %v7952_v10, %v15838_v8  ;;  %v5941_v62 = vpop.f32.mrb[71].mxu0 }
 0xaa5   : > { %v13604_v43 = vadd.f32 %v5941_v62, %v15839_v38  ;;  %v13629_v62 = vld [vmem:[%s14024_s2 + $0x2] ss:$0 sm:$0xff] }
 0xaa6   : > { %6068 = vadd.xlane.f32.xlu1 %v13601_v35  ;;  %v6141_v40 = vmul.f32 %v13601_v35, %v13601_v35  ;;  %v15840_v38 = vld [vmem:[#allocation33_spill] sm:$0xff] }
 0xaa7   : > { %6066 = vadd.xlane.f32.xlu0 %v13604_v43  ;;  %v6140_v9 = vmul.f32 %v13604_v43, %v13604_v43 }
 0xaaa   : > { %6196 = vadd.xlane.f32.xlu1 %v6141_v40 }
 0xaab   : > { %6194 = vadd.xlane.f32.xlu0 %v6140_v9 }
 0xad8   : > { %v6025_v59 = vpop.xlane.xlu1 %6024 }
 0xad9   : > { %v6087_v12 = vmul.f32 0.125, %v6025_v59  ;;  %v6023_v27 = vpop.xlane.xlu0 %6022 }
 0xada   : > { %v6086_v54 = vmul.f32 0.125, %v6023_v27 }
 0xadb   : > { %v6247_v52 = vmul.f32 %v6087_v12, %v6087_v12  ;;  %v6311_v42 = vsub.f32 %v13469_v32, %v6087_v12 }
 0xadc   : > { %v6153_v63 = vpop.xlane.xlu1 %6152  ;;  %v6246_v22 = vmul.f32 %v6086_v54, %v6086_v54  ;;  %v6310_v8 = vsub.f32 %v13472_v11, %v6086_v54 }
 0xadd   : > { %v6215_v25 = vmul.f32 0.125, %v6153_v63  ;;  %v6151_v57 = vpop.xlane.xlu0 %6150 }
 0xade   : > { %v6214_v5 = vmul.f32 0.125, %v6151_v57 }
 0xadf   : > { %v6279_v36 = vsub.f32 %v6215_v25, %v6247_v52  ;;  %v15841_v52 = vld [vmem:[#allocation34_spill] sm:$0xff] }
 0xae0   : > { %v6278_v6 = vsub.f32 %v6214_v5, %v6246_v22 }
 0xae1   : > { %v6343_v53 = vadd.f32 1e-05, %v6279_v36 }
 0xae2   : > { %v6342_v41 = vadd.f32 1e-05, %v6278_v6  ;;  %v13645_v6 = vld [vmem:[%s14024_s2 + $0x3] ss:$0 sm:$0xff] }
 0xae3   : > { %v6029_v21 = vpop.xlane.xlu1 %6028  ;;  %9176 = vrsqrt.f32 %v6343_v53 }
 0xae4   : > { %v13612_v7 = vmul.f32 0.125, %v6029_v21  ;;  %v6027_v14 = vpop.xlane.xlu0 %6026  ;;  %9178 = vrsqrt.f32 %v6342_v41 }
 0xae5   : > { %v13614_v30 = vmul.f32 0.125, %v6027_v14 }
 0xae6   : > { %v6249_v31 = vmul.f32 %v13612_v7, %v13612_v7 }
 0xae7   : > { %v6157_v4 = vpop.xlane.xlu1 %6156  ;;  %v6248_v24 = vmul.f32 %v13614_v30, %v13614_v30 }
 0xae8   : > { %v6217_v17 = vmul.f32 0.125, %v6157_v4  ;;  %v6155_v45 = vpop.xlane.xlu0 %6154 }
 0xae9   : > { %v6216_v56 = vmul.f32 0.125, %v6155_v45 }
 0xaea   : > { %v6281_v13 = vsub.f32 %v6217_v17, %v6249_v31 }
 0xaeb   : > { %v6280_v3 = vsub.f32 %v6216_v56, %v6248_v24  ;;  %v6033_v0 = vpop.xlane.xlu1 %6032 }
 0xaec   : > { %v6345_v20 = vadd.f32 1e-05, %v6281_v13  ;;  %v13620_v58 = vmul.f32 0.125, %v6033_v0  ;;  %v6031_v60 = vpop.xlane.xlu0 %6030  ;;  %v7955_v19 = vpop.f32.mrb[72].mxu0 }
 0xaed   : > { %v6344_v50 = vadd.f32 1e-05, %v6280_v3  ;;  %v13622_v29 = vmul.f32 0.125, %v6031_v60  ;;  %v9177_v10 = vpop.eup %9176  ;;  %v13632_v40 = vadd.f32 %v7955_v19, %v15840_v38  ;;  %v5951_v9 = vpop.f32.mrb[73].mxu0 }
 0xaee   : > { %9180 = vrsqrt.f32 %v6345_v20  ;;  %v9179_v27 = vpop.eup %9178  ;;  %v6407_v63 = vmul.f32 %v9177_v10, %v6311_v42  ;;  %v6251_v12 = vmul.f32 %v13620_v58, %v13620_v58  ;;  %v13637_v25 = vadd.f32 %v5951_v9, %v15841_v52  ;;  %v15842_v42 = vld [vmem:[#allocation35_spill] sm:$0xff] }
 0xaef   : > { %9182 = vrsqrt.f32 %v6344_v50  ;;  %v6161_v59 = vpop.xlane.xlu1 %6160  ;;  %v6250_v22 = vmul.f32 %v13622_v29, %v13622_v29  ;;  %6072 = vadd.xlane.f32.xlu1 %v13632_v40  ;;  %v6406_v36 = vmul.f32 %v9179_v27, %v6310_v8  ;;  %v6143_v4 = vmul.f32 %v13632_v40, %v13632_v40  ;;  %v15843_v27 = vld [vmem:[#allocation36_spill] sm:$0xff] }
 0xaf0   : > { %v6219_v54 = vmul.f32 0.125, %v6161_v59  ;;  %v6159_v57 = vpop.xlane.xlu0 %6158  ;;  %v6443_v53 = vmul.f32 %v13629_v62, %v6407_v63  ;;  %6070 = vadd.xlane.f32.xlu0 %v13637_v25  ;;  %v6142_v56 = vmul.f32 %v13637_v25, %v13637_v25  ;;  %v6313_v50 = vsub.f32 %v13481_v15, %v13612_v7 }
 0xaf1   : > { %v6218_v5 = vmul.f32 0.125, %v6159_v57  ;;  %v6442_v31 = vmul.f32 %v13629_v62, %v6406_v36  ;;  %v6312_v9 = vsub.f32 %v13484_v47, %v13614_v30 }
 0xaf2   : > { %v6283_v21 = vsub.f32 %v6219_v54, %v6251_v12  ;;  %v6479_v20 = vadd.f32 %v13645_v6, %v6443_v53 }
 0xaf3   : > { %v6282_v41 = vsub.f32 %v6218_v5, %v6250_v22  ;;  %v6037_v14 = vpop.xlane.xlu1 %6036  ;;  %6200 = vadd.xlane.f32.xlu1 %v6143_v4  ;;  %v6478_v0 = vadd.f32 %v13645_v6, %v6442_v31 }
 0xaf4   : > { %v6347_v17 = vadd.f32 1e-05, %v6283_v21  ;;  %v13652_v45 = vmul.f32 0.125, %v6037_v14  ;;  %v6035_v24 = vpop.xlane.xlu0 %6034  ;;  %6198 = vadd.xlane.f32.xlu0 %v6142_v56  ;;  %v7958_v60 = vpop.f32.mrb[74].mxu0 }
 0xaf5   : > { %v6346_v13 = vadd.f32 1e-05, %v6282_v41  ;;  %v13656_v3 = vmul.f32 0.125, %v6035_v24  ;;  %v13663_v19 = vadd.f32 %v7958_v60, %v15842_v42  ;;  %v5961_v10 = vpop.f32.mrb[75].mxu0  ;;  %7997 = vmatprep.mubr.f32.mxu1 %v6478_v0  ;;  %v6315_v60 = vsub.f32 %v13493_v33, %v13620_v58 }
 0xaf6   : > { %9184 = vrsqrt.f32 %v6347_v17  ;;  %v6253_v59 = vmul.f32 %v13652_v45, %v13652_v45  ;;  %v13670_v63 = vadd.f32 %v5961_v10, %v15843_v27  ;;  %7998 = vmatmul.mubr.f32.vlgmr.msra.gmra.mrb[80].mxu1 %v6479_v20 }
 0xaf7   : > { %9186 = vrsqrt.f32 %v6346_v13  ;;  %v6165_v8 = vpop.xlane.xlu1 %6164  ;;  %v6252_v57 = vmul.f32 %v13656_v3, %v13656_v3  ;;  %6076 = vadd.xlane.f32.xlu1 %v13663_v19  ;;  %v6145_v21 = vmul.f32 %v13663_v19, %v13663_v19 }
 0xaf8   : > { %v9181_v38 = vpop.eup %9180  ;;  %v6221_v12 = vmul.f32 0.125, %v6165_v8  ;;  %v6163_v52 = vpop.xlane.xlu0 %6162  ;;  %6074 = vadd.xlane.f32.xlu0 %v13670_v63  ;;  %v6144_v17 = vmul.f32 %v13670_v63, %v13670_v63 }
 0xaf9   : > { %v9183_v7 = vpop.eup %9182  ;;  %v6409_v54 = vmul.f32 %v9181_v38, %v6313_v50  ;;  %v6220_v22 = vmul.f32 0.125, %v6163_v52  ;;  %v15844_v50 = vld [vmem:[#allocation37_spill] sm:$0xff] }
 0xafa   : > { %v6285_v5 = vsub.f32 %v6221_v12, %v6253_v59  ;;  %v6408_v30 = vmul.f32 %v9183_v7, %v6312_v9  ;;  %v6314_v59 = vsub.f32 %v13496_v49, %v13622_v29  ;;  %v15845_v12 = vld [vmem:[#allocation38_spill] sm:$0xff] }
 0xafb   : > { %v6284_v36 = vsub.f32 %v6220_v22, %v6252_v57  ;;  %v6041_v53 = vpop.xlane.xlu1 %6040  ;;  %v6445_v41 = vmul.f32 %v13629_v62, %v6409_v54  ;;  %6204 = vadd.xlane.f32.xlu1 %v6145_v21 }
 0xafc   : > { %v6349_v14 = vadd.f32 1e-05, %v6285_v5  ;;  %v13679_v4 = vmul.f32 0.125, %v6041_v53  ;;  %v6039_v31 = vpop.xlane.xlu0 %6038  ;;  %v6444_v24 = vmul.f32 %v13629_v62, %v6408_v30  ;;  %6202 = vadd.xlane.f32.xlu0 %v6144_v17  ;;  %v7961_v0 = vpop.f32.mrb[76].mxu0 }
 0xafd   : > { %v6348_v56 = vadd.f32 1e-05, %v6284_v36  ;;  %v13684_v13 = vmul.f32 0.125, %v6039_v31  ;;  %v13690_v42 = vadd.f32 %v7961_v0, %v15844_v50  ;;  %v5971_v10 = vpop.f32.mrb[77].mxu0  ;;  %v6481_v38 = vadd.f32 %v13645_v6, %v6445_v41 }
 0xafe   : > { %9188 = vrsqrt.f32 %v6349_v14  ;;  %v6480_v20 = vadd.f32 %v13645_v6, %v6444_v24  ;;  %v6255_v27 = vmul.f32 %v13679_v4, %v13679_v4  ;;  %v13698_v52 = vadd.f32 %v5971_v10, %v15845_v12 }
 0xaff   : > { %9190 = vrsqrt.f32 %v6348_v56  ;;  %v6169_v8 = vpop.xlane.xlu1 %6168  ;;  %v6254_v22 = vmul.f32 %v13684_v13, %v13684_v13  ;;  %6080 = vadd.xlane.f32.xlu1 %v13690_v42  ;;  %v6147_v21 = vmul.f32 %v13690_v42, %v13690_v42  ;;  %v6317_v10 = vsub.f32 %v13505_v55, %v13652_v45 }
 0xb00   : > { %v9185_v9 = vpop.eup %9184  ;;  %v6223_v7 = vmul.f32 0.125, %v6169_v8  ;;  %v6167_v58 = vpop.xlane.xlu0 %6166  ;;  %8000 = vmatprep.mubr.f32.mxu1 %v6480_v20  ;;  %6078 = vadd.xlane.f32.xlu0 %v13698_v52  ;;  %v6146_v24 = vmul.f32 %v13698_v52, %v13698_v52  ;;  %v15846_v8 = vld [vmem:[#allocation39_spill] sm:$0xff] }
 0xb01   : > { %v9187_v54 = vpop.eup %9186  ;;  %v6411_v57 = vmul.f32 %v9185_v9, %v6315_v60  ;;  %v6222_v5 = vmul.f32 0.125, %v6167_v58  ;;  %8001 = vmatmul.mubr.f32.gmra.mrb[82].mxu1 %v6481_v38 }
 0xb02   : > { %v6287_v30 = vsub.f32 %v6223_v7, %v6255_v27  ;;  %v6410_v29 = vmul.f32 %v9187_v54, %v6314_v59  ;;  %v6316_v7 = vsub.f32 %v13508_v34, %v13656_v3  ;;  %v15847_v54 = vld [vmem:[#allocation40_spill] sm:$0xff] }
 0xb03   : > { %v6286_v36 = vsub.f32 %v6222_v5, %v6254_v22  ;;  %v6045_v53 = vpop.xlane.xlu1 %6044  ;;  %v6447_v41 = vmul.f32 %v13629_v62, %v6411_v57  ;;  %6208 = vadd.xlane.f32.xlu1 %v6147_v21 }
 0xb04   : > { %v6351_v14 = vadd.f32 1e-05, %v6287_v30  ;;  %v13707_v31 = vmul.f32 0.125, %v6045_v53  ;;  %v6043_v17 = vpop.xlane.xlu0 %6042  ;;  %v6446_v56 = vmul.f32 %v13629_v62, %v6410_v29  ;;  %6206 = vadd.xlane.f32.xlu0 %v6146_v24 }
 0xb05   : > { %v6350_v0 = vadd.f32 1e-05, %v6286_v36  ;;  %v13712_v20 = vmul.f32 0.125, %v6043_v17  ;;  %v7964_v60 = vpop.f32.mrb[78].mxu0  ;;  %v6483_v27 = vadd.f32 %v13645_v6, %v6447_v41 }
 0xb06   : > { %9192 = vrsqrt.f32 %v6351_v14  ;;  %v6482_v50 = vadd.f32 %v13645_v6, %v6446_v56  ;;  %v13718_v38 = vadd.f32 %v7964_v60, %v15846_v8  ;;  %v5981_v9 = vpop.f32.mrb[79].mxu0  ;;  %v6257_v58 = vmul.f32 %v13707_v31, %v13707_v31 }
 0xb07   : > { %9194 = vrsqrt.f32 %v6350_v0  ;;  %v6173_v59 = vpop.xlane.xlu1 %6172  ;;  %v13726_v57 = vadd.f32 %v5981_v9, %v15847_v54  ;;  %v6256_v29 = vmul.f32 %v13712_v20, %v13712_v20 }
 0xb08   : > { %v9189_v12 = vpop.eup %9188  ;;  %v6225_v22 = vmul.f32 0.125, %v6173_v59  ;;  %v6171_v45 = vpop.xlane.xlu0 %6170  ;;  %8003 = vmatprep.mubr.f32.mxu1 %v6482_v50  ;;  %6084 = vadd.xlane.f32.xlu1 %v13718_v38  ;;  %v6149_v14 = vmul.f32 %v13718_v38, %v13718_v38  ;;  %v6319_v59 = vsub.f32 %v13517_v37, %v13679_v4 }
 0xb09   : > { %v9191_v5 = vpop.eup %9190  ;;  %v6413_v30 = vmul.f32 %v9189_v12, %v6317_v10  ;;  %v6224_v36 = vmul.f32 0.125, %v6171_v45  ;;  %8004 = vmatmul.mubr.f32.gmra.mrb[84].mxu1 %v6483_v27  ;;  %6082 = vadd.xlane.f32.xlu0 %v13726_v57  ;;  %v6148_v60 = vmul.f32 %v13726_v57, %v13726_v57 }
 0xb0a   : > { %v6289_v53 = vsub.f32 %v6225_v22, %v6257_v58  ;;  %v6412_v3 = vmul.f32 %v9191_v5, %v6316_v7  ;;  %v6318_v58 = vsub.f32 %v13520_v28, %v13684_v13 }
 0xb0b   : > { %v6288_v21 = vsub.f32 %v6224_v36, %v6256_v29  ;;  %v6049_v41 = vpop.xlane.xlu1 %6048  ;;  %v6449_v17 = vmul.f32 %v13629_v62, %v6413_v30 }
 0xb0c   : > { %v6353_v24 = vadd.f32 1e-05, %v6289_v53  ;;  %v13735_v56 = vmul.f32 0.125, %v6049_v41  ;;  %v6047_v0 = vpop.xlane.xlu0 %6046  ;;  %v6448_v50 = vmul.f32 %v13629_v62, %v6412_v3  ;;  %6212 = vadd.xlane.f32.xlu1 %v6149_v14 }
 0xb0d   : > { %v6352_v10 = vadd.f32 1e-05, %v6288_v21  ;;  %v13740_v8 = vmul.f32 0.125, %v6047_v0  ;;  %6210 = vadd.xlane.f32.xlu0 %v6148_v60  ;;  %v6485_v12 = vadd.f32 %v13645_v6, %v6449_v17 }
 0xb0e   : > { %9196 = vrsqrt.f32 %v6353_v24  ;;  %v6484_v9 = vadd.f32 %v13645_v6, %v6448_v50  ;;  %v6259_v54 = vmul.f32 %v13735_v56, %v13735_v56 }
 0xb0f   : > { %9198 = vrsqrt.f32 %v6352_v10  ;;  %v6177_v27 = vpop.xlane.xlu1 %6176  ;;  %v6258_v29 = vmul.f32 %v13740_v8, %v13740_v8  ;;  %v6321_v10 = vsub.f32 %v13529_v26, %v13707_v31 }
 0xb10   : > { %v9193_v7 = vpop.eup %9192  ;;  %v6227_v22 = vmul.f32 0.125, %v6177_v27  ;;  %v6175_v45 = vpop.xlane.xlu0 %6174  ;;  %8006 = vmatprep.mubr.f32.mxu1 %v6484_v9 }
 0xb11   : > { %v9195_v5 = vpop.eup %9194  ;;  %v6415_v30 = vmul.f32 %v9193_v7, %v6319_v59  ;;  %v6226_v4 = vmul.f32 0.125, %v6175_v45  ;;  %8007 = vmatmul.mubr.f32.gmra.mrb[86].mxu1 %v6485_v12  ;;  %v6320_v12 = vsub.f32 %v13532_v18, %v13712_v20 }
 0xb12   : > { %v6291_v36 = vsub.f32 %v6227_v22, %v6259_v54  ;;  %v6414_v53 = vmul.f32 %v9195_v5, %v6318_v58 }
 0xb13   : > { %v6290_v3 = vsub.f32 %v6226_v4, %v6258_v29  ;;  %v6053_v21 = vpop.xlane.xlu1 %6052  ;;  %v6451_v41 = vmul.f32 %v13629_v62, %v6415_v30 }
 0xb14   : > { %v6355_v13 = vadd.f32 1e-05, %v6291_v36  ;;  %v13753_v14 = vmul.f32 0.125, %v6053_v21  ;;  %v6051_v17 = vpop.xlane.xlu0 %6050  ;;  %v6450_v24 = vmul.f32 %v13629_v62, %v6414_v53 }
 0xb15   : > { %v6354_v0 = vadd.f32 1e-05, %v6290_v3  ;;  %v13756_v60 = vmul.f32 0.125, %v6051_v17  ;;  %v6487_v59 = vadd.f32 %v13645_v6, %v6451_v41 }
 0xb16   : > { %9200 = vrsqrt.f32 %v6355_v13  ;;  %v6486_v50 = vadd.f32 %v13645_v6, %v6450_v24  ;;  %v6261_v7 = vmul.f32 %v13753_v14, %v13753_v14 }
 0xb17   : > { %9202 = vrsqrt.f32 %v6354_v0  ;;  %v6181_v9 = vpop.xlane.xlu1 %6180  ;;  %v6260_v5 = vmul.f32 %v13756_v60, %v13756_v60  ;;  %v6323_v0 = vsub.f32 %v13541_v2, %v13735_v56 }
 0xb18   : > { %v9197_v27 = vpop.eup %9196  ;;  %v6229_v58 = vmul.f32 0.125, %v6181_v9  ;;  %v6179_v54 = vpop.xlane.xlu0 %6178  ;;  %8009 = vmatprep.mubr.f32.mxu1 %v6486_v50 }
 0xb19   : > { %v9199_v22 = vpop.eup %9198  ;;  %v6417_v45 = vmul.f32 %v9197_v27, %v6321_v10  ;;  %v6228_v31 = vmul.f32 0.125, %v6179_v54  ;;  %8010 = vmatmul.mubr.f32.gmra.mrb[88].mxu1 %v6487_v59  ;;  %v6322_v59 = vsub.f32 %v13544_v48, %v13740_v8 }
 0xb1a   : > { %v6293_v30 = vsub.f32 %v6229_v58, %v6261_v7  ;;  %v6416_v29 = vmul.f32 %v9199_v22, %v6320_v12 }
 0xb1b   : > { %v6292_v4 = vsub.f32 %v6228_v31, %v6260_v5  ;;  %v6057_v36 = vpop.xlane.xlu1 %6056  ;;  %v6453_v53 = vmul.f32 %v13629_v62, %v6417_v45 }
 0xb1c   : > { %v6357_v20 = vadd.f32 1e-05, %v6293_v30  ;;  %v13769_v3 = vmul.f32 0.125, %v6057_v36  ;;  %v6055_v21 = vpop.xlane.xlu0 %6054  ;;  %v6452_v41 = vmul.f32 %v13629_v62, %v6416_v29 }
 0xb1d   : > { %v6356_v13 = vadd.f32 1e-05, %v6292_v4  ;;  %v13772_v17 = vmul.f32 0.125, %v6055_v21  ;;  %v6489_v10 = vadd.f32 %v13645_v6, %v6453_v53 }
 0xb1e   : > { %9204 = vrsqrt.f32 %v6357_v20  ;;  %v6488_v24 = vadd.f32 %v13645_v6, %v6452_v41  ;;  %v6263_v27 = vmul.f32 %v13769_v3, %v13769_v3 }
 0xb1f   : > { %9206 = vrsqrt.f32 %v6356_v13  ;;  %v6185_v50 = vpop.xlane.xlu1 %6184  ;;  %v6262_v22 = vmul.f32 %v13772_v17, %v13772_v17  ;;  %v6325_v13 = vsub.f32 %v13553_v23, %v13753_v14 }
 0xb20   : > { %v9201_v9 = vpop.eup %9200  ;;  %v6231_v12 = vmul.f32 0.125, %v6185_v50  ;;  %v6183_v7 = vpop.xlane.xlu0 %6182  ;;  %8012 = vmatprep.mubr.f32.mxu1 %v6488_v24 }
 0xb21   : > { %v9203_v58 = vpop.eup %9202  ;;  %v6419_v54 = vmul.f32 %v9201_v9, %v6323_v0  ;;  %v6230_v56 = vmul.f32 0.125, %v6183_v7  ;;  %8013 = vmatmul.mubr.f32.gmra.mrb[90].mxu1 %v6489_v10  ;;  %v6324_v10 = vsub.f32 %v13556_v39, %v13756_v60 }
 0xb22   : > { %v6295_v45 = vsub.f32 %v6231_v12, %v6263_v27  ;;  %v6418_v5 = vmul.f32 %v9203_v58, %v6322_v59 }
 0xb23   : > { %v6294_v31 = vsub.f32 %v6230_v56, %v6262_v22  ;;  %v6061_v30 = vpop.xlane.xlu1 %6060  ;;  %v6455_v29 = vmul.f32 %v13629_v62, %v6419_v54 }
 0xb24   : > { %v6359_v8 = vadd.f32 1e-05, %v6295_v45  ;;  %v13785_v4 = vmul.f32 0.125, %v6061_v30  ;;  %v6059_v36 = vpop.xlane.xlu0 %6058  ;;  %v6454_v53 = vmul.f32 %v13629_v62, %v6418_v5 }
 0xb25   : > { %v6358_v20 = vadd.f32 1e-05, %v6294_v31  ;;  %v13788_v21 = vmul.f32 0.125, %v6059_v36  ;;  %v6491_v0 = vadd.f32 %v13645_v6, %v6455_v29 }
 0xb26   : > { %9208 = vrsqrt.f32 %v6359_v8  ;;  %v6490_v41 = vadd.f32 %v13645_v6, %v6454_v53  ;;  %v6265_v9 = vmul.f32 %v13785_v4, %v13785_v4 }
 0xb27   : > { %9210 = vrsqrt.f32 %v6358_v20  ;;  %v6189_v24 = vpop.xlane.xlu1 %6188  ;;  %v6264_v58 = vmul.f32 %v13788_v21, %v13788_v21  ;;  %v6327_v20 = vsub.f32 %v13565_v16, %v13769_v3 }
 0xb28   : > { %v9205_v50 = vpop.eup %9204  ;;  %v6233_v59 = vmul.f32 0.125, %v6189_v24  ;;  %v6187_v27 = vpop.xlane.xlu0 %6186  ;;  %8015 = vmatprep.mubr.f32.mxu1 %v6490_v41 }
 0xb29   : > { %v9207_v12 = vpop.eup %9206  ;;  %v6421_v7 = vmul.f32 %v9205_v50, %v6325_v13  ;;  %v6232_v14 = vmul.f32 0.125, %v6187_v27  ;;  %8016 = vmatmul.mubr.f32.gmra.mrb[92].mxu1 %v6491_v0  ;;  %v6326_v0 = vsub.f32 %v13568_v1, %v13772_v17 }
 0xb2a   : > { %v6297_v54 = vsub.f32 %v6233_v59, %v6265_v9  ;;  %v6420_v22 = vmul.f32 %v9207_v12, %v6324_v10 }
 0xb2b   : > { %v6296_v56 = vsub.f32 %v6232_v14, %v6264_v58  ;;  %v6065_v45 = vpop.xlane.xlu1 %6064  ;;  %v6457_v5 = vmul.f32 %v13629_v62, %v6421_v7 }
 0xb2c   : > { %v6361_v60 = vadd.f32 1e-05, %v6297_v54  ;;  %v13801_v31 = vmul.f32 0.125, %v6065_v45  ;;  %v6063_v30 = vpop.xlane.xlu0 %6062  ;;  %v6456_v29 = vmul.f32 %v13629_v62, %v6420_v22 }
 0xb2d   : > { %v6360_v8 = vadd.f32 1e-05, %v6296_v56  ;;  %v13804_v36 = vmul.f32 0.125, %v6063_v30  ;;  %v6493_v13 = vadd.f32 %v13645_v6, %v6457_v5  ;;  %v6007_v30 = vld [vmem:[#allocation2 + $0x58] sm:$0xff] }
 0xb2e   : > { %9212 = vrsqrt.f32 %v6361_v60  ;;  %v6492_v53 = vadd.f32 %v13645_v6, %v6456_v29  ;;  %v6267_v50 = vmul.f32 %v13801_v31, %v13801_v31  ;;  %v6006_v60 = vld [vmem:[#allocation2 + $0x28] sm:$0xff] }
 0xb2f   : > { %9214 = vrsqrt.f32 %v6360_v8  ;;  %v6193_v41 = vpop.xlane.xlu1 %6192  ;;  %v6266_v12 = vmul.f32 %v13804_v36, %v13804_v36  ;;  %v6008_v29 = vld [vmem:[#allocation2 + $0x88] sm:$0xff] }
 0xb30   : > { %v9209_v24 = vpop.eup %9208  ;;  %v6235_v10 = vmul.f32 0.125, %v6193_v41  ;;  %v6191_v9 = vpop.xlane.xlu0 %6190  ;;  %8018 = vmatprep.mubr.f32.mxu1 %v6492_v53  ;;  %v6009_v41 = vld [vmem:[#allocation2 + $0xb8] sm:$0xff] }
 0xb31   : > { %v9211_v59 = vpop.eup %9210  ;;  %v6423_v27 = vmul.f32 %v9209_v24, %v6327_v20  ;;  %v6234_v3 = vmul.f32 0.125, %v6191_v9  ;;  %8019 = vmatmul.mubr.f32.gmra.mrb[94].mxu1 %v6493_v13  ;;  %v8253_v20 = vpack.c.bf16 %v6007_v30, %v6006_v60  ;;  %v6010_v24 = vld [vmem:[#allocation2 + $0xe8] sm:$0xff] }
 0xb32   : > { %v6299_v7 = vsub.f32 %v6235_v10, %v6267_v50  ;;  %v6422_v58 = vmul.f32 %v9211_v59, %v6326_v0  ;;  %v6011_v0 = vld [vmem:[#allocation2 + $0x118] sm:$0xff]  ;;  %v6329_v50 = vsub.f32 %v13577_v46, %v13785_v4  ;;  %v8257_v59 = vpack.c.bf16 %v6009_v41, %v6008_v29 }
 0xb33   : > { %v6298_v14 = vsub.f32 %v6234_v3, %v6266_v12  ;;  %v6069_v54 = vpop.xlane.xlu1 %6068  ;;  %v6459_v22 = vmul.f32 %v13629_v62, %v6423_v27  ;;  %8254 = vmatprep.subr.bf16.mxu0 %v8253_v20  ;;  %v6328_v12 = vsub.f32 %v13580_v44, %v13788_v21  ;;  %v6331_v41 = vsub.f32 %v13589_v51, %v13801_v31 }
 0xb34   : > { %v6363_v17 = vadd.f32 1e-05, %v6299_v7  ;;  %v13817_v56 = vmul.f32 0.125, %v6069_v54  ;;  %v6067_v45 = vpop.xlane.xlu0 %6066  ;;  %v6458_v5 = vmul.f32 %v13629_v62, %v6422_v58  ;;  %8256 = vmatpush3.bf16.msra.mxu0 %v8253_v20 }
 0xb35   : > { %v6362_v8 = vadd.f32 1e-05, %v6298_v14  ;;  %v13820_v53 = vmul.f32 0.125, %v6067_v45  ;;  %v6495_v9 = vadd.f32 %v13645_v6, %v6459_v22  ;;  %8258 = vmatprep.subr.bf16.mxu0 %v8257_v59  ;;  %v8261_v22 = vpack.c.bf16 %v6011_v0, %v6010_v24 }
 0xb36   : > { %9216 = vrsqrt.f32 %v6363_v17  ;;  %v6494_v13 = vadd.f32 %v13645_v6, %v6458_v5  ;;  %v6269_v3 = vmul.f32 %v13817_v56, %v13817_v56  ;;  %v6330_v0 = vsub.f32 %v13592_v61, %v13804_v36 }
 0xb37   : > { %9218 = vrsqrt.f32 %v6362_v8  ;;  %v6197_v10 = vpop.xlane.xlu1 %6196  ;;  %v6268_v4 = vmul.f32 %v13820_v53, %v13820_v53  ;;  %v6333_v31 = vsub.f32 %v13601_v35, %v13817_v56  ;;  %v6332_v36 = vsub.f32 %v13604_v43, %v13820_v53  ;;  %v6014_v56 = vld [vmem:[#allocation2 + $0x1a8] sm:$0xff] }
 0xb38   : > { %v9213_v27 = vpop.eup %9212  ;;  %v6237_v7 = vmul.f32 0.125, %v6197_v10  ;;  %v6195_v58 = vpop.xlane.xlu0 %6194  ;;  %8021 = vmatprep.mubr.f32.mxu1 %v6494_v13  ;;  %8260 = vmatpush3.bf16.msra.mxu0 %v8257_v59 }
 0xb39   : > { %v9215_v14 = vpop.eup %9214  ;;  %v6425_v54 = vmul.f32 %v9213_v27, %v6329_v50  ;;  %v6236_v17 = vmul.f32 0.125, %v6195_v58  ;;  %8022 = vmatmul.mubr.f32.gmra.mrb[96].mxu1 %v6495_v9  ;;  %8262 = vmatprep.subr.bf16.mxu0 %v8261_v22 }
 0xb3a   : > { %v6301_v45 = vsub.f32 %v6237_v7, %v6269_v3  ;;  %v6424_v5 = vmul.f32 %v9215_v14, %v6328_v12 }
 0xb3b   : > { %v6300_v60 = vsub.f32 %v6236_v17, %v6268_v4  ;;  %v6461_v21 = vmul.f32 %v13629_v62, %v6425_v54  ;;  %v6012_v54 = vld [vmem:[#allocation2 + $0x148] sm:$0xff]  ;;  %v6013_v4 = vld [vmem:[#allocation2 + $0x178] sm:$0xff] }
 0xb3c   : > { %v6365_v30 = vadd.f32 1e-05, %v6301_v45  ;;  %v6460_v29 = vmul.f32 %v13629_v62, %v6424_v5  ;;  %8264 = vmatpush3.bf16.msra.mxu0 %v8261_v22  ;;  %v8265_v22 = vpack.c.bf16 %v6013_v4, %v6012_v54 }
 0xb3d   : > { %v6364_v8 = vadd.f32 1e-05, %v6300_v60  ;;  %v6497_v13 = vadd.f32 %v13645_v6, %v6461_v21  ;;  %v6015_v60 = vld [vmem:[#allocation2 + $0x1d8] sm:$0xff] }
 0xb3e   : > { %9220 = vrsqrt.f32 %v6365_v30  ;;  %v6496_v20 = vadd.f32 %v13645_v6, %v6460_v29  ;;  %8266 = vmatprep.subr.bf16.mxu0 %v8265_v22  ;;  %v8269_v30 = vpack.c.bf16 %v6015_v60, %v6014_v56  ;;  %v6016_v29 = vld [vmem:[#allocation2 + $0x208] sm:$0xff] }
 0xb3f   : > { %9222 = vrsqrt.f32 %v6364_v8  ;;  %v6017_v8 = vld [vmem:[#allocation2 + $0x238] sm:$0xff] }
 0xb40   : > { %v9217_v24 = vpop.eup %9216  ;;  %8024 = vmatprep.mubr.f32.mxu1 %v6496_v20  ;;  %8268 = vmatpush3.bf16.msra.mxu0 %v8265_v22  ;;  %v8273_v20 = vpack.c.bf16 %v6017_v8, %v6016_v29 }
 0xb41   : > { %v9219_v50 = vpop.eup %9218  ;;  %v6427_v10 = vmul.f32 %v9217_v24, %v6331_v41  ;;  %8025 = vmatmul.mubr.f32.gmra.mrb[98].mxu1 %v6497_v13  ;;  %8270 = vmatprep.subr.bf16.mxu0 %v8269_v30  ;;  %v6018_v41 = vld [vmem:[#allocation2 + $0x268] sm:$0xff]  ;;  %v6019_v13 = vld [vmem:[#allocation2 + $0x298] sm:$0xff] }
 0xb42   : > { %v6426_v9 = vmul.f32 %v9219_v50, %v6330_v0  ;;  %v8277_v24 = vpack.c.bf16 %v6019_v13, %v6018_v41  ;;  %v6020_v0 = vld [vmem:[#allocation2 + $0x2c8] sm:$0xff]  ;;  %v6021_v50 = vld [vmem:[#allocation2 + $0x2f8] sm:$0xff] }
 0xb43   : > { %v6463_v59 = vmul.f32 %v13629_v62, %v6427_v10  ;;  %v8281_v10 = vpack.c.bf16 %v6021_v50, %v6020_v0 }
 0xb44   : > { %v6462_v27 = vmul.f32 %v13629_v62, %v6426_v9  ;;  %8272 = vmatpush3.bf16.msra.mxu0 %v8269_v30 }
 0xb45   : > { %v6499_v3 = vadd.f32 %v13645_v6, %v6463_v59  ;;  %8274 = vmatprep.subr.bf16.mxu0 %v8273_v20 }
 0xb46   : > { %v6498_v12 = vadd.f32 %v13645_v6, %v6462_v27 }
 0xb48   : > { %v9221_v7 = vpop.eup %9220  ;;  %8027 = vmatprep.mubr.f32.mxu1 %v6498_v12  ;;  %8276 = vmatpush3.bf16.msra.mxu0 %v8273_v20 }
 0xb49   : > { %v9223_v58 = vpop.eup %9222  ;;  %v6429_v14 = vmul.f32 %v9221_v7, %v6333_v31  ;;  %8028 = vmatmul.mubr.f32.gmra.mrb[100].mxu1 %v6499_v3  ;;  %8278 = vmatprep.subr.bf16.mxu0 %v8277_v24 }
 0xb4a   : > { %v6428_v17 = vmul.f32 %v9223_v58, %v6332_v36 }
 0xb4b   : > { %v6465_v45 = vmul.f32 %v13629_v62, %v6429_v14 }
 0xb4c   : > { %v6464_v5 = vmul.f32 %v13629_v62, %v6428_v17  ;;  %8280 = vmatpush3.bf16.msra.mxu0 %v8277_v24 }
 0xb4d   : > { %v6501_v53 = vadd.f32 %v13645_v6, %v6465_v45  ;;  %8282 = vmatprep.subr.bf16.mxu0 %v8281_v10 }
 0xb4e   : > { %v6500_v21 = vadd.f32 %v13645_v6, %v6464_v5 }
 0xb50   : > { %8030 = vmatprep.mubr.f32.mxu1 %v6500_v21  ;;  %8284 = vmatpush3.bf16.msra.mxu0 %v8281_v10 }
 0xb51   : > { %8031 = vmatmul.mubr.f32.gmra.mrb[102].mxu1 %v6501_v53 }
 0xb7c   : > { %v6073_v9 = vpop.xlane.xlu1 %6072 }
 0xb7d   : > { %v6111_v59 = vmul.f32 0.125, %v6073_v9  ;;  %v6071_v27 = vpop.xlane.xlu0 %6070 }
 0xb7e   : > { %v6110_v12 = vmul.f32 0.125, %v6071_v27 }
 0xb7f   : > { %v6271_v3 = vmul.f32 %v6111_v59, %v6111_v59 }
 0xb80   : > { %v6201_v31 = vpop.xlane.xlu1 %6200  ;;  %v6270_v58 = vmul.f32 %v6110_v12, %v6110_v12 }
 0xb81   : > { %v6239_v7 = vmul.f32 0.125, %v6201_v31  ;;  %v6199_v36 = vpop.xlane.xlu0 %6198  ;;  %v6335_v31 = vsub.f32 %v13632_v40, %v6111_v59 }
 0xb82   : > { %v6238_v14 = vmul.f32 0.125, %v6199_v36  ;;  %v6334_v36 = vsub.f32 %v13637_v25, %v6110_v12 }
 0xb83   : > { %v6303_v54 = vsub.f32 %v6239_v7, %v6271_v3 }
 0xb84   : > { %v6302_v4 = vsub.f32 %v6238_v14, %v6270_v58  ;;  %v6077_v17 = vpop.xlane.xlu1 %6076 }
 0xb85   : > { %v6367_v22 = vadd.f32 1e-05, %v6303_v54  ;;  %v6113_v45 = vmul.f32 0.125, %v6077_v17  ;;  %v6075_v5 = vpop.xlane.xlu0 %6074 }
 0xb86   : > { %v6366_v56 = vadd.f32 1e-05, %v6302_v4  ;;  %v6112_v60 = vmul.f32 0.125, %v6075_v5 }
 0xb87   : > { %9224 = vrsqrt.f32 %v6367_v22  ;;  %v6273_v30 = vmul.f32 %v6113_v45, %v6113_v45 }
 0xb88   : > { %9226 = vrsqrt.f32 %v6366_v56  ;;  %v6205_v21 = vpop.xlane.xlu1 %6204  ;;  %v6272_v8 = vmul.f32 %v6112_v60, %v6112_v60 }
 0xb89   : > { %v6241_v53 = vmul.f32 0.125, %v6205_v21  ;;  %v6203_v29 = vpop.xlane.xlu0 %6202 }
 0xb8a   : > { %v6240_v20 = vmul.f32 0.125, %v6203_v29 }
 0xb8b   : > { %v6305_v41 = vsub.f32 %v6241_v53, %v6273_v30 }
 0xb8c   : > { %v6304_v13 = vsub.f32 %v6240_v20, %v6272_v8  ;;  %v6081_v24 = vpop.xlane.xlu1 %6080 }
 0xb8d   : > { %v6369_v0 = vadd.f32 1e-05, %v6305_v41  ;;  %v6115_v50 = vmul.f32 0.125, %v6081_v24  ;;  %v6079_v10 = vpop.xlane.xlu0 %6078 }
 0xb8e   : > { %v6368_v9 = vadd.f32 1e-05, %v6304_v13  ;;  %v6114_v27 = vmul.f32 0.125, %v6079_v10 }
 0xb8f   : > { %9228 = vrsqrt.f32 %v6369_v0  ;;  %v6275_v58 = vmul.f32 %v6115_v50, %v6115_v50  ;;  %v6337_v0 = vsub.f32 %v13663_v19, %v6113_v45 }
 0xb90   : > { %9230 = vrsqrt.f32 %v6368_v9  ;;  %v6209_v3 = vpop.xlane.xlu1 %6208  ;;  %v6274_v22 = vmul.f32 %v6114_v27, %v6114_v27 }
 0xb91   : > { %v9225_v7 = vpop.eup %9224  ;;  %v6243_v14 = vmul.f32 0.125, %v6209_v3  ;;  %v6207_v54 = vpop.xlane.xlu0 %6206  ;;  %v6336_v3 = vsub.f32 %v13670_v63, %v6112_v60 }
 0xb92   : > { %v9227_v4 = vpop.eup %9226  ;;  %v6431_v17 = vmul.f32 %v9225_v7, %v6335_v31  ;;  %v6242_v5 = vmul.f32 0.125, %v6207_v54 }
 0xb93   : > { %v6307_v56 = vsub.f32 %v6243_v14, %v6275_v58  ;;  %v6430_v21 = vmul.f32 %v9227_v4, %v6334_v36 }
 0xb94   : > { %v6306_v30 = vsub.f32 %v6242_v5, %v6274_v22  ;;  %v6467_v29 = vmul.f32 %v13629_v62, %v6431_v17 }
 0xb95   : > { %v6085_v53 = vpop.xlane.xlu1 %6084  ;;  %v6371_v8 = vadd.f32 1e-05, %v6307_v56  ;;  %v6466_v41 = vmul.f32 %v13629_v62, %v6430_v21 }
 0xb96   : > { %v6117_v59 = vmul.f32 0.125, %v6085_v53  ;;  %v6083_v20 = vpop.xlane.xlu0 %6082  ;;  %v6370_v13 = vadd.f32 1e-05, %v6306_v30  ;;  %v6503_v9 = vadd.f32 %v13645_v6, %v6467_v29  ;;  %v6339_v29 = vsub.f32 %v13690_v42, %v6115_v50 }
 0xb97   : > { %v6116_v12 = vmul.f32 0.125, %v6083_v20  ;;  %9232 = vrsqrt.f32 %v6371_v8  ;;  %v6502_v24 = vadd.f32 %v13645_v6, %v6466_v41  ;;  %v6338_v41 = vsub.f32 %v13698_v52, %v6114_v27 }
 0xb98   : > { %9234 = vrsqrt.f32 %v6370_v13  ;;  %v6277_v7 = vmul.f32 %v6117_v59, %v6117_v59 }
 0xb99   : > { %v6213_v10 = vpop.xlane.xlu1 %6212  ;;  %v9229_v31 = vpop.eup %9228  ;;  %8033 = vmatprep.mubr.f32.mxu1 %v6502_v24  ;;  %v6276_v4 = vmul.f32 %v6116_v12, %v6116_v12 }
 0xb9a   : > { %v6245_v36 = vmul.f32 0.125, %v6213_v10  ;;  %v6211_v58 = vpop.xlane.xlu0 %6210  ;;  %v9231_v14 = vpop.eup %9230  ;;  %v6433_v54 = vmul.f32 %v9229_v31, %v6337_v0  ;;  %8034 = vmatmul.mubr.f32.gmra.mrb[104].mxu1 %v6503_v9 }
 0xb9b   : > { %v6244_v17 = vmul.f32 0.125, %v6211_v58  ;;  %v6432_v5 = vmul.f32 %v9231_v14, %v6336_v3  ;;  %v6341_v3 = vsub.f32 %v13718_v38, %v6117_v59  ;;  %v15848_v59 = vmov 1.0  }
 0xb9c   : > { %v6309_v22 = vsub.f32 %v6245_v36, %v6277_v7  ;;  %v6469_v45 = vmul.f32 %v13629_v62, %v6433_v54  ;;  %v6340_v36 = vsub.f32 %v13726_v57, %v6116_v12 }
 0xb9d   : > { %v6308_v56 = vsub.f32 %v6244_v17, %v6276_v4  ;;  %v6468_v30 = vmul.f32 %v13629_v62, %v6432_v5 }
 0xb9e   : > { %v6373_v21 = vadd.f32 1e-05, %v6309_v22  ;;  %v6505_v8 = vadd.f32 %v13645_v6, %v6469_v45 }
 0xb9f   : > { %v6372_v53 = vadd.f32 1e-05, %v6308_v56  ;;  %v6504_v60 = vadd.f32 %v13645_v6, %v6468_v30 }
 0xba0   : > { %9236 = vrsqrt.f32 %v6373_v21 }
 0xba1   : > { %9238 = vrsqrt.f32 %v6372_v53  ;;  %v9233_v20 = vpop.eup %9232  ;;  %8036 = vmatprep.mubr.f32.mxu1 %v6504_v60 }
 0xba2   : > { %v9235_v13 = vpop.eup %9234  ;;  %v6435_v24 = vmul.f32 %v9233_v20, %v6339_v29  ;;  %8037 = vmatmul.mubr.f32.gmra.mrb[106].mxu1 %v6505_v8 }
 0xba3   : > { %v6434_v0 = vmul.f32 %v9235_v13, %v6338_v41 }
 0xba4   : > { %v6471_v10 = vmul.f32 %v13629_v62, %v6435_v24 }
 0xba5   : > { %v6470_v9 = vmul.f32 %v13629_v62, %v6434_v0 }
 0xba6   : > { %v6507_v50 = vadd.f32 %v13645_v6, %v6471_v10 }
 0xba7   : > { %v6506_v31 = vadd.f32 %v13645_v6, %v6470_v9 }
 0xba9   : > { %8039 = vmatprep.mubr.f32.mxu1 %v6506_v31 }
 0xbaa   : > { %v9237_v7 = vpop.eup %9236  ;;  %8040 = vmatmul.mubr.f32.gmra.mrb[108].mxu1 %v6507_v50 }
 0xbab   : > { %v9239_v27 = vpop.eup %9238  ;;  %v6437_v58 = vmul.f32 %v9237_v7, %v6341_v3 }
 0xbac   : > { %v6436_v14 = vmul.f32 %v9239_v27, %v6340_v36 }
 0xbad   : > { %v6473_v54 = vmul.f32 %v13629_v62, %v6437_v58 }
 0xbae   : > { %v6472_v4 = vmul.f32 %v13629_v62, %v6436_v14 }
 0xbaf   : > { %v6509_v22 = vadd.f32 %v13645_v6, %v6473_v54 }
 0xbb0   : > { %v6508_v17 = vadd.f32 %v13645_v6, %v6472_v4 }
 0xbb2   : > { %8042 = vmatprep.mubr.f32.mxu1 %v6508_v17 }
 0xbb3   : > { %8043 = vmatmul.mubr.f32.gmra.mrb[110].mxu1 %v6509_v22 }
 0xbb4   : > { %7753 = vmatprep.mubr.msk.f32.mxu1 %vm9429_vm0, %v15848_v59 }
 0xbc9   : > { %v7999_v12 = vpop.f32.mrb[80].mxu1 }
 0xbca   : > { %v6768_v56 = vmul.f32 0.70710677, %v7999_v12  ;;  %v6576_v45 = vpop.f32.mrb[81].mxu1  ;;  %v6736_v13 = vmul.f32 0.5, %v7999_v12 }
 0xbcb   : > { %v6767_v21 = vmul.f32 0.70710677, %v6576_v45  ;;  %v6735_v20 = vmul.f32 0.5, %v6576_v45 }
 0xbcc   : > { %9240 = verf.f32 %v6768_v56 }
 0xbcd   : > { %9242 = verf.f32 %v6767_v21 }
 0xbd4   : > { %v8002_v30 = vpop.f32.mrb[82].mxu1 }
 0xbd5   : > { %v6770_v53 = vmul.f32 0.70710677, %v8002_v30  ;;  %v6586_v60 = vpop.f32.mrb[83].mxu1  ;;  %v6738_v14 = vmul.f32 0.5, %v8002_v30 }
 0xbd6   : > { %v6769_v62 = vmul.f32 0.70710677, %v6586_v60  ;;  %v9241_v29 = vpop.eup %9240  ;;  %v6737_v27 = vmul.f32 0.5, %v6586_v60 }
 0xbd7   : > { %9244 = verf.f32 %v6770_v53  ;;  %v9243_v6 = vpop.eup %9242  ;;  %v6832_v8 = vadd.f32 1.0, %v9241_v29 }
 0xbd8   : > { %9246 = verf.f32 %v6769_v62  ;;  %v6831_v41 = vadd.f32 1.0, %v9243_v6 }
 0xbd9   : > { %v6864_v10 = vmul.f32 %v6832_v8, %v6736_v13 }
 0xbda   : > { %v6863_v24 = vmul.f32 %v6831_v41, %v6735_v20 }
 0xbdc   : > { %v8005_v0 = vpop.f32.mrb[84].mxu1  ;;  %8077 = vmatprep.mubr.f32.mxu0 %v6863_v24 }
 0xbdd   : > { %v6772_v9 = vmul.f32 0.70710677, %v8005_v0  ;;  %v6596_v31 = vpop.f32.mrb[85].mxu1  ;;  %8078 = vmatmul.mubr.f32.vlgmr.msra.gmra.mrb[80].mxu0 %v6864_v10  ;;  %v6740_v6 = vmul.f32 0.5, %v8005_v0 }
 0xbde   : > { %v6771_v3 = vmul.f32 0.70710677, %v6596_v31  ;;  %v6739_v62 = vmul.f32 0.5, %v6596_v31 }
 0xbdf   : > { %9248 = verf.f32 %v6772_v9 }
 0xbe0   : > { %9250 = verf.f32 %v6771_v3 }
 0xbe1   : > { %v9245_v50 = vpop.eup %9244 }
 0xbe2   : > { %v9247_v7 = vpop.eup %9246  ;;  %v6834_v36 = vadd.f32 1.0, %v9245_v50 }
 0xbe3   : > { %v6833_v58 = vadd.f32 1.0, %v9247_v7 }
 0xbe4   : > { %v8008_v54 = vpop.f32.mrb[86].mxu1  ;;  %v6866_v12 = vmul.f32 %v6834_v36, %v6738_v14 }
 0xbe5   : > { %v6865_v4 = vmul.f32 %v6833_v58, %v6737_v27  ;;  %v6774_v17 = vmul.f32 0.70710677, %v8008_v54  ;;  %v6606_v22 = vpop.f32.mrb[87].mxu1  ;;  %v6742_v7 = vmul.f32 0.5, %v8008_v54 }
 0xbe6   : > { %v6773_v56 = vmul.f32 0.70710677, %v6606_v22  ;;  %v6741_v3 = vmul.f32 0.5, %v6606_v22 }
 0xbe7   : > { %9252 = verf.f32 %v6774_v17  ;;  %8080 = vmatprep.mubr.f32.mxu0 %v6865_v4 }
 0xbe8   : > { %9254 = verf.f32 %v6773_v56  ;;  %8081 = vmatmul.mubr.f32.gmra.mrb[82].mxu0 %v6866_v12 }
 0xbe9   : > { %v9249_v45 = vpop.eup %9248 }
 0xbea   : > { %v9251_v21 = vpop.eup %9250  ;;  %v6836_v53 = vadd.f32 1.0, %v9249_v45 }
 0xbeb   : > { %v6835_v29 = vadd.f32 1.0, %v9251_v21 }
 0xbec   : > { %v8011_v8 = vpop.f32.mrb[88].mxu1  ;;  %v6868_v41 = vmul.f32 %v6836_v53, %v6740_v6 }
 0xbed   : > { %v6867_v60 = vmul.f32 %v6835_v29, %v6739_v62  ;;  %v6776_v20 = vmul.f32 0.70710677, %v8011_v8  ;;  %v6616_v30 = vpop.f32.mrb[89].mxu1  ;;  %v6744_v21 = vmul.f32 0.5, %v8011_v8 }
 0xbee   : > { %v6775_v13 = vmul.f32 0.70710677, %v6616_v30  ;;  %v6743_v56 = vmul.f32 0.5, %v6616_v30 }
 0xbef   : > { %9256 = verf.f32 %v6776_v20  ;;  %8083 = vmatprep.mubr.f32.mxu0 %v6867_v60 }
 0xbf0   : > { %9258 = verf.f32 %v6775_v13  ;;  %8084 = vmatmul.mubr.f32.gmra.mrb[84].mxu0 %v6868_v41 }
 0xbf1   : > { %v9253_v24 = vpop.eup %9252 }
 0xbf2   : > { %v9255_v10 = vpop.eup %9254  ;;  %v6838_v9 = vadd.f32 1.0, %v9253_v24 }
 0xbf3   : > { %v6837_v50 = vadd.f32 1.0, %v9255_v10 }
 0xbf4   : > { %v8014_v36 = vpop.f32.mrb[90].mxu1  ;;  %v6870_v58 = vmul.f32 %v6838_v9, %v6742_v7 }
 0xbf5   : > { %v6869_v31 = vmul.f32 %v6837_v50, %v6741_v3  ;;  %v6778_v27 = vmul.f32 0.70710677, %v8014_v36  ;;  %v6626_v0 = vpop.f32.mrb[91].mxu1  ;;  %v6746_v10 = vmul.f32 0.5, %v8014_v36 }
 0xbf6   : > { %v6777_v14 = vmul.f32 0.70710677, %v6626_v0  ;;  %v6745_v13 = vmul.f32 0.5, %v6626_v0 }
 0xbf7   : > { %9260 = verf.f32 %v6778_v27  ;;  %8086 = vmatprep.mubr.f32.mxu0 %v6869_v31 }
 0xbf8   : > { %9262 = verf.f32 %v6777_v14  ;;  %8087 = vmatmul.mubr.f32.gmra.mrb[86].mxu0 %v6870_v58 }
 0xbf9   : > { %v9257_v4 = vpop.eup %9256 }
 0xbfa   : > { %v9259_v17 = vpop.eup %9258  ;;  %v6840_v12 = vadd.f32 1.0, %v9257_v4 }
 0xbfb   : > { %v6839_v45 = vadd.f32 1.0, %v9259_v17 }
 0xbfc   : > { %v8017_v53 = vpop.f32.mrb[92].mxu1  ;;  %v6872_v29 = vmul.f32 %v6840_v12, %v6744_v21 }
 0xbfd   : > { %v6871_v22 = vmul.f32 %v6839_v45, %v6743_v56  ;;  %v6780_v62 = vmul.f32 0.70710677, %v8017_v53  ;;  %v6636_v54 = vpop.f32.mrb[93].mxu1  ;;  %v6748_v17 = vmul.f32 0.5, %v8017_v53 }
 0xbfe   : > { %v6779_v6 = vmul.f32 0.70710677, %v6636_v54  ;;  %v6747_v14 = vmul.f32 0.5, %v6636_v54 }
 0xbff   : > { %9264 = verf.f32 %v6780_v62  ;;  %8089 = vmatprep.mubr.f32.mxu0 %v6871_v22 }
 0xc00   : > { %9266 = verf.f32 %v6779_v6  ;;  %8090 = vmatmul.mubr.f32.gmra.mrb[88].mxu0 %v6872_v29 }
 0xc01   : > { %v9261_v60 = vpop.eup %9260 }
 0xc02   : > { %v9263_v20 = vpop.eup %9262  ;;  %v6842_v41 = vadd.f32 1.0, %v9261_v60 }
 0xc03   : > { %v6841_v24 = vadd.f32 1.0, %v9263_v20 }
 0xc04   : > { %v8020_v9 = vpop.f32.mrb[94].mxu1  ;;  %v6874_v50 = vmul.f32 %v6842_v41, %v6746_v10 }
 0xc05   : > { %v6873_v30 = vmul.f32 %v6841_v24, %v6745_v13  ;;  %v6782_v3 = vmul.f32 0.70710677, %v8020_v9  ;;  %v6646_v8 = vpop.f32.mrb[95].mxu1  ;;  %v6750_v20 = vmul.f32 0.5, %v8020_v9 }
 0xc06   : > { %v6781_v7 = vmul.f32 0.70710677, %v6646_v8  ;;  %v6749_v6 = vmul.f32 0.5, %v6646_v8 }
 0xc07   : > { %9268 = verf.f32 %v6782_v3  ;;  %8092 = vmatprep.mubr.f32.mxu0 %v6873_v30 }
 0xc08   : > { %9270 = verf.f32 %v6781_v7  ;;  %8093 = vmatmul.mubr.f32.gmra.mrb[90].mxu0 %v6874_v50 }
 0xc09   : > { %v9265_v31 = vpop.eup %9264 }
 0xc0a   : > { %v9267_v27 = vpop.eup %9266  ;;  %v6844_v58 = vadd.f32 1.0, %v9265_v31 }
 0xc0b   : > { %v6843_v4 = vadd.f32 1.0, %v9267_v27 }
 0xc0c   : > { %v8023_v12 = vpop.f32.mrb[96].mxu1  ;;  %v6876_v45 = vmul.f32 %v6844_v58, %v6748_v17 }
 0xc0d   : > { %v6875_v0 = vmul.f32 %v6843_v4, %v6747_v14  ;;  %v6784_v56 = vmul.f32 0.70710677, %v8023_v12  ;;  %v6656_v36 = vpop.f32.mrb[97].mxu1  ;;  %v6752_v27 = vmul.f32 0.5, %v8023_v12 }
 0xc0e   : > { %v6783_v21 = vmul.f32 0.70710677, %v6656_v36  ;;  %v6751_v7 = vmul.f32 0.5, %v6656_v36 }
 0xc0f   : > { %9272 = verf.f32 %v6784_v56  ;;  %8095 = vmatprep.mubr.f32.mxu0 %v6875_v0 }
 0xc10   : > { %9274 = verf.f32 %v6783_v21  ;;  %8096 = vmatmul.mubr.f32.gmra.mrb[92].mxu0 %v6876_v45 }
 0xc11   : > { %v9269_v22 = vpop.eup %9268 }
 0xc12   : > { %v9271_v62 = vpop.eup %9270  ;;  %v6846_v29 = vadd.f32 1.0, %v9269_v22 }
 0xc13   : > { %v6845_v60 = vadd.f32 1.0, %v9271_v62 }
 0xc14   : > { %v8026_v41 = vpop.f32.mrb[98].mxu1  ;;  %v6878_v24 = vmul.f32 %v6846_v29, %v6750_v20 }
 0xc15   : > { %v6877_v54 = vmul.f32 %v6845_v60, %v6749_v6  ;;  %v6786_v13 = vmul.f32 0.70710677, %v8026_v41  ;;  %v6666_v53 = vpop.f32.mrb[99].mxu1  ;;  %v6754_v62 = vmul.f32 0.5, %v8026_v41 }
 0xc16   : > { %v6785_v10 = vmul.f32 0.70710677, %v6666_v53  ;;  %v6753_v21 = vmul.f32 0.5, %v6666_v53 }
 0xc17   : > { %9276 = verf.f32 %v6786_v13  ;;  %8098 = vmatprep.mubr.f32.mxu0 %v6877_v54 }
 0xc18   : > { %9278 = verf.f32 %v6785_v10  ;;  %8099 = vmatmul.mubr.f32.gmra.mrb[94].mxu0 %v6878_v24 }
 0xc19   : > { %v9273_v30 = vpop.eup %9272 }
 0xc1a   : > { %v9275_v3 = vpop.eup %9274  ;;  %v6848_v50 = vadd.f32 1.0, %v9273_v30 }
 0xc1b   : > { %v6847_v31 = vadd.f32 1.0, %v9275_v3 }
 0xc1c   : > { %v8029_v58 = vpop.f32.mrb[100].mxu1  ;;  %v6880_v4 = vmul.f32 %v6848_v50, %v6752_v27 }
 0xc1d   : > { %v6879_v8 = vmul.f32 %v6847_v31, %v6751_v7  ;;  %v6788_v14 = vmul.f32 0.70710677, %v8029_v58  ;;  %v6676_v9 = vpop.f32.mrb[101].mxu1  ;;  %v6756_v3 = vmul.f32 0.5, %v8029_v58 }
 0xc1e   : > { %v6787_v17 = vmul.f32 0.70710677, %v6676_v9  ;;  %v6755_v10 = vmul.f32 0.5, %v6676_v9 }
 0xc1f   : > { %9280 = verf.f32 %v6788_v14  ;;  %8101 = vmatprep.mubr.f32.mxu0 %v6879_v8 }
 0xc20   : > { %9282 = verf.f32 %v6787_v17  ;;  %8102 = vmatmul.mubr.f32.gmra.mrb[96].mxu0 %v6880_v4 }
 0xc21   : > { %v9277_v0 = vpop.eup %9276 }
 0xc22   : > { %v9279_v56 = vpop.eup %9278  ;;  %v6850_v45 = vadd.f32 1.0, %v9277_v0 }
 0xc23   : > { %v6849_v22 = vadd.f32 1.0, %v9279_v56 }
 0xc24   : > { %v8032_v29 = vpop.f32.mrb[102].mxu1  ;;  %v6882_v60 = vmul.f32 %v6850_v45, %v6754_v62 }
 0xc25   : > { %v6881_v36 = vmul.f32 %v6849_v22, %v6753_v21  ;;  %v6790_v6 = vmul.f32 0.70710677, %v8032_v29  ;;  %v6686_v12 = vpop.f32.mrb[103].mxu1  ;;  %v6758_v14 = vmul.f32 0.5, %v8032_v29 }
 0xc26   : > { %v6789_v20 = vmul.f32 0.70710677, %v6686_v12  ;;  %v6757_v27 = vmul.f32 0.5, %v6686_v12 }
 0xc27   : > { %9284 = verf.f32 %v6790_v6  ;;  %8104 = vmatprep.mubr.f32.mxu0 %v6881_v36 }
 0xc28   : > { %9286 = verf.f32 %v6789_v20  ;;  %8105 = vmatmul.mubr.f32.gmra.mrb[98].mxu0 %v6882_v60 }
 0xc29   : > { %v9281_v54 = vpop.eup %9280 }
 0xc2a   : > { %v9283_v13 = vpop.eup %9282  ;;  %v6852_v24 = vadd.f32 1.0, %v9281_v54 }
 0xc2b   : > { %v6851_v30 = vadd.f32 1.0, %v9283_v13 }
 0xc2c   : > { %v6884_v53 = vmul.f32 %v6852_v24, %v6756_v3 }
 0xc2d   : > { %v6883_v50 = vmul.f32 %v6851_v30, %v6755_v10 }
 0xc2f   : > { %8107 = vmatprep.mubr.f32.mxu0 %v6883_v50 }
 0xc30   : > { %8108 = vmatmul.mubr.f32.gmra.mrb[100].mxu0 %v6884_v53 }
 0xc31   : > { %v9285_v41 = vpop.eup %9284 }
 0xc32   : > { %v9287_v7 = vpop.eup %9286  ;;  %v6854_v31 = vadd.f32 1.0, %v9285_v41 }
 0xc33   : > { %v6853_v8 = vadd.f32 1.0, %v9287_v7 }
 0xc34   : > { %v6886_v17 = vmul.f32 %v6854_v31, %v6758_v14 }
 0xc35   : > { %v6885_v4 = vmul.f32 %v6853_v8, %v6757_v27 }
 0xc37   : > { %8110 = vmatprep.mubr.f32.mxu0 %v6885_v4 }
 0xc38   : > { %8111 = vmatmul.mubr.f32.gmra.mrb[102].mxu0 %v6886_v17 }
 0xc6d   : > { %v8035_v0 = vpop.f32.mrb[104].mxu1 }
 0xc6e   : > { %v6792_v56 = vmul.f32 0.70710677, %v8035_v0  ;;  %v6696_v45 = vpop.f32.mrb[105].mxu1  ;;  %v6760_v20 = vmul.f32 0.5, %v8035_v0 }
 0xc6f   : > { %v6791_v9 = vmul.f32 0.70710677, %v6696_v45  ;;  %v6759_v29 = vmul.f32 0.5, %v6696_v45 }
 0xc70   : > { %9288 = verf.f32 %v6792_v56 }
 0xc71   : > { %9290 = verf.f32 %v6791_v9 }
 0xc75   : > { %v8038_v58 = vpop.f32.mrb[106].mxu1 }
 0xc76   : > { %v6794_v21 = vmul.f32 0.70710677, %v8038_v58  ;;  %v6706_v22 = vpop.f32.mrb[107].mxu1  ;;  %v6762_v27 = vmul.f32 0.5, %v8038_v58 }
 0xc77   : > { %v6793_v62 = vmul.f32 0.70710677, %v6706_v22  ;;  %v6761_v7 = vmul.f32 0.5, %v6706_v22 }
 0xc78   : > { %9292 = verf.f32 %v6794_v21 }
 0xc79   : > { %9294 = verf.f32 %v6793_v62 }
 0xc7a   : > { %v9289_v36 = vpop.eup %9288 }
 0xc7b   : > { %v9291_v6 = vpop.eup %9290  ;;  %v6856_v12 = vadd.f32 1.0, %v9289_v36 }
 0xc7c   : > { %v6855_v60 = vadd.f32 1.0, %v9291_v6 }
 0xc7d   : > { %v8041_v54 = vpop.f32.mrb[108].mxu1  ;;  %v6888_v30 = vmul.f32 %v6856_v12, %v6760_v20 }
 0xc7e   : > { %v6887_v13 = vmul.f32 %v6855_v60, %v6759_v29  ;;  %v6796_v24 = vmul.f32 0.70710677, %v8041_v54  ;;  %v6716_v10 = vpop.f32.mrb[109].mxu1  ;;  %v6764_v6 = vmul.f32 0.5, %v8041_v54 }
 0xc7f   : > { %v6795_v3 = vmul.f32 0.70710677, %v6716_v10  ;;  %v6763_v62 = vmul.f32 0.5, %v6716_v10  ;;  %v13882_v10 = vld [vmem:[%s14024_s2 + $0x4] ss:$0 sm:$0xff] }
 0xc80   : > { %9296 = verf.f32 %v6796_v24  ;;  %8113 = vmatprep.mubr.f32.mxu0 %v6887_v13 }
 0xc81   : > { %9298 = verf.f32 %v6795_v3  ;;  %8114 = vmatmul.mubr.f32.gmra.mrb[104].mxu0 %v6888_v30 }
 0xc82   : > { %v9293_v50 = vpop.eup %9292 }
 0xc83   : > { %v9295_v53 = vpop.eup %9294  ;;  %v6858_v41 = vadd.f32 1.0, %v9293_v50 }
 0xc84   : > { %v6857_v31 = vadd.f32 1.0, %v9295_v53 }
 0xc85   : > { %v6890_v0 = vmul.f32 %v6858_v41, %v6762_v27 }
 0xc86   : > { %v8044_v8 = vpop.f32.mrb[110].mxu1  ;;  %v6889_v14 = vmul.f32 %v6857_v31, %v6761_v7 }
 0xc87   : > { %v6798_v4 = vmul.f32 0.70710677, %v8044_v8  ;;  %v6726_v17 = vpop.f32.mrb[111].mxu1  ;;  %v6766_v24 = vmul.f32 0.5, %v8044_v8 }
 0xc88   : > { %v6797_v56 = vmul.f32 0.70710677, %v6726_v17  ;;  %8116 = vmatprep.mubr.f32.mxu0 %v6889_v14  ;;  %v6765_v20 = vmul.f32 0.5, %v6726_v17 }
 0xc89   : > { %9300 = verf.f32 %v6798_v4  ;;  %8117 = vmatmul.mubr.f32.gmra.mrb[106].mxu0 %v6890_v0 }
 0xc8a   : > { %9302 = verf.f32 %v6797_v56  ;;  %v9297_v45 = vpop.eup %9296 }
 0xc8b   : > { %v9299_v9 = vpop.eup %9298  ;;  %v6860_v21 = vadd.f32 1.0, %v9297_v45 }
 0xc8c   : > { %v6859_v36 = vadd.f32 1.0, %v9299_v9 }
 0xc8d   : > { %v6892_v22 = vmul.f32 %v6860_v21, %v6764_v6 }
 0xc8e   : > { %v6891_v12 = vmul.f32 %v6859_v36, %v6763_v62 }
 0xc90   : > { %8119 = vmatprep.mubr.f32.mxu0 %v6891_v12 }
 0xc91   : > { %8120 = vmatmul.mubr.f32.gmra.mrb[108].mxu0 %v6892_v22 }
 0xc93   : > { %v9301_v58 = vpop.eup %9300 }
 0xc94   : > { %v9303_v29 = vpop.eup %9302  ;;  %v6862_v60 = vadd.f32 1.0, %v9301_v58 }
 0xc95   : > { %v6861_v13 = vadd.f32 1.0, %v9303_v29 }
 0xc96   : > { %v6894_v3 = vmul.f32 %v6862_v60, %v6766_v24 }
 0xc97   : > { %v6893_v30 = vmul.f32 %v6861_v13, %v6765_v20 }
 0xc99   : > { %8122 = vmatprep.mubr.f32.mxu0 %v6893_v30 }
 0xc9a   : > { %8123 = vmatmul.mubr.f32.gmra.mrb[110].mxu0 %v6894_v3 }
 0xcb0   : > { %v8079_v54 = vpop.f32.mrb[80].mxu0 }
 0xcb1   : > { %v6971_v50 = vadd.f32 %v8079_v54, %v13882_v10  ;;  %v6965_v53 = vpop.f32.mrb[81].mxu0 }
 0xcb2   : > { %v6966_v41 = vadd.f32 %v13882_v10, %v6965_v53 }
 0xcb3   : > { %v13887_v7 = vadd.f32 %v6971_v50, %v13469_v32 }
 0xcb4   : > { %v7124_v31 = vadd.f32 %v6966_v41, %v13472_v11 }
 0xcb6   : > { %v8287_v27 = vpack.c.bf16 %v13887_v7, %v7124_v31 }
 0xcbb   : > { %v8082_v8 = vpop.f32.mrb[82].mxu0 }
 0xcbc   : > { %v6981_v14 = vadd.f32 %v8082_v8, %v13882_v10  ;;  %v6975_v4 = vpop.f32.mrb[83].mxu0 }
 0xcbd   : > { %v6976_v17 = vadd.f32 %v13882_v10, %v6975_v4 }
 0xcbe   : > { %v13894_v0 = vadd.f32 %v6981_v14, %v13481_v15 }
 0xcbf   : > { %v13897_v56 = vadd.f32 %v6976_v17, %v13484_v47 }
 0xcc1   : > { %v8291_v32 = vpack.c.bf16 %v13894_v0, %v13897_v56 }
 0xcc3   : > { %v8085_v45 = vpop.f32.mrb[84].mxu0 }
 0xcc4   : > { %v6991_v11 = vadd.f32 %v8085_v45, %v13882_v10  ;;  %v6985_v9 = vpop.f32.mrb[85].mxu0 }
 0xcc5   : > { %v6986_v21 = vadd.f32 %v13882_v10, %v6985_v9 }
 0xcc6   : > { %v13904_v62 = vadd.f32 %v6991_v11, %v13493_v33 }
 0xcc7   : > { %v13907_v36 = vadd.f32 %v6986_v21, %v13496_v49 }
 0xcc9   : > { %v8295_v15 = vpack.c.bf16 %v13904_v62, %v13907_v36 }
 0xccb   : > { %v8088_v47 = vpop.f32.mrb[86].mxu0 }
 0xccc   : > { %v7001_v6 = vadd.f32 %v8088_v47, %v13882_v10  ;;  %v6995_v12 = vpop.f32.mrb[87].mxu0 }
 0xccd   : > { %v6996_v22 = vadd.f32 %v13882_v10, %v6995_v12 }
 0xcce   : > { %v13914_v58 = vadd.f32 %v7001_v6, %v13505_v55 }
 0xccf   : > { %v13917_v29 = vadd.f32 %v6996_v22, %v13508_v34 }
 0xcd1   : > { %v8299_v33 = vpack.c.bf16 %v13914_v58, %v13917_v29 }
 0xcd3   : > { %v8091_v49 = vpop.f32.mrb[88].mxu0 }
 0xcd4   : > { %v7011_v60 = vadd.f32 %v8091_v49, %v13882_v10  ;;  %v7005_v20 = vpop.f32.mrb[89].mxu0 }
 0xcd5   : > { %v7006_v13 = vadd.f32 %v13882_v10, %v7005_v20 }
 0xcd6   : > { %v13924_v24 = vadd.f32 %v7011_v60, %v13517_v37 }
 0xcd7   : > { %v13927_v30 = vadd.f32 %v7006_v13, %v13520_v28 }
 0xcd9   : > { %v8303_v55 = vpack.c.bf16 %v13924_v24, %v13927_v30 }
 0xcdb   : > { %v8094_v34 = vpop.f32.mrb[90].mxu0 }
 0xcdc   : > { %v7021_v3 = vadd.f32 %v8094_v34, %v13882_v10  ;;  %v7015_v54 = vpop.f32.mrb[91].mxu0 }
 0xcdd   : > { %v7016_v50 = vadd.f32 %v13882_v10, %v7015_v54 }
 0xcde   : > { %v13934_v53 = vadd.f32 %v7021_v3, %v13529_v26 }
 0xcdf   : > { %v13937_v41 = vadd.f32 %v7016_v50, %v13532_v18 }
 0xce1   : > { %v8307_v37 = vpack.c.bf16 %v13934_v53, %v13937_v41 }
 0xce3   : > { %v8097_v28 = vpop.f32.mrb[92].mxu0 }
 0xce4   : > { %v7031_v7 = vadd.f32 %v8097_v28, %v13882_v10  ;;  %v7025_v31 = vpop.f32.mrb[93].mxu0 }
 0xce5   : > { %v7026_v8 = vadd.f32 %v13882_v10, %v7025_v31 }
 0xce6   : > { %v13944_v14 = vadd.f32 %v7031_v7, %v13541_v2 }
 0xce7   : > { %v13947_v4 = vadd.f32 %v7026_v8, %v13544_v48 }
 0xce9   : > { %v8311_v26 = vpack.c.bf16 %v13944_v14, %v13947_v4 }
 0xceb   : > { %v8100_v18 = vpop.f32.mrb[94].mxu0 }
 0xcec   : > { %v7041_v17 = vadd.f32 %v8100_v18, %v13882_v10  ;;  %v7035_v0 = vpop.f32.mrb[95].mxu0 }
 0xced   : > { %v7036_v56 = vadd.f32 %v13882_v10, %v7035_v0 }
 0xcee   : > { %v13954_v45 = vadd.f32 %v7041_v17, %v13553_v23 }
 0xcef   : > { %v13957_v11 = vadd.f32 %v7036_v56, %v13556_v39 }
 0xcf1   : > { %v8315_v2 = vpack.c.bf16 %v13954_v45, %v13957_v11 }
 0xcf3   : > { %v8103_v48 = vpop.f32.mrb[96].mxu0 }
 0xcf4   : > { %v7051_v9 = vadd.f32 %v8103_v48, %v13882_v10  ;;  %v7045_v21 = vpop.f32.mrb[97].mxu0 }
 0xcf5   : > { %v7046_v47 = vadd.f32 %v13882_v10, %v7045_v21 }
 0xcf6   : > { %v7141_v6 = vadd.f32 %v7051_v9, %v13565_v16 }
 0xcf7   : > { %v7140_v12 = vadd.f32 %v7046_v47, %v13568_v1 }
 0xcf9   : > { %v8285_v22 = vpack.c.bf16 %v7141_v6, %v7140_v12 }
 0xcfb   : > { %v8106_v49 = vpop.f32.mrb[98].mxu0  ;;  %8286 = vmatprep.subr.bf16.mxu1 %v8285_v22 }
 0xcfc   : > { %v7061_v23 = vadd.f32 %v8106_v49, %v13882_v10  ;;  %v7055_v39 = vpop.f32.mrb[99].mxu0  ;;  %8288 = vmatpush3.bf16.xpose.msra.mxu1 %v8287_v27 }
 0xcfd   : > { %v7056_v60 = vadd.f32 %v13882_v10, %v7055_v39 }
 0xcfe   : > { %v7143_v20 = vadd.f32 %v7061_v23, %v13577_v46 }
 0xcff   : > { %v7142_v13 = vadd.f32 %v7056_v60, %v13580_v44 }
 0xd01   : > { %v8289_v34 = vpack.c.bf16 %v7143_v20, %v7142_v13 }
 0xd03   : > { %v8109_v3 = vpop.f32.mrb[100].mxu0  ;;  %8290 = vmatprep.subr.bf16.mxu1 %v8289_v34 }
 0xd04   : > { %v7071_v16 = vadd.f32 %v8109_v3, %v13882_v10  ;;  %v7065_v54 = vpop.f32.mrb[101].mxu0  ;;  %8292 = vmatpush3.bf16.xpose.msra.mxu1 %v8291_v32 }
 0xd05   : > { %v7066_v1 = vadd.f32 %v13882_v10, %v7065_v54 }
 0xd06   : > { %v7145_v50 = vadd.f32 %v7071_v16, %v13589_v51 }
 0xd07   : > { %v7144_v28 = vadd.f32 %v7066_v1, %v13592_v61 }
 0xd09   : > { %v8293_v27 = vpack.c.bf16 %v7145_v50, %v7144_v28 }
 0xd0b   : > { %v8112_v7 = vpop.f32.mrb[102].mxu0  ;;  %8294 = vmatprep.subr.bf16.mxu1 %v8293_v27 }
 0xd0c   : > { %v7081_v46 = vadd.f32 %v8112_v7, %v13882_v10  ;;  %v7075_v31 = vpop.f32.mrb[103].mxu0  ;;  %8296 = vmatpush3.bf16.xpose.msra.mxu1 %v8295_v15 }
 0xd0d   : > { %v7076_v44 = vadd.f32 %v13882_v10, %v7075_v31 }
 0xd0e   : > { %v7147_v32 = vadd.f32 %v7081_v46, %v13601_v35 }
 0xd0f   : > { %v7146_v8 = vadd.f32 %v7076_v44, %v13604_v43 }
 0xd11   : > { %v8297_v18 = vpack.c.bf16 %v7147_v32, %v7146_v8 }
 0xd13   : > { %8298 = vmatprep.subr.bf16.mxu1 %v8297_v18 }
 0xd14   : > { %8300 = vmatpush3.bf16.xpose.msra.mxu1 %v8299_v33 }
 0xd54   : > { %v8115_v51 = vpop.f32.mrb[104].mxu0 }
 0xd55   : > { %v7091_v61 = vadd.f32 %v8115_v51, %v13882_v10  ;;  %v7085_v17 = vpop.f32.mrb[105].mxu0 }
 0xd56   : > { %v7086_v0 = vadd.f32 %v13882_v10, %v7085_v17 }
 0xd57   : > { %v7149_v62 = vadd.f32 %v7091_v61, %v13632_v40 }
 0xd58   : > { %v7148_v36 = vadd.f32 %v7086_v0, %v13637_v25 }
 0xd5a   : > { %v8301_v15 = vpack.c.bf16 %v7149_v62, %v7148_v36 }
 0xd5c   : > { %v8118_v35 = vpop.f32.mrb[106].mxu0  ;;  %8302 = vmatprep.subr.bf16.mxu1 %v8301_v15 }
 0xd5d   : > { %v7101_v43 = vadd.f32 %v8118_v35, %v13882_v10  ;;  %v7095_v56 = vpop.f32.mrb[107].mxu0  ;;  %8304 = vmatpush3.bf16.xpose.msra.mxu1 %v8303_v55 }
 0xd5e   : > { %v7096_v58 = vadd.f32 %v13882_v10, %v7095_v56 }
 0xd5f   : > { %v7151_v29 = vadd.f32 %v7101_v43, %v13663_v19 }
 0xd60   : > { %v7150_v33 = vadd.f32 %v7096_v58, %v13670_v63 }
 0xd62   : > { %v8305_v48 = vpack.c.bf16 %v7151_v29, %v7150_v33 }
 0xd64   : > { %v8121_v40 = vpop.f32.mrb[108].mxu0  ;;  %8306 = vmatprep.subr.bf16.mxu1 %v8305_v48 }
 0xd65   : > { %v7111_v25 = vadd.f32 %v8121_v40, %v13882_v10  ;;  %v7105_v9 = vpop.f32.mrb[109].mxu0  ;;  %8308 = vmatpush3.bf16.xpose.msra.mxu1 %v8307_v37 }
 0xd66   : > { %v7106_v21 = vadd.f32 %v13882_v10, %v7105_v9 }
 0xd67   : > { %v7153_v24 = vadd.f32 %v7111_v25, %v13690_v42 }
 0xd68   : > { %v7152_v30 = vadd.f32 %v7106_v21, %v13698_v52 }
 0xd6a   : > { %v8309_v19 = vpack.c.bf16 %v7153_v24, %v7152_v30 }
 0xd6c   : > { %8310 = vmatprep.subr.bf16.mxu1 %v8309_v19 }
 0xd6d   : > { %v8124_v55 = vpop.f32.mrb[110].mxu0  ;;  %8312 = vmatpush3.bf16.xpose.msra.mxu1 %v8311_v26 }
 0xd6e   : > { %v7121_v63 = vadd.f32 %v8124_v55, %v13882_v10  ;;  %v7115_v47 = vpop.f32.mrb[111].mxu0 }
 0xd6f   : > { %v7116_v53 = vadd.f32 %v13882_v10, %v7115_v47 }
 0xd70   : > { %v7155_v41 = vadd.f32 %v7121_v63, %v13718_v38 }
 0xd71   : > { %v7154_v37 = vadd.f32 %v7116_v53, %v13726_v57 }
 0xd73   : > { %v8313_v6 = vpack.c.bf16 %v7155_v41, %v7154_v37 }
 0xd75   : > { %8314 = vmatprep.subr.bf16.mxu1 %v8313_v6 }
 0xd76   : > { %8316 = vmatpush3.bf16.xpose.msra.mxu1 %v8315_v2 }
 0xd7d   : > { %7754 = vmatmul.mubr.msk.f32.vlgmr.msra.gmra.mrb[112].mxu1 %vm9429_vm0, %v15848_v59 }
 0xe50   : > { %v7222_v42 = vpop.f32.mrb[112].mxu1 }
 0xe51   : > { %7227 = vst [vmem:[%s185_s23] sm:$0xff] %v7222_v42  ;;  %v7224_v52 = vpop.f32.mrb[113].mxu1 }
 0xe52   : > { %7228 = vst [vmem:[%s185_s23 + $0x8] sm:$0xff] %v7224_v52 }
 0xe53 PF: > { %s14_s12 = sadd.s32 1, %s9342_s12  }
 0xe54   : > { %p11_p3 = scmp.ge.s32.totalorder %s14_s12, 4  }
 0xe56   :  { %13 = sbr.rel (!%p11_p3) target bundleno = 1 (0x1), region = 67 }
 0xe5d   :  { %7250 = vsyncpa [#allocation3], 1 }
 0xe5e   :  { %7252 = vsyncpa [#allocation3 + $0x1], 1 }

</bundles_post_ra>
